<compile_context>
chip_gen: v7x
topology: tpu7x:2x2x1
jax: 0.10.0
libtpu: 0.0.40
codegen_flags: <defaults>
</compile_context>

<pallas_src>
import functools

import jax
import jax.numpy as jnp
from jax.experimental import pallas as pl
from jax.experimental.pallas import tpu as pltpu


def _round_up(x, m):
    return ((x + m - 1) // m) * m


def _cdiv(a, b):
    return -(-a // b)


def _pick_tile(m, max_tile=512):
    """Row-tile for the flattened M axis.

    - Big enough to amortize per-grid-step overhead (up to 512 rows).
    - If all of M fits in one tile but there is a reasonable amount of work,
      split into 2 steps so both v7x TensorCores get a block.
    - Tiny problems use a single full-extent block (always layout-legal).
    """
    if m <= max_tile:
        if m >= 64:
            return _round_up(_cdiv(m, 2), 8)
        return m
    return max_tile


# ---------------------------------------------------------------------------
# Pallas kernels
# ---------------------------------------------------------------------------
def _matmul_bias_act_kernel(x_ref, w_ref, b_ref, o_ref, *, relu):
    # x_ref: (tm, K) bf16   w_ref: (K, Cout) bf16   b_ref: (1, Cout) f32
    # o_ref: (tm, Cout) bf16 ; accumulate in fp32 on the MXU.
    acc = jnp.dot(x_ref[...], w_ref[...], preferred_element_type=jnp.float32)
    acc = acc + b_ref[...]
    if relu:
        acc = jnp.maximum(acc, 0.0)
    o_ref[...] = acc.astype(o_ref.dtype)


def _maxpool_kernel(x_ref, o_ref):
    # x_ref: (9, tm, C) -> max over the 9 window taps (elementwise on VPU)
    o_ref[...] = jnp.max(x_ref[...], axis=0)


# ---------------------------------------------------------------------------
# Wrappers (glue: padding, im2col, reshapes)
# ---------------------------------------------------------------------------
_VMEM_LIMIT = 48 << 20  # leave headroom on v7x's 64 MiB physical VMEM


def _matmul_bias_act(patches, wmat, bias, relu):
    m, k = patches.shape
    _, cout = wmat.shape
    tm = _pick_tile(m)
    grid_m = _cdiv(m, tm)
    bias2d = bias.reshape(1, cout).astype(jnp.float32)

    out = pl.pallas_call(
        functools.partial(_matmul_bias_act_kernel, relu=relu),
        out_shape=jax.ShapeDtypeStruct((m, cout), jnp.bfloat16),
        grid_spec=pltpu.PrefetchScalarGridSpec(
            num_scalar_prefetch=0,
            grid=(grid_m,),
            in_specs=[
                pl.BlockSpec((tm, k), lambda i: (i, 0)),
                pl.BlockSpec((k, cout), lambda i: (0, 0)),
                pl.BlockSpec((1, cout), lambda i: (0, 0)),
            ],
            out_specs=pl.BlockSpec((tm, cout), lambda i: (i, 0)),
        ),
        compiler_params=pltpu.CompilerParams(
            dimension_semantics=("parallel",),
            vmem_limit_bytes=_VMEM_LIMIT,
        ),
    )(patches, wmat, bias2d)
    return out


def conv2d_relu(x_nhwc, w_oihw, bias, *, stride, padding, relu=True):
    """Conv2d (NCHW-equivalent semantics) + bias + ReLU via im2col matmul."""
    n, h, w, cin = x_nhwc.shape
    cout, cin_w, kh_sz, kw_sz = w_oihw.shape
    assert cin == cin_w
    x_bf16 = x_nhwc.astype(jnp.bfloat16)
    xp = jnp.pad(x_bf16, ((0, 0), (padding, padding), (padding, padding), (0, 0)))
    hp, wp = h + 2 * padding, w + 2 * padding
    oh = (hp - kh_sz) // stride + 1
    ow = (wp - kw_sz) // stride + 1

    slices = []
    for kh in range(kh_sz):
        for kw in range(kw_sz):
            slices.append(
                xp[:,
                   kh:kh + stride * (oh - 1) + 1:stride,
                   kw:kw + stride * (ow - 1) + 1:stride,
                   :]
            )
    patches = jnp.stack(slices, axis=3)                      # (N, OH, OW, KH*KW, Cin)
    patches = patches.reshape(n * oh * ow, kh_sz * kw_sz * cin)
    wmat = jnp.transpose(w_oihw, (2, 3, 1, 0)).reshape(
        kh_sz * kw_sz * cin, cout).astype(jnp.bfloat16)

    out = _matmul_bias_act(patches, wmat, bias, relu)
    return out.reshape(n, oh, ow, cout)


def maxpool2d_3x3s2(x_nhwc):
    """MaxPool2d(kernel_size=3, stride=2) — PyTorch default (no padding, floor)."""
    n, h, w, c = x_nhwc.shape
    oh = (h - 3) // 2 + 1
    ow = (w - 3) // 2 + 1
    slices = []
    for kh in range(3):
        for kw in range(3):
            slices.append(
                x_nhwc[:, kh:kh + 2 * (oh - 1) + 1:2, kw:kw + 2 * (ow - 1) + 1:2, :]
            )
    stacked = jnp.stack(slices, axis=0).reshape(9, n * oh * ow, c)

    m = n * oh * ow
    tm = _pick_tile(m)
    grid_m = _cdiv(m, tm)

    out = pl.pallas_call(
        _maxpool_kernel,
        out_shape=jax.ShapeDtypeStruct((m, c), stacked.dtype),
        grid_spec=pltpu.PrefetchScalarGridSpec(
            num_scalar_prefetch=0,
            grid=(grid_m,),
            in_specs=[pl.BlockSpec((9, tm, c), lambda i: (0, i, 0))],
            out_specs=pl.BlockSpec((tm, c), lambda i: (i, 0)),
        ),
        compiler_params=pltpu.CompilerParams(
            dimension_semantics=("parallel",),
            vmem_limit_bytes=_VMEM_LIMIT,
        ),
    )(stacked)
    return out.reshape(n, oh, ow, c)


# ---------------------------------------------------------------------------
# AlexNet `features` definition + deterministic params
# ---------------------------------------------------------------------------
_CONV_CFGS = [
    # (cin, cout, kernel, stride, padding) — exactly torchvision AlexNet.features
    (3, 64, 11, 4, 2),
    (64, 192, 5, 1, 2),
    (192, 384, 3, 1, 1),
    (384, 256, 3, 1, 1),
    (256, 256, 3, 1, 1),
]


def init_params(key):
    # TODO(synk): pretrained=True weights are replaced by deterministic He-normal init.
    params = []
    for i, (cin, cout, k, _s, _p) in enumerate(_CONV_CFGS):
        kw_, kb_ = jax.random.split(jax.random.fold_in(key, i))
        fan_in = cin * k * k
        wgt = jax.random.normal(kw_, (cout, cin, k, k), jnp.float32) * (2.0 / fan_in) ** 0.5
        bias = jax.random.uniform(kb_, (cout,), jnp.float32, -0.01, 0.01)
        params.append((wgt, bias))
    return params


def alexnet_features(x_nchw, params):
    """Forward pass of CNN.forward: x = self.conv.features(x). In/out are NCHW fp32."""
    x = jnp.transpose(x_nchw, (0, 2, 3, 1))  # NCHW -> NHWC
    (w0, b0), (w1, b1), (w2, b2), (w3, b3), (w4, b4) = params

    x = conv2d_relu(x, w0, b0, stride=4, padding=2)   # Conv(3,64,11,4,2) + ReLU
    x = maxpool2d_3x3s2(x)                            # MaxPool(3,2)
    x = conv2d_relu(x, w1, b1, stride=1, padding=2)   # Conv(64,192,5,p2) + ReLU
    x = maxpool2d_3x3s2(x)                            # MaxPool(3,2)
    x = conv2d_relu(x, w2, b2, stride=1, padding=1)   # Conv(192,384,3,p1) + ReLU
    x = conv2d_relu(x, w3, b3, stride=1, padding=1)   # Conv(384,256,3,p1) + ReLU
    x = conv2d_relu(x, w4, b4, stride=1, padding=1)   # Conv(256,256,3,p1) + ReLU
    x = maxpool2d_3x3s2(x)                            # MaxPool(3,2)

    x = jnp.transpose(x, (0, 3, 1, 2))  # NHWC -> NCHW
    return x.astype(jnp.float32)


if __name__ == "__main__":
    key = jax.random.PRNGKey(0)
    kx, kp = jax.random.split(key)

    # Small but AlexNet-compatible input (channels must be 3): (N=2, C=3, 96, 96)
    x = jax.random.normal(kx, (2, 3, 96, 96), jnp.float32)
    params = init_params(kp)

    fwd = jax.jit(lambda inp: alexnet_features(inp, params))
    out = fwd(x)
    jax.block_until_ready(out)

    # 96 -> conv1 23 -> pool 11 -> pool 5 -> pool 2 ; final channels 256
    assert out.shape == (2, 256, 2, 2), out.shape
    assert out.dtype == jnp.float32
    print("KERNEL_OK")
</pallas_src>

<mosaic_0001>
module attributes {stable_mosaic.version = 11 : i64} {
  func.func @_matmul_bias_act_kernel(%arg0: i32, %arg1: memref<512x363xbf16, #tpu.memory_space<vmem>>, %arg2: memref<363x64xbf16, #tpu.memory_space<vmem>>, %arg3: memref<1x64xf32, #tpu.memory_space<vmem>>, %arg4: memref<512x64xbf16, #tpu.memory_space<vmem>>) attributes {dimension_semantics = [#tpu.dimension_semantics<parallel>], iteration_bounds = array<i64: 3>, scalar_prefetch = 0 : i64, scratch_operands = 0 : i64, tpu.core_type = #tpu.core_type<tc>, window_params = [{transform_indices = @transform_0, window_bounds = array<i64: 512, 363>}, {pipeline_mode = #tpu.pipeline_mode<synchronous>, transform_indices = @transform_1, window_bounds = array<i64: 363, 64>}, {pipeline_mode = #tpu.pipeline_mode<synchronous>, transform_indices = @transform_2, window_bounds = array<i64: 1, 64>}, {transform_indices = @transform_3, window_bounds = array<i64: 512, 64>}]} {
    %c0 = arith.constant 0 : index
    %c0_0 = arith.constant 0 : index
    %0 = vector.load %arg1[%c0, %c0_0] : memref<512x363xbf16, #tpu.memory_space<vmem>>, vector<512x363xbf16>
    %c0_1 = arith.constant 0 : index
    %c0_2 = arith.constant 0 : index
    %1 = vector.load %arg2[%c0_1, %c0_2] : memref<363x64xbf16, #tpu.memory_space<vmem>>, vector<363x64xbf16>
    %cst = arith.constant dense<0.000000e+00> : vector<512x64xf32>
    %2 = tpu.matmul %0, %1, %cst {dimension_numbers = #tpu.dot_dimension_numbers<[1], [0], [0], [1], [0, 0, 1, 1], [], []>} : vector<512x363xbf16>, vector<363x64xbf16>, vector<512x64xf32> -> vector<512x64xf32>
    %c0_3 = arith.constant 0 : index
    %c0_4 = arith.constant 0 : index
    %3 = vector.load %arg3[%c0_3, %c0_4] : memref<1x64xf32, #tpu.memory_space<vmem>>, vector<1x64xf32>
    %4 = vector.broadcast %3 : vector<1x64xf32> to vector<512x64xf32>
    %5 = arith.addf %2, %4 : vector<512x64xf32>
    %cst_5 = arith.constant 0.000000e+00 : f32
    %6 = vector.broadcast %cst_5 : f32 to vector<512x64xf32>
    %7 = arith.maximumf %5, %6 : vector<512x64xf32>
    %8 = arith.truncf %7 : vector<512x64xf32> to vector<512x64xbf16>
    %c0_6 = arith.constant 0 : index
    %c0_7 = arith.constant 0 : index
    %9 = vector.load %arg4[%c0_6, %c0_7] : memref<512x64xbf16, #tpu.memory_space<vmem>>, vector<512x64xbf16>
    tpu.vector_store %arg4[%c0_6, %c0_7], %8 {strides = array<i32>} : memref<512x64xbf16, #tpu.memory_space<vmem>>, vector<512x64xbf16>,
    return
  }
  func.func @transform_0(%arg0: i32) -> (i32, i32) {
    %c0_i32 = arith.constant 0 : i32
    %c0_i32_0 = arith.constant 0 : i32
    return %arg0, %c0_i32 : i32, i32
  }
  func.func @transform_1(%arg0: i32) -> (i32, i32) {
    %c0_i32 = arith.constant 0 : i32
    %c0_i32_0 = arith.constant 0 : i32
    %c0_i32_1 = arith.constant 0 : i32
    return %c0_i32, %c0_i32_0 : i32, i32
  }
  func.func @transform_2(%arg0: i32) -> (i32, i32) {
    %c0_i32 = arith.constant 0 : i32
    %c0_i32_0 = arith.constant 0 : i32
    %c0_i32_1 = arith.constant 0 : i32
    return %c0_i32, %c0_i32_0 : i32, i32
  }
  func.func @transform_3(%arg0: i32) -> (i32, i32) {
    %c0_i32 = arith.constant 0 : i32
    %c0_i32_0 = arith.constant 0 : i32
    return %arg0, %c0_i32 : i32, i32
  }
}

module attributes {stable_mosaic.version = 11 : i64} {
  func.func @_maxpool_kernel(%arg0: i32, %arg1: memref<9x128x64xbf16, #tpu.memory_space<vmem>>, %arg2: memref<128x64xbf16, #tpu.memory_space<vmem>>) attributes {dimension_semantics = [#tpu.dimension_semantics<parallel>], iteration_bounds = array<i64: 2>, scalar_prefetch = 0 : i64, scratch_operands = 0 : i64, tpu.core_type = #tpu.core_type<tc>, window_params = [{transform_indices = @transform_0, window_bounds = array<i64: 9, 128, 64>}, {transform_indices = @transform_1, window_bounds = array<i64: 128, 64>}]} {
    %c0 = arith.constant 0 : index
    %c0_0 = arith.constant 0 : index
    %c0_1 = arith.constant 0 : index
    %0 = vector.load %arg1[%c0, %c0_0, %c0_1] : memref<9x128x64xbf16, #tpu.memory_space<vmem>>, vector<9x128x64xbf16>
    %cst = arith.constant dense<0xFF80> : vector<128x64xbf16>
    %1 = vector.multi_reduction <maximumf>, %0, %cst [0] : vector<9x128x64xbf16> to vector<128x64xbf16>
    %c0_2 = arith.constant 0 : index
    %c0_3 = arith.constant 0 : index
    %2 = vector.load %arg2[%c0_2, %c0_3] : memref<128x64xbf16, #tpu.memory_space<vmem>>, vector<128x64xbf16>
    tpu.vector_store %arg2[%c0_2, %c0_3], %1 {strides = array<i32>} : memref<128x64xbf16, #tpu.memory_space<vmem>>, vector<128x64xbf16>,
    return
  }
  func.func @transform_0(%arg0: i32) -> (i32, i32, i32) {
    %c0_i32 = arith.constant 0 : i32
    %c0_i32_0 = arith.constant 0 : i32
    %c0_i32_1 = arith.constant 0 : i32
    return %c0_i32, %arg0, %c0_i32_0 : i32, i32, i32
  }
  func.func @transform_1(%arg0: i32) -> (i32, i32) {
    %c0_i32 = arith.constant 0 : i32
    %c0_i32_0 = arith.constant 0 : i32
    return %arg0, %c0_i32 : i32, i32
  }
}

module attributes {stable_mosaic.version = 11 : i64} {
  func.func @_matmul_bias_act_kernel(%arg0: i32, %arg1: memref<128x1600xbf16, #tpu.memory_space<vmem>>, %arg2: memref<1600x192xbf16, #tpu.memory_space<vmem>>, %arg3: memref<1x192xf32, #tpu.memory_space<vmem>>, %arg4: memref<128x192xbf16, #tpu.memory_space<vmem>>) attributes {dimension_semantics = [#tpu.dimension_semantics<parallel>], iteration_bounds = array<i64: 2>, scalar_prefetch = 0 : i64, scratch_operands = 0 : i64, tpu.core_type = #tpu.core_type<tc>, window_params = [{transform_indices = @transform_0, window_bounds = array<i64: 128, 1600>}, {pipeline_mode = #tpu.pipeline_mode<synchronous>, transform_indices = @transform_1, window_bounds = array<i64: 1600, 192>}, {pipeline_mode = #tpu.pipeline_mode<synchronous>, transform_indices = @transform_2, window_bounds = array<i64: 1, 192>}, {transform_indices = @transform_3, window_bounds = array<i64: 128, 192>}]} {
    %c0 = arith.constant 0 : index
    %c0_0 = arith.constant 0 : index
    %0 = vector.load %arg1[%c0, %c0_0] : memref<128x1600xbf16, #tpu.memory_space<vmem>>, vector<128x1600xbf16>
    %c0_1 = arith.constant 0 : index
    %c0_2 = arith.constant 0 : index
    %1 = vector.load %arg2[%c0_1, %c0_2] : memref<1600x192xbf16, #tpu.memory_space<vmem>>, vector<1600x192xbf16>
    %cst = arith.constant dense<0.000000e+00> : vector<128x192xf32>
    %2 = tpu.matmul %0, %1, %cst {dimension_numbers = #tpu.dot_dimension_numbers<[1], [0], [0], [1], [0, 0, 1, 1], [], []>} : vector<128x1600xbf16>, vector<1600x192xbf16>, vector<128x192xf32> -> vector<128x192xf32>
    %c0_3 = arith.constant 0 : index
    %c0_4 = arith.constant 0 : index
    %3 = vector.load %arg3[%c0_3, %c0_4] : memref<1x192xf32, #tpu.memory_space<vmem>>, vector<1x192xf32>
    %4 = vector.broadcast %3 : vector<1x192xf32> to vector<128x192xf32>
    %5 = arith.addf %2, %4 : vector<128x192xf32>
    %cst_5 = arith.constant 0.000000e+00 : f32
    %6 = vector.broadcast %cst_5 : f32 to vector<128x192xf32>
    %7 = arith.maximumf %5, %6 : vector<128x192xf32>
    %8 = arith.truncf %7 : vector<128x192xf32> to vector<128x192xbf16>
    %c0_6 = arith.constant 0 : index
    %c0_7 = arith.constant 0 : index
    %9 = vector.load %arg4[%c0_6, %c0_7] : memref<128x192xbf16, #tpu.memory_space<vmem>>, vector<128x192xbf16>
    tpu.vector_store %arg4[%c0_6, %c0_7], %8 {strides = array<i32>} : memref<128x192xbf16, #tpu.memory_space<vmem>>, vector<128x192xbf16>,
    return
  }
  func.func @transform_0(%arg0: i32) -> (i32, i32) {
    %c0_i32 = arith.constant 0 : i32
    %c0_i32_0 = arith.constant 0 : i32
    return %arg0, %c0_i32 : i32, i32
  }
  func.func @transform_1(%arg0: i32) -> (i32, i32) {
    %c0_i32 = arith.constant 0 : i32
    %c0_i32_0 = arith.constant 0 : i32
    %c0_i32_1 = arith.constant 0 : i32
    return %c0_i32, %c0_i32_0 : i32, i32
  }
  func.func @transform_2(%arg0: i32) -> (i32, i32) {
    %c0_i32 = arith.constant 0 : i32
    %c0_i32_0 = arith.constant 0 : i32
    %c0_i32_1 = arith.constant 0 : i32
    return %c0_i32, %c0_i32_0 : i32, i32
  }
  func.func @transform_3(%arg0: i32) -> (i32, i32) {
    %c0_i32 = arith.constant 0 : i32
    %c0_i32_0 = arith.constant 0 : i32
    return %arg0, %c0_i32 : i32, i32
  }
}

module attributes {stable_mosaic.version = 11 : i64} {
  func.func @_maxpool_kernel(%arg0: i32, %arg1: memref<9x50x192xbf16, #tpu.memory_space<vmem>>, %arg2: memref<50x192xbf16, #tpu.memory_space<vmem>>) attributes {dimension_semantics = [#tpu.dimension_semantics<parallel>], iteration_bounds = array<i64: 1>, scalar_prefetch = 0 : i64, scratch_operands = 0 : i64, tpu.core_type = #tpu.core_type<tc>, window_params = [{transform_indices = @transform_0, window_bounds = array<i64: 9, 50, 192>}, {transform_indices = @transform_1, window_bounds = array<i64: 50, 192>}]} {
    %c0 = arith.constant 0 : index
    %c0_0 = arith.constant 0 : index
    %c0_1 = arith.constant 0 : index
    %0 = vector.load %arg1[%c0, %c0_0, %c0_1] : memref<9x50x192xbf16, #tpu.memory_space<vmem>>, vector<9x50x192xbf16>
    %cst = arith.constant dense<0xFF80> : vector<50x192xbf16>
    %1 = vector.multi_reduction <maximumf>, %0, %cst [0] : vector<9x50x192xbf16> to vector<50x192xbf16>
    %c0_2 = arith.constant 0 : index
    %c0_3 = arith.constant 0 : index
    %2 = vector.load %arg2[%c0_2, %c0_3] : memref<50x192xbf16, #tpu.memory_space<vmem>>, vector<50x192xbf16>
    tpu.vector_store %arg2[%c0_2, %c0_3], %1 {strides = array<i32>} : memref<50x192xbf16, #tpu.memory_space<vmem>>, vector<50x192xbf16>,
    return
  }
  func.func @transform_0(%arg0: i32) -> (i32, i32, i32) {
    %c0_i32 = arith.constant 0 : i32
    %c0_i32_0 = arith.constant 0 : i32
    %c0_i32_1 = arith.constant 0 : i32
    return %c0_i32, %arg0, %c0_i32_0 : i32, i32, i32
  }
  func.func @transform_1(%arg0: i32) -> (i32, i32) {
    %c0_i32 = arith.constant 0 : i32
    %c0_i32_0 = arith.constant 0 : i32
    return %arg0, %c0_i32 : i32, i32
  }
}

module attributes {stable_mosaic.version = 11 : i64} {
  func.func @_matmul_bias_act_kernel(%arg0: i32, %arg1: memref<50x1728xbf16, #tpu.memory_space<vmem>>, %arg2: memref<1728x384xbf16, #tpu.memory_space<vmem>>, %arg3: memref<1x384xf32, #tpu.memory_space<vmem>>, %arg4: memref<50x384xbf16, #tpu.memory_space<vmem>>) attributes {dimension_semantics = [#tpu.dimension_semantics<parallel>], iteration_bounds = array<i64: 1>, scalar_prefetch = 0 : i64, scratch_operands = 0 : i64, tpu.core_type = #tpu.core_type<tc>, window_params = [{transform_indices = @transform_0, window_bounds = array<i64: 50, 1728>}, {pipeline_mode = #tpu.pipeline_mode<synchronous>, transform_indices = @transform_1, window_bounds = array<i64: 1728, 384>}, {pipeline_mode = #tpu.pipeline_mode<synchronous>, transform_indices = @transform_2, window_bounds = array<i64: 1, 384>}, {transform_indices = @transform_3, window_bounds = array<i64: 50, 384>}]} {
    %c0 = arith.constant 0 : index
    %c0_0 = arith.constant 0 : index
    %0 = vector.load %arg1[%c0, %c0_0] : memref<50x1728xbf16, #tpu.memory_space<vmem>>, vector<50x1728xbf16>
    %c0_1 = arith.constant 0 : index
    %c0_2 = arith.constant 0 : index
    %1 = vector.load %arg2[%c0_1, %c0_2] : memref<1728x384xbf16, #tpu.memory_space<vmem>>, vector<1728x384xbf16>
    %cst = arith.constant dense<0.000000e+00> : vector<50x384xf32>
    %2 = tpu.matmul %0, %1, %cst {dimension_numbers = #tpu.dot_dimension_numbers<[1], [0], [0], [1], [0, 0, 1, 1], [], []>} : vector<50x1728xbf16>, vector<1728x384xbf16>, vector<50x384xf32> -> vector<50x384xf32>
    %c0_3 = arith.constant 0 : index
    %c0_4 = arith.constant 0 : index
    %3 = vector.load %arg3[%c0_3, %c0_4] : memref<1x384xf32, #tpu.memory_space<vmem>>, vector<1x384xf32>
    %4 = vector.broadcast %3 : vector<1x384xf32> to vector<50x384xf32>
    %5 = arith.addf %2, %4 : vector<50x384xf32>
    %cst_5 = arith.constant 0.000000e+00 : f32
    %6 = vector.broadcast %cst_5 : f32 to vector<50x384xf32>
    %7 = arith.maximumf %5, %6 : vector<50x384xf32>
    %8 = arith.truncf %7 : vector<50x384xf32> to vector<50x384xbf16>
    %c0_6 = arith.constant 0 : index
    %c0_7 = arith.constant 0 : index
    %9 = vector.load %arg4[%c0_6, %c0_7] : memref<50x384xbf16, #tpu.memory_space<vmem>>, vector<50x384xbf16>
    tpu.vector_store %arg4[%c0_6, %c0_7], %8 {strides = array<i32>} : memref<50x384xbf16, #tpu.memory_space<vmem>>, vector<50x384xbf16>,
    return
  }
  func.func @transform_0(%arg0: i32) -> (i32, i32) {
    %c0_i32 = arith.constant 0 : i32
    %c0_i32_0 = arith.constant 0 : i32
    return %arg0, %c0_i32 : i32, i32
  }
  func.func @transform_1(%arg0: i32) -> (i32, i32) {
    %c0_i32 = arith.constant 0 : i32
    %c0_i32_0 = arith.constant 0 : i32
    %c0_i32_1 = arith.constant 0 : i32
    return %c0_i32, %c0_i32_0 : i32, i32
  }
  func.func @transform_2(%arg0: i32) -> (i32, i32) {
    %c0_i32 = arith.constant 0 : i32
    %c0_i32_0 = arith.constant 0 : i32
    %c0_i32_1 = arith.constant 0 : i32
    return %c0_i32, %c0_i32_0 : i32, i32
  }
  func.func @transform_3(%arg0: i32) -> (i32, i32) {
    %c0_i32 = arith.constant 0 : i32
    %c0_i32_0 = arith.constant 0 : i32
    return %arg0, %c0_i32 : i32, i32
  }
}

module attributes {stable_mosaic.version = 11 : i64} {
  func.func @_matmul_bias_act_kernel(%arg0: i32, %arg1: memref<50x3456xbf16, #tpu.memory_space<vmem>>, %arg2: memref<3456x256xbf16, #tpu.memory_space<vmem>>, %arg3: memref<1x256xf32, #tpu.memory_space<vmem>>, %arg4: memref<50x256xbf16, #tpu.memory_space<vmem>>) attributes {dimension_semantics = [#tpu.dimension_semantics<parallel>], iteration_bounds = array<i64: 1>, scalar_prefetch = 0 : i64, scratch_operands = 0 : i64, tpu.core_type = #tpu.core_type<tc>, window_params = [{transform_indices = @transform_0, window_bounds = array<i64: 50, 3456>}, {pipeline_mode = #tpu.pipeline_mode<synchronous>, transform_indices = @transform_1, window_bounds = array<i64: 3456, 256>}, {pipeline_mode = #tpu.pipeline_mode<synchronous>, transform_indices = @transform_2, window_bounds = array<i64: 1, 256>}, {transform_indices = @transform_3, window_bounds = array<i64: 50, 256>}]} {
    %c0 = arith.constant 0 : index
    %c0_0 = arith.constant 0 : index
    %0 = vector.load %arg1[%c0, %c0_0] : memref<50x3456xbf16, #tpu.memory_space<vmem>>, vector<50x3456xbf16>
    %c0_1 = arith.constant 0 : index
    %c0_2 = arith.constant 0 : index
    %1 = vector.load %arg2[%c0_1, %c0_2] : memref<3456x256xbf16, #tpu.memory_space<vmem>>, vector<3456x256xbf16>
    %cst = arith.constant dense<0.000000e+00> : vector<50x256xf32>
    %2 = tpu.matmul %0, %1, %cst {dimension_numbers = #tpu.dot_dimension_numbers<[1], [0], [0], [1], [0, 0, 1, 1], [], []>} : vector<50x3456xbf16>, vector<3456x256xbf16>, vector<50x256xf32> -> vector<50x256xf32>
    %c0_3 = arith.constant 0 : index
    %c0_4 = arith.constant 0 : index
    %3 = vector.load %arg3[%c0_3, %c0_4] : memref<1x256xf32, #tpu.memory_space<vmem>>, vector<1x256xf32>
    %4 = vector.broadcast %3 : vector<1x256xf32> to vector<50x256xf32>
    %5 = arith.addf %2, %4 : vector<50x256xf32>
    %cst_5 = arith.constant 0.000000e+00 : f32
    %6 = vector.broadcast %cst_5 : f32 to vector<50x256xf32>
    %7 = arith.maximumf %5, %6 : vector<50x256xf32>
    %8 = arith.truncf %7 : vector<50x256xf32> to vector<50x256xbf16>
    %c0_6 = arith.constant 0 : index
    %c0_7 = arith.constant 0 : index
    %9 = vector.load %arg4[%c0_6, %c0_7] : memref<50x256xbf16, #tpu.memory_space<vmem>>, vector<50x256xbf16>
    tpu.vector_store %arg4[%c0_6, %c0_7], %8 {strides = array<i32>} : memref<50x256xbf16, #tpu.memory_space<vmem>>, vector<50x256xbf16>,
    return
  }
  func.func @transform_0(%arg0: i32) -> (i32, i32) {
    %c0_i32 = arith.constant 0 : i32
    %c0_i32_0 = arith.constant 0 : i32
    return %arg0, %c0_i32 : i32, i32
  }
  func.func @transform_1(%arg0: i32) -> (i32, i32) {
    %c0_i32 = arith.constant 0 : i32
    %c0_i32_0 = arith.constant 0 : i32
    %c0_i32_1 = arith.constant 0 : i32
    return %c0_i32, %c0_i32_0 : i32, i32
  }
  func.func @transform_2(%arg0: i32) -> (i32, i32) {
    %c0_i32 = arith.constant 0 : i32
    %c0_i32_0 = arith.constant 0 : i32
    %c0_i32_1 = arith.constant 0 : i32
    return %c0_i32, %c0_i32_0 : i32, i32
  }
  func.func @transform_3(%arg0: i32) -> (i32, i32) {
    %c0_i32 = arith.constant 0 : i32
    %c0_i32_0 = arith.constant 0 : i32
    return %arg0, %c0_i32 : i32, i32
  }
}

module attributes {stable_mosaic.version = 11 : i64} {
  func.func @_matmul_bias_act_kernel(%arg0: i32, %arg1: memref<50x2304xbf16, #tpu.memory_space<vmem>>, %arg2: memref<2304x256xbf16, #tpu.memory_space<vmem>>, %arg3: memref<1x256xf32, #tpu.memory_space<vmem>>, %arg4: memref<50x256xbf16, #tpu.memory_space<vmem>>) attributes {dimension_semantics = [#tpu.dimension_semantics<parallel>], iteration_bounds = array<i64: 1>, scalar_prefetch = 0 : i64, scratch_operands = 0 : i64, tpu.core_type = #tpu.core_type<tc>, window_params = [{transform_indices = @transform_0, window_bounds = array<i64: 50, 2304>}, {pipeline_mode = #tpu.pipeline_mode<synchronous>, transform_indices = @transform_1, window_bounds = array<i64: 2304, 256>}, {pipeline_mode = #tpu.pipeline_mode<synchronous>, transform_indices = @transform_2, window_bounds = array<i64: 1, 256>}, {transform_indices = @transform_3, window_bounds = array<i64: 50, 256>}]} {
    %c0 = arith.constant 0 : index
    %c0_0 = arith.constant 0 : index
    %0 = vector.load %arg1[%c0, %c0_0] : memref<50x2304xbf16, #tpu.memory_space<vmem>>, vector<50x2304xbf16>
    %c0_1 = arith.constant 0 : index
    %c0_2 = arith.constant 0 : index
    %1 = vector.load %arg2[%c0_1, %c0_2] : memref<2304x256xbf16, #tpu.memory_space<vmem>>, vector<2304x256xbf16>
    %cst = arith.constant dense<0.000000e+00> : vector<50x256xf32>
    %2 = tpu.matmul %0, %1, %cst {dimension_numbers = #tpu.dot_dimension_numbers<[1], [0], [0], [1], [0, 0, 1, 1], [], []>} : vector<50x2304xbf16>, vector<2304x256xbf16>, vector<50x256xf32> -> vector<50x256xf32>
    %c0_3 = arith.constant 0 : index
    %c0_4 = arith.constant 0 : index
    %3 = vector.load %arg3[%c0_3, %c0_4] : memref<1x256xf32, #tpu.memory_space<vmem>>, vector<1x256xf32>
    %4 = vector.broadcast %3 : vector<1x256xf32> to vector<50x256xf32>
    %5 = arith.addf %2, %4 : vector<50x256xf32>
    %cst_5 = arith.constant 0.000000e+00 : f32
    %6 = vector.broadcast %cst_5 : f32 to vector<50x256xf32>
    %7 = arith.maximumf %5, %6 : vector<50x256xf32>
    %8 = arith.truncf %7 : vector<50x256xf32> to vector<50x256xbf16>
    %c0_6 = arith.constant 0 : index
    %c0_7 = arith.constant 0 : index
    %9 = vector.load %arg4[%c0_6, %c0_7] : memref<50x256xbf16, #tpu.memory_space<vmem>>, vector<50x256xbf16>
    tpu.vector_store %arg4[%c0_6, %c0_7], %8 {strides = array<i32>} : memref<50x256xbf16, #tpu.memory_space<vmem>>, vector<50x256xbf16>,
    return
  }
  func.func @transform_0(%arg0: i32) -> (i32, i32) {
    %c0_i32 = arith.constant 0 : i32
    %c0_i32_0 = arith.constant 0 : i32
    return %arg0, %c0_i32 : i32, i32
  }
  func.func @transform_1(%arg0: i32) -> (i32, i32) {
    %c0_i32 = arith.constant 0 : i32
    %c0_i32_0 = arith.constant 0 : i32
    %c0_i32_1 = arith.constant 0 : i32
    return %c0_i32, %c0_i32_0 : i32, i32
  }
  func.func @transform_2(%arg0: i32) -> (i32, i32) {
    %c0_i32 = arith.constant 0 : i32
    %c0_i32_0 = arith.constant 0 : i32
    %c0_i32_1 = arith.constant 0 : i32
    return %c0_i32, %c0_i32_0 : i32, i32
  }
  func.func @transform_3(%arg0: i32) -> (i32, i32) {
    %c0_i32 = arith.constant 0 : i32
    %c0_i32_0 = arith.constant 0 : i32
    return %arg0, %c0_i32 : i32, i32
  }
}

module attributes {stable_mosaic.version = 11 : i64} {
  func.func @_maxpool_kernel(%arg0: i32, %arg1: memref<9x8x256xbf16, #tpu.memory_space<vmem>>, %arg2: memref<8x256xbf16, #tpu.memory_space<vmem>>) attributes {dimension_semantics = [#tpu.dimension_semantics<parallel>], iteration_bounds = array<i64: 1>, scalar_prefetch = 0 : i64, scratch_operands = 0 : i64, tpu.core_type = #tpu.core_type<tc>, window_params = [{transform_indices = @transform_0, window_bounds = array<i64: 9, 8, 256>}, {transform_indices = @transform_1, window_bounds = array<i64: 8, 256>}]} {
    %c0 = arith.constant 0 : index
    %c0_0 = arith.constant 0 : index
    %c0_1 = arith.constant 0 : index
    %0 = vector.load %arg1[%c0, %c0_0, %c0_1] : memref<9x8x256xbf16, #tpu.memory_space<vmem>>, vector<9x8x256xbf16>
    %cst = arith.constant dense<0xFF80> : vector<8x256xbf16>
    %1 = vector.multi_reduction <maximumf>, %0, %cst [0] : vector<9x8x256xbf16> to vector<8x256xbf16>
    %c0_2 = arith.constant 0 : index
    %c0_3 = arith.constant 0 : index
    %2 = vector.load %arg2[%c0_2, %c0_3] : memref<8x256xbf16, #tpu.memory_space<vmem>>, vector<8x256xbf16>
    tpu.vector_store %arg2[%c0_2, %c0_3], %1 {strides = array<i32>} : memref<8x256xbf16, #tpu.memory_space<vmem>>, vector<8x256xbf16>,
    return
  }
  func.func @transform_0(%arg0: i32) -> (i32, i32, i32) {
    %c0_i32 = arith.constant 0 : i32
    %c0_i32_0 = arith.constant 0 : i32
    %c0_i32_1 = arith.constant 0 : i32
    return %c0_i32, %arg0, %c0_i32_0 : i32, i32, i32
  }
  func.func @transform_1(%arg0: i32) -> (i32, i32) {
    %c0_i32 = arith.constant 0 : i32
    %c0_i32_0 = arith.constant 0 : i32
    return %arg0, %c0_i32 : i32, i32
  }
}

</mosaic_0001>

<bundles_post_ra>
// kernel: _lambda_.8
= control target key start
LH: loop header
LB: loop body
LE: loop exit
PB: predicated region body
PF: predicated region fallthrough
CT: control target
= control target key end

     0   :  { %s3340_s12 = smov 0   ;;  %s3342_s13 = smov 0   ;;  %s4133_s0 = inlined_call_operand.vmem [shape: bf16[1058,363], index: 0, kind: input, shape index: {}]   ;;  %s4134_s1 = inlined_call_operand.vmem [shape: bf16[363,64], index: 1, kind: input, shape index: {}]   ;;  %s4135_s2 = inlined_call_operand.vmem [shape: f32[1,64], index: 2, kind: input, shape index: {}]   ;;  %s4136_s3 = inlined_call_operand.vmem [shape: bf16[1058,64], index: 3, kind: output, shape index: {}]  }
   0x1   :  { %s3344_s14 = smov 0  }
   0x2 LB: > { %s3353_s15 = sadd.s32 4294967295, %s3284_s14   ;;  %s3355_s16 = sadd.s32 1, %s3284_s14   ;;  %s3284_s14 = sphi %s3344_s14, %s4143_s14   ;;  %s3280_s13 = sphi %s3342_s13, %s4142_s13   ;;  %s3276_s12 = sphi %s3340_s12, %s4141_s12  }
   0x3   : > { %s85_s17 = ssub.s32 %s3284_s14, %s3355_s16  ;;  %s88_s18 = sadd.s32 1, %s3280_s13 }
   0x4   : > { %p86_p0 = scmp.eq.s32.totalorder %s85_s17, 0  ;;  %p98_p1 = scmp.ne.s32.totalorder %s3280_s13, %s3276_s12 }
   0x5   : > { %p99_p2 = scmp.eq.s32.totalorder %s3353_s15, 2  ;;  %p2535_p3 = scmp.ge.s32.totalorder %s3284_s14, 1 }
   0x6   : > { %s3363_s19 = scalar_select %p86_p0, %s3280_s13, %s88_s18  }
   0x7   : > { %p3365_p4 = por %p99_p2, %p98_p1  ;;  %p149_p5 = scmp.lt.s32.totalorder %s3284_s14, 4 }
   0x9   : > { %p150_p6 = pnand %p2535_p3, %p149_p5 }
   0xa   : > { %v3079_v0 = vld [vmem:[%s4134_s1] sm:$0xff] (!%p150_p6)   ;;  %v3318_v1 = vmov (!%p150_p6), 0   ;;  %s3375_s23 = sshll.u32 (!%p150_p6), %s3353_s15, 6  ;;  %v3080_v2 = vld [vmem:[%s4134_s1 + $0x8] sm:$0xff] (!%p150_p6)   ;;  %v3081_v3 = vld [vmem:[%s4134_s1 + $0x10] sm:$0xff] (!%p150_p6)   ;;  %vm1096_vm0 = vcmask (!%p150_p6), 1044480  }
   0xb   : > { %153 = sbr.rel (%p150_p6) target bundleno = 573 (0x23d), region = 32  ;;  %1103 = vmatprep.subr.bf16.mxu0 (!%p150_p6), %v3318_v1  ;;  %2956 = vmatprep.subr.bf16.mxu1 (!%p150_p6), %v3318_v1  ;;  %p184_p7 = scmp.lt.s32.totalorder (!%p150_p6), %s3375_s23, 132  ;;  %v3082_v4 = vld [vmem:[%s4134_s1 + $0x18] sm:$0xff] (!%p150_p6)   ;;  %v3083_v5 = vld [vmem:[%s4134_s1 + $0x20] sm:$0xff] (!%p150_p6)   ;;  %v3084_v7 = vld [vmem:[%s4134_s1 + $0x28] sm:$0xff] (!%p150_p6)   ;;  %vm1097_vm1 = vcmask (!%p150_p6), 1045504  }
   0xc   : > { %1104 = vmatpush1.bf16.msra.mxu0 (!%p150_p6), %v3079_v0  ;;  %2972 = vmatpush1.bf16.msra.mxu1 (!%p150_p6), %v3079_v0  ;;  %v3085_v9 = vld [vmem:[%s4134_s1 + $0x30] sm:$0xff] (!%p150_p6)   ;;  %v3086_v10 = vld [vmem:[%s4134_s1 + $0x38] sm:$0xff] (!%p150_p6)   ;;  %v3087_v11 = vld [vmem:[%s4134_s1 + $0x40] sm:$0xff] (!%p150_p6)   ;;  %v3319_v36 = vmov (!%p150_p6), 65535   ;;  %vm999_vm2 = vcmask (!%p150_p6), 875520   ;;  %s175_s8 = sand.u32 (!%p150_p6), 1, %s3276_s12  }
   0xd   : > { %1105 = vmatprep.subr.bf16.mxu0 (!%p150_p6), %v3318_v1  ;;  %2957 = vmatprep.subr.bf16.mxu1 (!%p150_p6), %v3318_v1  ;;  %v3088_v12 = vld [vmem:[%s4134_s1 + $0x48] sm:$0xff] (!%p150_p6)   ;;  %v3089_v13 = vld [vmem:[%s4134_s1 + $0x50] sm:$0xff] (!%p150_p6)   ;;  %v3090_v14 = vld [vmem:[%s4134_s1 + $0x58] sm:$0xff] (!%p150_p6)   ;;  %v1098_v37 = vsel (!%p150_p6), %vm1096_vm0, 4294967295, %v3319_v36  ;;  %s2536_s10 = sshll.u32 (!%p150_p6), %s175_s8, 8  ;;  %vm2001_vm3 = vcmask (!%p150_p6), 519168  }
   0xe   : > { %v3091_v15 = vld [vmem:[%s4134_s1 + $0x60] sm:$0xff] (!%p150_p6)   ;;  %v3092_v16 = vld [vmem:[%s4134_s1 + $0x68] sm:$0xff] (!%p150_p6)   ;;  %v3093_v17 = vld [vmem:[%s4134_s1 + $0x70] sm:$0xff] (!%p150_p6)   ;;  %v1099_v40 = vsel (!%p150_p6), %vm1097_vm1, %v1098_v37, 0  ;;  %s3686_s12 = scalar_lea.vmem (!%p150_p6), [#allocation2], %s2536_s10  }
   0xf   : > { %v3094_v18 = vld [vmem:[%s4134_s1 + $0x78] sm:$0xff] (!%p150_p6)   ;;  %v3101_v20 = vld [vmem:[%s4134_s1 + $0x80] sm:$0xff] (!%p150_p6)   ;;  %v3108_v24 = vld [vmem:[%s4134_s1 + $0x88] sm:$0xff] (!%p150_p6)  }
  0x10   : > { %1106 = vmatpush1.bf16.msra.mxu0 (!%p150_p6), %v3080_v2  ;;  %2973 = vmatpush1.bf16.msra.mxu1 (!%p150_p6), %v3080_v2  ;;  %v3115_v25 = vld [vmem:[%s4134_s1 + $0x90] sm:$0xff] (!%p150_p6)   ;;  %v3122_v30 = vld [vmem:[%s4134_s1 + $0x98] sm:$0xff] (!%p150_p6)   ;;  %v3129_v33 = vld [vmem:[%s4134_s1 + $0xa0] sm:$0xff] (!%p150_p6)  }
  0x11   : > { %1107 = vmatprep.subr.bf16.mxu0 (!%p150_p6), %v3318_v1  ;;  %2958 = vmatprep.subr.bf16.mxu1 (!%p150_p6), %v3318_v1  ;;  %v3136_v38 = vld [vmem:[%s4134_s1 + $0xa8] sm:$0xff] (!%p150_p6)   ;;  %v3147_v39 = vld [vmem:[%s4134_s1 + $0xb0] sm:$0x3f] (!%p150_p6)  }
  0x12   : > { %s185_s28 = scalar_select %p184_p7, %s3375_s23, 132  ;;  %v1101_v45 = vand.u32 %v3147_v39, %v1099_v40 }
  0x13   : > { %s2074_s11 = ssub.s32 (%p3365_p4), 133, %s3375_s23  ;;  %s2836_s14 = sshll.u32 (%p3365_p4), %s3353_s15, 8 }
  0x14   : > { %1108 = vmatpush1.bf16.msra.mxu0 %v3081_v3  ;;  %2974 = vmatpush1.bf16.msra.mxu1 %v3081_v3  ;;  %s2988_s4 = smul.u32 12, %s185_s28  ;;  %p2075_p8 = scmp.lt.s32.totalorder (%p3365_p4), %s2074_s11, 64 }
  0x15   : > { %1109 = vmatprep.subr.bf16.mxu0 %v3318_v1  ;;  %2959 = vmatprep.subr.bf16.mxu1 %v3318_v1  ;;  %s3941_s21 = scalar_lea.vmem (%p3365_p4), %s4136_s3, %s2836_s14  }
  0x16   : > { %s3400_s9 = scalar_lea.vmem %s4133_s0, %s2988_s4 }
  0x17   : > { %v3097_v6 = vld [vmem:[%s3400_s9 + $0x4] ss:$12 sps:$4 sm:$0xff]   ;;  %v3095_v19 = vld [vmem:[%s3400_s9] ss:$12 sps:$4 sm:$0xff]   ;;  %v3102_v22 = vld [vmem:[%s3400_s9 + $0x1c] ss:$12 sps:$4 sm:$0xff]  }
  0x18   : > { %1110 = vmatpush1.bf16.msra.mxu0 %v3082_v4  ;;  %2975 = vmatpush1.bf16.msra.mxu1 %v3082_v4  ;;  %v3100_v8 = vld [vmem:[%s3400_s9 + $0x244] ss:$12 sps:$4 sm:$0xff]   ;;  %v3098_v21 = vld [vmem:[%s3400_s9 + $0x240] ss:$12 sps:$4 sm:$0xff]   ;;  %v3104_v23 = vld [vmem:[%s3400_s9 + $0x25c] ss:$12 sps:$4 sm:$0xff]  }
  0x19   : > { %1111 = vmatprep.subr.bf16.mxu0 %v3318_v1  ;;  %2960 = vmatprep.subr.bf16.mxu1 %v3318_v1  ;;  %v3106_v26 = vld [vmem:[%s3400_s9 + $0x18] ss:$12 sps:$4 sm:$0xff]   ;;  %v3109_v28 = vld [vmem:[%s3400_s9 + $0x34] ss:$12 sps:$4 sm:$0xff]   ;;  %v3113_v31 = vld [vmem:[%s3400_s9 + $0x30] ss:$12 sps:$4 sm:$0xff]  }
  0x1a   : > { %1135 = vmatprep.mubr.bf16.mxu0 %v3097_v6  ;;  %1327 = vmatprep.mubr.bf16.mxu1 %v3100_v8  ;;  %v3107_v27 = vld [vmem:[%s3400_s9 + $0x258] ss:$12 sps:$4 sm:$0xff]   ;;  %v3111_v29 = vld [vmem:[%s3400_s9 + $0x274] ss:$12 sps:$4 sm:$0xff]   ;;  %v3114_v32 = vld [vmem:[%s3400_s9 + $0x270] ss:$12 sps:$4 sm:$0xff]  }
  0x1b   : > { %v3116_v34 = vld [vmem:[%s3400_s9 + $0x4c] ss:$12 sps:$4 sm:$0xff]   ;;  %v3120_v41 = vld [vmem:[%s3400_s9 + $0x48] ss:$12 sps:$4 sm:$0xff]   ;;  %v3123_v43 = vld [vmem:[%s3400_s9 + $0x64] ss:$12 sps:$4 sm:$0xff]  }
  0x1c   : > { %1112 = vmatpush1.bf16.msra.mxu0 %v3083_v5  ;;  %2976 = vmatpush1.bf16.msra.mxu1 %v3083_v5  ;;  %v3118_v35 = vld [vmem:[%s3400_s9 + $0x28c] ss:$12 sps:$4 sm:$0xff]   ;;  %v3121_v42 = vld [vmem:[%s3400_s9 + $0x288] ss:$12 sps:$4 sm:$0xff]   ;;  %v3125_v44 = vld [vmem:[%s3400_s9 + $0x2a4] ss:$12 sps:$4 sm:$0xff]  }
  0x1d   : > { %1113 = vmatprep.subr.bf16.mxu0 %v3318_v1  ;;  %2961 = vmatprep.subr.bf16.mxu1 %v3318_v1  ;;  %v3127_v46 = vld [vmem:[%s3400_s9 + $0x60] ss:$12 sps:$4 sm:$0xff]   ;;  %v3130_v48 = vld [vmem:[%s3400_s9 + $0x7c] ss:$12 sps:$4 sm:$0xff]   ;;  %v3134_v50 = vld [vmem:[%s3400_s9 + $0x78] ss:$12 sps:$4 sm:$0xff]  }
  0x1e   : > { %v3128_v47 = vld [vmem:[%s3400_s9 + $0x2a0] ss:$12 sps:$4 sm:$0xff]   ;;  %v3132_v49 = vld [vmem:[%s3400_s9 + $0x2bc] ss:$12 sps:$4 sm:$0xff]   ;;  %v3135_v51 = vld [vmem:[%s3400_s9 + $0x2b8] ss:$12 sps:$4 sm:$0xff]  }
  0x1f   : > { %v3137_v52 = vld [vmem:[%s3400_s9 + $0x94] ss:$12 sps:$4 sm:$0xff]   ;;  %v3141_v54 = vld [vmem:[%s3400_s9 + $0x90] ss:$12 sps:$4 sm:$0xff]   ;;  %v3143_v56 = vld [vmem:[%s3400_s9 + $0xac] ss:$12 sps:$4 sm:$0xff]  }
  0x20   : > { %1114 = vmatpush1.bf16.msra.mxu0 %v3084_v7  ;;  %2977 = vmatpush1.bf16.msra.mxu1 %v3084_v7  ;;  %v3139_v53 = vld [vmem:[%s3400_s9 + $0x2d4] ss:$12 sps:$4 sm:$0xff]   ;;  %v3142_v55 = vld [vmem:[%s3400_s9 + $0x2d0] ss:$12 sps:$4 sm:$0xff]   ;;  %v3145_v57 = vld [vmem:[%s3400_s9 + $0x2ec] ss:$12 sps:$4 sm:$0xff]  }
  0x21   : > { %1115 = vmatprep.subr.bf16.mxu0 %v3318_v1  ;;  %2962 = vmatprep.subr.bf16.mxu1 %v3318_v1  ;;  %v3148_v58 = vld [vmem:[%s3400_s9 + $0xa8] ss:$12 sps:$4 sm:$0xff]   ;;  %v3150_v60 = vld [vmem:[%s3400_s9 + $0xc4] ss:$12 sps:$4 sm:$0xff]   ;;  %v3153_v62 = vld [vmem:[%s3400_s9 + $0xc0] ss:$12 sps:$4 sm:$0xff]  }
  0x22   : > { %v3149_v59 = vld [vmem:[%s3400_s9 + $0x2e8] ss:$12 sps:$4 sm:$0xff]   ;;  %v3154_v63 = vld [vmem:[%s3400_s9 + $0x20] ss:$12 sps:$4 sm:$0xff]   ;;  %v3158_v2 = vld [vmem:[%s3400_s9 + $0xd8] ss:$12 sps:$4 sm:$0xff]  }
  0x23   : > { %v3152_v61 = vld [vmem:[%s3400_s9 + $0x8] ss:$12 sps:$4 sm:$0xff]   ;;  %v3159_v3 = vld [vmem:[%s3400_s9 + $0x50] ss:$12 sps:$4 sm:$0xff]   ;;  %v3164_v7 = vld [vmem:[%s3400_s9 + $0x80] ss:$12 sps:$4 sm:$0xff]  }
  0x24   : > { %1116 = vmatpush1.bf16.msra.mxu0 %v3085_v9  ;;  %2978 = vmatpush1.bf16.msra.mxu1 %v3085_v9  ;;  %v3155_v0 = vld [vmem:[%s3400_s9 + $0xdc] ss:$12 sps:$4 sm:$0xff]   ;;  %v3160_v4 = vld [vmem:[%s3400_s9 + $0xf4] ss:$12 sps:$4 sm:$0xff]   ;;  %v3165_v8 = vld [vmem:[%s3400_s9 + $0x10c] ss:$12 sps:$4 sm:$0xff]  }
  0x25   : > { %1117 = vmatprep.subr.bf16.mxu0 %v3318_v1  ;;  %2963 = vmatprep.subr.bf16.mxu1 %v3318_v1  ;;  %v3162_v5 = vld [vmem:[%s3400_s9 + $0x68] ss:$12 sps:$4 sm:$0xff]   ;;  %v3163_v6 = vld [vmem:[%s3400_s9 + $0xf0] ss:$12 sps:$4 sm:$0xff]   ;;  %v3167_v9 = vld [vmem:[%s3400_s9 + $0x98] ss:$12 sps:$4 sm:$0xff]  }
  0x26   : > { %v3200_v36 = vld [vmem:[%s3400_s9 + $0x1b4] ss:$12 sps:$4 sm:$0xff]   ;;  %v3205_v40 = vld [vmem:[%s3400_s9 + $0x1cc] ss:$12 sps:$4 sm:$0xff]  }
  0x27   : > { %v3202_v37 = vld [vmem:[%s3400_s9 + $0x1e8] ss:$12 sps:$4 sm:$0xff]   ;;  %v3204_v39 = vld [vmem:[%s3400_s9 + $0x200] ss:$12 sps:$4 sm:$0xff]  }
  0x28   : > { %1118 = vmatpush1.bf16.msra.mxu0 %v3086_v10  ;;  %2979 = vmatpush1.bf16.msra.mxu1 %v3086_v10  ;;  %v3168_v10 = vld [vmem:[%s3400_s9 + $0x108] ss:$12 sps:$4 sm:$0xff]  }
  0x29   : > { %1119 = vmatprep.subr.bf16.mxu0 %v3318_v1  ;;  %2964 = vmatprep.subr.bf16.mxu1 %v3318_v1 }
  0x2c   : > { %1120 = vmatpush1.bf16.msra.mxu0 %v3087_v11  ;;  %2980 = vmatpush1.bf16.msra.mxu1 %v3087_v11  ;;  %v3169_v11 = vld [vmem:[%s3400_s9 + $0xb0] ss:$12 sps:$4 sm:$0xff]  }
  0x2d   : > { %1121 = vmatprep.subr.bf16.mxu0 %v3318_v1  ;;  %2965 = vmatprep.subr.bf16.mxu1 %v3318_v1 }
  0x30   : > { %1122 = vmatpush1.bf16.msra.mxu0 %v3088_v12  ;;  %2981 = vmatpush1.bf16.msra.mxu1 %v3088_v12  ;;  %v3170_v12 = vld [vmem:[%s3400_s9 + $0x124] ss:$12 sps:$4 sm:$0xff]  }
  0x31   : > { %1123 = vmatprep.subr.bf16.mxu0 %v3318_v1  ;;  %2966 = vmatprep.subr.bf16.mxu1 %v3318_v1 }
  0x34   : > { %1124 = vmatpush1.bf16.msra.mxu0 %v3089_v13  ;;  %2982 = vmatpush1.bf16.msra.mxu1 %v3089_v13  ;;  %v3172_v13 = vld [vmem:[%s3400_s9 + $0xc8] ss:$12 sps:$4 sm:$0xff]  }
  0x35   : > { %1125 = vmatprep.subr.bf16.mxu0 %v3318_v1  ;;  %2967 = vmatprep.subr.bf16.mxu1 %v3318_v1 }
  0x38   : > { %1126 = vmatpush1.bf16.msra.mxu0 %v3090_v14  ;;  %2983 = vmatpush1.bf16.msra.mxu1 %v3090_v14  ;;  %v3173_v14 = vld [vmem:[%s3400_s9 + $0x120] ss:$12 sps:$4 sm:$0xff]  }
  0x39   : > { %1127 = vmatprep.subr.bf16.mxu0 %v3318_v1  ;;  %2968 = vmatprep.subr.bf16.mxu1 %v3318_v1 }
  0x3c   : > { %1128 = vmatpush1.bf16.msra.mxu0 %v3091_v15  ;;  %2984 = vmatpush1.bf16.msra.mxu1 %v3091_v15  ;;  %v3174_v15 = vld [vmem:[%s3400_s9 + $0xe0] ss:$12 sps:$4 sm:$0xff]  }
  0x3d   : > { %1129 = vmatprep.subr.bf16.mxu0 %v3318_v1  ;;  %2969 = vmatprep.subr.bf16.mxu1 %v3318_v1 }
  0x40   : > { %1130 = vmatpush1.bf16.msra.mxu0 %v3092_v16  ;;  %2985 = vmatpush1.bf16.msra.mxu1 %v3092_v16  ;;  %v3175_v16 = vld [vmem:[%s3400_s9 + $0x13c] ss:$12 sps:$4 sm:$0xff]  }
  0x41   : > { %1131 = vmatprep.subr.bf16.mxu0 %v3318_v1  ;;  %2970 = vmatprep.subr.bf16.mxu1 %v3318_v1 }
  0x44   : > { %1132 = vmatpush1.bf16.msra.mxu0 %v3093_v17  ;;  %2986 = vmatpush1.bf16.msra.mxu1 %v3093_v17  ;;  %v3177_v17 = vld [vmem:[%s3400_s9 + $0xf8] ss:$12 sps:$4 sm:$0xff]  }
  0x45   : > { %1133 = vmatprep.subr.bf16.mxu0 %v3318_v1  ;;  %2971 = vmatprep.subr.bf16.mxu1 %v3318_v1  ;;  %v3157_v1 = vld [vmem:[%s3400_s9 + $0x38] ss:$12 sps:$4 sm:$0xff]  }
  0x48   : > { %1134 = vmatpush1.bf16.msra.mxu0 %v3094_v18  ;;  %2987 = vmatpush1.bf16.msra.mxu1 %v3094_v18  ;;  %v3178_v18 = vld [vmem:[%s3400_s9 + $0x138] ss:$12 sps:$4 sm:$0xff]  }
  0x49   : > { %2878 = vmatprep.subr.bf16.mxu1 %v3101_v20 }
  0x4b   : > { %1136 = vmatmul.mubr.bf16.vlgmr.msra.gmra.mrb[0].mxu0 %v3095_v19  ;;  %1328 = vmatmul.mubr.bf16.vlgmr.msra.gmra.mrb[0].mxu1 %v3098_v21  ;;  %v3179_v19 = vld [vmem:[%s3400_s9 + $0x110] ss:$12 sps:$4 sm:$0xff]   ;;  %v3182_v21 = vld [vmem:[%s3400_s9 + $0x128] ss:$12 sps:$4 sm:$0xff]  }
  0x4c   : > { %2879 = vmatpush3.bf16.msra.mxu1 %v3101_v20  ;;  %1143 = vmatprep.mubr.bf16.mxu0 %v3102_v22  ;;  %v3180_v20 = vld [vmem:[%s3400_s9 + $0x154] ss:$12 sps:$4 sm:$0xff]   ;;  %v3183_v22 = vld [vmem:[%s3400_s9 + $0x150] ss:$12 sps:$4 sm:$0xff]  }
  0x4d   : > { %1335 = vmatprep.mubr.bf16.mxu1 %v3104_v23  ;;  %2880 = vmatprep.subr.bf16.mxu1 %v3108_v24  ;;  %v3184_v23 = vld [vmem:[%s3400_s9 + $0x140] ss:$12 sps:$4 sm:$0xff]  }
  0x50   : > { %2881 = vmatpush3.bf16.msra.mxu1 %v3108_v24  ;;  %v3185_v24 = vld [vmem:[%s3400_s9 + $0x16c] ss:$12 sps:$4 sm:$0xff]  }
  0x51   : > { %2882 = vmatprep.subr.bf16.mxu1 %v3115_v25 }
  0x53   : > { %1144 = vmatmul.mubr.bf16.gmra.mrb[4].mxu0 %v3106_v26  ;;  %1336 = vmatmul.mubr.bf16.gmra.mrb[4].mxu1 %v3107_v27  ;;  %v3188_v26 = vld [vmem:[%s3400_s9 + $0x168] ss:$12 sps:$4 sm:$0xff]   ;;  %v3189_v27 = vld [vmem:[%s3400_s9 + $0x170] ss:$12 sps:$4 sm:$0xff]  }
  0x54   : > { %1151 = vmatprep.mubr.bf16.mxu0 %v3109_v28  ;;  %1343 = vmatprep.mubr.bf16.mxu1 %v3111_v29  ;;  %v3190_v28 = vld [vmem:[%s3400_s9 + $0x184] ss:$12 sps:$4 sm:$0xff]   ;;  %v3192_v29 = vld [vmem:[%s3400_s9 + $0x188] ss:$12 sps:$4 sm:$0xff]  }
  0x55   : > { %2883 = vmatpush3.bf16.msra.mxu1 %v3115_v25  ;;  %v3187_v25 = vld [vmem:[%s3400_s9 + $0x158] ss:$12 sps:$4 sm:$0xff]  }
  0x56   : > { %2884 = vmatprep.subr.bf16.mxu1 %v3122_v30 }
  0x59   : > { %2885 = vmatpush3.bf16.msra.mxu1 %v3122_v30  ;;  %v3193_v30 = vld [vmem:[%s3400_s9 + $0x180] ss:$12 sps:$4 sm:$0xff]  }
  0x5a   : > { %2886 = vmatprep.subr.bf16.mxu1 %v3129_v33 }
  0x5b   : > { %1152 = vmatmul.mubr.bf16.gmra.mrb[8].mxu0 %v3113_v31  ;;  %1344 = vmatmul.mubr.bf16.gmra.mrb[8].mxu1 %v3114_v32  ;;  %v3194_v31 = vld [vmem:[%s3400_s9 + $0x1a0] ss:$12 sps:$4 sm:$0xff]   ;;  %v3195_v32 = vld [vmem:[%s3400_s9 + $0x19c] ss:$12 sps:$4 sm:$0xff]  }
  0x5c   : > { %1159 = vmatprep.mubr.bf16.mxu0 %v3116_v34  ;;  %1351 = vmatprep.mubr.bf16.mxu1 %v3118_v35  ;;  %v3198_v34 = vld [vmem:[%s3400_s9 + $0x198] ss:$12 sps:$4 sm:$0xff]   ;;  %v3199_v35 = vld [vmem:[%s3400_s9 + $0x1d0] ss:$12 sps:$4 sm:$0xff]  }
  0x5d   : > { %2887 = vmatpush3.bf16.msra.mxu1 %v3129_v33  ;;  %v3197_v33 = vld [vmem:[%s3400_s9 + $0x1b8] ss:$12 sps:$4 sm:$0xff]  }
  0x5e   : > { %2888 = vmatprep.subr.bf16.mxu1 %v3136_v38 }
  0x61   : > { %2889 = vmatpush3.bf16.msra.mxu1 %v3136_v38  ;;  %v3203_v38 = vld [vmem:[%s3400_s9 + $0x1b0] ss:$12 sps:$4 sm:$0xff]  }
  0x62   : > { %2890 = vmatprep.subr.bf16.mxu1 %v1101_v45 }
  0x63   : > { %1160 = vmatmul.mubr.bf16.gmra.mrb[12].mxu0 %v3120_v41  ;;  %1352 = vmatmul.mubr.bf16.gmra.mrb[12].mxu1 %v3121_v42  ;;  %v3207_v41 = vld [vmem:[%s3400_s9 + $0x218] ss:$12 sps:$4 sm:$0xff]   ;;  %v3208_v42 = vld [vmem:[%s3400_s9 + $0x1c8] ss:$12 sps:$4 sm:$0xff]  }
  0x64   : > { %1167 = vmatprep.mubr.bf16.mxu0 %v3123_v43  ;;  %1359 = vmatprep.mubr.bf16.mxu1 %v3125_v44  ;;  %v3209_v43 = vld [vmem:[%s3400_s9 + $0x230] ss:$12 sps:$4 sm:$0xff]  }
  0x65   : > { %2891 = vmatpush3.bf16.msra.mxu1 %v1101_v45  ;;  %v3210_v44 = vld [vmem:[%s3400_s9 + $0x1e4] ss:$12 sps:$4 sm:$0xff]   ;;  %v3212_v45 = vld [vmem:[%s3400_s9 + $0x248] ss:$12 sps:$4 sm:$0xff]  }
  0x6b   : > { %1168 = vmatmul.mubr.bf16.gmra.mrb[16].mxu0 %v3127_v46  ;;  %1360 = vmatmul.mubr.bf16.gmra.mrb[16].mxu1 %v3128_v47  ;;  %v3213_v46 = vld [vmem:[%s3400_s9 + $0x1e0] ss:$12 sps:$4 sm:$0xff]  }
  0x6c   : > { %1175 = vmatprep.mubr.bf16.mxu0 %v3130_v48  ;;  %1367 = vmatprep.mubr.bf16.mxu1 %v3132_v49  ;;  %v3214_v47 = vld [vmem:[%s3400_s9 + $0x260] ss:$12 sps:$4 sm:$0xff]   ;;  %v3215_v48 = vld [vmem:[%s3400_s9 + $0x1fc] ss:$12 sps:$4 sm:$0xff]   ;;  %v3217_v49 = vld [vmem:[%s3400_s9 + $0x278] ss:$12 sps:$4 sm:$0xff]  }
  0x73   : > { %1176 = vmatmul.mubr.bf16.gmra.mrb[20].mxu0 %v3134_v50  ;;  %1368 = vmatmul.mubr.bf16.gmra.mrb[20].mxu1 %v3135_v51  ;;  %v3218_v50 = vld [vmem:[%s3400_s9 + $0x1f8] ss:$12 sps:$4 sm:$0xff]   ;;  %v3219_v51 = vld [vmem:[%s3400_s9 + $0x290] ss:$12 sps:$4 sm:$0xff]  }
  0x74   : > { %1183 = vmatprep.mubr.bf16.mxu0 %v3137_v52  ;;  %1375 = vmatprep.mubr.bf16.mxu1 %v3139_v53  ;;  %v3220_v52 = vld [vmem:[%s3400_s9 + $0x214] ss:$12 sps:$4 sm:$0xff]  }
  0x75   : > { %v3222_v53 = vld [vmem:[%s3400_s9 + $0x2a8] ss:$12 sps:$4 sm:$0xff]  }
  0x7b   : > { %1184 = vmatmul.mubr.bf16.gmra.mrb[24].mxu0 %v3141_v54  ;;  %1376 = vmatmul.mubr.bf16.gmra.mrb[24].mxu1 %v3142_v55  ;;  %v3223_v54 = vld [vmem:[%s3400_s9 + $0x210] ss:$12 sps:$4 sm:$0xff]   ;;  %v3224_v55 = vld [vmem:[%s3400_s9 + $0x2c0] ss:$12 sps:$4 sm:$0xff]  }
  0x7c   : > { %1191 = vmatprep.mubr.bf16.mxu0 %v3143_v56  ;;  %1383 = vmatprep.mubr.bf16.mxu1 %v3145_v57  ;;  %v3225_v56 = vld [vmem:[%s3400_s9 + $0x22c] ss:$12 sps:$4 sm:$0xff]  }
  0x7d   : > { %v3227_v57 = vld [vmem:[%s3400_s9 + $0x2d8] ss:$12 sps:$4 sm:$0xff]  }
  0x83   : > { %1192 = vmatmul.mubr.bf16.gmra.mrb[28].mxu0 %v3148_v58  ;;  %1384 = vmatmul.mubr.bf16.gmra.mrb[28].mxu1 %v3149_v59  ;;  %v3228_v58 = vld [vmem:[%s3400_s9 + $0x228] ss:$12 sps:$4 sm:$0xff]   ;;  %v3229_v59 = vld [vmem:[%s3400_s9 + $0x2f0] ss:$12 sps:$4 sm:$0xff]  }
  0x84   : > { %1199 = vmatprep.mubr.bf16.mxu0 %v3150_v60  ;;  %2892 = vmatprep.mubr.msk.bf16.mxu1 %vm999_vm2, %v3152_v61 }
  0x8b   : > { %1200 = vmatmul.mubr.bf16.gmra.mrb[32].mxu0 %v3153_v62  ;;  %2893 = vmatmul.mubr.msk.bf16.vlgmr.msra.gmra.mrb[32].mxu1 %vm999_vm2, %v3154_v63 }
  0x8c   : > { %1207 = vmatprep.mubr.bf16.mxu0 %v3155_v0  ;;  %2896 = vmatprep.mubr.msk.bf16.mxu1 %vm999_vm2, %v3157_v1 }
  0x93   : > { %1208 = vmatmul.mubr.bf16.gmra.mrb[36].mxu0 %v3158_v2  ;;  %2897 = vmatmul.mubr.msk.bf16.gmra.mrb[36].mxu1 %vm999_vm2, %v3159_v3 }
  0x94   : > { %1215 = vmatprep.mubr.bf16.mxu0 %v3160_v4  ;;  %2900 = vmatprep.mubr.msk.bf16.mxu1 %vm999_vm2, %v3162_v5 }
  0x9b   : > { %1216 = vmatmul.mubr.bf16.gmra.mrb[40].mxu0 %v3163_v6  ;;  %2901 = vmatmul.mubr.msk.bf16.gmra.mrb[40].mxu1 %vm999_vm2, %v3164_v7 }
  0x9c   : > { %1223 = vmatprep.mubr.bf16.mxu0 %v3165_v8  ;;  %2904 = vmatprep.mubr.msk.bf16.mxu1 %vm999_vm2, %v3167_v9 }
  0xa3   : > { %1224 = vmatmul.mubr.bf16.gmra.mrb[44].mxu0 %v3168_v10  ;;  %2905 = vmatmul.mubr.msk.bf16.gmra.mrb[44].mxu1 %vm999_vm2, %v3169_v11 }
  0xa4   : > { %1231 = vmatprep.mubr.bf16.mxu0 %v3170_v12  ;;  %2908 = vmatprep.mubr.msk.bf16.mxu1 %vm999_vm2, %v3172_v13 }
  0xab   : > { %1232 = vmatmul.mubr.bf16.gmra.mrb[48].mxu0 %v3173_v14  ;;  %2909 = vmatmul.mubr.msk.bf16.gmra.mrb[48].mxu1 %vm999_vm2, %v3174_v15 }
  0xac   : > { %1239 = vmatprep.mubr.bf16.mxu0 %v3175_v16  ;;  %2912 = vmatprep.mubr.msk.bf16.mxu1 %vm999_vm2, %v3177_v17 }
  0xb3   : > { %1240 = vmatmul.mubr.bf16.gmra.mrb[52].mxu0 %v3178_v18  ;;  %2913 = vmatmul.mubr.msk.bf16.gmra.mrb[52].mxu1 %vm999_vm2, %v3179_v19 }
  0xb4   : > { %1247 = vmatprep.mubr.bf16.mxu0 %v3180_v20  ;;  %2916 = vmatprep.mubr.msk.bf16.mxu1 %vm999_vm2, %v3182_v21 }
  0xbb   : > { %1248 = vmatmul.mubr.bf16.gmra.mrb[56].mxu0 %v3183_v22  ;;  %2917 = vmatmul.mubr.msk.bf16.gmra.mrb[56].mxu1 %vm999_vm2, %v3184_v23 }
  0xbc   : > { %1255 = vmatprep.mubr.bf16.mxu0 %v3185_v24  ;;  %2920 = vmatprep.mubr.msk.bf16.mxu1 %vm999_vm2, %v3187_v25 }
  0xc3   : > { %1256 = vmatmul.mubr.bf16.gmra.mrb[60].mxu0 %v3188_v26  ;;  %2921 = vmatmul.mubr.msk.bf16.gmra.mrb[60].mxu1 %vm999_vm2, %v3189_v27 }
  0xc4   : > { %1263 = vmatprep.mubr.bf16.mxu0 %v3190_v28  ;;  %2924 = vmatprep.mubr.msk.bf16.mxu1 %vm999_vm2, %v3192_v29 }
  0xcb   : > { %1264 = vmatmul.mubr.bf16.gmra.mrb[64].mxu0 %v3193_v30  ;;  %2925 = vmatmul.mubr.msk.bf16.gmra.mrb[64].mxu1 %vm999_vm2, %v3194_v31 }
  0xcc   : > { %1271 = vmatprep.mubr.bf16.mxu0 %v3195_v32  ;;  %2928 = vmatprep.mubr.msk.bf16.mxu1 %vm999_vm2, %v3197_v33 }
  0xd3   : > { %1272 = vmatmul.mubr.bf16.gmra.mrb[68].mxu0 %v3198_v34  ;;  %2929 = vmatmul.mubr.msk.bf16.gmra.mrb[68].mxu1 %vm999_vm2, %v3199_v35 }
  0xd4   : > { %1279 = vmatprep.mubr.bf16.mxu0 %v3200_v36  ;;  %2932 = vmatprep.mubr.msk.bf16.mxu1 %vm999_vm2, %v3202_v37 }
  0xdb   : > { %1280 = vmatmul.mubr.bf16.gmra.mrb[72].mxu0 %v3203_v38  ;;  %2933 = vmatmul.mubr.msk.bf16.gmra.mrb[72].mxu1 %vm999_vm2, %v3204_v39 }
  0xdc   : > { %1287 = vmatprep.mubr.bf16.mxu0 %v3205_v40  ;;  %2936 = vmatprep.mubr.msk.bf16.mxu1 %vm999_vm2, %v3207_v41 }
  0xe3   : > { %1288 = vmatmul.mubr.bf16.gmra.mrb[76].mxu0 %v3208_v42  ;;  %2937 = vmatmul.mubr.msk.bf16.gmra.mrb[76].mxu1 %vm999_vm2, %v3209_v43 }
  0xe4   : > { %1295 = vmatprep.mubr.bf16.mxu0 %v3210_v44  ;;  %2940 = vmatprep.mubr.msk.bf16.mxu1 %vm999_vm2, %v3212_v45 }
  0xeb   : > { %1296 = vmatmul.mubr.bf16.gmra.mrb[80].mxu0 %v3213_v46  ;;  %2941 = vmatmul.mubr.msk.bf16.gmra.mrb[80].mxu1 %vm999_vm2, %v3214_v47 }
  0xec   : > { %1303 = vmatprep.mubr.bf16.mxu0 %v3215_v48  ;;  %2944 = vmatprep.mubr.msk.bf16.mxu1 %vm999_vm2, %v3217_v49 }
  0xf3   : > { %1304 = vmatmul.mubr.bf16.gmra.mrb[84].mxu0 %v3218_v50  ;;  %2945 = vmatmul.mubr.msk.bf16.gmra.mrb[84].mxu1 %vm999_vm2, %v3219_v51 }
  0xf4   : > { %1311 = vmatprep.mubr.bf16.mxu0 %v3220_v52  ;;  %2948 = vmatprep.mubr.msk.bf16.mxu1 %vm999_vm2, %v3222_v53 }
  0xfb   : > { %1312 = vmatmul.mubr.bf16.gmra.mrb[88].mxu0 %v3223_v54  ;;  %2949 = vmatmul.mubr.msk.bf16.gmra.mrb[88].mxu1 %vm999_vm2, %v3224_v55 }
  0xfc   : > { %1319 = vmatprep.mubr.bf16.mxu0 %v3225_v56  ;;  %2952 = vmatprep.mubr.msk.bf16.mxu1 %vm999_vm2, %v3227_v57 }
 0x103   : > { %1320 = vmatmul.mubr.bf16.gmra.mrb[92].mxu0 %v3228_v58  ;;  %2953 = vmatmul.mubr.msk.bf16.gmra.mrb[92].mxu1 %vm999_vm2, %v3229_v59 }
 0x11e   : > { %v3608_v60 = vpop.f32.mrb[0].mxu0  ;;  %v3610_v61 = vpop.f32.mrb[0].mxu1 }
 0x11f   : > { %v1139_v62 = vpop.f32.mrb[1].mxu0  ;;  %v1331_v63 = vpop.f32.mrb[1].mxu1 }
 0x120   : > { %v3612_v0 = vpop.f32.mrb[2].mxu0  ;;  %v3614_v1 = vpop.f32.mrb[2].mxu1  ;;  %v3671_v62 = vld [vmem:[%s4135_s2] ss:$0 sm:$0xff] }
 0x121   : > { %v1142_v2 = vpop.f32.mrb[3].mxu0  ;;  %v1334_v3 = vpop.f32.mrb[3].mxu1 }
 0x122   : > { %v1138_v2 = vadd.f32 %v3671_v62, %v3608_v60 }
 0x126   : > { %v1145_v4 = vpop.f32.mrb[4].mxu0  ;;  %v3616_v5 = vpop.f32.mrb[4].mxu1 }
 0x127   : > { %v1147_v6 = vpop.f32.mrb[5].mxu0  ;;  %v1339_v7 = vpop.f32.mrb[5].mxu1  ;;  %v1146_v63 = vadd.f32 %v3671_v62, %v1145_v4 }
 0x128   : > { %v1148_v8 = vpop.f32.mrb[6].mxu0  ;;  %v3618_v9 = vpop.f32.mrb[6].mxu1 }
 0x129   : > { %v1150_v10 = vpop.f32.mrb[7].mxu0  ;;  %v1342_v11 = vpop.f32.mrb[7].mxu1  ;;  %v1149_v7 = vadd.f32 %v3671_v62, %v1148_v8 }
 0x12e   : > { %v3620_v12 = vpop.f32.mrb[8].mxu0  ;;  %v3622_v13 = vpop.f32.mrb[8].mxu1 }
 0x12f   : > { %v1155_v14 = vpop.f32.mrb[9].mxu0  ;;  %v1347_v15 = vpop.f32.mrb[9].mxu1 }
 0x130   : > { %v3624_v16 = vpop.f32.mrb[10].mxu0  ;;  %v3626_v17 = vpop.f32.mrb[10].mxu1  ;;  %v1141_v15 = vadd.f32 %v3671_v62, %v3612_v0 }
 0x131   : > { %v1158_v18 = vpop.f32.mrb[11].mxu0  ;;  %v1350_v19 = vpop.f32.mrb[11].mxu1 }
 0x136   : > { %v3628_v20 = vpop.f32.mrb[12].mxu0  ;;  %v3630_v21 = vpop.f32.mrb[12].mxu1 }
 0x137   : > { %v1163_v22 = vpop.f32.mrb[13].mxu0  ;;  %v1355_v23 = vpop.f32.mrb[13].mxu1 }
 0x138   : > { %v3632_v24 = vpop.f32.mrb[14].mxu0  ;;  %v3634_v25 = vpop.f32.mrb[14].mxu1 }
 0x139   : > { %v1166_v26 = vpop.f32.mrb[15].mxu0  ;;  %v1358_v27 = vpop.f32.mrb[15].mxu1 }
 0x13e   : > { %v3636_v28 = vpop.f32.mrb[16].mxu0  ;;  %v3638_v29 = vpop.f32.mrb[16].mxu1 }
 0x13f   : > { %v1171_v30 = vpop.f32.mrb[17].mxu0  ;;  %v1363_v31 = vpop.f32.mrb[17].mxu1 }
 0x140   : > { %v3640_v32 = vpop.f32.mrb[18].mxu0  ;;  %v3642_v33 = vpop.f32.mrb[18].mxu1 }
 0x141   : > { %v1174_v34 = vpop.f32.mrb[19].mxu0  ;;  %v1366_v35 = vpop.f32.mrb[19].mxu1 }
 0x146   : > { %v3644_v36 = vpop.f32.mrb[20].mxu0  ;;  %v3646_v37 = vpop.f32.mrb[20].mxu1 }
 0x147   : > { %v1179_v38 = vpop.f32.mrb[21].mxu0  ;;  %v1371_v39 = vpop.f32.mrb[21].mxu1 }
 0x148   : > { %v3648_v40 = vpop.f32.mrb[22].mxu0  ;;  %v3650_v41 = vpop.f32.mrb[22].mxu1  ;;  %v1162_v38 = vadd.f32 %v3671_v62, %v3628_v20  ;;  %v1154_v39 = vadd.f32 %v3671_v62, %v3620_v12  ;;  %v1165_v20 = vadd.f32 %v3671_v62, %v3632_v24 }
 0x149   : > { %v1182_v42 = vpop.f32.mrb[23].mxu0  ;;  %v1374_v43 = vpop.f32.mrb[23].mxu1 }
 0x14e   : > { %v3652_v44 = vpop.f32.mrb[24].mxu0  ;;  %v3654_v45 = vpop.f32.mrb[24].mxu1 }
 0x14f   : > { %v1187_v46 = vpop.f32.mrb[25].mxu0  ;;  %v1379_v47 = vpop.f32.mrb[25].mxu1 }
 0x150   : > { %v3656_v48 = vpop.f32.mrb[26].mxu0  ;;  %v3658_v49 = vpop.f32.mrb[26].mxu1 }
 0x151   : > { %v1190_v50 = vpop.f32.mrb[27].mxu0  ;;  %v1382_v51 = vpop.f32.mrb[27].mxu1 }
 0x156   : > { %v3660_v52 = vpop.f32.mrb[28].mxu0  ;;  %v3662_v53 = vpop.f32.mrb[28].mxu1 }
 0x157   : > { %v1195_v54 = vpop.f32.mrb[29].mxu0  ;;  %v1387_v55 = vpop.f32.mrb[29].mxu1 }
 0x158   : > { %v3664_v56 = vpop.f32.mrb[30].mxu0  ;;  %v3666_v57 = vpop.f32.mrb[30].mxu1  ;;  %v1157_v54 = vadd.f32 %v3671_v62, %v3624_v16 }
 0x159   : > { %v1198_v58 = vpop.f32.mrb[31].mxu0  ;;  %v1390_v59 = vpop.f32.mrb[31].mxu1 }
 0x15e   : > { %v3677_v3 = vpop.f32.mrb[32].mxu0  ;;  %v2894_v6 = vpop.f32.mrb[32].mxu1 }
 0x15f   : > { %v1435_v10 = vadd.f32 %v2894_v6, %v1146_v63  ;;  %v1203_v11 = vpop.f32.mrb[33].mxu0  ;;  %v1426_v14 = vpop.f32.mrb[33].mxu1 }
 0x160   : > { %v1427_v18 = vadd.f32 %v1426_v14, %v1138_v2  ;;  %v3682_v19 = vpop.f32.mrb[34].mxu0  ;;  %v2895_v22 = vpop.f32.mrb[34].mxu1 }
 0x161   : > { %v1683_v4 = vmax.f32 %v1435_v10, 0.0  ;;  %v1438_v23 = vadd.f32 %v2895_v22, %v1149_v7  ;;  %v1206_v26 = vpop.f32.mrb[35].mxu0  ;;  %v1429_v60 = vpop.f32.mrb[35].mxu1  ;;  %v1170_v22 = vadd.f32 %v3671_v62, %v3636_v28 }
 0x162   : > { %v1681_v27 = vmax.f32 %v1427_v18, 0.0  ;;  %v1430_v30 = vadd.f32 %v1429_v60, %v1141_v15  ;;  %v1178_v15 = vadd.f32 %v3671_v62, %v3644_v36  ;;  %v1181_v60 = vadd.f32 %v3671_v62, %v3648_v40 }
 0x163   : > { %v2774_v31 = vpack.c.bf16 %v1683_v4, %v1683_v4  ;;  %v1684_v8 = vmax.f32 %v1438_v23, 0.0 }
 0x164   : > { %v2772_v34 = vpack.c.bf16 %v1681_v27, %v1681_v27  ;;  %v1682_v35 = vmax.f32 %v1430_v30, 0.0 }
 0x165   : > { %2004 = vst.msk [vmem:[%s3686_s12 + $0x8] sm:$0xf] %vm2001_vm3, %v2774_v31  ;;  %v2775_v0 = vpack.c.bf16 %v1684_v8, %v1684_v8  ;;  %v1173_v31 = vadd.f32 %v3671_v62, %v3640_v32 }
 0x166   : > { %2002 = vst.msk [vmem:[%s3686_s12] sm:$0xf] %vm2001_vm3, %v2772_v34  ;;  %v2773_v42 = vpack.c.bf16 %v1682_v35, %v1682_v35  ;;  %v3694_v43 = vpop.f32.mrb[36].mxu0  ;;  %v2898_v46 = vpop.f32.mrb[36].mxu1 }
 0x167   : > { %2005 = vst.msk [vmem:[%s3686_s12 + $0xc] sm:$0xf] %vm2001_vm3, %v2775_v0  ;;  %v1451_v47 = vadd.f32 %v2898_v46, %v1162_v38  ;;  %v1211_v50 = vpop.f32.mrb[37].mxu0  ;;  %v1442_v51 = vpop.f32.mrb[37].mxu1 }
 0x168   : > { %2003 = vst.msk [vmem:[%s3686_s12 + $0x4] sm:$0xf] %vm2001_vm3, %v2773_v42  ;;  %v1443_v12 = vadd.f32 %v1442_v51, %v1154_v39  ;;  %v3704_v55 = vpop.f32.mrb[38].mxu0  ;;  %v2899_v58 = vpop.f32.mrb[38].mxu1  ;;  %v1194_v50 = vadd.f32 %v3671_v62, %v3660_v52  ;;  %v1189_v52 = vadd.f32 %v3671_v62, %v3656_v48  ;;  %v1210_v48 = vadd.f32 %v3671_v62, %v3694_v43 }
 0x169   : > { %v1687_v59 = vmax.f32 %v1451_v47, 0.0  ;;  %v1454_v63 = vadd.f32 %v2899_v58, %v1165_v20  ;;  %v1214_v2 = vpop.f32.mrb[39].mxu0  ;;  %v1445_v24 = vpop.f32.mrb[39].mxu1  ;;  %v1205_v43 = vadd.f32 %v3671_v62, %v3682_v19 }
 0x16a   : > { %v1685_v6 = vmax.f32 %v1443_v12, 0.0  ;;  %v1446_v7 = vadd.f32 %v1445_v24, %v1157_v54  ;;  %v1186_v54 = vadd.f32 %v3671_v62, %v3652_v44 }
 0x16b   : > { %v2778_v10 = vpack.c.bf16 %v1687_v59, %v1687_v59  ;;  %v1688_v11 = vmax.f32 %v1454_v63, 0.0  ;;  %v1197_v63 = vadd.f32 %v3671_v62, %v3664_v56 }
 0x16c   : > { %v2776_v14 = vpack.c.bf16 %v1685_v6, %v1685_v6  ;;  %v1686_v16 = vmax.f32 %v1446_v7, 0.0 }
 0x16d   : > { %2008 = vst.msk [vmem:[%s3686_s12 + $0x18] sm:$0xf] %vm2001_vm3, %v2778_v10  ;;  %v2779_v18 = vpack.c.bf16 %v1688_v11, %v1688_v11 }
 0x16e   : > { %2006 = vst.msk [vmem:[%s3686_s12 + $0x10] sm:$0xf] %vm2001_vm3, %v2776_v14  ;;  %v2777_v4 = vpack.c.bf16 %v1686_v16, %v1686_v16  ;;  %v3714_v23 = vpop.f32.mrb[40].mxu0  ;;  %v2902_v26 = vpop.f32.mrb[40].mxu1 }
 0x16f   : > { %2009 = vst.msk [vmem:[%s3686_s12 + $0x1c] sm:$0xf] %vm2001_vm3, %v2779_v18  ;;  %v1467_v27 = vadd.f32 %v2902_v26, %v1178_v15  ;;  %v1219_v30 = vpop.f32.mrb[41].mxu0  ;;  %v1458_v36 = vpop.f32.mrb[41].mxu1 }
 0x170   : > { %2007 = vst.msk [vmem:[%s3686_s12 + $0x14] sm:$0xf] %vm2001_vm3, %v2777_v4  ;;  %v1459_v28 = vadd.f32 %v1458_v36, %v1170_v22  ;;  %v3724_v8 = vpop.f32.mrb[42].mxu0  ;;  %v2903_v34 = vpop.f32.mrb[42].mxu1  ;;  %v1202_v30 = vadd.f32 %v3671_v62, %v3677_v3 }
 0x171   : > { %v1691_v35 = vmax.f32 %v1467_v27, 0.0  ;;  %v1470_v38 = vadd.f32 %v2903_v34, %v1181_v60  ;;  %v1222_v0 = vpop.f32.mrb[43].mxu0  ;;  %v1461_v40 = vpop.f32.mrb[43].mxu1  ;;  %v1213_v34 = vadd.f32 %v3671_v62, %v3704_v55 }
 0x172   : > { %v1689_v39 = vmax.f32 %v1459_v28, 0.0  ;;  %v1462_v42 = vadd.f32 %v1461_v40, %v1173_v31 }
 0x173   : > { %v2782_v46 = vpack.c.bf16 %v1691_v35, %v1691_v35  ;;  %v1692_v20 = vmax.f32 %v1470_v38, 0.0 }
 0x174   : > { %v2780_v47 = vpack.c.bf16 %v1689_v39, %v1689_v39  ;;  %v1690_v32 = vmax.f32 %v1462_v42, 0.0 }
 0x175   : > { %2012 = vst.msk [vmem:[%s3686_s12 + $0x28] sm:$0xf] %vm2001_vm3, %v2782_v46  ;;  %v2783_v51 = vpack.c.bf16 %v1692_v20, %v1692_v20 }
 0x176   : > { %2010 = vst.msk [vmem:[%s3686_s12 + $0x20] sm:$0xf] %vm2001_vm3, %v2780_v47  ;;  %v2781_v12 = vpack.c.bf16 %v1690_v32, %v1690_v32  ;;  %v1225_v58 = vpop.f32.mrb[44].mxu0  ;;  %v2906_v59 = vpop.f32.mrb[44].mxu1 }
 0x177   : > { %2013 = vst.msk [vmem:[%s3686_s12 + $0x2c] sm:$0xf] %vm2001_vm3, %v2783_v51  ;;  %v1483_v2 = vadd.f32 %v2906_v59, %v1194_v50  ;;  %v1227_v24 = vpop.f32.mrb[45].mxu0  ;;  %v1474_v6 = vpop.f32.mrb[45].mxu1  ;;  %v1226_v19 = vadd.f32 %v3671_v62, %v1225_v58  ;;  %v1221_v58 = vadd.f32 %v3671_v62, %v3724_v8 }
 0x178   : > { %2011 = vst.msk [vmem:[%s3686_s12 + $0x24] sm:$0xf] %vm2001_vm3, %v2781_v12  ;;  %v1475_v44 = vadd.f32 %v1474_v6, %v1186_v54  ;;  %v1228_v7 = vpop.f32.mrb[46].mxu0  ;;  %v2907_v10 = vpop.f32.mrb[46].mxu1 }
 0x179   : > { %v1695_v11 = vmax.f32 %v1483_v2, 0.0  ;;  %v1486_v14 = vadd.f32 %v2907_v10, %v1197_v63  ;;  %v1230_v16 = vpop.f32.mrb[47].mxu0  ;;  %v1477_v15 = vpop.f32.mrb[47].mxu1  ;;  %v1218_v63 = vadd.f32 %v3671_v62, %v3714_v23 }
 0x17a   : > { %v1693_v56 = vmax.f32 %v1475_v44, 0.0  ;;  %v1478_v18 = vadd.f32 %v1477_v15, %v1189_v52  ;;  %v1229_v52 = vadd.f32 %v3671_v62, %v1228_v7 }
 0x17b   : > { %v2786_v22 = vpack.c.bf16 %v1695_v11, %v1695_v11  ;;  %v1696_v4 = vmax.f32 %v1486_v14, 0.0 }
 0x17c   : > { %v2784_v26 = vpack.c.bf16 %v1693_v56, %v1693_v56  ;;  %v1694_v60 = vmax.f32 %v1478_v18, 0.0 }
 0x17d   : > { %2016 = vst.msk [vmem:[%s3686_s12 + $0x38] sm:$0xf] %vm2001_vm3, %v2786_v22  ;;  %v2787_v27 = vpack.c.bf16 %v1696_v4, %v1696_v4 }
 0x17e   : > { %2014 = vst.msk [vmem:[%s3686_s12 + $0x30] sm:$0xf] %vm2001_vm3, %v2784_v26  ;;  %v2785_v36 = vpack.c.bf16 %v1694_v60, %v1694_v60  ;;  %v1233_v31 = vpop.f32.mrb[48].mxu0  ;;  %v2910_v28 = vpop.f32.mrb[48].mxu1 }
 0x17f   : > { %2017 = vst.msk [vmem:[%s3686_s12 + $0x3c] sm:$0xf] %vm2001_vm3, %v2787_v27  ;;  %v1499_v35 = vadd.f32 %v2910_v28, %v1210_v48  ;;  %v1235_v38 = vpop.f32.mrb[49].mxu0  ;;  %v1490_v0 = vpop.f32.mrb[49].mxu1 }
 0x180   : > { %2015 = vst.msk [vmem:[%s3686_s12 + $0x34] sm:$0xf] %vm2001_vm3, %v2785_v36  ;;  %v1491_v3 = vadd.f32 %v1490_v0, %v1202_v30  ;;  %v1236_v40 = vpop.f32.mrb[50].mxu0  ;;  %v2911_v39 = vpop.f32.mrb[50].mxu1  ;;  %v1234_v36 = vadd.f32 %v3671_v62, %v1233_v31 }
 0x181   : > { %v1699_v42 = vmax.f32 %v1499_v35, 0.0  ;;  %v1502_v46 = vadd.f32 %v2911_v39, %v1213_v34  ;;  %v1238_v20 = vpop.f32.mrb[51].mxu0  ;;  %v1493_v47 = vpop.f32.mrb[51].mxu1  ;;  %v1237_v39 = vadd.f32 %v3671_v62, %v1236_v40 }
 0x182   : > { %v1697_v55 = vmax.f32 %v1491_v3, 0.0  ;;  %v1494_v32 = vadd.f32 %v1493_v47, %v1205_v43 }
 0x183   : > { %v2790_v50 = vpack.c.bf16 %v1699_v42, %v1699_v42  ;;  %v1700_v51 = vmax.f32 %v1502_v46, 0.0 }
 0x184   : > { %v2788_v54 = vpack.c.bf16 %v1697_v55, %v1697_v55  ;;  %v1698_v12 = vmax.f32 %v1494_v32, 0.0 }
 0x185   : > { %2020 = vst.msk [vmem:[%s3686_s12 + $0x48] sm:$0xf] %vm2001_vm3, %v2790_v50  ;;  %v2791_v59 = vpack.c.bf16 %v1700_v51, %v1700_v51 }
 0x186   : > { %2018 = vst.msk [vmem:[%s3686_s12 + $0x40] sm:$0xf] %vm2001_vm3, %v2788_v54  ;;  %v2789_v2 = vpack.c.bf16 %v1698_v12, %v1698_v12  ;;  %v1241_v24 = vpop.f32.mrb[52].mxu0  ;;  %v2914_v6 = vpop.f32.mrb[52].mxu1 }
 0x187   : > { %2021 = vst.msk [vmem:[%s3686_s12 + $0x4c] sm:$0xf] %vm2001_vm3, %v2791_v59  ;;  %v1515_v44 = vadd.f32 %v2914_v6, %v1226_v19  ;;  %v1243_v10 = vpop.f32.mrb[53].mxu0  ;;  %v1506_v11 = vpop.f32.mrb[53].mxu1  ;;  %v1242_v8 = vadd.f32 %v3671_v62, %v1241_v24 }
 0x188   : > { %2019 = vst.msk [vmem:[%s3686_s12 + $0x44] sm:$0xf] %vm2001_vm3, %v2789_v2  ;;  %v1507_v14 = vadd.f32 %v1506_v11, %v1218_v63  ;;  %v1244_v23 = vpop.f32.mrb[54].mxu0  ;;  %v2915_v16 = vpop.f32.mrb[54].mxu1 }
 0x189   : > { %v1703_v15 = vmax.f32 %v1515_v44, 0.0  ;;  %v1518_v56 = vadd.f32 %v2915_v16, %v1229_v52  ;;  %v1246_v18 = vpop.f32.mrb[55].mxu0  ;;  %v1509_v22 = vpop.f32.mrb[55].mxu1  ;;  %v1245_v38 = vadd.f32 %v3671_v62, %v1244_v23 }
 0x18a   : > { %v1701_v7 = vmax.f32 %v1507_v14, 0.0  ;;  %v1510_v4 = vadd.f32 %v1509_v22, %v1221_v58 }
 0x18b   : > { %v2794_v26 = vpack.c.bf16 %v1703_v15, %v1703_v15  ;;  %v1704_v60 = vmax.f32 %v1518_v56, 0.0 }
 0x18c   : > { %v2792_v48 = vpack.c.bf16 %v1701_v7, %v1701_v7  ;;  %v1702_v27 = vmax.f32 %v1510_v4, 0.0 }
 0x18d   : > { %2024 = vst.msk [vmem:[%s3686_s12 + $0x58] sm:$0xf] %vm2001_vm3, %v2794_v26  ;;  %v2795_v30 = vpack.c.bf16 %v1704_v60, %v1704_v60 }
 0x18e   : > { %2022 = vst.msk [vmem:[%s3686_s12 + $0x50] sm:$0xf] %vm2001_vm3, %v2792_v48  ;;  %v2793_v28 = vpack.c.bf16 %v1702_v27, %v1702_v27  ;;  %v1249_v34 = vpop.f32.mrb[56].mxu0  ;;  %v2918_v35 = vpop.f32.mrb[56].mxu1 }
 0x18f   : > { %2025 = vst.msk [vmem:[%s3686_s12 + $0x5c] sm:$0xf] %vm2001_vm3, %v2795_v30  ;;  %v1531_v0 = vadd.f32 %v2918_v35, %v1242_v8  ;;  %v1251_v43 = vpop.f32.mrb[57].mxu0  ;;  %v1522_v3 = vpop.f32.mrb[57].mxu1  ;;  %v1250_v63 = vadd.f32 %v3671_v62, %v1249_v34 }
 0x190   : > { %2023 = vst.msk [vmem:[%s3686_s12 + $0x54] sm:$0xf] %vm2001_vm3, %v2793_v28  ;;  %v1523_v42 = vadd.f32 %v1522_v3, %v1234_v36  ;;  %v1252_v31 = vpop.f32.mrb[58].mxu0  ;;  %v2919_v46 = vpop.f32.mrb[58].mxu1 }
 0x191   : > { %v1707_v20 = vmax.f32 %v1531_v0, 0.0  ;;  %v1534_v47 = vadd.f32 %v2919_v46, %v1245_v38  ;;  %v1254_v55 = vpop.f32.mrb[59].mxu0  ;;  %v1525_v32 = vpop.f32.mrb[59].mxu1  ;;  %v1253_v11 = vadd.f32 %v3671_v62, %v1252_v31 }
 0x192   : > { %v1705_v50 = vmax.f32 %v1523_v42, 0.0  ;;  %v1526_v51 = vadd.f32 %v1525_v32, %v1237_v39 }
 0x193   : > { %v2798_v54 = vpack.c.bf16 %v1707_v20, %v1707_v20  ;;  %v1708_v12 = vmax.f32 %v1534_v47, 0.0 }
 0x194   : > { %v2796_v19 = vpack.c.bf16 %v1705_v50, %v1705_v50  ;;  %v1706_v59 = vmax.f32 %v1526_v51, 0.0 }
 0x195   : > { %2028 = vst.msk [vmem:[%s3686_s12 + $0x68] sm:$0xf] %vm2001_vm3, %v2798_v54  ;;  %v2799_v40 = vpack.c.bf16 %v1708_v12, %v1708_v12 }
 0x196   : > { %2026 = vst.msk [vmem:[%s3686_s12 + $0x60] sm:$0xf] %vm2001_vm3, %v2796_v19  ;;  %v2797_v2 = vpack.c.bf16 %v1706_v59, %v1706_v59  ;;  %v1257_v24 = vpop.f32.mrb[60].mxu0  ;;  %v2922_v6 = vpop.f32.mrb[60].mxu1 }
 0x197   : > { %2029 = vst.msk [vmem:[%s3686_s12 + $0x6c] sm:$0xf] %vm2001_vm3, %v2799_v40  ;;  %v1258_v52 = vadd.f32 %v3671_v62, %v1257_v24  ;;  %v1259_v44 = vpop.f32.mrb[61].mxu0  ;;  %v1538_v10 = vpop.f32.mrb[61].mxu1 }
 0x198   : > { %2027 = vst.msk [vmem:[%s3686_s12 + $0x64] sm:$0xf] %vm2001_vm3, %v2797_v2  ;;  %v1539_v58 = vadd.f32 %v1538_v10, %v1250_v63  ;;  %v1260_v14 = vpop.f32.mrb[62].mxu0  ;;  %v2923_v23 = vpop.f32.mrb[62].mxu1 }
 0x199   : > { %v1547_v16 = vadd.f32 %v2922_v6, %v1258_v52  ;;  %v1261_v15 = vadd.f32 %v3671_v62, %v1260_v14  ;;  %v1262_v56 = vpop.f32.mrb[63].mxu0  ;;  %v1541_v18 = vpop.f32.mrb[63].mxu1 }
 0x19a   : > { %v1709_v22 = vmax.f32 %v1539_v58, 0.0  ;;  %v1542_v7 = vadd.f32 %v1541_v18, %v1253_v11 }
 0x19b   : > { %v1711_v4 = vmax.f32 %v1547_v16, 0.0  ;;  %v1550_v26 = vadd.f32 %v2923_v23, %v1261_v15 }
 0x19c   : > { %v2800_v60 = vpack.c.bf16 %v1709_v22, %v1709_v22  ;;  %v1710_v48 = vmax.f32 %v1542_v7, 0.0 }
 0x19d   : > { %v2802_v27 = vpack.c.bf16 %v1711_v4, %v1711_v4  ;;  %v1712_v8 = vmax.f32 %v1550_v26, 0.0 }
 0x19e   : > { %2030 = vst.msk [vmem:[%s3686_s12 + $0x70] sm:$0xf] %vm2001_vm3, %v2800_v60  ;;  %v2801_v30 = vpack.c.bf16 %v1710_v48, %v1710_v48  ;;  %v1265_v36 = vpop.f32.mrb[64].mxu0  ;;  %v2926_v28 = vpop.f32.mrb[64].mxu1 }
 0x19f   : > { %2032 = vst.msk [vmem:[%s3686_s12 + $0x78] sm:$0xf] %vm2001_vm3, %v2802_v27  ;;  %v2803_v34 = vpack.c.bf16 %v1712_v8, %v1712_v8  ;;  %v1266_v35 = vadd.f32 %v3671_v62, %v1265_v36  ;;  %v1267_v38 = vpop.f32.mrb[65].mxu0  ;;  %v1554_v0 = vpop.f32.mrb[65].mxu1 }
 0x1a0   : > { %2031 = vst.msk [vmem:[%s3686_s12 + $0x74] sm:$0xf] %vm2001_vm3, %v2801_v30  ;;  %v1268_v43 = vpop.f32.mrb[66].mxu0  ;;  %v2927_v3 = vpop.f32.mrb[66].mxu1 }
 0x1a1   : > { %2033 = vst.msk [vmem:[%s3686_s12 + $0x7c] sm:$0xf] %vm2001_vm3, %v2803_v34  ;;  %v1555_v39 = vadd.f32 %v1554_v0, %v1266_v35  ;;  %v1269_v42 = vadd.f32 %v3671_v62, %v1268_v43  ;;  %v1270_v31 = vpop.f32.mrb[67].mxu0  ;;  %v1557_v46 = vpop.f32.mrb[67].mxu1 }
 0x1a3   : > { %v1713_v20 = vmax.f32 %v1555_v39, 0.0  ;;  %v1558_v47 = vadd.f32 %v1557_v46, %v1269_v42 }
 0x1a5   : > { %v2804_v55 = vpack.c.bf16 %v1713_v20, %v1713_v20  ;;  %v1714_v32 = vmax.f32 %v1558_v47, 0.0 }
 0x1a6   : > { %v1273_v50 = vpop.f32.mrb[68].mxu0  ;;  %v2930_v51 = vpop.f32.mrb[68].mxu1 }
 0x1a7   : > { %2034 = vst.msk [vmem:[%s3686_s12 + $0x80] sm:$0xf] %vm2001_vm3, %v2804_v55  ;;  %v2805_v54 = vpack.c.bf16 %v1714_v32, %v1714_v32  ;;  %v1274_v12 = vadd.f32 %v3671_v62, %v1273_v50  ;;  %v1275_v19 = vpop.f32.mrb[69].mxu0  ;;  %v1570_v59 = vpop.f32.mrb[69].mxu1  ;;  %v1338_v32 = vadd.f32 %v3671_v62, %v3616_v5  ;;  %v1333_v5 = vadd.f32 %v3671_v62, %v3614_v1 }
 0x1a8   : > { %v1276_v40 = vpop.f32.mrb[70].mxu0  ;;  %v2931_v63 = vpop.f32.mrb[70].mxu1 }
 0x1a9   : > { %2035 = vst.msk [vmem:[%s3686_s12 + $0x84] sm:$0xf] %vm2001_vm3, %v2805_v54  ;;  %v1563_v2 = vadd.f32 %v2926_v28, %v1274_v12  ;;  %v1277_v24 = vadd.f32 %v3671_v62, %v1276_v40  ;;  %v1278_v6 = vpop.f32.mrb[71].mxu0  ;;  %v1573_v52 = vpop.f32.mrb[71].mxu1  ;;  %v1330_v12 = vadd.f32 %v3671_v62, %v3610_v61 }
 0x1ab   : > { %v1715_v44 = vmax.f32 %v1563_v2, 0.0  ;;  %v1566_v10 = vadd.f32 %v2927_v3, %v1277_v24 }
 0x1ad   : > { %v2806_v11 = vpack.c.bf16 %v1715_v44, %v1715_v44  ;;  %v1716_v58 = vmax.f32 %v1566_v10, 0.0 }
 0x1ae   : > { %v1281_v14 = vpop.f32.mrb[72].mxu0  ;;  %v3812_v23 = vpop.f32.mrb[72].mxu1 }
 0x1af   : > { %2036 = vst.msk [vmem:[%s3686_s12 + $0x88] sm:$0xf] %vm2001_vm3, %v2806_v11  ;;  %v2807_v16 = vpack.c.bf16 %v1716_v58, %v1716_v58  ;;  %v1282_v15 = vadd.f32 %v3671_v62, %v1281_v14  ;;  %v1283_v56 = vpop.f32.mrb[73].mxu0  ;;  %v1586_v18 = vpop.f32.mrb[73].mxu1 }
 0x1b0   : > { %v1284_v22 = vpop.f32.mrb[74].mxu0  ;;  %v3817_v7 = vpop.f32.mrb[74].mxu1 }
 0x1b1   : > { %2037 = vst.msk [vmem:[%s3686_s12 + $0x8c] sm:$0xf] %vm2001_vm3, %v2807_v16  ;;  %v1571_v4 = vadd.f32 %v1570_v59, %v1282_v15  ;;  %v1285_v26 = vadd.f32 %v3671_v62, %v1284_v22  ;;  %v1286_v60 = vpop.f32.mrb[75].mxu0  ;;  %v1589_v48 = vpop.f32.mrb[75].mxu1 }
 0x1b3   : > { %v1717_v27 = vmax.f32 %v1571_v4, 0.0  ;;  %v1574_v8 = vadd.f32 %v1573_v52, %v1285_v26 }
 0x1b5   : > { %v2808_v30 = vpack.c.bf16 %v1717_v27, %v1717_v27  ;;  %v1718_v36 = vmax.f32 %v1574_v8, 0.0 }
 0x1b6   : > { %v1289_v28 = vpop.f32.mrb[76].mxu0  ;;  %v3822_v34 = vpop.f32.mrb[76].mxu1 }
 0x1b7   : > { %2038 = vst.msk [vmem:[%s3686_s12 + $0x90] sm:$0xf] %vm2001_vm3, %v2808_v30  ;;  %v2809_v35 = vpack.c.bf16 %v1718_v36, %v1718_v36  ;;  %v1290_v38 = vadd.f32 %v3671_v62, %v1289_v28  ;;  %v1291_v0 = vpop.f32.mrb[77].mxu0  ;;  %v3827_v43 = vpop.f32.mrb[77].mxu1  ;;  %v1346_v28 = vadd.f32 %v3671_v62, %v3622_v13  ;;  %v1349_v13 = vadd.f32 %v3671_v62, %v3626_v17 }
 0x1b8   : > { %v1292_v3 = vpop.f32.mrb[78].mxu0  ;;  %v3829_v39 = vpop.f32.mrb[78].mxu1  ;;  %v1357_v0 = vadd.f32 %v3671_v62, %v3634_v25 }
 0x1b9   : > { %2039 = vst.msk [vmem:[%s3686_s12 + $0x94] sm:$0xf] %vm2001_vm3, %v2809_v35  ;;  %v1579_v42 = vadd.f32 %v2930_v51, %v1290_v38  ;;  %v1293_v31 = vadd.f32 %v3671_v62, %v1292_v3  ;;  %v1294_v46 = vpop.f32.mrb[79].mxu0  ;;  %v3834_v20 = vpop.f32.mrb[79].mxu1  ;;  %v1341_v51 = vadd.f32 %v3671_v62, %v3618_v9 }
 0x1bb   : > { %v1719_v47 = vmax.f32 %v1579_v42, 0.0  ;;  %v1582_v55 = vadd.f32 %v2931_v63, %v1293_v31 }
 0x1bd   : > { %v2810_v50 = vpack.c.bf16 %v1719_v47, %v1719_v47  ;;  %v1720_v54 = vmax.f32 %v1582_v55, 0.0 }
 0x1be   : > { %v1297_v19 = vpop.f32.mrb[80].mxu0  ;;  %v2942_v59 = vpop.f32.mrb[80].mxu1 }
 0x1bf   : > { %2040 = vst.msk [vmem:[%s3686_s12 + $0x98] sm:$0xf] %vm2001_vm3, %v2810_v50  ;;  %v2811_v40 = vpack.c.bf16 %v1720_v54, %v1720_v54  ;;  %v1298_v2 = vadd.f32 %v3671_v62, %v1297_v19  ;;  %v1627_v63 = vadd.f32 %v2942_v59, %v1338_v32  ;;  %v1299_v24 = vpop.f32.mrb[81].mxu0  ;;  %v1618_v6 = vpop.f32.mrb[81].mxu1 }
 0x1c0   : > { %v1619_v52 = vadd.f32 %v1618_v6, %v1330_v12  ;;  %v1300_v44 = vpop.f32.mrb[82].mxu0  ;;  %v2943_v10 = vpop.f32.mrb[82].mxu1 }
 0x1c1   : > { %2041 = vst.msk [vmem:[%s3686_s12 + $0x9c] sm:$0xf] %vm2001_vm3, %v2811_v40  ;;  %v1587_v61 = vadd.f32 %v1586_v18, %v1298_v2  ;;  %v1731_v11 = vmax.f32 %v1627_v63, 0.0  ;;  %v1301_v9 = vadd.f32 %v3671_v62, %v1300_v44  ;;  %v1630_v58 = vadd.f32 %v2943_v10, %v1341_v51  ;;  %v1302_v14 = vpop.f32.mrb[83].mxu0  ;;  %v1621_v16 = vpop.f32.mrb[83].mxu1 }
 0x1c2   : > { %v1729_v15 = vmax.f32 %v1619_v52, 0.0  ;;  %v1622_v56 = vadd.f32 %v1621_v16, %v1333_v5  ;;  %v1354_v18 = vadd.f32 %v3671_v62, %v3630_v21 }
 0x1c3   : > { %v1721_v22 = vmax.f32 %v1587_v61, 0.0  ;;  %v2822_v4 = vpack.c.bf16 %v1731_v11, %v1731_v11  ;;  %v1590_v1 = vadd.f32 %v1589_v48, %v1301_v9  ;;  %v1732_v26 = vmax.f32 %v1630_v58, 0.0 }
 0x1c4   : > { %v2820_v60 = vpack.c.bf16 %v1729_v15, %v1729_v15  ;;  %v1730_v27 = vmax.f32 %v1622_v56, 0.0  ;;  %v1362_v61 = vadd.f32 %v3671_v62, %v3638_v29  ;;  %v1373_v58 = vadd.f32 %v3671_v62, %v3650_v41 }
 0x1c5   : > { %v2812_v8 = vpack.c.bf16 %v1721_v22, %v1721_v22  ;;  %2052 = vst.msk [vmem:[%s3686_s12 + $0xc8] sm:$0xf] %vm2001_vm3, %v2822_v4  ;;  %v1722_v30 = vmax.f32 %v1590_v1, 0.0  ;;  %v2823_v36 = vpack.c.bf16 %v1732_v26, %v1732_v26  ;;  %v1365_v29 = vadd.f32 %v3671_v62, %v3642_v33 }
 0x1c6   : > { %2050 = vst.msk [vmem:[%s3686_s12 + $0xc0] sm:$0xf] %vm2001_vm3, %v2820_v60  ;;  %v2821_v35 = vpack.c.bf16 %v1730_v27, %v1730_v27  ;;  %v1305_v48 = vpop.f32.mrb[84].mxu0  ;;  %v2946_v38 = vpop.f32.mrb[84].mxu1 }
 0x1c7   : > { %2042 = vst.msk [vmem:[%s3686_s12 + $0xa0] sm:$0xf] %vm2001_vm3, %v2812_v8  ;;  %v2813_v21 = vpack.c.bf16 %v1722_v30, %v1722_v30  ;;  %2053 = vst.msk [vmem:[%s3686_s12 + $0xcc] sm:$0xf] %vm2001_vm3, %v2823_v36  ;;  %v1306_v3 = vadd.f32 %v3671_v62, %v1305_v48  ;;  %v1643_v42 = vadd.f32 %v2946_v38, %v1354_v18  ;;  %v1307_v31 = vpop.f32.mrb[85].mxu0  ;;  %v1634_v46 = vpop.f32.mrb[85].mxu1 }
 0x1c8   : > { %2051 = vst.msk [vmem:[%s3686_s12 + $0xc4] sm:$0xf] %vm2001_vm3, %v2821_v35  ;;  %v1635_v47 = vadd.f32 %v1634_v46, %v1346_v28  ;;  %v1308_v55 = vpop.f32.mrb[86].mxu0  ;;  %v2947_v32 = vpop.f32.mrb[86].mxu1  ;;  %v1378_v31 = vadd.f32 %v3671_v62, %v3654_v45  ;;  %v1381_v45 = vadd.f32 %v3671_v62, %v3658_v49 }
 0x1c9   : > { %2043 = vst.msk [vmem:[%s3686_s12 + $0xa4] sm:$0xf] %vm2001_vm3, %v2813_v21  ;;  %v1595_v25 = vadd.f32 %v3812_v23, %v1306_v3  ;;  %v1735_v50 = vmax.f32 %v1643_v42, 0.0  ;;  %v1309_v54 = vadd.f32 %v3671_v62, %v1308_v55  ;;  %v1646_v12 = vadd.f32 %v2947_v32, %v1357_v0  ;;  %v1310_v19 = vpop.f32.mrb[87].mxu0  ;;  %v1637_v59 = vpop.f32.mrb[87].mxu1 }
 0x1ca   : > { %v1733_v51 = vmax.f32 %v1635_v47, 0.0  ;;  %v1638_v40 = vadd.f32 %v1637_v59, %v1349_v13  ;;  %v1370_v23 = vadd.f32 %v3671_v62, %v3646_v37  ;;  %v1389_v47 = vadd.f32 %v3671_v62, %v3666_v57 }
 0x1cb   : > { %v1723_v17 = vmax.f32 %v1595_v25, 0.0  ;;  %v2826_v2 = vpack.c.bf16 %v1735_v50, %v1735_v50  ;;  %v1598_v63 = vadd.f32 %v3817_v7, %v1309_v54  ;;  %v1736_v24 = vmax.f32 %v1646_v12, 0.0 }
 0x1cc   : > { %v2824_v6 = vpack.c.bf16 %v1733_v51, %v1733_v51  ;;  %v1734_v5 = vmax.f32 %v1638_v40, 0.0 }
 0x1cd   : > { %v2814_v52 = vpack.c.bf16 %v1723_v17, %v1723_v17  ;;  %2056 = vst.msk [vmem:[%s3686_s12 + $0xd8] sm:$0xf] %vm2001_vm3, %v2826_v2  ;;  %v1724_v44 = vmax.f32 %v1598_v63, 0.0  ;;  %v2827_v10 = vpack.c.bf16 %v1736_v24, %v1736_v24 }
 0x1ce   : > { %2054 = vst.msk [vmem:[%s3686_s12 + $0xd0] sm:$0xf] %vm2001_vm3, %v2824_v6  ;;  %v2825_v11 = vpack.c.bf16 %v1734_v5, %v1734_v5  ;;  %v1313_v7 = vpop.f32.mrb[88].mxu0  ;;  %v2950_v9 = vpop.f32.mrb[88].mxu1 }
 0x1cf   : > { %2044 = vst.msk [vmem:[%s3686_s12 + $0xa8] sm:$0xf] %vm2001_vm3, %v2814_v52  ;;  %v2815_v37 = vpack.c.bf16 %v1724_v44, %v1724_v44  ;;  %2057 = vst.msk [vmem:[%s3686_s12 + $0xdc] sm:$0xf] %vm2001_vm3, %v2827_v10  ;;  %v1314_v14 = vadd.f32 %v3671_v62, %v1313_v7  ;;  %v1659_v16 = vadd.f32 %v2950_v9, %v1370_v23  ;;  %v1315_v15 = vpop.f32.mrb[89].mxu0  ;;  %v1650_v56 = vpop.f32.mrb[89].mxu1 }
 0x1d0   : > { %2055 = vst.msk [vmem:[%s3686_s12 + $0xd4] sm:$0xf] %vm2001_vm3, %v2825_v11  ;;  %v1651_v22 = vadd.f32 %v1650_v56, %v1362_v61  ;;  %v1316_v4 = vpop.f32.mrb[90].mxu0  ;;  %v2951_v1 = vpop.f32.mrb[90].mxu1 }
 0x1d1   : > { %2045 = vst.msk [vmem:[%s3686_s12 + $0xac] sm:$0xf] %vm2001_vm3, %v2815_v37  ;;  %v1603_v41 = vadd.f32 %v3827_v43, %v1314_v14  ;;  %v1739_v26 = vmax.f32 %v1659_v16, 0.0  ;;  %v1317_v60 = vadd.f32 %v3671_v62, %v1316_v4  ;;  %v1662_v27 = vadd.f32 %v2951_v1, %v1373_v58  ;;  %v1318_v18 = vpop.f32.mrb[91].mxu0  ;;  %v1653_v8 = vpop.f32.mrb[91].mxu1 }
 0x1d2   : > { %v1737_v30 = vmax.f32 %v1651_v22, 0.0  ;;  %v1654_v36 = vadd.f32 %v1653_v8, %v1365_v29  ;;  %v1386_v43 = vadd.f32 %v3671_v62, %v3662_v53 }
 0x1d3   : > { %v1725_v33 = vmax.f32 %v1603_v41, 0.0  ;;  %v2830_v28 = vpack.c.bf16 %v1739_v26, %v1739_v26  ;;  %v1606_v35 = vadd.f32 %v3834_v20, %v1317_v60  ;;  %v1740_v48 = vmax.f32 %v1662_v27, 0.0 }
 0x1d4   : > { %v2828_v38 = vpack.c.bf16 %v1737_v30, %v1737_v30  ;;  %v1738_v0 = vmax.f32 %v1654_v36, 0.0 }
 0x1d5   : > { %v2816_v21 = vpack.c.bf16 %v1725_v33, %v1725_v33  ;;  %2060 = vst.msk [vmem:[%s3686_s12 + $0xe8] sm:$0xf] %vm2001_vm3, %v2830_v28  ;;  %v1726_v3 = vmax.f32 %v1606_v35, 0.0  ;;  %v2831_v42 = vpack.c.bf16 %v1740_v48, %v1740_v48 }
 0x1d6   : > { %2058 = vst.msk [vmem:[%s3686_s12 + $0xe0] sm:$0xf] %vm2001_vm3, %v2828_v38  ;;  %v2829_v46 = vpack.c.bf16 %v1738_v0, %v1738_v0  ;;  %v1321_v20 = vpop.f32.mrb[92].mxu0  ;;  %v2954_v13 = vpop.f32.mrb[92].mxu1 }
 0x1d7   : > { %2046 = vst.msk [vmem:[%s3686_s12 + $0xb0] sm:$0xf] %vm2001_vm3, %v2816_v21  ;;  %v2817_v53 = vpack.c.bf16 %v1726_v3, %v1726_v3  ;;  %2061 = vst.msk [vmem:[%s3686_s12 + $0xec] sm:$0xf] %vm2001_vm3, %v2831_v42  ;;  %v1322_v55 = vadd.f32 %v3671_v62, %v1321_v20  ;;  %v1675_v32 = vadd.f32 %v2954_v13, %v1386_v43  ;;  %v1323_v25 = vpop.f32.mrb[93].mxu0  ;;  %v1666_v50 = vpop.f32.mrb[93].mxu1 }
 0x1d8   : > { %2059 = vst.msk [vmem:[%s3686_s12 + $0xe4] sm:$0xf] %vm2001_vm3, %v2829_v46  ;;  %v1667_v54 = vadd.f32 %v1666_v50, %v1378_v31  ;;  %v1324_v12 = vpop.f32.mrb[94].mxu0  ;;  %v2955_v19 = vpop.f32.mrb[94].mxu1 }
 0x1d9   : > { %2047 = vst.msk [vmem:[%s3686_s12 + $0xb4] sm:$0xf] %vm2001_vm3, %v2817_v53  ;;  %v1611_v57 = vadd.f32 %v3822_v34, %v1322_v55  ;;  %v1743_v59 = vmax.f32 %v1675_v32, 0.0  ;;  %v1325_v51 = vadd.f32 %v3671_v62, %v1324_v12  ;;  %v1678_v40 = vadd.f32 %v2955_v19, %v1389_v47  ;;  %v1326_v17 = vpop.f32.mrb[95].mxu0  ;;  %v1669_v2 = vpop.f32.mrb[95].mxu1 }
 0x1da   : > { %v1741_v63 = vmax.f32 %v1667_v54, 0.0  ;;  %v1670_v49 = vadd.f32 %v1669_v2, %v1381_v45 }
 0x1db   : > { %v1727_v24 = vmax.f32 %v1611_v57, 0.0  ;;  %v2834_v6 = vpack.c.bf16 %v1743_v59, %v1743_v59  ;;  %v1614_v5 = vadd.f32 %v3829_v39, %v1325_v51  ;;  %v1744_v23 = vmax.f32 %v1678_v40, 0.0  ;;  %2072 = sbr.rel (!%p3365_p4) target bundleno = 573 (0x23d), region = 36 }
 0x1dc   : > { %v2832_v52 = vpack.c.bf16 %v1741_v63, %v1741_v63  ;;  %v1742_v34 = vmax.f32 %v1670_v49, 0.0 }
 0x1dd   : > { %v2818_v44 = vpack.c.bf16 %v1727_v24, %v1727_v24  ;;  %2064 = vst.msk [vmem:[%s3686_s12 + $0xf8] sm:$0xf] %vm2001_vm3, %v2834_v6  ;;  %v1728_v62 = vmax.f32 %v1614_v5, 0.0  ;;  %v2835_v10 = vpack.c.bf16 %v1744_v23, %v1744_v23 }
 0x1de   : > { %2062 = vst.msk [vmem:[%s3686_s12 + $0xf0] sm:$0xf] %vm2001_vm3, %v2832_v52  ;;  %v2833_v61 = vpack.c.bf16 %v1742_v34, %v1742_v34 }
 0x1df   : > { %2048 = vst.msk [vmem:[%s3686_s12 + $0xb8] sm:$0xf] %vm2001_vm3, %v2818_v44  ;;  %v2819_v11 = vpack.c.bf16 %v1728_v62, %v1728_v62  ;;  %2065 = vst.msk [vmem:[%s3686_s12 + $0xfc] sm:$0xf] %vm2001_vm3, %v2835_v10 }
 0x1e0   : > { %2063 = vst.msk [vmem:[%s3686_s12 + $0xf4] sm:$0xf] %vm2001_vm3, %v2833_v61 }
 0x1e1   : > { %2049 = vst.msk [vmem:[%s3686_s12 + $0xbc] sm:$0xf] %vm2001_vm3, %v2819_v11 }
 0x1e2   : > { %s4145_s11 = smov (!%p2075_p8, %s2074_s11), 64 }
 0x1e3   : > { %s2757_s22 = sshll.u32 %s4145_s11, 6 }
 0x1e4   : > { %p2760_p9 = scmp.eq.s32.totalorder %s2757_s22, 0 }
 0x1e5   : > { %s3947_s24 = sshrl.u32 (!%p2760_p9), %s4145_s11, 6 }
 0x1e6   : > { %2083 = sbr.rel (%p2760_p9) target bundleno = 573 (0x23d), region = 40  ;;  %p2761_p10 = scmp.le.s32.totalorder (!%p2760_p9), %s3947_s24, 0 }
 0x1ed   : > { %2488 = sbr.rel (%p2761_p10) target bundleno = 552 (0x228), region = 112  ;;  %s4138_s15 = smov (!%p2761_p10), %s3941_s21 }
 0x1ee   : > { %s4139_s20 = smov (!%p2761_p10), %s3686_s12  ;;  %s3956_s23 = smov (!%p2761_p10), 0  }
 0x1ef   : > { %s3958_s25 = smov (!%p2761_p10), 0  }
 0x1f4 LB: >> { %v2099_v39 = vld [vmem:[%s3292_s20] sm:$0xf]  ;;  %v2101_v7 = vld [vmem:[%s3292_s20 + $0x4] sm:$0xf]  ;;  %v2103_v9 = vld [vmem:[%s3292_s20 + $0x8] sm:$0xf]  ;;  %s3300_s25 = sphi %s3958_s25, %s2093_s25   ;;  %s3296_s23 = sphi %s3956_s23, %s4140_s23   ;;  %s3292_s20 = sphi %s4139_s20, %s2232_s20   ;;  %s3288_s15 = sphi %s4138_s15, %s2233_s15  }
 0x1f5   : >> { %2100 = vst [vmem:[%s3288_s15] sm:$0xf] %v2099_v39  ;;  %2102 = vst [vmem:[%s3288_s15 + $0x4] sm:$0xf] %v2101_v7  ;;  %v2105_v58 = vld [vmem:[%s3292_s20 + $0xc] sm:$0xf]  ;;  %s2227_s26 = sadd.s32 1, %s3296_s23 }
 0x1f6   : >> { %2104 = vst [vmem:[%s3288_s15 + $0x8] sm:$0xf] %v2103_v9  ;;  %v2107_v37 = vld [vmem:[%s3292_s20 + $0x10] sm:$0xf]  ;;  %v2109_v14 = vld [vmem:[%s3292_s20 + $0x14] sm:$0xf]  ;;  %p2228_p11 = scmp.ge.s32.totalorder %s2227_s26, %s3947_s24 }
 0x1f7   : >> { %2106 = vst [vmem:[%s3288_s15 + $0xc] sm:$0xf] %v2105_v58  ;;  %2108 = vst [vmem:[%s3288_s15 + $0x10] sm:$0xf] %v2107_v37  ;;  %v2111_v16 = vld [vmem:[%s3292_s20 + $0x18] sm:$0xf] }
 0x1f8   : >> { %2110 = vst [vmem:[%s3288_s15 + $0x14] sm:$0xf] %v2109_v14  ;;  %v2113_v15 = vld [vmem:[%s3292_s20 + $0x1c] sm:$0xf]  ;;  %v2115_v56 = vld [vmem:[%s3292_s20 + $0x20] sm:$0xf] }
 0x1f9   : >> { %2112 = vst [vmem:[%s3288_s15 + $0x18] sm:$0xf] %v2111_v16  ;;  %2114 = vst [vmem:[%s3288_s15 + $0x1c] sm:$0xf] %v2113_v15  ;;  %v2117_v29 = vld [vmem:[%s3292_s20 + $0x24] sm:$0xf] }
 0x1fa   : >> { %2116 = vst [vmem:[%s3288_s15 + $0x20] sm:$0xf] %v2115_v56  ;;  %v2119_v22 = vld [vmem:[%s3292_s20 + $0x28] sm:$0xf]  ;;  %v2121_v4 = vld [vmem:[%s3292_s20 + $0x2c] sm:$0xf] }
 0x1fb   : >> { %2118 = vst [vmem:[%s3288_s15 + $0x24] sm:$0xf] %v2117_v29  ;;  %2120 = vst [vmem:[%s3288_s15 + $0x28] sm:$0xf] %v2119_v22  ;;  %v2123_v1 = vld [vmem:[%s3292_s20 + $0x30] sm:$0xf] }
 0x1fc   : >> { %2122 = vst [vmem:[%s3288_s15 + $0x2c] sm:$0xf] %v2121_v4  ;;  %v2125_v41 = vld [vmem:[%s3292_s20 + $0x34] sm:$0xf]  ;;  %v2127_v26 = vld [vmem:[%s3292_s20 + $0x38] sm:$0xf] }
 0x1fd   : >> { %2124 = vst [vmem:[%s3288_s15 + $0x30] sm:$0xf] %v2123_v1  ;;  %2126 = vst [vmem:[%s3288_s15 + $0x34] sm:$0xf] %v2125_v41  ;;  %v2129_v60 = vld [vmem:[%s3292_s20 + $0x3c] sm:$0xf] }
 0x1fe   : >> { %2128 = vst [vmem:[%s3288_s15 + $0x38] sm:$0xf] %v2127_v26  ;;  %v2131_v27 = vld [vmem:[%s3292_s20 + $0x40] sm:$0xf]  ;;  %v2133_v18 = vld [vmem:[%s3292_s20 + $0x44] sm:$0xf] }
 0x1ff   : >> { %2130 = vst [vmem:[%s3288_s15 + $0x3c] sm:$0xf] %v2129_v60  ;;  %2132 = vst [vmem:[%s3288_s15 + $0x40] sm:$0xf] %v2131_v27  ;;  %v2135_v8 = vld [vmem:[%s3292_s20 + $0x48] sm:$0xf] }
 0x200   : >> { %2134 = vst [vmem:[%s3288_s15 + $0x44] sm:$0xf] %v2133_v18  ;;  %v2137_v30 = vld [vmem:[%s3292_s20 + $0x4c] sm:$0xf]  ;;  %v2139_v36 = vld [vmem:[%s3292_s20 + $0x50] sm:$0xf] }
 0x201   : >> { %2136 = vst [vmem:[%s3288_s15 + $0x48] sm:$0xf] %v2135_v8  ;;  %2138 = vst [vmem:[%s3288_s15 + $0x4c] sm:$0xf] %v2137_v30  ;;  %v2141_v33 = vld [vmem:[%s3292_s20 + $0x54] sm:$0xf] }
 0x202   : >> { %2140 = vst [vmem:[%s3288_s15 + $0x50] sm:$0xf] %v2139_v36  ;;  %v2143_v28 = vld [vmem:[%s3292_s20 + $0x58] sm:$0xf]  ;;  %v2145_v35 = vld [vmem:[%s3292_s20 + $0x5c] sm:$0xf] }
 0x203   : >> { %2142 = vst [vmem:[%s3288_s15 + $0x54] sm:$0xf] %v2141_v33  ;;  %2144 = vst [vmem:[%s3288_s15 + $0x58] sm:$0xf] %v2143_v28  ;;  %v2147_v48 = vld [vmem:[%s3292_s20 + $0x60] sm:$0xf] }
 0x204   : >> { %2146 = vst [vmem:[%s3288_s15 + $0x5c] sm:$0xf] %v2145_v35  ;;  %v2149_v38 = vld [vmem:[%s3292_s20 + $0x64] sm:$0xf]  ;;  %v2151_v0 = vld [vmem:[%s3292_s20 + $0x68] sm:$0xf] }
 0x205   : >> { %2148 = vst [vmem:[%s3288_s15 + $0x60] sm:$0xf] %v2147_v48  ;;  %2150 = vst [vmem:[%s3288_s15 + $0x64] sm:$0xf] %v2149_v38  ;;  %v2153_v43 = vld [vmem:[%s3292_s20 + $0x6c] sm:$0xf] }
 0x206   : >> { %2152 = vst [vmem:[%s3288_s15 + $0x68] sm:$0xf] %v2151_v0  ;;  %v2155_v21 = vld [vmem:[%s3292_s20 + $0x70] sm:$0xf]  ;;  %v2157_v3 = vld [vmem:[%s3292_s20 + $0x74] sm:$0xf] }
 0x207   : >> { %2154 = vst [vmem:[%s3288_s15 + $0x6c] sm:$0xf] %v2153_v43  ;;  %2156 = vst [vmem:[%s3288_s15 + $0x70] sm:$0xf] %v2155_v21  ;;  %v2159_v42 = vld [vmem:[%s3292_s20 + $0x78] sm:$0xf] }
 0x208   : >> { %2158 = vst [vmem:[%s3288_s15 + $0x74] sm:$0xf] %v2157_v3  ;;  %v2161_v31 = vld [vmem:[%s3292_s20 + $0x7c] sm:$0xf]  ;;  %v2163_v46 = vld [vmem:[%s3292_s20 + $0x80] sm:$0xf] }
 0x209   : >> { %2160 = vst [vmem:[%s3288_s15 + $0x78] sm:$0xf] %v2159_v42  ;;  %2162 = vst [vmem:[%s3288_s15 + $0x7c] sm:$0xf] %v2161_v31  ;;  %v2165_v20 = vld [vmem:[%s3292_s20 + $0x84] sm:$0xf] }
 0x20a   : >> { %2164 = vst [vmem:[%s3288_s15 + $0x80] sm:$0xf] %v2163_v46  ;;  %v2167_v13 = vld [vmem:[%s3292_s20 + $0x88] sm:$0xf]  ;;  %v2169_v47 = vld [vmem:[%s3292_s20 + $0x8c] sm:$0xf] }
 0x20b   : >> { %2166 = vst [vmem:[%s3288_s15 + $0x84] sm:$0xf] %v2165_v20  ;;  %2168 = vst [vmem:[%s3288_s15 + $0x88] sm:$0xf] %v2167_v13  ;;  %v2171_v53 = vld [vmem:[%s3292_s20 + $0x90] sm:$0xf] }
 0x20c   : >> { %2170 = vst [vmem:[%s3288_s15 + $0x8c] sm:$0xf] %v2169_v47  ;;  %v2173_v55 = vld [vmem:[%s3292_s20 + $0x94] sm:$0xf]  ;;  %v2175_v32 = vld [vmem:[%s3292_s20 + $0x98] sm:$0xf] }
 0x20d   : >> { %2172 = vst [vmem:[%s3288_s15 + $0x90] sm:$0xf] %v2171_v53  ;;  %2174 = vst [vmem:[%s3288_s15 + $0x94] sm:$0xf] %v2173_v55  ;;  %v2177_v25 = vld [vmem:[%s3292_s20 + $0x9c] sm:$0xf] }
 0x20e   : >> { %2176 = vst [vmem:[%s3288_s15 + $0x98] sm:$0xf] %v2175_v32  ;;  %v2179_v50 = vld [vmem:[%s3292_s20 + $0xa0] sm:$0xf]  ;;  %v2181_v45 = vld [vmem:[%s3292_s20 + $0xa4] sm:$0xf] }
 0x20f   : >> { %2178 = vst [vmem:[%s3288_s15 + $0x9c] sm:$0xf] %v2177_v25  ;;  %2180 = vst [vmem:[%s3288_s15 + $0xa0] sm:$0xf] %v2179_v50  ;;  %v2183_v54 = vld [vmem:[%s3292_s20 + $0xa8] sm:$0xf] }
 0x210   : >> { %2182 = vst [vmem:[%s3288_s15 + $0xa4] sm:$0xf] %v2181_v45  ;;  %v2185_v12 = vld [vmem:[%s3292_s20 + $0xac] sm:$0xf]  ;;  %v2187_v19 = vld [vmem:[%s3292_s20 + $0xb0] sm:$0xf] }
 0x211   : >> { %2184 = vst [vmem:[%s3288_s15 + $0xa8] sm:$0xf] %v2183_v54  ;;  %2186 = vst [vmem:[%s3288_s15 + $0xac] sm:$0xf] %v2185_v12  ;;  %v2189_v57 = vld [vmem:[%s3292_s20 + $0xb4] sm:$0xf] }
 0x212   : >> { %2188 = vst [vmem:[%s3288_s15 + $0xb0] sm:$0xf] %v2187_v19  ;;  %v2191_v59 = vld [vmem:[%s3292_s20 + $0xb8] sm:$0xf]  ;;  %v2193_v51 = vld [vmem:[%s3292_s20 + $0xbc] sm:$0xf] }
 0x213   : >> { %2190 = vst [vmem:[%s3288_s15 + $0xb4] sm:$0xf] %v2189_v57  ;;  %2192 = vst [vmem:[%s3288_s15 + $0xb8] sm:$0xf] %v2191_v59  ;;  %v2195_v40 = vld [vmem:[%s3292_s20 + $0xc0] sm:$0xf] }
 0x214   : >> { %2194 = vst [vmem:[%s3288_s15 + $0xbc] sm:$0xf] %v2193_v51  ;;  %v2197_v17 = vld [vmem:[%s3292_s20 + $0xc4] sm:$0xf]  ;;  %v2199_v2 = vld [vmem:[%s3292_s20 + $0xc8] sm:$0xf] }
 0x215   : >> { %2196 = vst [vmem:[%s3288_s15 + $0xc0] sm:$0xf] %v2195_v40  ;;  %2198 = vst [vmem:[%s3288_s15 + $0xc4] sm:$0xf] %v2197_v17  ;;  %v2201_v63 = vld [vmem:[%s3292_s20 + $0xcc] sm:$0xf] }
 0x216   : >> { %2200 = vst [vmem:[%s3288_s15 + $0xc8] sm:$0xf] %v2199_v2  ;;  %v2203_v49 = vld [vmem:[%s3292_s20 + $0xd0] sm:$0xf]  ;;  %v2205_v24 = vld [vmem:[%s3292_s20 + $0xd4] sm:$0xf] }
 0x217   : >> { %2202 = vst [vmem:[%s3288_s15 + $0xcc] sm:$0xf] %v2201_v63  ;;  %2204 = vst [vmem:[%s3288_s15 + $0xd0] sm:$0xf] %v2203_v49  ;;  %v2207_v6 = vld [vmem:[%s3292_s20 + $0xd8] sm:$0xf] }
 0x218   : >> { %2206 = vst [vmem:[%s3288_s15 + $0xd4] sm:$0xf] %v2205_v24  ;;  %v2209_v5 = vld [vmem:[%s3292_s20 + $0xdc] sm:$0xf]  ;;  %v2211_v23 = vld [vmem:[%s3292_s20 + $0xe0] sm:$0xf] }
 0x219   : >> { %2208 = vst [vmem:[%s3288_s15 + $0xd8] sm:$0xf] %v2207_v6  ;;  %2210 = vst [vmem:[%s3288_s15 + $0xdc] sm:$0xf] %v2209_v5  ;;  %v2213_v52 = vld [vmem:[%s3292_s20 + $0xe4] sm:$0xf] }
 0x21a   : >> { %2212 = vst [vmem:[%s3288_s15 + $0xe0] sm:$0xf] %v2211_v23  ;;  %v2215_v34 = vld [vmem:[%s3292_s20 + $0xe8] sm:$0xf]  ;;  %v2217_v44 = vld [vmem:[%s3292_s20 + $0xec] sm:$0xf] }
 0x21b   : >> { %2214 = vst [vmem:[%s3288_s15 + $0xe4] sm:$0xf] %v2213_v52  ;;  %2216 = vst [vmem:[%s3288_s15 + $0xe8] sm:$0xf] %v2215_v34  ;;  %v2219_v62 = vld [vmem:[%s3292_s20 + $0xf0] sm:$0xf] }
 0x21c   : >> { %2218 = vst [vmem:[%s3288_s15 + $0xec] sm:$0xf] %v2217_v44  ;;  %v2221_v10 = vld [vmem:[%s3292_s20 + $0xf4] sm:$0xf]  ;;  %v2223_v61 = vld [vmem:[%s3292_s20 + $0xf8] sm:$0xf] }
 0x21d   : >> { %2220 = vst [vmem:[%s3288_s15 + $0xf0] sm:$0xf] %v2219_v62  ;;  %2222 = vst [vmem:[%s3288_s15 + $0xf4] sm:$0xf] %v2221_v10  ;;  %v2225_v11 = vld [vmem:[%s3292_s20 + $0xfc] sm:$0xf] }
 0x21e   : >> { %2224 = vst [vmem:[%s3288_s15 + $0xf8] sm:$0xf] %v2223_v61  ;;  %2226 = vst [vmem:[%s3288_s15 + $0xfc] sm:$0xf] %v2225_v11  ;;  %s4147_s26 = smov (%p2228_p11, %s2227_s26), 0  ;;  %s2093_s25 = sadd.s32 1, %s3300_s25  }
 0x21f   : >> { %s2762_s27 = sshll.u32 %s4147_s26, 8  ;;  %p2092_p12 = scmp.ge.s32.totalorder %s2093_s25, %s3947_s24 }
 0x220   : >> { %s2232_s20 = scalar_lea.vmem %s3686_s12, %s2762_s27 [#allocation2]   ;;  %s2233_s15 = scalar_lea.vmem %s3941_s21, %s2762_s27  }
 0x221   : >> { %s4140_s23 = smov %s4147_s26  ;;  %2095 = sbr.rel (!%p2092_p12) target bundleno = 500 (0x1f4), region = 118 }
 0x228 PF: > { %s4115_s28 = sand.u32 63, %s4145_s11   ;;  %s2837_s29 = sshll.u32 %s3947_s24, 8 }
 0x229   : > { %s2238_s30 = scalar_lea.vmem %s3686_s12, %s2837_s29 [#allocation2]   ;;  %s2240_s4 = scalar_lea.vmem %s3941_s21, %s2837_s29  }
 0x22a   : > { %p2767_p13 = scmp.le.s32.totalorder %s4115_s28, 0 }
 0x22b   : > { %s3302_s5 = smov (!%p2767_p13), %s2240_s4   ;;  %s3306_s6 = smov (!%p2767_p13), %s2238_s30  }
 0x22c   : > { %2502 = sbr.rel (%p2767_p13) target bundleno = 573 (0x23d), region = 123  ;;  %s3310_s9 = smov (!%p2767_p13), 0  }
 0x22d   : > { %s3314_s7 = smov (!%p2767_p13), 0  }
 0x233 LB: >> { %v2250_v39 = vld [vmem:[%s3308_s6] sm:$0xf]  ;;  %s2252_s8 = sadd.s32 1, %s3312_s9  ;;  %s2244_s7 = sadd.s32 1, %s3316_s7   ;;  %s3316_s7 = sphi %s3314_s7, %s2244_s7   ;;  %s3312_s9 = sphi %s3310_s9, %s3311_s9   ;;  %s3308_s6 = sphi %s3306_s6, %s2257_s6   ;;  %s3304_s5 = sphi %s3302_s5, %s2258_s5  }
 0x234   : >> { %2251 = vst [vmem:[%s3304_s5] sm:$0xf] %v2250_v39  ;;  %p2253_p0 = scmp.ge.s32.totalorder %s2252_s8, %s4115_s28  ;;  %p2243_p1 = scmp.ge.s32.totalorder %s2244_s7, %s4115_s28 }
 0x236   : >> { %s4149_s8 = smov (%p2253_p0, %s2252_s8), 0  ;;  %2246 = sbr.rel (!%p2243_p1) target bundleno = 563 (0x233), region = 129 }
 0x237   : >> { %s2768_s10 = sshll.u32 %s4149_s8, 2  ;;  %s3311_s9 = smov %s4149_s8  }
 0x238   : >> { %s2257_s6 = scalar_lea.vmem %s2238_s30, %s2768_s10 [#allocation2]   ;;  %s2258_s5 = scalar_lea.vmem %s2240_s4, %s2768_s10  }
 0x23d PF: > { %p10_p2 = scmp.ge.s32.totalorder %s3355_s16, 5   ;;  %s4141_s12 = smov %s3280_s13 }
 0x23e   : > { %s4142_s13 = smov %s3363_s19  ;;  %s4143_s14 = smov %s3355_s16 }
 0x23f   :  { %12 = sbr.rel (!%p10_p2) target bundleno = 2 (0x2), region = 140 }

// kernel: _lambda_.9
= control target key start
LH: loop header
LB: loop body
LE: loop exit
PB: predicated region body
PF: predicated region fallthrough
CT: control target
= control target key end

     0   :  { %s2005_s6 = smov 0   ;;  %s2007_s7 = smov 0   ;;  %s2711_s0 = inlined_call_operand.vmem [shape: bf16[9,242,64], index: 0, kind: input, shape index: {}]   ;;  %s2712_s1 = inlined_call_operand.vmem [shape: bf16[242,64], index: 1, kind: output, shape index: {}]  }
   0x1   :  { %s2009_s8 = smov 0  }
   0x2 LB: > { %s2021_s9 = sadd.s32 4294967295, %s1929_s8   ;;  %s2024_s10 = sadd.s32 1, %s1929_s8   ;;  %s1929_s8 = sphi %s2009_s8, %s2725_s8   ;;  %s1925_s7 = sphi %s2007_s7, %s2724_s7   ;;  %s1921_s6 = sphi %s2005_s6, %s2723_s6  }
   0x3   : > { %s15_s11 = ssub.s32 %s1929_s8, %s2024_s10  ;;  %s18_s12 = sadd.s32 1, %s1925_s7 }
   0x4   : > { %p16_p0 = scmp.eq.s32.totalorder %s15_s11, 0  ;;  %p25_p1 = scmp.ne.s32.totalorder %s1925_s7, %s1921_s6 }
   0x5   : > { %p26_p2 = scmp.eq.s32.totalorder %s1929_s8, 0  ;;  %p55_p3 = scmp.eq.s32.totalorder %s2021_s9, 1 }
   0x6   : > { %s2034_s13 = scalar_select %p16_p0, %s1925_s7, %s18_s12  }
   0x7   : > { %p27_p4 = por %p26_p2, %p25_p1  ;;  %p2036_p5 = por %p55_p3, %p25_p1 }
   0x8   : > { %p1650_p6 = scmp.ge.s32.totalorder %s1929_s8, 2 }
   0xa   : > { %77 = sbr.rel (%p1650_p6) target bundleno = 126 (0x7e), region = 16 }
  0x11   : > { %80 = sbr.rel (!%p27_p4) target bundleno = 126 (0x7e), region = 20  ;;  %s82_s15 = sand.u32 (%p27_p4), 1, %s1925_s7  }
  0x12   : > { %s1651_s16 = sshll.u32 (%p27_p4), %s1929_s8, 4  ;;  %s1689_s17 = smul.u32 (%p27_p4), 576, %s82_s15 }
  0x13   : > { %s86_s18 = ssub.s32 (%p27_p4), 31, %s1651_s16  ;;  %s1683_s19 = sshll.u32 (%p27_p4), %s1929_s8, 6 }
  0x14   : > { %p87_p7 = scmp.lt.s32.totalorder (%p27_p4), %s86_s18, 16  ;;  %s2047_s22 = scalar_lea.vmem (%p27_p4), %s2711_s0, %s1683_s19  }
  0x15   : > { %s2052_s24 = scalar_lea.vmem (%p27_p4), [#allocation2], %s1689_s17  }
  0x18   : > { %s2727_s18 = smov (!%p87_p7, %s86_s18), 16 }
  0x19   : > { %s89_s23 = smul.u32 576, %s2727_s18 }
  0x1b   : > { %p1654_p8 = scmp.eq.s32.totalorder %s89_s23, 0 }
  0x1c   : > { %s2055_s25 = sshrl.u32 (!%p1654_p8), %s2727_s18, 3 }
  0x1d   : > { %95 = sbr.rel (%p1654_p8) target bundleno = 126 (0x7e), region = 24  ;;  %p1655_p9 = scmp.le.s32.totalorder (!%p1654_p8), %s2055_s25, 0 }
  0x24   : > { %1576 = sbr.rel (%p1655_p9) target bundleno = 100 (0x64), region = 185  ;;  %s2714_s26 = smov (!%p1655_p9), %s2052_s24 }
  0x25   : > { %s2715_s27 = smov (!%p1655_p9), %s2047_s22  ;;  %s2064_s28 = smov (!%p1655_p9), 0  }
  0x26   : > { %s2066_s29 = smov (!%p1655_p9), 0  }
  0x2b LB: >> { %v111_v0 = vld [vmem:[%s1937_s27] sm:$0xf]  ;;  %v113_v1 = vld [vmem:[%s1937_s27 + $0x4] sm:$0xf]  ;;  %v115_v2 = vld [vmem:[%s1937_s27 + $0x8] sm:$0xf]  ;;  %s1945_s29 = sphi %s2066_s29, %s105_s29   ;;  %s1941_s28 = sphi %s2064_s28, %s2716_s28   ;;  %s1937_s27 = sphi %s2715_s27, %s260_s27   ;;  %s1933_s26 = sphi %s2714_s26, %s261_s26  }
  0x2c   : >> { %112 = vst [vmem:[%s1933_s26] sm:$0xf] %v111_v0  ;;  %114 = vst [vmem:[%s1933_s26 + $0x4] sm:$0xf] %v113_v1  ;;  %v117_v3 = vld [vmem:[%s1937_s27 + $0xc] sm:$0xf]  ;;  %s255_s30 = sadd.s32 1, %s1941_s28 }
  0x2d   : >> { %116 = vst [vmem:[%s1933_s26 + $0x8] sm:$0xf] %v115_v2  ;;  %v119_v4 = vld [vmem:[%s1937_s27 + $0x10] sm:$0xf]  ;;  %v121_v5 = vld [vmem:[%s1937_s27 + $0x14] sm:$0xf]  ;;  %p256_p10 = scmp.ge.s32.totalorder %s255_s30, %s2055_s25 }
  0x2e   : >> { %118 = vst [vmem:[%s1933_s26 + $0xc] sm:$0xf] %v117_v3  ;;  %120 = vst [vmem:[%s1933_s26 + $0x10] sm:$0xf] %v119_v4  ;;  %v123_v6 = vld [vmem:[%s1937_s27 + $0x18] sm:$0xf] }
  0x2f   : >> { %122 = vst [vmem:[%s1933_s26 + $0x14] sm:$0xf] %v121_v5  ;;  %v125_v7 = vld [vmem:[%s1937_s27 + $0x1c] sm:$0xf]  ;;  %124 = vst [vmem:[%s1933_s26 + $0x18] sm:$0xf] %v123_v6 }
  0x30   : >> { %v127_v8 = vld [vmem:[%s1937_s27 + $0x7c] sm:$0xf]  ;;  %126 = vst [vmem:[%s1933_s26 + $0x1c] sm:$0xf] %v125_v7  ;;  %v129_v9 = vld [vmem:[%s1937_s27 + $0x80] sm:$0xf] }
  0x31   : >> { %128 = vst [vmem:[%s1933_s26 + $0x40] sm:$0xf] %v127_v8  ;;  %v131_v10 = vld [vmem:[%s1937_s27 + $0x84] sm:$0xf]  ;;  %v133_v11 = vld [vmem:[%s1937_s27 + $0x88] sm:$0xf] }
  0x32   : >> { %130 = vst [vmem:[%s1933_s26 + $0x44] sm:$0xf] %v129_v9  ;;  %132 = vst [vmem:[%s1933_s26 + $0x48] sm:$0xf] %v131_v10  ;;  %v135_v12 = vld [vmem:[%s1937_s27 + $0x8c] sm:$0xf] }
  0x33   : >> { %134 = vst [vmem:[%s1933_s26 + $0x4c] sm:$0xf] %v133_v11  ;;  %v137_v13 = vld [vmem:[%s1937_s27 + $0x90] sm:$0xf]  ;;  %v139_v14 = vld [vmem:[%s1937_s27 + $0x94] sm:$0xf] }
  0x34   : >> { %136 = vst [vmem:[%s1933_s26 + $0x50] sm:$0xf] %v135_v12  ;;  %138 = vst [vmem:[%s1933_s26 + $0x54] sm:$0xf] %v137_v13  ;;  %v141_v15 = vld [vmem:[%s1937_s27 + $0x98] sm:$0xf] }
  0x35   : >> { %140 = vst [vmem:[%s1933_s26 + $0x58] sm:$0xf] %v139_v14  ;;  %v143_v16 = vld [vmem:[%s1937_s27 + $0xf8] sm:$0xf]  ;;  %v145_v17 = vld [vmem:[%s1937_s27 + $0xfc] sm:$0xf] }
  0x36   : >> { %142 = vst [vmem:[%s1933_s26 + $0x5c] sm:$0xf] %v141_v15  ;;  %144 = vst [vmem:[%s1933_s26 + $0x80] sm:$0xf] %v143_v16  ;;  %v147_v18 = vld [vmem:[%s1937_s27 + $0x100] sm:$0xf] }
  0x37   : >> { %146 = vst [vmem:[%s1933_s26 + $0x84] sm:$0xf] %v145_v17  ;;  %v149_v19 = vld [vmem:[%s1937_s27 + $0x104] sm:$0xf]  ;;  %v151_v20 = vld [vmem:[%s1937_s27 + $0x108] sm:$0xf] }
  0x38   : >> { %148 = vst [vmem:[%s1933_s26 + $0x88] sm:$0xf] %v147_v18  ;;  %150 = vst [vmem:[%s1933_s26 + $0x8c] sm:$0xf] %v149_v19  ;;  %v153_v21 = vld [vmem:[%s1937_s27 + $0x10c] sm:$0xf] }
  0x39   : >> { %152 = vst [vmem:[%s1933_s26 + $0x90] sm:$0xf] %v151_v20  ;;  %v155_v22 = vld [vmem:[%s1937_s27 + $0x110] sm:$0xf]  ;;  %v157_v23 = vld [vmem:[%s1937_s27 + $0x114] sm:$0xf] }
  0x3a   : >> { %154 = vst [vmem:[%s1933_s26 + $0x94] sm:$0xf] %v153_v21  ;;  %156 = vst [vmem:[%s1933_s26 + $0x98] sm:$0xf] %v155_v22  ;;  %v159_v24 = vld [vmem:[%s1937_s27 + $0x174] sm:$0xf] }
  0x3b   : >> { %158 = vst [vmem:[%s1933_s26 + $0x9c] sm:$0xf] %v157_v23  ;;  %v161_v25 = vld [vmem:[%s1937_s27 + $0x178] sm:$0xf]  ;;  %v163_v26 = vld [vmem:[%s1937_s27 + $0x17c] sm:$0xf] }
  0x3c   : >> { %160 = vst [vmem:[%s1933_s26 + $0xc0] sm:$0xf] %v159_v24  ;;  %162 = vst [vmem:[%s1933_s26 + $0xc4] sm:$0xf] %v161_v25  ;;  %v165_v27 = vld [vmem:[%s1937_s27 + $0x180] sm:$0xf] }
  0x3d   : >> { %164 = vst [vmem:[%s1933_s26 + $0xc8] sm:$0xf] %v163_v26  ;;  %v167_v28 = vld [vmem:[%s1937_s27 + $0x184] sm:$0xf]  ;;  %v169_v29 = vld [vmem:[%s1937_s27 + $0x188] sm:$0xf] }
  0x3e   : >> { %166 = vst [vmem:[%s1933_s26 + $0xcc] sm:$0xf] %v165_v27  ;;  %168 = vst [vmem:[%s1933_s26 + $0xd0] sm:$0xf] %v167_v28  ;;  %v171_v30 = vld [vmem:[%s1937_s27 + $0x18c] sm:$0xf] }
  0x3f   : >> { %170 = vst [vmem:[%s1933_s26 + $0xd4] sm:$0xf] %v169_v29  ;;  %v173_v31 = vld [vmem:[%s1937_s27 + $0x190] sm:$0xf]  ;;  %172 = vst [vmem:[%s1933_s26 + $0xd8] sm:$0xf] %v171_v30 }
  0x40   : >> { %v175_v32 = vld [vmem:[%s1937_s27 + $0x1f0] sm:$0xf]  ;;  %174 = vst [vmem:[%s1933_s26 + $0xdc] sm:$0xf] %v173_v31  ;;  %v177_v33 = vld [vmem:[%s1937_s27 + $0x1f4] sm:$0xf] }
  0x41   : >> { %176 = vst [vmem:[%s1933_s26 + $0x100] sm:$0xf] %v175_v32  ;;  %v179_v34 = vld [vmem:[%s1937_s27 + $0x1f8] sm:$0xf]  ;;  %v181_v35 = vld [vmem:[%s1937_s27 + $0x1fc] sm:$0xf] }
  0x42   : >> { %178 = vst [vmem:[%s1933_s26 + $0x104] sm:$0xf] %v177_v33  ;;  %180 = vst [vmem:[%s1933_s26 + $0x108] sm:$0xf] %v179_v34  ;;  %v183_v36 = vld [vmem:[%s1937_s27 + $0x200] sm:$0xf] }
  0x43   : >> { %182 = vst [vmem:[%s1933_s26 + $0x10c] sm:$0xf] %v181_v35  ;;  %v185_v37 = vld [vmem:[%s1937_s27 + $0x204] sm:$0xf]  ;;  %v187_v38 = vld [vmem:[%s1937_s27 + $0x208] sm:$0xf] }
  0x44   : >> { %184 = vst [vmem:[%s1933_s26 + $0x110] sm:$0xf] %v183_v36  ;;  %186 = vst [vmem:[%s1933_s26 + $0x114] sm:$0xf] %v185_v37  ;;  %v189_v39 = vld [vmem:[%s1937_s27 + $0x20c] sm:$0xf] }
  0x45   : >> { %188 = vst [vmem:[%s1933_s26 + $0x118] sm:$0xf] %v187_v38  ;;  %v191_v40 = vld [vmem:[%s1937_s27 + $0x26c] sm:$0xf]  ;;  %v193_v41 = vld [vmem:[%s1937_s27 + $0x270] sm:$0xf] }
  0x46   : >> { %190 = vst [vmem:[%s1933_s26 + $0x11c] sm:$0xf] %v189_v39  ;;  %192 = vst [vmem:[%s1933_s26 + $0x140] sm:$0xf] %v191_v40  ;;  %v195_v42 = vld [vmem:[%s1937_s27 + $0x274] sm:$0xf] }
  0x47   : >> { %194 = vst [vmem:[%s1933_s26 + $0x144] sm:$0xf] %v193_v41  ;;  %v197_v43 = vld [vmem:[%s1937_s27 + $0x278] sm:$0xf]  ;;  %v199_v44 = vld [vmem:[%s1937_s27 + $0x27c] sm:$0xf] }
  0x48   : >> { %196 = vst [vmem:[%s1933_s26 + $0x148] sm:$0xf] %v195_v42  ;;  %198 = vst [vmem:[%s1933_s26 + $0x14c] sm:$0xf] %v197_v43  ;;  %v201_v45 = vld [vmem:[%s1937_s27 + $0x280] sm:$0xf] }
  0x49   : >> { %200 = vst [vmem:[%s1933_s26 + $0x150] sm:$0xf] %v199_v44  ;;  %v203_v46 = vld [vmem:[%s1937_s27 + $0x284] sm:$0xf]  ;;  %v205_v47 = vld [vmem:[%s1937_s27 + $0x288] sm:$0xf] }
  0x4a   : >> { %202 = vst [vmem:[%s1933_s26 + $0x154] sm:$0xf] %v201_v45  ;;  %204 = vst [vmem:[%s1933_s26 + $0x158] sm:$0xf] %v203_v46  ;;  %v207_v48 = vld [vmem:[%s1937_s27 + $0x2e8] sm:$0xf] }
  0x4b   : >> { %206 = vst [vmem:[%s1933_s26 + $0x15c] sm:$0xf] %v205_v47  ;;  %v209_v49 = vld [vmem:[%s1937_s27 + $0x2ec] sm:$0xf]  ;;  %v211_v50 = vld [vmem:[%s1937_s27 + $0x2f0] sm:$0xf] }
  0x4c   : >> { %208 = vst [vmem:[%s1933_s26 + $0x180] sm:$0xf] %v207_v48  ;;  %210 = vst [vmem:[%s1933_s26 + $0x184] sm:$0xf] %v209_v49  ;;  %v213_v51 = vld [vmem:[%s1937_s27 + $0x2f4] sm:$0xf] }
  0x4d   : >> { %212 = vst [vmem:[%s1933_s26 + $0x188] sm:$0xf] %v211_v50  ;;  %v215_v52 = vld [vmem:[%s1937_s27 + $0x2f8] sm:$0xf]  ;;  %v217_v53 = vld [vmem:[%s1937_s27 + $0x2fc] sm:$0xf] }
  0x4e   : >> { %214 = vst [vmem:[%s1933_s26 + $0x18c] sm:$0xf] %v213_v51  ;;  %216 = vst [vmem:[%s1933_s26 + $0x190] sm:$0xf] %v215_v52  ;;  %v219_v54 = vld [vmem:[%s1937_s27 + $0x300] sm:$0xf] }
  0x4f   : >> { %218 = vst [vmem:[%s1933_s26 + $0x194] sm:$0xf] %v217_v53  ;;  %v221_v55 = vld [vmem:[%s1937_s27 + $0x304] sm:$0xf]  ;;  %220 = vst [vmem:[%s1933_s26 + $0x198] sm:$0xf] %v219_v54 }
  0x50   : >> { %v223_v56 = vld [vmem:[%s1937_s27 + $0x364] sm:$0xf]  ;;  %222 = vst [vmem:[%s1933_s26 + $0x19c] sm:$0xf] %v221_v55  ;;  %v225_v57 = vld [vmem:[%s1937_s27 + $0x368] sm:$0xf] }
  0x51   : >> { %224 = vst [vmem:[%s1933_s26 + $0x1c0] sm:$0xf] %v223_v56  ;;  %v227_v58 = vld [vmem:[%s1937_s27 + $0x36c] sm:$0xf]  ;;  %v229_v59 = vld [vmem:[%s1937_s27 + $0x370] sm:$0xf] }
  0x52   : >> { %226 = vst [vmem:[%s1933_s26 + $0x1c4] sm:$0xf] %v225_v57  ;;  %228 = vst [vmem:[%s1933_s26 + $0x1c8] sm:$0xf] %v227_v58  ;;  %v231_v60 = vld [vmem:[%s1937_s27 + $0x374] sm:$0xf] }
  0x53   : >> { %230 = vst [vmem:[%s1933_s26 + $0x1cc] sm:$0xf] %v229_v59  ;;  %v233_v61 = vld [vmem:[%s1937_s27 + $0x378] sm:$0xf]  ;;  %v235_v62 = vld [vmem:[%s1937_s27 + $0x37c] sm:$0xf] }
  0x54   : >> { %232 = vst [vmem:[%s1933_s26 + $0x1d0] sm:$0xf] %v231_v60  ;;  %234 = vst [vmem:[%s1933_s26 + $0x1d4] sm:$0xf] %v233_v61  ;;  %v237_v63 = vld [vmem:[%s1937_s27 + $0x380] sm:$0xf] }
  0x55   : >> { %236 = vst [vmem:[%s1933_s26 + $0x1d8] sm:$0xf] %v235_v62  ;;  %v239_v0 = vld [vmem:[%s1937_s27 + $0x3e0] sm:$0xf]  ;;  %v241_v1 = vld [vmem:[%s1937_s27 + $0x3e4] sm:$0xf] }
  0x56   : >> { %238 = vst [vmem:[%s1933_s26 + $0x1dc] sm:$0xf] %v237_v63  ;;  %240 = vst [vmem:[%s1933_s26 + $0x200] sm:$0xf] %v239_v0  ;;  %v243_v2 = vld [vmem:[%s1937_s27 + $0x3e8] sm:$0xf] }
  0x57   : >> { %242 = vst [vmem:[%s1933_s26 + $0x204] sm:$0xf] %v241_v1  ;;  %v245_v3 = vld [vmem:[%s1937_s27 + $0x3ec] sm:$0xf]  ;;  %v247_v4 = vld [vmem:[%s1937_s27 + $0x3f0] sm:$0xf] }
  0x58   : >> { %244 = vst [vmem:[%s1933_s26 + $0x208] sm:$0xf] %v243_v2  ;;  %246 = vst [vmem:[%s1933_s26 + $0x20c] sm:$0xf] %v245_v3  ;;  %v249_v5 = vld [vmem:[%s1937_s27 + $0x3f4] sm:$0xf] }
  0x59   : >> { %248 = vst [vmem:[%s1933_s26 + $0x210] sm:$0xf] %v247_v4  ;;  %v251_v6 = vld [vmem:[%s1937_s27 + $0x3f8] sm:$0xf]  ;;  %v253_v7 = vld [vmem:[%s1937_s27 + $0x3fc] sm:$0xf] }
  0x5a   : >> { %250 = vst [vmem:[%s1933_s26 + $0x214] sm:$0xf] %v249_v5  ;;  %252 = vst [vmem:[%s1933_s26 + $0x218] sm:$0xf] %v251_v6  ;;  %s2729_s30 = smov (%p256_p10, %s255_s30), 0  ;;  %s105_s29 = sadd.s32 1, %s1945_s29  }
  0x5b   : >> { %254 = vst [vmem:[%s1933_s26 + $0x21c] sm:$0xf] %v253_v7  ;;  %s1656_s2 = sshll.u32 %s2729_s30, 5  ;;  %p104_p11 = scmp.ge.s32.totalorder %s105_s29, %s2055_s25 }
  0x5c   : >> { %s260_s27 = scalar_lea.vmem %s2047_s22, %s1656_s2   ;;  %s261_s26 = scalar_lea.vmem %s2052_s24, %s1656_s2 [#allocation2]  }
  0x5d   : >> { %s2716_s28 = smov %s2729_s30  ;;  %107 = sbr.rel (!%p104_p11) target bundleno = 43 (0x2b), region = 191 }
  0x64 PF: > { %s2239_s3 = sand.u32 7, %s2727_s18   ;;  %s1684_s4 = sshll.u32 %s2055_s25, 5 }
  0x65   : > { %s2243_s5 = scalar_lea.vmem %s2047_s22, %s1684_s4   ;;  %s2246_s11 = scalar_lea.vmem %s2052_s24, %s1684_s4 [#allocation2]  }
  0x66   : > { %p1661_p12 = scmp.le.s32.totalorder %s2239_s3, 0 }
  0x67   : > { %s2717_s12 = smov (!%p1661_p12), %s2246_s11  ;;  %s2718_s15 = smov (!%p1661_p12), %s2243_s5 }
  0x68   : > { %1590 = sbr.rel (%p1661_p12) target bundleno = 126 (0x7e), region = 196  ;;  %s2255_s16 = smov (!%p1661_p12), 0  }
  0x69   : > { %s2257_s17 = smov (!%p1661_p12), 0  }
  0x6f LB: >> { %v278_v8 = vld [vmem:[%s1953_s15] sm:$0xf]  ;;  %v280_v9 = vld [vmem:[%s1953_s15 + $0x7c] sm:$0xf]  ;;  %v282_v10 = vld [vmem:[%s1953_s15 + $0xf8] sm:$0xf]  ;;  %s1961_s17 = sphi %s2257_s17, %s272_s17   ;;  %s1957_s16 = sphi %s2255_s16, %s2719_s16   ;;  %s1953_s15 = sphi %s2718_s15, %s301_s15   ;;  %s1949_s12 = sphi %s2717_s12, %s302_s12  }
  0x70   : >> { %279 = vst [vmem:[%s1949_s12] sm:$0xf] %v278_v8  ;;  %281 = vst [vmem:[%s1949_s12 + $0x40] sm:$0xf] %v280_v9  ;;  %v284_v11 = vld [vmem:[%s1953_s15 + $0x174] sm:$0xf]  ;;  %s296_s18 = sadd.s32 1, %s1957_s16 }
  0x71   : >> { %283 = vst [vmem:[%s1949_s12 + $0x80] sm:$0xf] %v282_v10  ;;  %v286_v12 = vld [vmem:[%s1953_s15 + $0x1f0] sm:$0xf]  ;;  %v288_v13 = vld [vmem:[%s1953_s15 + $0x26c] sm:$0xf]  ;;  %p297_p13 = scmp.ge.s32.totalorder %s296_s18, %s2239_s3 }
  0x72   : >> { %285 = vst [vmem:[%s1949_s12 + $0xc0] sm:$0xf] %v284_v11  ;;  %287 = vst [vmem:[%s1949_s12 + $0x100] sm:$0xf] %v286_v12  ;;  %v290_v14 = vld [vmem:[%s1953_s15 + $0x2e8] sm:$0xf] }
  0x73   : >> { %289 = vst [vmem:[%s1949_s12 + $0x140] sm:$0xf] %v288_v13  ;;  %v292_v15 = vld [vmem:[%s1953_s15 + $0x364] sm:$0xf]  ;;  %v294_v16 = vld [vmem:[%s1953_s15 + $0x3e0] sm:$0xf] }
  0x74   : >> { %291 = vst [vmem:[%s1949_s12 + $0x180] sm:$0xf] %v290_v14  ;;  %293 = vst [vmem:[%s1949_s12 + $0x1c0] sm:$0xf] %v292_v15  ;;  %s2731_s18 = smov (%p297_p13, %s296_s18), 0  ;;  %s272_s17 = sadd.s32 1, %s1961_s17  }
  0x75   : >> { %295 = vst [vmem:[%s1949_s12 + $0x200] sm:$0xf] %v294_v16  ;;  %s1662_s19 = sshll.u32 %s2731_s18, 2  ;;  %p271_p0 = scmp.ge.s32.totalorder %s272_s17, %s2239_s3 }
  0x76   : >> { %s301_s15 = scalar_lea.vmem %s2243_s5, %s1662_s19   ;;  %s302_s12 = scalar_lea.vmem %s2246_s11, %s1662_s19 [#allocation2]  }
  0x77   : >> { %s2719_s16 = smov %s2731_s18  ;;  %274 = sbr.rel (!%p271_p0) target bundleno = 111 (0x6f), region = 202 }
  0x7e PF: > { %p1664_p1 = scmp.ge.s32.totalorder %s1929_s8, 1  ;;  %p550_p2 = scmp.lt.s32.totalorder %s1929_s8, 3 }
  0x80   : > { %p551_p3 = pnand %p1664_p1, %p550_p2 }
  0x81   : > { %s557_s20 = sand.u32 (!%p551_p3), 1, %s1921_s6   ;;  %vm730_vm0 = vcmask (!%p551_p3), 519168  }
  0x82   : > { %554 = sbr.rel (%p551_p3) target bundleno = 305 (0x131), region = 82  ;;  %s2290_s6 = sshll.u32 (!%p551_p3), %s557_s20, 6 }
  0x83   : > { %s1690_s21 = smul.u32 (!%p551_p3), 576, %s557_s20  ;;  %s2336_s8 = scalar_lea.vmem (!%p551_p3), [#allocation3], %s2290_s6  }
  0x85   : > { %s2281_s22 = scalar_lea.vmem (!%p551_p3), [#allocation2], %s1690_s21 }
  0x86   : > { %v586_v17 = vld [vmem:[%s2281_s22] sm:$0xf] (!%p551_p3)  ;;  %v587_v29 = vld [vmem:[%s2281_s22 + $0x4] sm:$0xf] (!%p551_p3)  ;;  %v588_v50 = vld [vmem:[%s2281_s22 + $0x8] sm:$0xf] (!%p551_p3) }
  0x87   : > { %v602_v18 = vld [vmem:[%s2281_s22 + $0x40] sm:$0xf] (!%p551_p3)  ;;  %v733_v21 = vsel (!%p551_p3), %vm730_vm0, %v586_v17, 4286644096  ;;  %v603_v30 = vld [vmem:[%s2281_s22 + $0x44] sm:$0xf] (!%p551_p3) }
  0x88   : > { %v618_v19 = vld [vmem:[%s2281_s22 + $0x80] sm:$0xf] (!%p551_p3)  ;;  %v736_v22 = vsel (!%p551_p3), %vm730_vm0, %v602_v18, 4286644096  ;;  %v619_v31 = vld [vmem:[%s2281_s22 + $0x84] sm:$0xf] (!%p551_p3) }
  0x89   : > { %v634_v20 = vld [vmem:[%s2281_s22 + $0xc0] sm:$0xf]  ;;  %v740_v23 = vsel %vm730_vm0, %v618_v19, 4286644096  ;;  %v738_v25 = vmax.bf16 %v736_v22, %v733_v21  ;;  %v635_v36 = vld [vmem:[%s2281_s22 + $0xc4] sm:$0xf] }
  0x8a   : > { %v650_v24 = vld [vmem:[%s2281_s22 + $0x100] sm:$0xf]  ;;  %v744_v27 = vsel %vm730_vm0, %v634_v20, 4286644096  ;;  %v768_v37 = vsel %vm730_vm0, %v587_v29, 4286644096 }
  0x8b   : > { %v666_v26 = vld [vmem:[%s2281_s22 + $0x140] sm:$0xf]  ;;  %v742_v28 = vmax.bf16 %v740_v23, %v738_v25  ;;  %v748_v32 = vsel %vm730_vm0, %v650_v24, 4286644096  ;;  %v771_v38 = vsel %vm730_vm0, %v603_v30, 4286644096 }
  0x8c   : > { %v682_v33 = vld [vmem:[%s2281_s22 + $0x180] sm:$0xf]  ;;  %v752_v35 = vsel %vm730_vm0, %v666_v26, 4286644096  ;;  %v775_v39 = vsel %vm730_vm0, %v619_v31, 4286644096  ;;  %v773_v44 = vmax.bf16 %v771_v38, %v768_v37 }
  0x8d   : > { %v746_v34 = vmax.bf16 %v744_v27, %v742_v28  ;;  %v698_v40 = vld [vmem:[%s2281_s22 + $0x1c0] sm:$0xf]  ;;  %v651_v43 = vld [vmem:[%s2281_s22 + $0x104] sm:$0xf]  ;;  %v756_v45 = vsel %vm730_vm0, %v682_v33, 4286644096 }
  0x8e   : > { %v714_v41 = vld [vmem:[%s2281_s22 + $0x200] sm:$0xf]  ;;  %v667_v46 = vld [vmem:[%s2281_s22 + $0x144] sm:$0xf]  ;;  %v779_v47 = vsel %vm730_vm0, %v635_v36, 4286644096  ;;  %v777_v49 = vmax.bf16 %v775_v39, %v773_v44 }
  0x8f   : > { %v750_v42 = vmax.bf16 %v748_v32, %v746_v34  ;;  %v604_v51 = vld [vmem:[%s2281_s22 + $0x48] sm:$0xf]  ;;  %v760_v53 = vsel %vm730_vm0, %v698_v40, 4286644096  ;;  %v764_v54 = vsel %vm730_vm0, %v714_v41, 4286644096 }
  0x90   : > { %v620_v52 = vld [vmem:[%s2281_s22 + $0x88] sm:$0xf]  ;;  %v783_v55 = vsel %vm730_vm0, %v651_v43, 4286644096  ;;  %v683_v57 = vld [vmem:[%s2281_s22 + $0x184] sm:$0xf]  ;;  %v781_v58 = vmax.bf16 %v779_v47, %v777_v49 }
  0x91   : > { %v754_v48 = vmax.bf16 %v752_v35, %v750_v42  ;;  %v787_v59 = vsel %vm730_vm0, %v667_v46, 4286644096  ;;  %v636_v60 = vld [vmem:[%s2281_s22 + $0xc8] sm:$0xf]  ;;  %v803_v61 = vsel %vm730_vm0, %v588_v50, 4286644096 }
  0x92   : > { %v806_v62 = vsel %vm730_vm0, %v604_v51, 4286644096  ;;  %v810_v63 = vsel %vm730_vm0, %v620_v52, 4286644096  ;;  %v699_v1 = vld [vmem:[%s2281_s22 + $0x1c4] sm:$0xf]  ;;  %v785_v3 = vmax.bf16 %v783_v55, %v781_v58 }
  0x93   : > { %v758_v56 = vmax.bf16 %v756_v45, %v754_v48  ;;  %v715_v2 = vld [vmem:[%s2281_s22 + $0x204] sm:$0xf]  ;;  %v652_v4 = vld [vmem:[%s2281_s22 + $0x108] sm:$0xf]  ;;  %v808_v5 = vmax.bf16 %v806_v62, %v803_v61  ;;  %v791_v6 = vsel %vm730_vm0, %v683_v57, 4286644096 }
  0x94   : > { %v668_v7 = vld [vmem:[%s2281_s22 + $0x148] sm:$0xf]  ;;  %v814_v8 = vsel %vm730_vm0, %v636_v60, 4286644096  ;;  %v789_v10 = vmax.bf16 %v787_v59, %v785_v3  ;;  %v589_v12 = vld [vmem:[%s2281_s22 + $0xc] sm:$0xf] }
  0x95   : > { %v762_v0 = vmax.bf16 %v760_v53, %v758_v56  ;;  %v812_v11 = vmax.bf16 %v810_v63, %v808_v5  ;;  %v605_v13 = vld [vmem:[%s2281_s22 + $0x4c] sm:$0xf]  ;;  %v795_v15 = vsel %vm730_vm0, %v699_v1, 4286644096  ;;  %v799_v16 = vsel %vm730_vm0, %v715_v2, 4286644096 }
  0x96   : > { %v621_v14 = vld [vmem:[%s2281_s22 + $0x8c] sm:$0xf]  ;;  %v818_v17 = vsel %vm730_vm0, %v652_v4, 4286644096  ;;  %v793_v18 = vmax.bf16 %v791_v6, %v789_v10  ;;  %v684_v19 = vld [vmem:[%s2281_s22 + $0x188] sm:$0xf] }
  0x97   : > { %v766_v9 = vmax.bf16 %v764_v54, %v762_v0  ;;  %v816_v20 = vmax.bf16 %v814_v8, %v812_v11  ;;  %v822_v21 = vsel %vm730_vm0, %v668_v7, 4286644096  ;;  %v637_v22 = vld [vmem:[%s2281_s22 + $0xcc] sm:$0xf]  ;;  %v838_v23 = vsel %vm730_vm0, %v589_v12, 4286644096 }
  0x98   : > { %v841_v24 = vsel %vm730_vm0, %v605_v13, 4286644096  ;;  %v845_v25 = vsel %vm730_vm0, %v621_v14, 4286644096  ;;  %v797_v26 = vmax.bf16 %v795_v15, %v793_v18  ;;  %v700_v27 = vld [vmem:[%s2281_s22 + $0x1c8] sm:$0xf] }
  0x99   : > { %1292 = vst.msk [vmem:[%s2336_s8] sm:$0xf] %vm730_vm0, %v766_v9  ;;  %v716_v28 = vld [vmem:[%s2281_s22 + $0x208] sm:$0xf]  ;;  %v820_v29 = vmax.bf16 %v818_v17, %v816_v20  ;;  %v653_v30 = vld [vmem:[%s2281_s22 + $0x10c] sm:$0xf]  ;;  %v843_v31 = vmax.bf16 %v841_v24, %v838_v23 }
  0x9a   : > { %v826_v32 = vsel %vm730_vm0, %v684_v19, 4286644096  ;;  %v669_v33 = vld [vmem:[%s2281_s22 + $0x14c] sm:$0xf]  ;;  %v849_v34 = vsel %vm730_vm0, %v637_v22, 4286644096  ;;  %v801_v35 = vmax.bf16 %v799_v16, %v797_v26 }
  0x9b   : > { %v824_v36 = vmax.bf16 %v822_v21, %v820_v29  ;;  %v847_v37 = vmax.bf16 %v845_v25, %v843_v31  ;;  %v590_v38 = vld [vmem:[%s2281_s22 + $0x10] sm:$0xf]  ;;  %v830_v41 = vsel %vm730_vm0, %v700_v27, 4286644096  ;;  %v834_v42 = vsel %vm730_vm0, %v716_v28, 4286644096 }
  0x9c   : > { %v606_v39 = vld [vmem:[%s2281_s22 + $0x50] sm:$0xf]  ;;  %v853_v43 = vsel %vm730_vm0, %v653_v30, 4286644096  ;;  %1293 = vst.msk [vmem:[%s2336_s8 + $0x4] sm:$0xf] %vm730_vm0, %v801_v35 }
  0x9d   : > { %v622_v40 = vld [vmem:[%s2281_s22 + $0x90] sm:$0xf]  ;;  %v828_v44 = vmax.bf16 %v826_v32, %v824_v36  ;;  %v685_v45 = vld [vmem:[%s2281_s22 + $0x18c] sm:$0xf]  ;;  %v851_v46 = vmax.bf16 %v849_v34, %v847_v37  ;;  %v857_v47 = vsel %vm730_vm0, %v669_v33, 4286644096 }
  0x9e   : > { %v638_v48 = vld [vmem:[%s2281_s22 + $0xd0] sm:$0xf]  ;;  %v873_v49 = vsel %vm730_vm0, %v590_v38, 4286644096  ;;  %v876_v50 = vsel %vm730_vm0, %v606_v39, 4286644096 }
  0x9f   : > { %v880_v51 = vsel %vm730_vm0, %v622_v40, 4286644096  ;;  %v832_v52 = vmax.bf16 %v830_v41, %v828_v44  ;;  %v701_v53 = vld [vmem:[%s2281_s22 + $0x1cc] sm:$0xf]  ;;  %v855_v55 = vmax.bf16 %v853_v43, %v851_v46  ;;  %v654_v56 = vld [vmem:[%s2281_s22 + $0x110] sm:$0xf]  ;;  %v878_v57 = vmax.bf16 %v876_v50, %v873_v49 }
  0xa0   : > { %v717_v54 = vld [vmem:[%s2281_s22 + $0x20c] sm:$0xf]  ;;  %v861_v58 = vsel %vm730_vm0, %v685_v45, 4286644096  ;;  %v670_v59 = vld [vmem:[%s2281_s22 + $0x150] sm:$0xf] }
  0xa1   : > { %v884_v60 = vsel %vm730_vm0, %v638_v48, 4286644096  ;;  %v836_v61 = vmax.bf16 %v834_v42, %v832_v52  ;;  %v859_v62 = vmax.bf16 %v857_v47, %v855_v55  ;;  %v882_v63 = vmax.bf16 %v880_v51, %v878_v57  ;;  %v591_v0 = vld [vmem:[%s2281_s22 + $0x14] sm:$0xf]  ;;  %v686_v7 = vld [vmem:[%s2281_s22 + $0x190] sm:$0xf] }
  0xa2   : > { %v607_v1 = vld [vmem:[%s2281_s22 + $0x54] sm:$0xf]  ;;  %v865_v3 = vsel %vm730_vm0, %v701_v53, 4286644096  ;;  %v869_v4 = vsel %vm730_vm0, %v717_v54, 4286644096 }
  0xa3   : > { %v623_v2 = vld [vmem:[%s2281_s22 + $0x94] sm:$0xf]  ;;  %v888_v5 = vsel %vm730_vm0, %v654_v56, 4286644096  ;;  %1294 = vst.msk [vmem:[%s2336_s8 + $0x8] sm:$0xf] %vm730_vm0, %v836_v61  ;;  %v863_v6 = vmax.bf16 %v861_v58, %v859_v62  ;;  %v886_v8 = vmax.bf16 %v884_v60, %v882_v63 }
  0xa4   : > { %v892_v9 = vsel %vm730_vm0, %v670_v59, 4286644096  ;;  %v639_v10 = vld [vmem:[%s2281_s22 + $0xd4] sm:$0xf]  ;;  %v908_v11 = vsel %vm730_vm0, %v591_v0, 4286644096 }
  0xa5   : > { %v911_v12 = vsel %vm730_vm0, %v607_v1, 4286644096  ;;  %v915_v13 = vsel %vm730_vm0, %v623_v2, 4286644096  ;;  %v867_v14 = vmax.bf16 %v865_v3, %v863_v6  ;;  %v702_v15 = vld [vmem:[%s2281_s22 + $0x1d0] sm:$0xf]  ;;  %v890_v17 = vmax.bf16 %v888_v5, %v886_v8 }
  0xa6   : > { %v718_v16 = vld [vmem:[%s2281_s22 + $0x210] sm:$0xf]  ;;  %v655_v18 = vld [vmem:[%s2281_s22 + $0x114] sm:$0xf]  ;;  %v913_v19 = vmax.bf16 %v911_v12, %v908_v11  ;;  %v896_v20 = vsel %vm730_vm0, %v686_v7, 4286644096 }
  0xa7   : > { %v671_v21 = vld [vmem:[%s2281_s22 + $0x154] sm:$0xf]  ;;  %v919_v22 = vsel %vm730_vm0, %v639_v10, 4286644096  ;;  %v871_v23 = vmax.bf16 %v869_v4, %v867_v14  ;;  %v894_v24 = vmax.bf16 %v892_v9, %v890_v17  ;;  %v592_v26 = vld [vmem:[%s2281_s22 + $0x18] sm:$0xf] }
  0xa8   : > { %v917_v25 = vmax.bf16 %v915_v13, %v913_v19  ;;  %v608_v27 = vld [vmem:[%s2281_s22 + $0x58] sm:$0xf]  ;;  %v900_v29 = vsel %vm730_vm0, %v702_v15, 4286644096  ;;  %v904_v30 = vsel %vm730_vm0, %v718_v16, 4286644096 }
  0xa9   : > { %v624_v28 = vld [vmem:[%s2281_s22 + $0x98] sm:$0xf]  ;;  %v923_v31 = vsel %vm730_vm0, %v655_v18, 4286644096  ;;  %1295 = vst.msk [vmem:[%s2336_s8 + $0xc] sm:$0xf] %vm730_vm0, %v871_v23  ;;  %v898_v32 = vmax.bf16 %v896_v20, %v894_v24 }
  0xaa   : > { %v687_v33 = vld [vmem:[%s2281_s22 + $0x194] sm:$0xf]  ;;  %v921_v34 = vmax.bf16 %v919_v22, %v917_v25  ;;  %v927_v35 = vsel %vm730_vm0, %v671_v21, 4286644096  ;;  %v640_v36 = vld [vmem:[%s2281_s22 + $0xd8] sm:$0xf] }
  0xab   : > { %v943_v37 = vsel %vm730_vm0, %v592_v26, 4286644096  ;;  %v946_v38 = vsel %vm730_vm0, %v608_v27, 4286644096  ;;  %v950_v39 = vsel %vm730_vm0, %v624_v28, 4286644096  ;;  %v902_v40 = vmax.bf16 %v900_v29, %v898_v32 }
  0xac   : > { %v703_v41 = vld [vmem:[%s2281_s22 + $0x1d4] sm:$0xf]  ;;  %v925_v43 = vmax.bf16 %v923_v31, %v921_v34  ;;  %v656_v44 = vld [vmem:[%s2281_s22 + $0x118] sm:$0xf]  ;;  %v948_v45 = vmax.bf16 %v946_v38, %v943_v37  ;;  %v931_v46 = vsel %vm730_vm0, %v687_v33, 4286644096 }
  0xad   : > { %v719_v42 = vld [vmem:[%s2281_s22 + $0x214] sm:$0xf]  ;;  %v672_v47 = vld [vmem:[%s2281_s22 + $0x158] sm:$0xf]  ;;  %v954_v48 = vsel %vm730_vm0, %v640_v36, 4286644096  ;;  %v906_v49 = vmax.bf16 %v904_v30, %v902_v40 }
  0xae   : > { %v929_v50 = vmax.bf16 %v927_v35, %v925_v43  ;;  %v952_v51 = vmax.bf16 %v950_v39, %v948_v45  ;;  %v593_v52 = vld [vmem:[%s2281_s22 + $0x1c] sm:$0xf]  ;;  %v935_v55 = vsel %vm730_vm0, %v703_v41, 4286644096  ;;  %v939_v56 = vsel %vm730_vm0, %v719_v42, 4286644096 }
  0xaf   : > { %v609_v53 = vld [vmem:[%s2281_s22 + $0x5c] sm:$0xf]  ;;  %v958_v57 = vsel %vm730_vm0, %v656_v44, 4286644096  ;;  %1296 = vst.msk [vmem:[%s2336_s8 + $0x10] sm:$0xf] %vm730_vm0, %v906_v49 }
  0xb0   : > { %v625_v54 = vld [vmem:[%s2281_s22 + $0x9c] sm:$0xf]  ;;  %v933_v58 = vmax.bf16 %v931_v46, %v929_v50  ;;  %v688_v59 = vld [vmem:[%s2281_s22 + $0x198] sm:$0xf]  ;;  %v956_v60 = vmax.bf16 %v954_v48, %v952_v51  ;;  %v962_v61 = vsel %vm730_vm0, %v672_v47, 4286644096 }
  0xb1   : > { %v641_v62 = vld [vmem:[%s2281_s22 + $0xdc] sm:$0xf]  ;;  %v978_v63 = vsel %vm730_vm0, %v593_v52, 4286644096  ;;  %v981_v0 = vsel %vm730_vm0, %v609_v53, 4286644096 }
  0xb2   : > { %v985_v1 = vsel %vm730_vm0, %v625_v54, 4286644096  ;;  %v937_v2 = vmax.bf16 %v935_v55, %v933_v58  ;;  %v704_v3 = vld [vmem:[%s2281_s22 + $0x1d8] sm:$0xf]  ;;  %v960_v5 = vmax.bf16 %v958_v57, %v956_v60  ;;  %v657_v6 = vld [vmem:[%s2281_s22 + $0x11c] sm:$0xf]  ;;  %v983_v7 = vmax.bf16 %v981_v0, %v978_v63 }
  0xb3   : > { %v720_v4 = vld [vmem:[%s2281_s22 + $0x218] sm:$0xf]  ;;  %v966_v8 = vsel %vm730_vm0, %v688_v59, 4286644096  ;;  %v673_v9 = vld [vmem:[%s2281_s22 + $0x15c] sm:$0xf] }
  0xb4   : > { %v989_v10 = vsel %vm730_vm0, %v641_v62, 4286644096  ;;  %v941_v11 = vmax.bf16 %v939_v56, %v937_v2  ;;  %v964_v12 = vmax.bf16 %v962_v61, %v960_v5  ;;  %v987_v13 = vmax.bf16 %v985_v1, %v983_v7  ;;  %v594_v14 = vld [vmem:[%s2281_s22 + $0x20] sm:$0xf]  ;;  %v689_v21 = vld [vmem:[%s2281_s22 + $0x19c] sm:$0xf] }
  0xb5   : > { %v610_v15 = vld [vmem:[%s2281_s22 + $0x60] sm:$0xf]  ;;  %v970_v17 = vsel %vm730_vm0, %v704_v3, 4286644096  ;;  %v974_v18 = vsel %vm730_vm0, %v720_v4, 4286644096 }
  0xb6   : > { %v626_v16 = vld [vmem:[%s2281_s22 + $0xa0] sm:$0xf]  ;;  %v993_v19 = vsel %vm730_vm0, %v657_v6, 4286644096  ;;  %1297 = vst.msk [vmem:[%s2336_s8 + $0x14] sm:$0xf] %vm730_vm0, %v941_v11  ;;  %v968_v20 = vmax.bf16 %v966_v8, %v964_v12  ;;  %v991_v22 = vmax.bf16 %v989_v10, %v987_v13 }
  0xb7   : > { %v997_v23 = vsel %vm730_vm0, %v673_v9, 4286644096  ;;  %v642_v24 = vld [vmem:[%s2281_s22 + $0xe0] sm:$0xf]  ;;  %v1013_v25 = vsel %vm730_vm0, %v594_v14, 4286644096 }
  0xb8   : > { %v1016_v26 = vsel %vm730_vm0, %v610_v15, 4286644096  ;;  %v1020_v27 = vsel %vm730_vm0, %v626_v16, 4286644096  ;;  %v972_v28 = vmax.bf16 %v970_v17, %v968_v20  ;;  %v705_v29 = vld [vmem:[%s2281_s22 + $0x1dc] sm:$0xf]  ;;  %v995_v31 = vmax.bf16 %v993_v19, %v991_v22 }
  0xb9   : > { %v721_v30 = vld [vmem:[%s2281_s22 + $0x21c] sm:$0xf]  ;;  %v658_v32 = vld [vmem:[%s2281_s22 + $0x120] sm:$0xf]  ;;  %v1018_v33 = vmax.bf16 %v1016_v26, %v1013_v25  ;;  %v1001_v34 = vsel %vm730_vm0, %v689_v21, 4286644096 }
  0xba   : > { %v674_v35 = vld [vmem:[%s2281_s22 + $0x160] sm:$0xf]  ;;  %v1024_v36 = vsel %vm730_vm0, %v642_v24, 4286644096  ;;  %v976_v37 = vmax.bf16 %v974_v18, %v972_v28  ;;  %v999_v38 = vmax.bf16 %v997_v23, %v995_v31  ;;  %v595_v40 = vld [vmem:[%s2281_s22 + $0x24] sm:$0xf] }
  0xbb   : > { %v1022_v39 = vmax.bf16 %v1020_v27, %v1018_v33  ;;  %v611_v41 = vld [vmem:[%s2281_s22 + $0x64] sm:$0xf]  ;;  %v1005_v43 = vsel %vm730_vm0, %v705_v29, 4286644096  ;;  %v1009_v44 = vsel %vm730_vm0, %v721_v30, 4286644096 }
  0xbc   : > { %v627_v42 = vld [vmem:[%s2281_s22 + $0xa4] sm:$0xf]  ;;  %v1028_v45 = vsel %vm730_vm0, %v658_v32, 4286644096  ;;  %1298 = vst.msk [vmem:[%s2336_s8 + $0x18] sm:$0xf] %vm730_vm0, %v976_v37  ;;  %v1003_v46 = vmax.bf16 %v1001_v34, %v999_v38 }
  0xbd   : > { %v690_v47 = vld [vmem:[%s2281_s22 + $0x1a0] sm:$0xf]  ;;  %v1026_v48 = vmax.bf16 %v1024_v36, %v1022_v39  ;;  %v1032_v49 = vsel %vm730_vm0, %v674_v35, 4286644096  ;;  %v643_v50 = vld [vmem:[%s2281_s22 + $0xe4] sm:$0xf] }
  0xbe   : > { %v1048_v51 = vsel %vm730_vm0, %v595_v40, 4286644096  ;;  %v1051_v52 = vsel %vm730_vm0, %v611_v41, 4286644096  ;;  %v1055_v53 = vsel %vm730_vm0, %v627_v42, 4286644096  ;;  %v1007_v54 = vmax.bf16 %v1005_v43, %v1003_v46 }
  0xbf   : > { %v706_v55 = vld [vmem:[%s2281_s22 + $0x1e0] sm:$0xf]  ;;  %v1030_v57 = vmax.bf16 %v1028_v45, %v1026_v48  ;;  %v659_v58 = vld [vmem:[%s2281_s22 + $0x124] sm:$0xf]  ;;  %v1053_v59 = vmax.bf16 %v1051_v52, %v1048_v51  ;;  %v1036_v60 = vsel %vm730_vm0, %v690_v47, 4286644096 }
  0xc0   : > { %v722_v56 = vld [vmem:[%s2281_s22 + $0x220] sm:$0xf]  ;;  %v675_v61 = vld [vmem:[%s2281_s22 + $0x164] sm:$0xf]  ;;  %v1059_v62 = vsel %vm730_vm0, %v643_v50, 4286644096  ;;  %v1011_v63 = vmax.bf16 %v1009_v44, %v1007_v54 }
  0xc1   : > { %v1034_v0 = vmax.bf16 %v1032_v49, %v1030_v57  ;;  %v1057_v1 = vmax.bf16 %v1055_v53, %v1053_v59  ;;  %v596_v2 = vld [vmem:[%s2281_s22 + $0x28] sm:$0xf]  ;;  %v1040_v5 = vsel %vm730_vm0, %v706_v55, 4286644096  ;;  %v1044_v6 = vsel %vm730_vm0, %v722_v56, 4286644096 }
  0xc2   : > { %v612_v3 = vld [vmem:[%s2281_s22 + $0x68] sm:$0xf]  ;;  %v1063_v7 = vsel %vm730_vm0, %v659_v58, 4286644096  ;;  %1299 = vst.msk [vmem:[%s2336_s8 + $0x1c] sm:$0xf] %vm730_vm0, %v1011_v63 }
  0xc3   : > { %v628_v4 = vld [vmem:[%s2281_s22 + $0xa8] sm:$0xf]  ;;  %v1038_v8 = vmax.bf16 %v1036_v60, %v1034_v0  ;;  %v691_v9 = vld [vmem:[%s2281_s22 + $0x1a4] sm:$0xf]  ;;  %v1061_v10 = vmax.bf16 %v1059_v62, %v1057_v1  ;;  %v1067_v11 = vsel %vm730_vm0, %v675_v61, 4286644096 }
  0xc4   : > { %v644_v12 = vld [vmem:[%s2281_s22 + $0xe8] sm:$0xf]  ;;  %v1083_v13 = vsel %vm730_vm0, %v596_v2, 4286644096  ;;  %v1086_v14 = vsel %vm730_vm0, %v612_v3, 4286644096 }
  0xc5   : > { %v1090_v15 = vsel %vm730_vm0, %v628_v4, 4286644096  ;;  %v1042_v16 = vmax.bf16 %v1040_v5, %v1038_v8  ;;  %v707_v17 = vld [vmem:[%s2281_s22 + $0x1e4] sm:$0xf]  ;;  %v1065_v19 = vmax.bf16 %v1063_v7, %v1061_v10  ;;  %v660_v20 = vld [vmem:[%s2281_s22 + $0x128] sm:$0xf]  ;;  %v1088_v21 = vmax.bf16 %v1086_v14, %v1083_v13 }
  0xc6   : > { %v723_v18 = vld [vmem:[%s2281_s22 + $0x224] sm:$0xf]  ;;  %v1071_v22 = vsel %vm730_vm0, %v691_v9, 4286644096  ;;  %v676_v23 = vld [vmem:[%s2281_s22 + $0x168] sm:$0xf] }
  0xc7   : > { %v1094_v24 = vsel %vm730_vm0, %v644_v12, 4286644096  ;;  %v1046_v25 = vmax.bf16 %v1044_v6, %v1042_v16  ;;  %v1069_v26 = vmax.bf16 %v1067_v11, %v1065_v19  ;;  %v1092_v27 = vmax.bf16 %v1090_v15, %v1088_v21  ;;  %v597_v28 = vld [vmem:[%s2281_s22 + $0x2c] sm:$0xf]  ;;  %v692_v35 = vld [vmem:[%s2281_s22 + $0x1a8] sm:$0xf] }
  0xc8   : > { %v613_v29 = vld [vmem:[%s2281_s22 + $0x6c] sm:$0xf]  ;;  %v1075_v31 = vsel %vm730_vm0, %v707_v17, 4286644096  ;;  %v1079_v32 = vsel %vm730_vm0, %v723_v18, 4286644096 }
  0xc9   : > { %v629_v30 = vld [vmem:[%s2281_s22 + $0xac] sm:$0xf]  ;;  %v1098_v33 = vsel %vm730_vm0, %v660_v20, 4286644096  ;;  %1300 = vst.msk [vmem:[%s2336_s8 + $0x20] sm:$0xf] %vm730_vm0, %v1046_v25  ;;  %v1073_v34 = vmax.bf16 %v1071_v22, %v1069_v26  ;;  %v1096_v36 = vmax.bf16 %v1094_v24, %v1092_v27 }
  0xca   : > { %v1102_v37 = vsel %vm730_vm0, %v676_v23, 4286644096  ;;  %v645_v38 = vld [vmem:[%s2281_s22 + $0xec] sm:$0xf]  ;;  %v1118_v39 = vsel %vm730_vm0, %v597_v28, 4286644096 }
  0xcb   : > { %v1121_v40 = vsel %vm730_vm0, %v613_v29, 4286644096  ;;  %v1125_v41 = vsel %vm730_vm0, %v629_v30, 4286644096  ;;  %v1077_v42 = vmax.bf16 %v1075_v31, %v1073_v34  ;;  %v708_v43 = vld [vmem:[%s2281_s22 + $0x1e8] sm:$0xf]  ;;  %v1100_v45 = vmax.bf16 %v1098_v33, %v1096_v36 }
  0xcc   : > { %v724_v44 = vld [vmem:[%s2281_s22 + $0x228] sm:$0xf]  ;;  %v661_v46 = vld [vmem:[%s2281_s22 + $0x12c] sm:$0xf]  ;;  %v1123_v47 = vmax.bf16 %v1121_v40, %v1118_v39  ;;  %v1106_v48 = vsel %vm730_vm0, %v692_v35, 4286644096 }
  0xcd   : > { %v677_v49 = vld [vmem:[%s2281_s22 + $0x16c] sm:$0xf]  ;;  %v1129_v50 = vsel %vm730_vm0, %v645_v38, 4286644096  ;;  %v1081_v51 = vmax.bf16 %v1079_v32, %v1077_v42  ;;  %v1104_v52 = vmax.bf16 %v1102_v37, %v1100_v45  ;;  %v598_v54 = vld [vmem:[%s2281_s22 + $0x30] sm:$0xf] }
  0xce   : > { %v1127_v53 = vmax.bf16 %v1125_v41, %v1123_v47  ;;  %v614_v55 = vld [vmem:[%s2281_s22 + $0x70] sm:$0xf]  ;;  %v1110_v57 = vsel %vm730_vm0, %v708_v43, 4286644096  ;;  %v1114_v58 = vsel %vm730_vm0, %v724_v44, 4286644096 }
  0xcf   : > { %v630_v56 = vld [vmem:[%s2281_s22 + $0xb0] sm:$0xf]  ;;  %v1133_v59 = vsel %vm730_vm0, %v661_v46, 4286644096  ;;  %1301 = vst.msk [vmem:[%s2336_s8 + $0x24] sm:$0xf] %vm730_vm0, %v1081_v51  ;;  %v1108_v60 = vmax.bf16 %v1106_v48, %v1104_v52 }
  0xd0   : > { %v693_v61 = vld [vmem:[%s2281_s22 + $0x1ac] sm:$0xf]  ;;  %v1131_v62 = vmax.bf16 %v1129_v50, %v1127_v53  ;;  %v1137_v63 = vsel %vm730_vm0, %v677_v49, 4286644096  ;;  %v646_v0 = vld [vmem:[%s2281_s22 + $0xf0] sm:$0xf] }
  0xd1   : > { %v1153_v1 = vsel %vm730_vm0, %v598_v54, 4286644096  ;;  %v1156_v2 = vsel %vm730_vm0, %v614_v55, 4286644096  ;;  %v1160_v3 = vsel %vm730_vm0, %v630_v56, 4286644096  ;;  %v1112_v4 = vmax.bf16 %v1110_v57, %v1108_v60 }
  0xd2   : > { %v709_v5 = vld [vmem:[%s2281_s22 + $0x1ec] sm:$0xf]  ;;  %v1135_v7 = vmax.bf16 %v1133_v59, %v1131_v62  ;;  %v662_v8 = vld [vmem:[%s2281_s22 + $0x130] sm:$0xf]  ;;  %v1158_v9 = vmax.bf16 %v1156_v2, %v1153_v1  ;;  %v1141_v10 = vsel %vm730_vm0, %v693_v61, 4286644096 }
  0xd3   : > { %v725_v6 = vld [vmem:[%s2281_s22 + $0x22c] sm:$0xf]  ;;  %v678_v11 = vld [vmem:[%s2281_s22 + $0x170] sm:$0xf]  ;;  %v1164_v12 = vsel %vm730_vm0, %v646_v0, 4286644096  ;;  %v1116_v13 = vmax.bf16 %v1114_v58, %v1112_v4 }
  0xd4   : > { %v1139_v14 = vmax.bf16 %v1137_v63, %v1135_v7  ;;  %v1162_v15 = vmax.bf16 %v1160_v3, %v1158_v9  ;;  %v599_v16 = vld [vmem:[%s2281_s22 + $0x34] sm:$0xf]  ;;  %v1145_v19 = vsel %vm730_vm0, %v709_v5, 4286644096  ;;  %v1149_v20 = vsel %vm730_vm0, %v725_v6, 4286644096 }
  0xd5   : > { %v615_v17 = vld [vmem:[%s2281_s22 + $0x74] sm:$0xf]  ;;  %v1168_v21 = vsel %vm730_vm0, %v662_v8, 4286644096  ;;  %1302 = vst.msk [vmem:[%s2336_s8 + $0x28] sm:$0xf] %vm730_vm0, %v1116_v13 }
  0xd6   : > { %v631_v18 = vld [vmem:[%s2281_s22 + $0xb4] sm:$0xf]  ;;  %v1143_v22 = vmax.bf16 %v1141_v10, %v1139_v14  ;;  %v694_v23 = vld [vmem:[%s2281_s22 + $0x1b0] sm:$0xf]  ;;  %v1166_v24 = vmax.bf16 %v1164_v12, %v1162_v15  ;;  %v1172_v25 = vsel %vm730_vm0, %v678_v11, 4286644096 }
  0xd7   : > { %v647_v26 = vld [vmem:[%s2281_s22 + $0xf4] sm:$0xf]  ;;  %v1188_v27 = vsel %vm730_vm0, %v599_v16, 4286644096  ;;  %v1191_v28 = vsel %vm730_vm0, %v615_v17, 4286644096 }
  0xd8   : > { %v1195_v29 = vsel %vm730_vm0, %v631_v18, 4286644096  ;;  %v1147_v30 = vmax.bf16 %v1145_v19, %v1143_v22  ;;  %v710_v31 = vld [vmem:[%s2281_s22 + $0x1f0] sm:$0xf]  ;;  %v1170_v33 = vmax.bf16 %v1168_v21, %v1166_v24  ;;  %v663_v34 = vld [vmem:[%s2281_s22 + $0x134] sm:$0xf]  ;;  %v1193_v35 = vmax.bf16 %v1191_v28, %v1188_v27 }
  0xd9   : > { %v726_v32 = vld [vmem:[%s2281_s22 + $0x230] sm:$0xf]  ;;  %v1176_v36 = vsel %vm730_vm0, %v694_v23, 4286644096  ;;  %v679_v37 = vld [vmem:[%s2281_s22 + $0x174] sm:$0xf] }
  0xda   : > { %v1199_v38 = vsel %vm730_vm0, %v647_v26, 4286644096  ;;  %v1151_v39 = vmax.bf16 %v1149_v20, %v1147_v30  ;;  %v1174_v40 = vmax.bf16 %v1172_v25, %v1170_v33  ;;  %v1197_v41 = vmax.bf16 %v1195_v29, %v1193_v35  ;;  %v600_v42 = vld [vmem:[%s2281_s22 + $0x38] sm:$0xf]  ;;  %v695_v49 = vld [vmem:[%s2281_s22 + $0x1b4] sm:$0xf] }
  0xdb   : > { %v616_v43 = vld [vmem:[%s2281_s22 + $0x78] sm:$0xf]  ;;  %v1180_v45 = vsel %vm730_vm0, %v710_v31, 4286644096  ;;  %v1184_v46 = vsel %vm730_vm0, %v726_v32, 4286644096 }
  0xdc   : > { %v632_v44 = vld [vmem:[%s2281_s22 + $0xb8] sm:$0xf]  ;;  %v1203_v47 = vsel %vm730_vm0, %v663_v34, 4286644096  ;;  %1303 = vst.msk [vmem:[%s2336_s8 + $0x2c] sm:$0xf] %vm730_vm0, %v1151_v39  ;;  %v1178_v48 = vmax.bf16 %v1176_v36, %v1174_v40  ;;  %v1201_v50 = vmax.bf16 %v1199_v38, %v1197_v41 }
  0xdd   : > { %v1207_v51 = vsel %vm730_vm0, %v679_v37, 4286644096  ;;  %v648_v52 = vld [vmem:[%s2281_s22 + $0xf8] sm:$0xf]  ;;  %v1223_v53 = vsel %vm730_vm0, %v600_v42, 4286644096 }
  0xde   : > { %v1226_v54 = vsel %vm730_vm0, %v616_v43, 4286644096  ;;  %v1230_v55 = vsel %vm730_vm0, %v632_v44, 4286644096  ;;  %v1182_v56 = vmax.bf16 %v1180_v45, %v1178_v48  ;;  %v711_v57 = vld [vmem:[%s2281_s22 + $0x1f4] sm:$0xf]  ;;  %v1205_v59 = vmax.bf16 %v1203_v47, %v1201_v50 }
  0xdf   : > { %v727_v58 = vld [vmem:[%s2281_s22 + $0x234] sm:$0xf]  ;;  %v664_v60 = vld [vmem:[%s2281_s22 + $0x138] sm:$0xf]  ;;  %v1228_v61 = vmax.bf16 %v1226_v54, %v1223_v53  ;;  %v1211_v62 = vsel %vm730_vm0, %v695_v49, 4286644096 }
  0xe0   : > { %v680_v63 = vld [vmem:[%s2281_s22 + $0x178] sm:$0xf]  ;;  %v1234_v0 = vsel %vm730_vm0, %v648_v52, 4286644096  ;;  %v1186_v1 = vmax.bf16 %v1184_v46, %v1182_v56  ;;  %v1209_v2 = vmax.bf16 %v1207_v51, %v1205_v59  ;;  %v601_v4 = vld [vmem:[%s2281_s22 + $0x3c] sm:$0xf] }
  0xe1   : > { %v1232_v3 = vmax.bf16 %v1230_v55, %v1228_v61  ;;  %v617_v5 = vld [vmem:[%s2281_s22 + $0x7c] sm:$0xf]  ;;  %v1215_v7 = vsel %vm730_vm0, %v711_v57, 4286644096  ;;  %v1219_v8 = vsel %vm730_vm0, %v727_v58, 4286644096 }
  0xe2   : > { %v633_v6 = vld [vmem:[%s2281_s22 + $0xbc] sm:$0xf]  ;;  %v1238_v9 = vsel %vm730_vm0, %v664_v60, 4286644096  ;;  %1304 = vst.msk [vmem:[%s2336_s8 + $0x30] sm:$0xf] %vm730_vm0, %v1186_v1  ;;  %v1213_v10 = vmax.bf16 %v1211_v62, %v1209_v2 }
  0xe3   : > { %v696_v11 = vld [vmem:[%s2281_s22 + $0x1b8] sm:$0xf]  ;;  %v1236_v12 = vmax.bf16 %v1234_v0, %v1232_v3  ;;  %v1242_v13 = vsel %vm730_vm0, %v680_v63, 4286644096  ;;  %v649_v14 = vld [vmem:[%s2281_s22 + $0xfc] sm:$0xf] }
  0xe4   : > { %v1258_v15 = vsel %vm730_vm0, %v601_v4, 4286644096  ;;  %v1261_v16 = vsel %vm730_vm0, %v617_v5, 4286644096  ;;  %v1265_v17 = vsel %vm730_vm0, %v633_v6, 4286644096  ;;  %v1217_v18 = vmax.bf16 %v1215_v7, %v1213_v10 }
  0xe5   : > { %v712_v19 = vld [vmem:[%s2281_s22 + $0x1f8] sm:$0xf]  ;;  %v1240_v20 = vmax.bf16 %v1238_v9, %v1236_v12  ;;  %v665_v21 = vld [vmem:[%s2281_s22 + $0x13c] sm:$0xf]  ;;  %v1263_v22 = vmax.bf16 %v1261_v16, %v1258_v15  ;;  %v1246_v23 = vsel %vm730_vm0, %v696_v11, 4286644096 }
  0xe6   : > { %v1269_v24 = vsel %vm730_vm0, %v649_v14, 4286644096  ;;  %v1221_v25 = vmax.bf16 %v1219_v8, %v1217_v18  ;;  %v728_v26 = vld [vmem:[%s2281_s22 + $0x238] sm:$0xf]  ;;  %v681_v28 = vld [vmem:[%s2281_s22 + $0x17c] sm:$0xf] }
  0xe7   : > { %v1244_v27 = vmax.bf16 %v1242_v13, %v1240_v20  ;;  %v1267_v29 = vmax.bf16 %v1265_v17, %v1263_v22  ;;  %v1250_v30 = vsel %vm730_vm0, %v712_v19, 4286644096  ;;  %v1273_v31 = vsel %vm730_vm0, %v665_v21, 4286644096  ;;  %v697_v33 = vld [vmem:[%s2281_s22 + $0x1bc] sm:$0xf] }
  0xe8   : > { %1305 = vst.msk [vmem:[%s2336_s8 + $0x34] sm:$0xf] %vm730_vm0, %v1221_v25  ;;  %v1254_v35 = vsel %vm730_vm0, %v728_v26, 4286644096  ;;  %v1277_v36 = vsel %vm730_vm0, %v681_v28, 4286644096 }
  0xe9   : > { %v1248_v32 = vmax.bf16 %v1246_v23, %v1244_v27  ;;  %v1271_v34 = vmax.bf16 %v1269_v24, %v1267_v29  ;;  %v713_v38 = vld [vmem:[%s2281_s22 + $0x1fc] sm:$0xf]  ;;  %v1281_v40 = vsel %vm730_vm0, %v697_v33, 4286644096  ;;  %s1667_s23 = sshll.u32 (%p2036_p5), %s2021_s9, 4  ;;  %s1686_s24 = sshll.u32 (%p2036_p5), %s2021_s9, 6 }
  0xea   : > { %v729_v42 = vld [vmem:[%s2281_s22 + $0x23c] sm:$0xf]  ;;  %v1285_v44 = vsel %vm730_vm0, %v713_v38, 4286644096  ;;  %s1316_s25 = ssub.s32 (%p2036_p5), 31, %s1667_s23  ;;  %s2615_s28 = scalar_lea.vmem (%p2036_p5), %s2712_s1, %s1686_s24  }
  0xeb   : > { %v1252_v37 = vmax.bf16 %v1250_v30, %v1248_v32  ;;  %v1275_v39 = vmax.bf16 %v1273_v31, %v1271_v34  ;;  %v1289_v46 = vsel %vm730_vm0, %v729_v42, 4286644096  ;;  %p1317_p4 = scmp.lt.s32.totalorder (%p2036_p5), %s1316_s25, 16 }
  0xed   : > { %v1256_v41 = vmax.bf16 %v1254_v35, %v1252_v37  ;;  %v1279_v43 = vmax.bf16 %v1277_v36, %v1275_v39 }
  0xef   : > { %1306 = vst.msk [vmem:[%s2336_s8 + $0x38] sm:$0xf] %vm730_vm0, %v1256_v41  ;;  %v1283_v45 = vmax.bf16 %v1281_v40, %v1279_v43  ;;  %1314 = sbr.rel (!%p2036_p5) target bundleno = 305 (0x131), region = 90 }
  0xf1   : > { %v1287_v47 = vmax.bf16 %v1285_v44, %v1283_v45 }
  0xf3   : > { %v1291_v48 = vmax.bf16 %v1289_v46, %v1287_v47 }
  0xf5   : > { %1307 = vst.msk [vmem:[%s2336_s8 + $0x3c] sm:$0xf] %vm730_vm0, %v1291_v48 }
  0xf6   : > { %s2733_s25 = smov (!%p1317_p4, %s1316_s25), 16 }
  0xf7   : > { %s1668_s29 = sshll.u32 %s2733_s25, 6 }
  0xf8   : > { %p1671_p6 = scmp.eq.s32.totalorder %s1668_s29, 0 }
  0xf9   : > { %s2621_s14 = sshrl.u32 (!%p1671_p6), %s2733_s25, 4 }
  0xfa   : > { %1325 = sbr.rel (%p1671_p6) target bundleno = 305 (0x131), region = 94  ;;  %p1672_p5 = scmp.le.s32.totalorder (!%p1671_p6), %s2621_s14, 0 }
 0x101   : > { %1604 = sbr.rel (%p1672_p5) target bundleno = 284 (0x11c), region = 207  ;;  %s2720_s9 = smov (!%p1672_p5), %s2615_s28 }
 0x102   : > { %s2721_s30 = smov (!%p1672_p5), %s2336_s8  ;;  %s2630_s2 = smov (!%p1672_p5), 0  }
 0x103   : > { %s2632_s3 = smov (!%p1672_p5), 0  }
 0x108 LB: >> { %v1341_v49 = vld [vmem:[%s1969_s30] sm:$0xf]  ;;  %v1343_v50 = vld [vmem:[%s1969_s30 + $0x4] sm:$0xf]  ;;  %v1345_v51 = vld [vmem:[%s1969_s30 + $0x8] sm:$0xf]  ;;  %s1977_s3 = sphi %s2632_s3, %s1335_s3   ;;  %s1973_s2 = sphi %s2630_s2, %s2722_s2   ;;  %s1969_s30 = sphi %s2721_s30, %s1378_s30   ;;  %s1965_s9 = sphi %s2720_s9, %s1379_s9  }
 0x109   : >> { %1342 = vst [vmem:[%s1965_s9] sm:$0xf] %v1341_v49  ;;  %1344 = vst [vmem:[%s1965_s9 + $0x4] sm:$0xf] %v1343_v50  ;;  %v1347_v52 = vld [vmem:[%s1969_s30 + $0xc] sm:$0xf]  ;;  %s1373_s4 = sadd.s32 1, %s1973_s2 }
 0x10a   : >> { %1346 = vst [vmem:[%s1965_s9 + $0x8] sm:$0xf] %v1345_v51  ;;  %v1349_v53 = vld [vmem:[%s1969_s30 + $0x10] sm:$0xf]  ;;  %v1351_v54 = vld [vmem:[%s1969_s30 + $0x14] sm:$0xf]  ;;  %p1374_p7 = scmp.ge.s32.totalorder %s1373_s4, %s2621_s14 }
 0x10b   : >> { %1348 = vst [vmem:[%s1965_s9 + $0xc] sm:$0xf] %v1347_v52  ;;  %1350 = vst [vmem:[%s1965_s9 + $0x10] sm:$0xf] %v1349_v53  ;;  %v1353_v55 = vld [vmem:[%s1969_s30 + $0x18] sm:$0xf] }
 0x10c   : >> { %1352 = vst [vmem:[%s1965_s9 + $0x14] sm:$0xf] %v1351_v54  ;;  %v1355_v56 = vld [vmem:[%s1969_s30 + $0x1c] sm:$0xf]  ;;  %v1357_v57 = vld [vmem:[%s1969_s30 + $0x20] sm:$0xf] }
 0x10d   : >> { %1354 = vst [vmem:[%s1965_s9 + $0x18] sm:$0xf] %v1353_v55  ;;  %1356 = vst [vmem:[%s1965_s9 + $0x1c] sm:$0xf] %v1355_v56  ;;  %v1359_v58 = vld [vmem:[%s1969_s30 + $0x24] sm:$0xf] }
 0x10e   : >> { %1358 = vst [vmem:[%s1965_s9 + $0x20] sm:$0xf] %v1357_v57  ;;  %v1361_v59 = vld [vmem:[%s1969_s30 + $0x28] sm:$0xf]  ;;  %v1363_v60 = vld [vmem:[%s1969_s30 + $0x2c] sm:$0xf] }
 0x10f   : >> { %1360 = vst [vmem:[%s1965_s9 + $0x24] sm:$0xf] %v1359_v58  ;;  %1362 = vst [vmem:[%s1965_s9 + $0x28] sm:$0xf] %v1361_v59  ;;  %v1365_v61 = vld [vmem:[%s1969_s30 + $0x30] sm:$0xf] }
 0x110   : >> { %1364 = vst [vmem:[%s1965_s9 + $0x2c] sm:$0xf] %v1363_v60  ;;  %v1367_v62 = vld [vmem:[%s1969_s30 + $0x34] sm:$0xf]  ;;  %v1369_v63 = vld [vmem:[%s1969_s30 + $0x38] sm:$0xf] }
 0x111   : >> { %1366 = vst [vmem:[%s1965_s9 + $0x30] sm:$0xf] %v1365_v61  ;;  %1368 = vst [vmem:[%s1965_s9 + $0x34] sm:$0xf] %v1367_v62  ;;  %v1371_v0 = vld [vmem:[%s1969_s30 + $0x3c] sm:$0xf] }
 0x112   : >> { %1370 = vst [vmem:[%s1965_s9 + $0x38] sm:$0xf] %v1369_v63  ;;  %1372 = vst [vmem:[%s1965_s9 + $0x3c] sm:$0xf] %v1371_v0  ;;  %s2735_s4 = smov (%p1374_p7, %s1373_s4), 0  ;;  %s1335_s3 = sadd.s32 1, %s1977_s3  }
 0x113   : >> { %s1673_s5 = sshll.u32 %s2735_s4, 6  ;;  %p1334_p8 = scmp.ge.s32.totalorder %s1335_s3, %s2621_s14 }
 0x114   : >> { %s1378_s30 = scalar_lea.vmem %s2336_s8, %s1673_s5 [#allocation3]   ;;  %s1379_s9 = scalar_lea.vmem %s2615_s28, %s1673_s5  }
 0x115   : >> { %s2722_s2 = smov %s2735_s4  ;;  %1337 = sbr.rel (!%p1334_p8) target bundleno = 264 (0x108), region = 213 }
 0x11c PF: > { %s2693_s11 = sand.u32 15, %s2733_s25   ;;  %s1687_s12 = sshll.u32 %s2621_s14, 6 }
 0x11d   : > { %s1384_s15 = scalar_lea.vmem %s2336_s8, %s1687_s12 [#allocation3]   ;;  %s1386_s16 = scalar_lea.vmem %s2615_s28, %s1687_s12  }
 0x11e   : > { %p1678_p9 = scmp.le.s32.totalorder %s2693_s11, 0 }
 0x11f   : > { %s1979_s17 = smov (!%p1678_p9), %s1386_s16   ;;  %s1983_s18 = smov (!%p1678_p9), %s1384_s15  }
 0x120   : > { %1618 = sbr.rel (%p1678_p9) target bundleno = 305 (0x131), region = 218  ;;  %s1987_s19 = smov (!%p1678_p9), 0  }
 0x121   : > { %s1991_s20 = smov (!%p1678_p9), 0  }
 0x127 LB: >> { %v1396_v1 = vld [vmem:[%s1985_s18] sm:$0xf]  ;;  %s1398_s21 = sadd.s32 1, %s1989_s19  ;;  %s1390_s20 = sadd.s32 1, %s1993_s20   ;;  %s1993_s20 = sphi %s1991_s20, %s1390_s20   ;;  %s1989_s19 = sphi %s1987_s19, %s1988_s19   ;;  %s1985_s18 = sphi %s1983_s18, %s1403_s18   ;;  %s1981_s17 = sphi %s1979_s17, %s1404_s17  }
 0x128   : >> { %1397 = vst [vmem:[%s1981_s17] sm:$0xf] %v1396_v1  ;;  %p1399_p10 = scmp.ge.s32.totalorder %s1398_s21, %s2693_s11  ;;  %p1389_p11 = scmp.ge.s32.totalorder %s1390_s20, %s2693_s11 }
 0x12a   : >> { %s2737_s21 = smov (%p1399_p10, %s1398_s21), 0  ;;  %1392 = sbr.rel (!%p1389_p11) target bundleno = 295 (0x127), region = 224 }
 0x12b   : >> { %s1679_s22 = sshll.u32 %s2737_s21, 2  ;;  %s1988_s19 = smov %s2737_s21  }
 0x12c   : >> { %s1403_s18 = scalar_lea.vmem %s1384_s15, %s1679_s22 [#allocation3]   ;;  %s1404_s17 = scalar_lea.vmem %s1386_s16, %s1679_s22  }
 0x131 PF: > { %p8_p12 = scmp.ge.s32.totalorder %s2024_s10, 4   ;;  %s2723_s6 = smov %s1925_s7 }
 0x132   : > { %s2724_s7 = smov %s2034_s13  ;;  %s2725_s8 = smov %s2024_s10 }
 0x133   :  { %10 = sbr.rel (!%p8_p12) target bundleno = 2 (0x2), region = 235 }

// kernel: _lambda_.10
= control target key start
LH: loop header
LB: loop body
LE: loop exit
PB: predicated region body
PF: predicated region fallthrough
CT: control target
= control target key end

     0   :  { %s4568_s12 = smov 0   ;;  %s4570_s13 = smov 0   ;;  %s5767_s0 = inlined_call_operand.vmem [shape: bf16[242,1600], index: 0, kind: input, shape index: {}]   ;;  %s5768_s1 = inlined_call_operand.vmem [shape: bf16[1600,192], index: 1, kind: input, shape index: {}]   ;;  %s5769_s2 = inlined_call_operand.vmem [shape: f32[1,192], index: 2, kind: input, shape index: {}]   ;;  %s5770_s3 = inlined_call_operand.vmem [shape: bf16[242,192], index: 3, kind: output, shape index: {}]  }
   0x1   :  { %s4572_s14 = smov 0  }
   0x2 LB: > { %s4581_s15 = sadd.s32 4294967295, %s4513_s14   ;;  %s4583_s16 = sadd.s32 1, %s4513_s14   ;;  %s4513_s14 = sphi %s4572_s14, %s5779_s14   ;;  %s4509_s13 = sphi %s4570_s13, %s5778_s13   ;;  %s4505_s12 = sphi %s4568_s12, %s5777_s12  }
   0x3   : > { %s85_s17 = ssub.s32 %s4513_s14, %s4583_s16  ;;  %s88_s18 = sadd.s32 1, %s4509_s13 }
   0x4   : > { %p86_p0 = scmp.eq.s32.totalorder %s85_s17, 0  ;;  %p98_p1 = scmp.ne.s32.totalorder %s4509_s13, %s4505_s12 }
   0x5   : > { %p99_p2 = scmp.eq.s32.totalorder %s4581_s15, 1  ;;  %p3289_p3 = scmp.ge.s32.totalorder %s4513_s14, 1 }
   0x6   : > { %s4591_s19 = scalar_select %p86_p0, %s4509_s13, %s88_s18  }
   0x7   : > { %p4593_p4 = por %p99_p2, %p98_p1  ;;  %p149_p5 = scmp.lt.s32.totalorder %s4513_s14, 3 }
   0x9   : > { %p150_p6 = pnand %p3289_p3, %p149_p5 }
   0xa   : > { %v4007_v0 = vld [vmem:[%s5768_s1 + $0x4] ss:$8 sps:$4 sm:$0xff] (!%p150_p6)   ;;  %v4011_v2 = vld [vmem:[%s5768_s1] ss:$8 sps:$4 sm:$0xff] (!%p150_p6)   ;;  %v4013_v4 = vld [vmem:[%s5768_s1 + $0x14] ss:$8 sps:$4 sm:$0xff] (!%p150_p6)  }
   0xb   : > { %153 = sbr.rel (%p150_p6) target bundleno = 564 (0x234), region = 32  ;;  %v4009_v1 = vld [vmem:[%s5768_s1 + $0x304] ss:$8 sps:$4 sm:$0xff] (!%p150_p6)   ;;  %2071 = vmatprep.subr.bf16.mxu1 (!%p150_p6), %v4007_v0  ;;  %v4012_v3 = vld [vmem:[%s5768_s1 + $0x300] ss:$8 sps:$4 sm:$0xff] (!%p150_p6)   ;;  %s4688_s14 = sshll.u32 (!%p150_p6), %s4581_s15, 4 }
   0xc   : > { %2410 = vmatprep.subr.bf16.mxu0 (!%p150_p6), %v4009_v1  ;;  %2072 = vmatpush1.bf16.msra.mxu1 (!%p150_p6), %v4011_v2  ;;  %v4015_v5 = vld [vmem:[%s5768_s1 + $0x314] ss:$8 sps:$4 sm:$0xff] (!%p150_p6)   ;;  %v4017_v6 = vld [vmem:[%s5768_s1 + $0x10] ss:$8 sps:$4 sm:$0xff] (!%p150_p6)   ;;  %v4019_v8 = vld [vmem:[%s5768_s1 + $0x24] ss:$8 sps:$4 sm:$0xff] (!%p150_p6)  }
   0xd   : > { %2411 = vmatpush1.bf16.msra.mxu0 (!%p150_p6), %v4012_v3  ;;  %2073 = vmatprep.subr.bf16.mxu1 (!%p150_p6), %v4013_v4  ;;  %v4018_v7 = vld [vmem:[%s5768_s1 + $0x310] ss:$8 sps:$4 sm:$0xff] (!%p150_p6)   ;;  %v4021_v9 = vld [vmem:[%s5768_s1 + $0x324] ss:$8 sps:$4 sm:$0xff] (!%p150_p6)   ;;  %v4023_v10 = vld [vmem:[%s5768_s1 + $0x20] ss:$8 sps:$4 sm:$0xff] (!%p150_p6)  }
   0xe   : > { %2412 = vmatprep.subr.bf16.mxu0 (!%p150_p6), %v4015_v5  ;;  %v4024_v11 = vld [vmem:[%s5768_s1 + $0x320] ss:$8 sps:$4 sm:$0xff] (!%p150_p6)   ;;  %v4025_v12 = vld [vmem:[%s5768_s1 + $0x34] ss:$8 sps:$4 sm:$0xff] (!%p150_p6)   ;;  %v4029_v14 = vld [vmem:[%s5768_s1 + $0x30] ss:$8 sps:$4 sm:$0xff] (!%p150_p6)  }
   0xf   : > { %v4027_v13 = vld [vmem:[%s5768_s1 + $0x334] ss:$8 sps:$4 sm:$0xff] (!%p150_p6)   ;;  %v4030_v15 = vld [vmem:[%s5768_s1 + $0x330] ss:$8 sps:$4 sm:$0xff] (!%p150_p6)   ;;  %v4031_v16 = vld [vmem:[%s5768_s1 + $0x44] ss:$8 sps:$4 sm:$0xff] (!%p150_p6)  }
  0x10   : > { %2074 = vmatpush1.bf16.msra.mxu1 (!%p150_p6), %v4017_v6  ;;  %v4033_v17 = vld [vmem:[%s5768_s1 + $0x344] ss:$8 sps:$4 sm:$0xff] (!%p150_p6)   ;;  %v4035_v18 = vld [vmem:[%s5768_s1 + $0x40] ss:$8 sps:$4 sm:$0xff] (!%p150_p6)   ;;  %v4037_v20 = vld [vmem:[%s5768_s1 + $0x54] ss:$8 sps:$4 sm:$0xff] (!%p150_p6)  }
  0x11   : > { %2413 = vmatpush1.bf16.msra.mxu0 (!%p150_p6), %v4018_v7  ;;  %2075 = vmatprep.subr.bf16.mxu1 (!%p150_p6), %v4019_v8  ;;  %v4036_v19 = vld [vmem:[%s5768_s1 + $0x340] ss:$8 sps:$4 sm:$0xff] (!%p150_p6)   ;;  %v4039_v21 = vld [vmem:[%s5768_s1 + $0x354] ss:$8 sps:$4 sm:$0xff] (!%p150_p6)   ;;  %v4041_v22 = vld [vmem:[%s5768_s1 + $0x50] ss:$8 sps:$4 sm:$0xff] (!%p150_p6)  }
  0x12   : > { %2414 = vmatprep.subr.bf16.mxu0 %v4021_v9  ;;  %v4042_v23 = vld [vmem:[%s5768_s1 + $0x350] ss:$8 sps:$4 sm:$0xff]   ;;  %v4043_v24 = vld [vmem:[%s5768_s1 + $0x64] ss:$8 sps:$4 sm:$0xff]   ;;  %v4047_v26 = vld [vmem:[%s5768_s1 + $0x60] ss:$8 sps:$4 sm:$0xff]  }
  0x13   : > { %v4045_v25 = vld [vmem:[%s5768_s1 + $0x364] ss:$8 sps:$4 sm:$0xff]   ;;  %v4048_v27 = vld [vmem:[%s5768_s1 + $0x360] ss:$8 sps:$4 sm:$0xff]   ;;  %v4049_v28 = vld [vmem:[%s5768_s1 + $0x74] ss:$8 sps:$4 sm:$0xff]  }
  0x14   : > { %2076 = vmatpush1.bf16.msra.mxu1 %v4023_v10  ;;  %v4051_v29 = vld [vmem:[%s5768_s1 + $0x374] ss:$8 sps:$4 sm:$0xff]   ;;  %v4053_v30 = vld [vmem:[%s5768_s1 + $0x70] ss:$8 sps:$4 sm:$0xff]   ;;  %v4055_v32 = vld [vmem:[%s5768_s1 + $0x84] ss:$8 sps:$4 sm:$0xff]  }
  0x15   : > { %2415 = vmatpush1.bf16.msra.mxu0 %v4024_v11  ;;  %2077 = vmatprep.subr.bf16.mxu1 %v4025_v12  ;;  %v4054_v31 = vld [vmem:[%s5768_s1 + $0x370] ss:$8 sps:$4 sm:$0xff]   ;;  %p184_p7 = scmp.lt.s32.totalorder %s4688_s14, 30  ;;  %v4057_v33 = vld [vmem:[%s5768_s1 + $0x384] ss:$8 sps:$4 sm:$0xff]   ;;  %vm2046_vm0 = vcmask 523264  }
  0x16   : > { %2416 = vmatprep.subr.bf16.mxu0 %v4027_v13  ;;  %v4059_v34 = vld [vmem:[%s5768_s1 + $0x80] ss:$8 sps:$4 sm:$0xff]   ;;  %v4061_v36 = vld [vmem:[%s5768_s1 + $0x94] ss:$8 sps:$4 sm:$0xff]   ;;  %v4065_v38 = vld [vmem:[%s5768_s1 + $0x90] ss:$8 sps:$4 sm:$0xff]  }
  0x17   : > { %v4060_v35 = vld [vmem:[%s5768_s1 + $0x380] ss:$8 sps:$4 sm:$0xff]   ;;  %s185_s6 = scalar_select %p184_p7, %s4688_s14, 30  ;;  %v4063_v37 = vld [vmem:[%s5768_s1 + $0x394] ss:$8 sps:$4 sm:$0xff]   ;;  %vm2990_vm1 = vcmask 1043456  }
  0x18   : > { %2078 = vmatpush1.bf16.msra.mxu1 %v4029_v14  ;;  %v4066_v39 = vld [vmem:[%s5768_s1 + $0x390] ss:$8 sps:$4 sm:$0xff]   ;;  %v4067_v40 = vld [vmem:[%s5768_s1 + $0xa4] ss:$8 sps:$4 sm:$0xff]   ;;  %v4071_v42 = vld [vmem:[%s5768_s1 + $0xa0] ss:$8 sps:$4 sm:$0xff]  }
  0x19   : > { %2417 = vmatpush1.bf16.msra.mxu0 %v4030_v15  ;;  %2079 = vmatprep.subr.bf16.mxu1 %v4031_v16  ;;  %s3917_s22 = smul.u32 52, %s185_s6  ;;  %v4069_v41 = vld [vmem:[%s5768_s1 + $0x3a4] ss:$8 sps:$4 sm:$0xff]   ;;  %v4072_v43 = vld [vmem:[%s5768_s1 + $0x3a0] ss:$8 sps:$4 sm:$0xff]   ;;  %s175_s21 = sand.u32 1, %s4505_s12  }
  0x1a   : > { %2418 = vmatprep.subr.bf16.mxu0 %v4033_v17  ;;  %v4073_v44 = vld [vmem:[%s5768_s1 + $0xb4] ss:$8 sps:$4 sm:$0xff]   ;;  %v4077_v46 = vld [vmem:[%s5768_s1 + $0xb0] ss:$8 sps:$4 sm:$0xff]   ;;  %v4079_v48 = vld [vmem:[%s5768_s1 + $0xc4] ss:$8 sps:$4 sm:$0xff]  }
  0x1b   : > { %s4740_s6 = scalar_lea.vmem %s5767_s0, %s3917_s22  ;;  %v4075_v45 = vld [vmem:[%s5768_s1 + $0x3b4] ss:$8 sps:$4 sm:$0xff]   ;;  %v4078_v47 = vld [vmem:[%s5768_s1 + $0x3b0] ss:$8 sps:$4 sm:$0xff]   ;;  %v4081_v50 = vld [vmem:[%s5768_s1 + $0x3c4] ss:$8 sps:$4 sm:$0xff]  }
  0x1c   : > { %2080 = vmatpush1.bf16.msra.mxu1 %v4035_v18  ;;  %v4105_v49 = vld [vmem:[%s4740_s6 + $0x4] ss:$52 sps:$4 sm:$0xff]   ;;  %v4108_v51 = vld [vmem:[%s4740_s6 + $0x1c] ss:$52 sps:$4 sm:$0xff]   ;;  %v4083_v52 = vld [vmem:[%s5768_s1 + $0xc0] ss:$8 sps:$4 sm:$0xff]  }
  0x1d   : > { %2419 = vmatpush1.bf16.msra.mxu0 %v4036_v19  ;;  %2081 = vmatprep.subr.bf16.mxu1 %v4037_v20  ;;  %v4084_v53 = vld [vmem:[%s5768_s1 + $0x3c0] ss:$8 sps:$4 sm:$0xff]   ;;  %v4085_v54 = vld [vmem:[%s5768_s1 + $0xd4] ss:$8 sps:$4 sm:$0xff]   ;;  %v4089_v56 = vld [vmem:[%s5768_s1 + $0xd0] ss:$8 sps:$4 sm:$0xff]  }
  0x1e   : > { %2420 = vmatprep.subr.bf16.mxu0 %v4039_v21  ;;  %2103 = vmatprep.mubr.bf16.mxu1 %v4105_v49  ;;  %v4087_v55 = vld [vmem:[%s5768_s1 + $0x3d4] ss:$8 sps:$4 sm:$0xff]   ;;  %v4090_v57 = vld [vmem:[%s5768_s1 + $0x3d0] ss:$8 sps:$4 sm:$0xff]   ;;  %v4091_v58 = vld [vmem:[%s5768_s1 + $0xe4] ss:$8 sps:$4 sm:$0xff]  }
  0x1f   : > { %2442 = vmatprep.mubr.bf16.mxu0 %v4108_v51  ;;  %v4093_v59 = vld [vmem:[%s5768_s1 + $0x3e4] ss:$8 sps:$4 sm:$0xff]   ;;  %v4095_v60 = vld [vmem:[%s5768_s1 + $0xe0] ss:$8 sps:$4 sm:$0xff]   ;;  %v4097_v62 = vld [vmem:[%s5768_s1 + $0xf4] ss:$8 sps:$4 sm:$0xff]  }
  0x20   : > { %2082 = vmatpush1.bf16.msra.mxu1 %v4041_v22  ;;  %v4096_v61 = vld [vmem:[%s5768_s1 + $0x3e0] ss:$8 sps:$4 sm:$0xff]   ;;  %v4099_v63 = vld [vmem:[%s5768_s1 + $0x3f4] ss:$8 sps:$4 sm:$0xff]   ;;  %v4101_v0 = vld [vmem:[%s5768_s1 + $0xf0] ss:$8 sps:$4 sm:$0xff]  }
  0x21   : > { %2421 = vmatpush1.bf16.msra.mxu0 %v4042_v23  ;;  %2083 = vmatprep.subr.bf16.mxu1 %v4043_v24  ;;  %v4102_v1 = vld [vmem:[%s5768_s1 + $0x3f0] ss:$8 sps:$4 sm:$0xff]   ;;  %v4111_v2 = vld [vmem:[%s5768_s1 + $0x104] ss:$8 sps:$4 sm:$0xff]   ;;  %v4103_v4 = vld [vmem:[%s4740_s6] ss:$52 sps:$4 sm:$0xff]  }
  0x22   : > { %2422 = vmatprep.subr.bf16.mxu0 %v4045_v25  ;;  %v4114_v3 = vld [vmem:[%s5768_s1 + $0x404] ss:$8 sps:$4 sm:$0xff]   ;;  %v4109_v6 = vld [vmem:[%s5768_s1 + $0x100] ss:$8 sps:$4 sm:$0xff]   ;;  %v4117_v8 = vld [vmem:[%s5768_s1 + $0x114] ss:$8 sps:$4 sm:$0xff]  }
  0x23   : > { %v4106_v5 = vld [vmem:[%s4740_s6 + $0x18] ss:$52 sps:$4 sm:$0xff]   ;;  %v4112_v7 = vld [vmem:[%s5768_s1 + $0x400] ss:$8 sps:$4 sm:$0xff]   ;;  %v4120_v9 = vld [vmem:[%s5768_s1 + $0x414] ss:$8 sps:$4 sm:$0xff]  }
  0x24   : > { %2084 = vmatpush1.bf16.msra.mxu1 %v4047_v26  ;;  %v4121_v10 = vld [vmem:[%s4740_s6 + $0x6c] ss:$52 sps:$4 sm:$0xff]   ;;  %v4123_v11 = vld [vmem:[%s4740_s6 + $0x84] ss:$52 sps:$4 sm:$0xff]   ;;  %v4125_v16 = vld [vmem:[%s4740_s6 + $0x68] ss:$52 sps:$4 sm:$0xff]  }
  0x25   : > { %2423 = vmatpush1.bf16.msra.mxu0 %v4048_v27  ;;  %2085 = vmatprep.subr.bf16.mxu1 %v4049_v28  ;;  %v4115_v12 = vld [vmem:[%s5768_s1 + $0x110] ss:$8 sps:$4 sm:$0xff]   ;;  %v4128_v14 = vld [vmem:[%s5768_s1 + $0x124] ss:$8 sps:$4 sm:$0xff]   ;;  %v4126_v17 = vld [vmem:[%s5768_s1 + $0x120] ss:$8 sps:$4 sm:$0xff]  }
  0x26   : > { %2424 = vmatprep.subr.bf16.mxu0 %v4051_v29  ;;  %v4118_v13 = vld [vmem:[%s5768_s1 + $0x410] ss:$8 sps:$4 sm:$0xff]   ;;  %v4132_v15 = vld [vmem:[%s5768_s1 + $0x424] ss:$8 sps:$4 sm:$0xff]   ;;  %v4129_v18 = vld [vmem:[%s4740_s6 + $0x80] ss:$52 sps:$4 sm:$0xff]  }
  0x27   : > { %v4130_v19 = vld [vmem:[%s5768_s1 + $0x420] ss:$8 sps:$4 sm:$0xff]   ;;  %v4135_v20 = vld [vmem:[%s5768_s1 + $0x134] ss:$8 sps:$4 sm:$0xff]   ;;  %v4133_v24 = vld [vmem:[%s5768_s1 + $0x130] ss:$8 sps:$4 sm:$0xff]  }
  0x28   : > { %2086 = vmatpush1.bf16.msra.mxu1 %v4053_v30  ;;  %v4138_v21 = vld [vmem:[%s5768_s1 + $0x434] ss:$8 sps:$4 sm:$0xff]   ;;  %v4141_v23 = vld [vmem:[%s4740_s6 + $0xec] ss:$52 sps:$4 sm:$0xff]   ;;  %v4136_v25 = vld [vmem:[%s5768_s1 + $0x430] ss:$8 sps:$4 sm:$0xff]  }
  0x29   : > { %2425 = vmatpush1.bf16.msra.mxu0 %v4054_v31  ;;  %2087 = vmatprep.subr.bf16.mxu1 %v4055_v32  ;;  %v4139_v22 = vld [vmem:[%s4740_s6 + $0xd4] ss:$52 sps:$4 sm:$0xff]   ;;  %v4146_v26 = vld [vmem:[%s5768_s1 + $0x144] ss:$8 sps:$4 sm:$0xff]   ;;  %v4172_v49 = vld [vmem:[%s5768_s1 + $0x470] ss:$8 sps:$4 sm:$0xff]  }
  0x2a   : > { %2426 = vmatprep.subr.bf16.mxu0 %v4057_v33  ;;  %v4150_v27 = vld [vmem:[%s5768_s1 + $0x444] ss:$8 sps:$4 sm:$0xff]   ;;  %v4144_v29 = vld [vmem:[%s5768_s1 + $0x140] ss:$8 sps:$4 sm:$0xff]   ;;  %v4153_v32 = vld [vmem:[%s5768_s1 + $0x154] ss:$8 sps:$4 sm:$0xff]  }
  0x2b   : > { %v4143_v28 = vld [vmem:[%s4740_s6 + $0xd0] ss:$52 sps:$4 sm:$0xff]   ;;  %v4147_v30 = vld [vmem:[%s4740_s6 + $0xe8] ss:$52 sps:$4 sm:$0xff]   ;;  %s3290_s22 = sshll.u32 %s175_s21, 7  ;;  %vm2991_vm2 = vcmask 523268  }
  0x2c   : > { %2088 = vmatpush1.bf16.msra.mxu1 %v4059_v34  ;;  %v4148_v31 = vld [vmem:[%s5768_s1 + $0x440] ss:$8 sps:$4 sm:$0xff]   ;;  %v4156_v33 = vld [vmem:[%s5768_s1 + $0x454] ss:$8 sps:$4 sm:$0xff]   ;;  %v4186_v51 = vld [vmem:[%s5768_s1 + $0x484] ss:$8 sps:$4 sm:$0xff]  }
  0x2d   : > { %2427 = vmatpush1.bf16.msra.mxu0 %v4060_v35  ;;  %2089 = vmatprep.subr.bf16.mxu1 %v4061_v36  ;;  %v4157_v34 = vld [vmem:[%s4740_s6 + $0x13c] ss:$52 sps:$4 sm:$0xff]   ;;  %v4159_v35 = vld [vmem:[%s4740_s6 + $0x154] ss:$52 sps:$4 sm:$0xff]   ;;  %vm5523_vm3 = vmor %vm2991_vm2, %vm2990_vm1  ;;  %s5535_s12 = scalar_lea.vmem [#allocation2], %s3290_s22   ;;  %s3017_s23 = ssub.s32 (%p4593_p4), 31, %s4688_s14 }
  0x2e   : > { %2428 = vmatprep.subr.bf16.mxu0 %v4063_v37  ;;  %v4151_v36 = vld [vmem:[%s5768_s1 + $0x150] ss:$8 sps:$4 sm:$0xff]   ;;  %s3658_s24 = sshll.u32 (%p4593_p4), %s4581_s15, 7  ;;  %p3018_p8 = scmp.lt.s32.totalorder (%p4593_p4), %s3017_s23, 16 }
  0x2f   : > { %v4154_v37 = vld [vmem:[%s5768_s1 + $0x450] ss:$8 sps:$4 sm:$0xff]   ;;  %s5674_s27 = scalar_lea.vmem (%p4593_p4), %s5770_s3, %s3658_s24  }
  0x30   : > { %2090 = vmatpush1.bf16.msra.mxu1 %v4065_v38  ;;  %v4164_v38 = vld [vmem:[%s5768_s1 + $0x164] ss:$8 sps:$4 sm:$0xff]  }
  0x31   : > { %2429 = vmatpush1.bf16.msra.mxu0 %v4066_v39  ;;  %2091 = vmatprep.subr.bf16.mxu1 %v4067_v40  ;;  %v4168_v39 = vld [vmem:[%s5768_s1 + $0x464] ss:$8 sps:$4 sm:$0xff]  }
  0x32   : > { %2430 = vmatprep.subr.bf16.mxu0 %v4069_v41  ;;  %v4161_v40 = vld [vmem:[%s4740_s6 + $0x138] ss:$52 sps:$4 sm:$0xff]   ;;  %v4162_v41 = vld [vmem:[%s5768_s1 + $0x160] ss:$8 sps:$4 sm:$0xff]  }
  0x34   : > { %2092 = vmatpush1.bf16.msra.mxu1 %v4071_v42  ;;  %v4165_v42 = vld [vmem:[%s4740_s6 + $0x150] ss:$52 sps:$4 sm:$0xff]  }
  0x35   : > { %2431 = vmatpush1.bf16.msra.mxu0 %v4072_v43  ;;  %2093 = vmatprep.subr.bf16.mxu1 %v4073_v44  ;;  %v4166_v43 = vld [vmem:[%s5768_s1 + $0x460] ss:$8 sps:$4 sm:$0xff]   ;;  %v4171_v44 = vld [vmem:[%s5768_s1 + $0x174] ss:$8 sps:$4 sm:$0xff]  }
  0x36   : > { %2432 = vmatprep.subr.bf16.mxu0 %v4075_v45  ;;  %v4174_v45 = vld [vmem:[%s5768_s1 + $0x474] ss:$8 sps:$4 sm:$0xff]  }
  0x38   : > { %2094 = vmatpush1.bf16.msra.mxu1 %v4077_v46  ;;  %v4175_v46 = vld [vmem:[%s4740_s6 + $0x1a4] ss:$52 sps:$4 sm:$0xff]  }
  0x39   : > { %2433 = vmatpush1.bf16.msra.mxu0 %v4078_v47  ;;  %2095 = vmatprep.subr.bf16.mxu1 %v4079_v48  ;;  %v4177_v47 = vld [vmem:[%s4740_s6 + $0x1bc] ss:$52 sps:$4 sm:$0xff]  }
  0x3a   : > { %2434 = vmatprep.subr.bf16.mxu0 %v4081_v50  ;;  %v4169_v48 = vld [vmem:[%s5768_s1 + $0x170] ss:$8 sps:$4 sm:$0xff]   ;;  %v4182_v50 = vld [vmem:[%s5768_s1 + $0x184] ss:$8 sps:$4 sm:$0xff]  }
  0x3c   : > { %2096 = vmatpush1.bf16.msra.mxu1 %v4083_v52  ;;  %v4179_v52 = vld [vmem:[%s4740_s6 + $0x1a0] ss:$52 sps:$4 sm:$0xff]  }
  0x3d   : > { %2435 = vmatpush1.bf16.msra.mxu0 %v4084_v53  ;;  %2097 = vmatprep.subr.bf16.mxu1 %v4085_v54  ;;  %v4180_v53 = vld [vmem:[%s5768_s1 + $0x180] ss:$8 sps:$4 sm:$0xff]   ;;  %v4183_v54 = vld [vmem:[%s4740_s6 + $0x1b8] ss:$52 sps:$4 sm:$0xff]  }
  0x3e   : > { %2436 = vmatprep.subr.bf16.mxu0 %v4087_v55  ;;  %v4184_v55 = vld [vmem:[%s5768_s1 + $0x480] ss:$8 sps:$4 sm:$0xff]  }
  0x40   : > { %2098 = vmatpush1.bf16.msra.mxu1 %v4089_v56  ;;  %v4189_v56 = vld [vmem:[%s5768_s1 + $0x194] ss:$8 sps:$4 sm:$0xff]  }
  0x41   : > { %2437 = vmatpush1.bf16.msra.mxu0 %v4090_v57  ;;  %2099 = vmatprep.subr.bf16.mxu1 %v4091_v58  ;;  %v4192_v57 = vld [vmem:[%s5768_s1 + $0x494] ss:$8 sps:$4 sm:$0xff]   ;;  %v4193_v58 = vld [vmem:[%s4740_s6 + $0x20c] ss:$52 sps:$4 sm:$0xff]  }
  0x42   : > { %2438 = vmatprep.subr.bf16.mxu0 %v4093_v59  ;;  %v4195_v59 = vld [vmem:[%s4740_s6 + $0x224] ss:$52 sps:$4 sm:$0xff]  }
  0x44   : > { %2100 = vmatpush1.bf16.msra.mxu1 %v4095_v60  ;;  %v4187_v60 = vld [vmem:[%s5768_s1 + $0x190] ss:$8 sps:$4 sm:$0xff]  }
  0x45   : > { %2439 = vmatpush1.bf16.msra.mxu0 %v4096_v61  ;;  %2101 = vmatprep.subr.bf16.mxu1 %v4097_v62  ;;  %v4190_v61 = vld [vmem:[%s5768_s1 + $0x490] ss:$8 sps:$4 sm:$0xff]   ;;  %v4200_v62 = vld [vmem:[%s5768_s1 + $0x1a4] ss:$8 sps:$4 sm:$0xff]  }
  0x46   : > { %2440 = vmatprep.subr.bf16.mxu0 %v4099_v63  ;;  %v4204_v63 = vld [vmem:[%s5768_s1 + $0x4a4] ss:$8 sps:$4 sm:$0xff]  }
  0x48   : > { %2102 = vmatpush1.bf16.msra.mxu1 %v4101_v0  ;;  %v4197_v0 = vld [vmem:[%s4740_s6 + $0x208] ss:$52 sps:$4 sm:$0xff]  }
  0x49   : > { %2441 = vmatpush1.bf16.msra.mxu0 %v4102_v1  ;;  %2184 = vmatprep.subr.bf16.mxu1 %v4111_v2  ;;  %v4198_v1 = vld [vmem:[%s5768_s1 + $0x1a0] ss:$8 sps:$4 sm:$0xff]  }
  0x4a   : > { %2523 = vmatprep.subr.bf16.mxu0 %v4114_v3  ;;  %v4201_v2 = vld [vmem:[%s4740_s6 + $0x220] ss:$52 sps:$4 sm:$0xff]  }
  0x4b   : > { %2104 = vmatmul.mubr.bf16.vlgmr.msra.gmra.mrb[0].mxu1 %v4103_v4  ;;  %v4202_v3 = vld [vmem:[%s5768_s1 + $0x4a0] ss:$8 sps:$4 sm:$0xff]   ;;  %v4207_v4 = vld [vmem:[%s5768_s1 + $0x1b4] ss:$8 sps:$4 sm:$0xff]  }
  0x4c   : > { %2443 = vmatmul.mubr.bf16.vlgmr.msra.gmra.mrb[0].mxu0 %v4106_v5  ;;  %2185 = vmatpush1.bf16.msra.mxu1 %v4109_v6  ;;  %v4210_v5 = vld [vmem:[%s5768_s1 + $0x4b4] ss:$8 sps:$4 sm:$0xff]  }
  0x4d   : > { %2524 = vmatpush1.bf16.msra.mxu0 %v4112_v7  ;;  %2186 = vmatprep.subr.bf16.mxu1 %v4117_v8  ;;  %v4211_v6 = vld [vmem:[%s4740_s6 + $0x274] ss:$52 sps:$4 sm:$0xff]   ;;  %v4213_v7 = vld [vmem:[%s4740_s6 + $0x28c] ss:$52 sps:$4 sm:$0xff]   ;;  %v4205_v8 = vld [vmem:[%s5768_s1 + $0x1b0] ss:$8 sps:$4 sm:$0xff]  }
  0x4e   : > { %2525 = vmatprep.subr.bf16.mxu0 %v4120_v9  ;;  %2113 = vmatprep.mubr.bf16.mxu1 %v4121_v10  ;;  %v4208_v9 = vld [vmem:[%s5768_s1 + $0x4b0] ss:$8 sps:$4 sm:$0xff]   ;;  %v4218_v10 = vld [vmem:[%s5768_s1 + $0x1c4] ss:$8 sps:$4 sm:$0xff]  }
  0x4f   : > { %2452 = vmatprep.mubr.bf16.mxu0 %v4123_v11  ;;  %v4222_v11 = vld [vmem:[%s5768_s1 + $0x4c4] ss:$8 sps:$4 sm:$0xff]  }
  0x50   : > { %2187 = vmatpush1.bf16.msra.mxu1 %v4115_v12  ;;  %v4215_v12 = vld [vmem:[%s4740_s6 + $0x270] ss:$52 sps:$4 sm:$0xff]  }
  0x51   : > { %2526 = vmatpush1.bf16.msra.mxu0 %v4118_v13  ;;  %2188 = vmatprep.subr.bf16.mxu1 %v4128_v14  ;;  %v4216_v13 = vld [vmem:[%s5768_s1 + $0x1c0] ss:$8 sps:$4 sm:$0xff]  }
  0x52   : > { %2527 = vmatprep.subr.bf16.mxu0 %v4132_v15  ;;  %v4219_v14 = vld [vmem:[%s4740_s6 + $0x288] ss:$52 sps:$4 sm:$0xff]  }
  0x53   : > { %2114 = vmatmul.mubr.bf16.gmra.mrb[4].mxu1 %v4125_v16  ;;  %v4220_v15 = vld [vmem:[%s5768_s1 + $0x4c0] ss:$8 sps:$4 sm:$0xff]   ;;  %v4225_v16 = vld [vmem:[%s5768_s1 + $0x1d4] ss:$8 sps:$4 sm:$0xff]  }
  0x54   : > { %2453 = vmatmul.mubr.bf16.gmra.mrb[4].mxu0 %v4129_v18  ;;  %2189 = vmatpush1.bf16.msra.mxu1 %v4126_v17  ;;  %v4228_v17 = vld [vmem:[%s5768_s1 + $0x4d4] ss:$8 sps:$4 sm:$0xff]  }
  0x55   : > { %2528 = vmatpush1.bf16.msra.mxu0 %v4130_v19  ;;  %2190 = vmatprep.subr.bf16.mxu1 %v4135_v20  ;;  %v4229_v18 = vld [vmem:[%s4740_s6 + $0x2dc] ss:$52 sps:$4 sm:$0xff]   ;;  %v4231_v19 = vld [vmem:[%s4740_s6 + $0x2f4] ss:$52 sps:$4 sm:$0xff]  }
  0x56   : > { %2529 = vmatprep.subr.bf16.mxu0 %v4138_v21  ;;  %2123 = vmatprep.mubr.bf16.mxu1 %v4139_v22  ;;  %v4223_v20 = vld [vmem:[%s5768_s1 + $0x1d0] ss:$8 sps:$4 sm:$0xff]   ;;  %v4236_v22 = vld [vmem:[%s5768_s1 + $0x1e4] ss:$8 sps:$4 sm:$0xff]  }
  0x57   : > { %2462 = vmatprep.mubr.bf16.mxu0 %v4141_v23  ;;  %v4226_v21 = vld [vmem:[%s5768_s1 + $0x4d0] ss:$8 sps:$4 sm:$0xff]   ;;  %v4240_v23 = vld [vmem:[%s5768_s1 + $0x4e4] ss:$8 sps:$4 sm:$0xff]  }
  0x58   : > { %2191 = vmatpush1.bf16.msra.mxu1 %v4133_v24  ;;  %v4233_v24 = vld [vmem:[%s4740_s6 + $0x2d8] ss:$52 sps:$4 sm:$0xff]  }
  0x59   : > { %2530 = vmatpush1.bf16.msra.mxu0 %v4136_v25  ;;  %2192 = vmatprep.subr.bf16.mxu1 %v4146_v26  ;;  %v4234_v25 = vld [vmem:[%s5768_s1 + $0x1e0] ss:$8 sps:$4 sm:$0xff]   ;;  %v4237_v26 = vld [vmem:[%s4740_s6 + $0x2f0] ss:$52 sps:$4 sm:$0xff]  }
  0x5a   : > { %2531 = vmatprep.subr.bf16.mxu0 %v4150_v27  ;;  %v4238_v27 = vld [vmem:[%s5768_s1 + $0x4e0] ss:$8 sps:$4 sm:$0xff]  }
  0x5b   : > { %2124 = vmatmul.mubr.bf16.gmra.mrb[8].mxu1 %v4143_v28  ;;  %v4243_v28 = vld [vmem:[%s5768_s1 + $0x1f4] ss:$8 sps:$4 sm:$0xff]  }
  0x5c   : > { %2463 = vmatmul.mubr.bf16.gmra.mrb[8].mxu0 %v4147_v30  ;;  %2193 = vmatpush1.bf16.msra.mxu1 %v4144_v29  ;;  %v4246_v29 = vld [vmem:[%s5768_s1 + $0x4f4] ss:$8 sps:$4 sm:$0xff]   ;;  %v4249_v30 = vld [vmem:[%s4740_s6 + $0xc] ss:$52 sps:$4 sm:$0xff]  }
  0x5d   : > { %2532 = vmatpush1.bf16.msra.mxu0 %v4148_v31  ;;  %2194 = vmatprep.subr.bf16.mxu1 %v4153_v32  ;;  %v4252_v31 = vld [vmem:[%s4740_s6 + $0x24] ss:$52 sps:$4 sm:$0xff]  }
  0x5e   : > { %2533 = vmatprep.subr.bf16.mxu0 %v4156_v33  ;;  %2133 = vmatprep.mubr.bf16.mxu1 %v4157_v34  ;;  %v4241_v32 = vld [vmem:[%s5768_s1 + $0x1f0] ss:$8 sps:$4 sm:$0xff]   ;;  %v4255_v34 = vld [vmem:[%s5768_s1 + $0x204] ss:$8 sps:$4 sm:$0xff]  }
  0x5f   : > { %2472 = vmatprep.mubr.bf16.mxu0 %v4159_v35  ;;  %v4244_v33 = vld [vmem:[%s5768_s1 + $0x4f0] ss:$8 sps:$4 sm:$0xff]   ;;  %v5031_v35 = vld [vmem:[%s5768_s1 + $0x504] ss:$8 sps:$4 sm:$0xff]  }
  0x60   : > { %2195 = vmatpush1.bf16.msra.mxu1 %v4151_v36  ;;  %v4247_v36 = vld [vmem:[%s4740_s6 + $0x8] ss:$52 sps:$4 sm:$0xff]  }
  0x61   : > { %2534 = vmatpush1.bf16.msra.mxu0 %v4154_v37  ;;  %2196 = vmatprep.subr.bf16.mxu1 %v4164_v38  ;;  %v4250_v37 = vld [vmem:[%s4740_s6 + $0x20] ss:$52 sps:$4 sm:$0xff]  }
  0x62   : > { %2535 = vmatprep.subr.bf16.mxu0 %v4168_v39  ;;  %v4253_v38 = vld [vmem:[%s5768_s1 + $0x200] ss:$8 sps:$4 sm:$0xff]  }
  0x63   : > { %2134 = vmatmul.mubr.bf16.gmra.mrb[12].mxu1 %v4161_v40  ;;  %v5041_v39 = vld [vmem:[%s5768_s1 + $0x500] ss:$8 sps:$4 sm:$0xff]   ;;  %v4261_v40 = vld [vmem:[%s5768_s1 + $0x214] ss:$8 sps:$4 sm:$0xff]  }
  0x64   : > { %2473 = vmatmul.mubr.bf16.gmra.mrb[12].mxu0 %v4165_v42  ;;  %2197 = vmatpush1.bf16.msra.mxu1 %v4162_v41  ;;  %v5050_v41 = vld [vmem:[%s5768_s1 + $0x514] ss:$8 sps:$4 sm:$0xff]  }
  0x65   : > { %2536 = vmatpush1.bf16.msra.mxu0 %v4166_v43  ;;  %2198 = vmatprep.subr.bf16.mxu1 %v4171_v44  ;;  %v4265_v42 = vld [vmem:[%s4740_s6 + $0x74] ss:$52 sps:$4 sm:$0xff]   ;;  %v4267_v43 = vld [vmem:[%s4740_s6 + $0x8c] ss:$52 sps:$4 sm:$0xff]   ;;  %v4259_v44 = vld [vmem:[%s5768_s1 + $0x210] ss:$8 sps:$4 sm:$0xff]  }
  0x66   : > { %2537 = vmatprep.subr.bf16.mxu0 %v4174_v45  ;;  %2143 = vmatprep.mubr.bf16.mxu1 %v4175_v46  ;;  %v5061_v45 = vld [vmem:[%s5768_s1 + $0x510] ss:$8 sps:$4 sm:$0xff]   ;;  %v4272_v46 = vld [vmem:[%s5768_s1 + $0x224] ss:$8 sps:$4 sm:$0xff]  }
  0x67   : > { %2482 = vmatprep.mubr.bf16.mxu0 %v4177_v47  ;;  %v5070_v47 = vld [vmem:[%s5768_s1 + $0x524] ss:$8 sps:$4 sm:$0xff]  }
  0x68   : > { %2199 = vmatpush1.bf16.msra.mxu1 %v4169_v48  ;;  %v4269_v48 = vld [vmem:[%s4740_s6 + $0x70] ss:$52 sps:$4 sm:$0xff]  }
  0x69   : > { %2538 = vmatpush1.bf16.msra.mxu0 %v4172_v49  ;;  %2200 = vmatprep.subr.bf16.mxu1 %v4182_v50  ;;  %v4270_v49 = vld [vmem:[%s5768_s1 + $0x220] ss:$8 sps:$4 sm:$0xff]  }
  0x6a   : > { %2539 = vmatprep.subr.bf16.mxu0 %v4186_v51  ;;  %v4273_v50 = vld [vmem:[%s4740_s6 + $0x88] ss:$52 sps:$4 sm:$0xff]  }
  0x6b   : > { %2144 = vmatmul.mubr.bf16.gmra.mrb[16].mxu1 %v4179_v52  ;;  %v5080_v51 = vld [vmem:[%s5768_s1 + $0x520] ss:$8 sps:$4 sm:$0xff]   ;;  %v4279_v52 = vld [vmem:[%s5768_s1 + $0x234] ss:$8 sps:$4 sm:$0xff]  }
  0x6c   : > { %2483 = vmatmul.mubr.bf16.gmra.mrb[16].mxu0 %v4183_v54  ;;  %2201 = vmatpush1.bf16.msra.mxu1 %v4180_v53  ;;  %v5090_v53 = vld [vmem:[%s5768_s1 + $0x534] ss:$8 sps:$4 sm:$0xff]  }
  0x6d   : > { %2540 = vmatpush1.bf16.msra.mxu0 %v4184_v55  ;;  %2202 = vmatprep.subr.bf16.mxu1 %v4189_v56  ;;  %v4283_v54 = vld [vmem:[%s4740_s6 + $0xdc] ss:$52 sps:$4 sm:$0xff]   ;;  %v4285_v55 = vld [vmem:[%s4740_s6 + $0xf4] ss:$52 sps:$4 sm:$0xff]  }
  0x6e   : > { %2541 = vmatprep.subr.bf16.mxu0 %v4192_v57  ;;  %2153 = vmatprep.mubr.bf16.mxu1 %v4193_v58  ;;  %v4277_v56 = vld [vmem:[%s5768_s1 + $0x230] ss:$8 sps:$4 sm:$0xff]   ;;  %v4290_v58 = vld [vmem:[%s5768_s1 + $0x244] ss:$8 sps:$4 sm:$0xff]  }
  0x6f   : > { %2492 = vmatprep.mubr.bf16.mxu0 %v4195_v59  ;;  %v5101_v57 = vld [vmem:[%s5768_s1 + $0x530] ss:$8 sps:$4 sm:$0xff]   ;;  %v5110_v59 = vld [vmem:[%s5768_s1 + $0x544] ss:$8 sps:$4 sm:$0xff]  }
  0x70   : > { %2203 = vmatpush1.bf16.msra.mxu1 %v4187_v60  ;;  %v4287_v60 = vld [vmem:[%s4740_s6 + $0xd8] ss:$52 sps:$4 sm:$0xff]  }
  0x71   : > { %2542 = vmatpush1.bf16.msra.mxu0 %v4190_v61  ;;  %2204 = vmatprep.subr.bf16.mxu1 %v4200_v62  ;;  %v4288_v61 = vld [vmem:[%s5768_s1 + $0x240] ss:$8 sps:$4 sm:$0xff]   ;;  %v4291_v62 = vld [vmem:[%s4740_s6 + $0xf0] ss:$52 sps:$4 sm:$0xff]  }
  0x72   : > { %2543 = vmatprep.subr.bf16.mxu0 %v4204_v63  ;;  %v5120_v63 = vld [vmem:[%s5768_s1 + $0x540] ss:$8 sps:$4 sm:$0xff]  }
  0x73   : > { %2154 = vmatmul.mubr.bf16.gmra.mrb[20].mxu1 %v4197_v0  ;;  %v4297_v0 = vld [vmem:[%s5768_s1 + $0x254] ss:$8 sps:$4 sm:$0xff]  }
  0x74   : > { %2493 = vmatmul.mubr.bf16.gmra.mrb[20].mxu0 %v4201_v2  ;;  %2205 = vmatpush1.bf16.msra.mxu1 %v4198_v1  ;;  %v5130_v1 = vld [vmem:[%s5768_s1 + $0x554] ss:$8 sps:$4 sm:$0xff]   ;;  %v4301_v2 = vld [vmem:[%s4740_s6 + $0x144] ss:$52 sps:$4 sm:$0xff]  }
  0x75   : > { %2544 = vmatpush1.bf16.msra.mxu0 %v4202_v3  ;;  %2206 = vmatprep.subr.bf16.mxu1 %v4207_v4  ;;  %v4303_v3 = vld [vmem:[%s4740_s6 + $0x15c] ss:$52 sps:$4 sm:$0xff]  }
  0x76   : > { %2545 = vmatprep.subr.bf16.mxu0 %v4210_v5  ;;  %2163 = vmatprep.mubr.bf16.mxu1 %v4211_v6  ;;  %v4295_v4 = vld [vmem:[%s5768_s1 + $0x250] ss:$8 sps:$4 sm:$0xff]   ;;  %v4308_v6 = vld [vmem:[%s5768_s1 + $0x264] ss:$8 sps:$4 sm:$0xff]  }
  0x77   : > { %2502 = vmatprep.mubr.bf16.mxu0 %v4213_v7  ;;  %v5141_v5 = vld [vmem:[%s5768_s1 + $0x550] ss:$8 sps:$4 sm:$0xff]   ;;  %v5150_v7 = vld [vmem:[%s5768_s1 + $0x564] ss:$8 sps:$4 sm:$0xff]  }
  0x78   : > { %2207 = vmatpush1.bf16.msra.mxu1 %v4205_v8  ;;  %v4305_v8 = vld [vmem:[%s4740_s6 + $0x140] ss:$52 sps:$4 sm:$0xff]  }
  0x79   : > { %2546 = vmatpush1.bf16.msra.mxu0 %v4208_v9  ;;  %2208 = vmatprep.subr.bf16.mxu1 %v4218_v10  ;;  %v4306_v9 = vld [vmem:[%s5768_s1 + $0x260] ss:$8 sps:$4 sm:$0xff]   ;;  %v4309_v10 = vld [vmem:[%s4740_s6 + $0x158] ss:$52 sps:$4 sm:$0xff]  }
  0x7a   : > { %2547 = vmatprep.subr.bf16.mxu0 %v4222_v11  ;;  %v5160_v11 = vld [vmem:[%s5768_s1 + $0x560] ss:$8 sps:$4 sm:$0xff]  }
  0x7b   : > { %2164 = vmatmul.mubr.bf16.gmra.mrb[24].mxu1 %v4215_v12  ;;  %v4315_v12 = vld [vmem:[%s5768_s1 + $0x274] ss:$8 sps:$4 sm:$0xff]  }
  0x7c   : > { %2503 = vmatmul.mubr.bf16.gmra.mrb[24].mxu0 %v4219_v14  ;;  %2209 = vmatpush1.bf16.msra.mxu1 %v4216_v13  ;;  %v5170_v13 = vld [vmem:[%s5768_s1 + $0x574] ss:$8 sps:$4 sm:$0xff]   ;;  %v4319_v14 = vld [vmem:[%s4740_s6 + $0x1ac] ss:$52 sps:$4 sm:$0xff]  }
  0x7d   : > { %2548 = vmatpush1.bf16.msra.mxu0 %v4220_v15  ;;  %2210 = vmatprep.subr.bf16.mxu1 %v4225_v16  ;;  %v4321_v15 = vld [vmem:[%s4740_s6 + $0x1c4] ss:$52 sps:$4 sm:$0xff]  }
  0x7e   : > { %2549 = vmatprep.subr.bf16.mxu0 %v4228_v17  ;;  %2173 = vmatprep.mubr.bf16.mxu1 %v4229_v18  ;;  %v4313_v16 = vld [vmem:[%s5768_s1 + $0x270] ss:$8 sps:$4 sm:$0xff]   ;;  %v4326_v18 = vld [vmem:[%s5768_s1 + $0x284] ss:$8 sps:$4 sm:$0xff]  }
  0x7f   : > { %2512 = vmatprep.mubr.bf16.mxu0 %v4231_v19  ;;  %v5181_v17 = vld [vmem:[%s5768_s1 + $0x570] ss:$8 sps:$4 sm:$0xff]   ;;  %v5190_v19 = vld [vmem:[%s5768_s1 + $0x584] ss:$8 sps:$4 sm:$0xff]  }
  0x80   : > { %2211 = vmatpush1.bf16.msra.mxu1 %v4223_v20  ;;  %v4323_v20 = vld [vmem:[%s4740_s6 + $0x1a8] ss:$52 sps:$4 sm:$0xff]  }
  0x81   : > { %2550 = vmatpush1.bf16.msra.mxu0 %v4226_v21  ;;  %2212 = vmatprep.subr.bf16.mxu1 %v4236_v22  ;;  %v4324_v21 = vld [vmem:[%s5768_s1 + $0x280] ss:$8 sps:$4 sm:$0xff]  }
  0x82   : > { %2551 = vmatprep.subr.bf16.mxu0 %v4240_v23  ;;  %v4327_v22 = vld [vmem:[%s4740_s6 + $0x1c0] ss:$52 sps:$4 sm:$0xff]  }
  0x83   : > { %2174 = vmatmul.mubr.bf16.gmra.mrb[28].mxu1 %v4233_v24  ;;  %v5200_v23 = vld [vmem:[%s5768_s1 + $0x580] ss:$8 sps:$4 sm:$0xff]   ;;  %v4333_v24 = vld [vmem:[%s5768_s1 + $0x294] ss:$8 sps:$4 sm:$0xff]  }
  0x84   : > { %2513 = vmatmul.mubr.bf16.gmra.mrb[28].mxu0 %v4237_v26  ;;  %2213 = vmatpush1.bf16.msra.mxu1 %v4234_v25  ;;  %v5210_v25 = vld [vmem:[%s5768_s1 + $0x594] ss:$8 sps:$4 sm:$0xff]  }
  0x85   : > { %2552 = vmatpush1.bf16.msra.mxu0 %v4238_v27  ;;  %2214 = vmatprep.subr.bf16.mxu1 %v4243_v28  ;;  %v4337_v26 = vld [vmem:[%s4740_s6 + $0x214] ss:$52 sps:$4 sm:$0xff]   ;;  %v4339_v27 = vld [vmem:[%s4740_s6 + $0x22c] ss:$52 sps:$4 sm:$0xff]   ;;  %v4331_v28 = vld [vmem:[%s5768_s1 + $0x290] ss:$8 sps:$4 sm:$0xff]  }
  0x86   : > { %2553 = vmatprep.subr.bf16.mxu0 %v4246_v29  ;;  %2216 = vmatprep.mubr.bf16.mxu1 %v4249_v30  ;;  %v5221_v29 = vld [vmem:[%s5768_s1 + $0x590] ss:$8 sps:$4 sm:$0xff]   ;;  %v4344_v30 = vld [vmem:[%s5768_s1 + $0x2a4] ss:$8 sps:$4 sm:$0xff]  }
  0x87   : > { %2555 = vmatprep.mubr.bf16.mxu0 %v4252_v31  ;;  %v5230_v31 = vld [vmem:[%s5768_s1 + $0x5a4] ss:$8 sps:$4 sm:$0xff]  }
  0x88   : > { %2215 = vmatpush1.bf16.msra.mxu1 %v4241_v32  ;;  %v4341_v32 = vld [vmem:[%s4740_s6 + $0x210] ss:$52 sps:$4 sm:$0xff]  }
  0x89   : > { %2554 = vmatpush1.bf16.msra.mxu0 %v4244_v33  ;;  %2297 = vmatprep.subr.bf16.mxu1 %v4255_v34  ;;  %v4342_v33 = vld [vmem:[%s5768_s1 + $0x2a0] ss:$8 sps:$4 sm:$0xff]  }
  0x8a   : > { %2636 = vmatprep.subr.bf16.mxu0 %v5031_v35  ;;  %v4345_v34 = vld [vmem:[%s4740_s6 + $0x228] ss:$52 sps:$4 sm:$0xff]  }
  0x8b   : > { %2217 = vmatmul.mubr.bf16.vlgmr.msra.gmra.mrb[0].mxu1 %v4247_v36  ;;  %v5240_v36 = vld [vmem:[%s5768_s1 + $0x5a0] ss:$8 sps:$4 sm:$0xff]  }
  0x8c   : > { %2556 = vmatmul.mubr.bf16.vlgmr.msra.gmra.mrb[0].mxu0 %v4250_v37  ;;  %2298 = vmatpush1.bf16.msra.mxu1 %v4253_v38  ;;  %v4351_v37 = vld [vmem:[%s5768_s1 + $0x2b4] ss:$8 sps:$4 sm:$0xff]  }
  0x8d   : > { %2637 = vmatpush1.bf16.msra.mxu0 %v5041_v39  ;;  %2299 = vmatprep.subr.bf16.mxu1 %v4261_v40  ;;  %v5250_v38 = vld [vmem:[%s5768_s1 + $0x5b4] ss:$8 sps:$4 sm:$0xff]  }
  0x8e   : > { %2638 = vmatprep.subr.bf16.mxu0 %v5050_v41  ;;  %2226 = vmatprep.mubr.bf16.mxu1 %v4265_v42  ;;  %v4355_v40 = vld [vmem:[%s4740_s6 + $0x27c] ss:$52 sps:$4 sm:$0xff]   ;;  %v4357_v42 = vld [vmem:[%s4740_s6 + $0x294] ss:$52 sps:$4 sm:$0xff]  }
  0x8f   : > { %2565 = vmatprep.mubr.bf16.mxu0 %v4267_v43  ;;  %v4349_v43 = vld [vmem:[%s5768_s1 + $0x2b0] ss:$8 sps:$4 sm:$0xff]  }
  0x90   : > { %2300 = vmatpush1.bf16.msra.mxu1 %v4259_v44  ;;  %v5260_v44 = vld [vmem:[%s5768_s1 + $0x5b0] ss:$8 sps:$4 sm:$0xff]  }
  0x91   : > { %2639 = vmatpush1.bf16.msra.mxu0 %v5061_v45  ;;  %2301 = vmatprep.subr.bf16.mxu1 %v4272_v46  ;;  %v4362_v46 = vld [vmem:[%s5768_s1 + $0x2c4] ss:$8 sps:$4 sm:$0xff]  }
  0x92   : > { %2640 = vmatprep.subr.bf16.mxu0 %v5070_v47 }
  0x93   : > { %2227 = vmatmul.mubr.bf16.gmra.mrb[4].mxu1 %v4269_v48  ;;  %v5270_v48 = vld [vmem:[%s5768_s1 + $0x5c4] ss:$8 sps:$4 sm:$0xff]  }
  0x94   : > { %2566 = vmatmul.mubr.bf16.gmra.mrb[4].mxu0 %v4273_v50  ;;  %2302 = vmatpush1.bf16.msra.mxu1 %v4270_v49  ;;  %v4359_v49 = vld [vmem:[%s4740_s6 + $0x278] ss:$52 sps:$4 sm:$0xff]   ;;  %v4360_v50 = vld [vmem:[%s5768_s1 + $0x2c0] ss:$8 sps:$4 sm:$0xff]  }
  0x95   : > { %2641 = vmatpush1.bf16.msra.mxu0 %v5080_v51  ;;  %2303 = vmatprep.subr.bf16.mxu1 %v4279_v52  ;;  %v4363_v52 = vld [vmem:[%s4740_s6 + $0x290] ss:$52 sps:$4 sm:$0xff]  }
  0x96   : > { %2642 = vmatprep.subr.bf16.mxu0 %v5090_v53  ;;  %2236 = vmatprep.mubr.bf16.mxu1 %v4283_v54  ;;  %v5281_v54 = vld [vmem:[%s5768_s1 + $0x5c0] ss:$8 sps:$4 sm:$0xff]  }
  0x97   : > { %2575 = vmatprep.mubr.bf16.mxu0 %v4285_v55  ;;  %v4369_v55 = vld [vmem:[%s5768_s1 + $0x2d4] ss:$8 sps:$4 sm:$0xff]  }
  0x98   : > { %2304 = vmatpush1.bf16.msra.mxu1 %v4277_v56  ;;  %v5290_v56 = vld [vmem:[%s5768_s1 + $0x5d4] ss:$8 sps:$4 sm:$0xff]  }
  0x99   : > { %2643 = vmatpush1.bf16.msra.mxu0 %v5101_v57  ;;  %2305 = vmatprep.subr.bf16.mxu1 %v4290_v58  ;;  %v4373_v58 = vld [vmem:[%s4740_s6 + $0x2e4] ss:$52 sps:$4 sm:$0xff]  }
  0x9a   : > { %2644 = vmatprep.subr.bf16.mxu0 %v5110_v59 }
  0x9b   : > { %2237 = vmatmul.mubr.bf16.gmra.mrb[8].mxu1 %v4287_v60  ;;  %v4375_v60 = vld [vmem:[%s4740_s6 + $0x2fc] ss:$52 sps:$4 sm:$0xff]  }
  0x9c   : > { %2576 = vmatmul.mubr.bf16.gmra.mrb[8].mxu0 %v4291_v62  ;;  %2306 = vmatpush1.bf16.msra.mxu1 %v4288_v61  ;;  %v4367_v61 = vld [vmem:[%s5768_s1 + $0x2d0] ss:$8 sps:$4 sm:$0xff]  }
  0x9d   : > { %2645 = vmatpush1.bf16.msra.mxu0 %v5120_v63  ;;  %2307 = vmatprep.subr.bf16.mxu1 %v4297_v0  ;;  %v5301_v62 = vld [vmem:[%s5768_s1 + $0x5d0] ss:$8 sps:$4 sm:$0xff]   ;;  %v4380_v0 = vld [vmem:[%s5768_s1 + $0x2e4] ss:$8 sps:$4 sm:$0xff]  }
  0x9e   : > { %2646 = vmatprep.subr.bf16.mxu0 %v5130_v1  ;;  %2246 = vmatprep.mubr.bf16.mxu1 %v4301_v2  ;;  %v5310_v2 = vld [vmem:[%s5768_s1 + $0x5e4] ss:$8 sps:$4 sm:$0xff]  }
  0x9f   : > { %2585 = vmatprep.mubr.bf16.mxu0 %v4303_v3  ;;  %v4377_v3 = vld [vmem:[%s4740_s6 + $0x2e0] ss:$52 sps:$4 sm:$0xff]  }
  0xa0   : > { %2308 = vmatpush1.bf16.msra.mxu1 %v4295_v4  ;;  %v4378_v4 = vld [vmem:[%s5768_s1 + $0x2e0] ss:$8 sps:$4 sm:$0xff]  }
  0xa1   : > { %2647 = vmatpush1.bf16.msra.mxu0 %v5141_v5  ;;  %2309 = vmatprep.subr.bf16.mxu1 %v4308_v6  ;;  %v4381_v6 = vld [vmem:[%s4740_s6 + $0x2f8] ss:$52 sps:$4 sm:$0xff]  }
  0xa2   : > { %2648 = vmatprep.subr.bf16.mxu0 %v5150_v7 }
  0xa3   : > { %2247 = vmatmul.mubr.bf16.gmra.mrb[12].mxu1 %v4305_v8  ;;  %v5321_v8 = vld [vmem:[%s5768_s1 + $0x5e0] ss:$8 sps:$4 sm:$0xff]  }
  0xa4   : > { %2586 = vmatmul.mubr.bf16.gmra.mrb[12].mxu0 %v4309_v10  ;;  %2310 = vmatpush1.bf16.msra.mxu1 %v4306_v9  ;;  %v4387_v9 = vld [vmem:[%s5768_s1 + $0x2f4] ss:$8 sps:$4 sm:$0xff]  }
  0xa5   : > { %2649 = vmatpush1.bf16.msra.mxu0 %v5160_v11  ;;  %2311 = vmatprep.subr.bf16.mxu1 %v4315_v12  ;;  %v5330_v10 = vld [vmem:[%s5768_s1 + $0x5f4] ss:$8 sps:$4 sm:$0xff]  }
  0xa6   : > { %2650 = vmatprep.subr.bf16.mxu0 %v5170_v13  ;;  %2256 = vmatprep.mubr.bf16.mxu1 %v4319_v14  ;;  %v4393_v12 = vld [vmem:[%s4740_s6 + $0x14] ss:$52 sps:$4 sm:$0xff]   ;;  %v4396_v14 = vld [vmem:[%s4740_s6 + $0x2c] ss:$52 sps:$4 sm:$0xff]  }
  0xa7   : > { %2595 = vmatprep.mubr.bf16.mxu0 %v4321_v15  ;;  %v4385_v15 = vld [vmem:[%s5768_s1 + $0x2f0] ss:$8 sps:$4 sm:$0xff]  }
  0xa8   : > { %2312 = vmatpush1.bf16.msra.mxu1 %v4313_v16  ;;  %v5341_v16 = vld [vmem:[%s5768_s1 + $0x5f0] ss:$8 sps:$4 sm:$0xff]  }
  0xa9   : > { %2651 = vmatpush1.bf16.msra.mxu0 %v5181_v17  ;;  %2313 = vmatprep.subr.bf16.mxu1 %v4326_v18  ;;  %v4399_v18 = vld [vmem:[%s5768_s1 + $0x604] ss:$8 sps:$4 sm:$0xff]  }
  0xaa   : > { %2652 = vmatprep.subr.bf16.mxu0 %v5190_v19 }
  0xab   : > { %2257 = vmatmul.mubr.bf16.gmra.mrb[16].mxu1 %v4323_v20  ;;  %v4391_v20 = vld [vmem:[%s4740_s6 + $0x10] ss:$52 sps:$4 sm:$0xff]  }
  0xac   : > { %2596 = vmatmul.mubr.bf16.gmra.mrb[16].mxu0 %v4327_v22  ;;  %2314 = vmatpush1.bf16.msra.mxu1 %v4324_v21  ;;  %v4394_v21 = vld [vmem:[%s4740_s6 + $0x28] ss:$52 sps:$4 sm:$0xff]  }
  0xad   : > { %2653 = vmatpush1.bf16.msra.mxu0 %v5200_v23  ;;  %2315 = vmatprep.subr.bf16.mxu1 %v4333_v24  ;;  %v4397_v22 = vld [vmem:[%s5768_s1 + $0x600] ss:$8 sps:$4 sm:$0xff]   ;;  %v4400_v24 = vld [vmem:[%s4740_s6 + $0x7c] ss:$52 sps:$4 sm:$0xff]  }
  0xae   : > { %2654 = vmatprep.subr.bf16.mxu0 %v5210_v25  ;;  %2266 = vmatprep.mubr.bf16.mxu1 %v4337_v26  ;;  %v4402_v26 = vld [vmem:[%s4740_s6 + $0x94] ss:$52 sps:$4 sm:$0xff]  }
  0xaf   : > { %2605 = vmatprep.mubr.bf16.mxu0 %v4339_v27  ;;  %v4408_v27 = vld [vmem:[%s5768_s1 + $0x614] ss:$8 sps:$4 sm:$0xff]  }
  0xb0   : > { %2316 = vmatpush1.bf16.msra.mxu1 %v4331_v28  ;;  %v4406_v28 = vld [vmem:[%s5768_s1 + $0x610] ss:$8 sps:$4 sm:$0xff]  }
  0xb1   : > { %2655 = vmatpush1.bf16.msra.mxu0 %v5221_v29  ;;  %2317 = vmatprep.subr.bf16.mxu1 %v4344_v30  ;;  %v4404_v30 = vld [vmem:[%s4740_s6 + $0x78] ss:$52 sps:$4 sm:$0xff]  }
  0xb2   : > { %2656 = vmatprep.subr.bf16.mxu0 %v5230_v31 }
  0xb3   : > { %2267 = vmatmul.mubr.bf16.gmra.mrb[20].mxu1 %v4341_v32  ;;  %v4405_v32 = vld [vmem:[%s4740_s6 + $0x90] ss:$52 sps:$4 sm:$0xff]  }
  0xb4   : > { %2606 = vmatmul.mubr.bf16.gmra.mrb[20].mxu0 %v4345_v34  ;;  %2318 = vmatpush1.bf16.msra.mxu1 %v4342_v33  ;;  %v4411_v33 = vld [vmem:[%s4740_s6 + $0xfc] ss:$52 sps:$4 sm:$0xff]   ;;  %v4413_v34 = vld [vmem:[%s4740_s6 + $0xe0] ss:$52 sps:$4 sm:$0xff]  }
  0xb5   : > { %2657 = vmatpush1.bf16.msra.mxu0 %v5240_v36  ;;  %2319 = vmatprep.subr.bf16.mxu1 %v4351_v37  ;;  %v4414_v37 = vld [vmem:[%s4740_s6 + $0xf8] ss:$52 sps:$4 sm:$0xff]  }
  0xb6   : > { %2658 = vmatprep.subr.bf16.mxu0 %v5250_v38  ;;  %2276 = vmatprep.mubr.bf16.mxu1 %v4355_v40  ;;  %v4418_v40 = vld [vmem:[%s4740_s6 + $0x14c] ss:$52 sps:$4 sm:$0xff]  }
  0xb7   : > { %2615 = vmatprep.mubr.bf16.mxu0 %v4357_v42  ;;  %v4423_v42 = vld [vmem:[%s4740_s6 + $0x160] ss:$52 sps:$4 sm:$0xff]  }
  0xb8   : > { %2320 = vmatpush1.bf16.msra.mxu1 %v4349_v43  ;;  %v4447_v43 = vld [vmem:[%s4740_s6 + $0x234] ss:$52 sps:$4 sm:$0xff]  }
  0xb9   : > { %2659 = vmatpush1.bf16.msra.mxu0 %v5260_v44  ;;  %2321 = vmatprep.subr.bf16.mxu1 %v4362_v46  ;;  %v4450_v46 = vld [vmem:[%s4740_s6 + $0x238] ss:$52 sps:$4 sm:$0xff]  }
  0xba   : > { %2660 = vmatprep.subr.bf16.mxu0 %v5270_v48 }
  0xbb   : > { %2277 = vmatmul.mubr.bf16.gmra.mrb[24].mxu1 %v4359_v49  ;;  %v4453_v49 = vld [vmem:[%s4740_s6 + $0x298] ss:$52 sps:$4 sm:$0xff]  }
  0xbc   : > { %2616 = vmatmul.mubr.bf16.gmra.mrb[24].mxu0 %v4363_v52  ;;  %2322 = vmatpush1.bf16.msra.mxu1 %v4360_v50  ;;  %v4454_v50 = vld [vmem:[%s4740_s6 + $0x2a0] ss:$52 sps:$4 sm:$0xff]   ;;  %v4455_v52 = vld [vmem:[%s4740_s6 + $0x304] ss:$52 sps:$4 sm:$0xff]  }
  0xbd   : > { %2661 = vmatpush1.bf16.msra.mxu0 %v5281_v54  ;;  %2323 = vmatprep.subr.bf16.mxu1 %v4369_v55  ;;  %v4458_v55 = vld [vmem:[%s4740_s6 + $0x308] ss:$52 sps:$4 sm:$0xff]  }
  0xbe   : > { %2662 = vmatprep.subr.bf16.mxu0 %v5290_v56  ;;  %2286 = vmatprep.mubr.bf16.mxu1 %v4373_v58 }
  0xbf   : > { %2625 = vmatprep.mubr.bf16.mxu0 %v4375_v60 }
  0xc0   : > { %2324 = vmatpush1.bf16.msra.mxu1 %v4367_v61 }
  0xc1   : > { %2663 = vmatpush1.bf16.msra.mxu0 %v5301_v62  ;;  %2325 = vmatprep.subr.bf16.mxu1 %v4380_v0 }
  0xc2   : > { %2664 = vmatprep.subr.bf16.mxu0 %v5310_v2 }
  0xc3   : > { %2287 = vmatmul.mubr.bf16.gmra.mrb[28].mxu1 %v4377_v3 }
  0xc4   : > { %2626 = vmatmul.mubr.bf16.gmra.mrb[28].mxu0 %v4381_v6  ;;  %2326 = vmatpush1.bf16.msra.mxu1 %v4378_v4 }
  0xc5   : > { %2665 = vmatpush1.bf16.msra.mxu0 %v5321_v8  ;;  %2327 = vmatprep.subr.bf16.mxu1 %v4387_v9 }
  0xc6   : > { %2666 = vmatprep.subr.bf16.mxu0 %v5330_v10  ;;  %2329 = vmatprep.mubr.bf16.mxu1 %v4393_v12 }
  0xc7   : > { %2668 = vmatprep.mubr.bf16.mxu0 %v4396_v14 }
  0xc8   : > { %2328 = vmatpush1.bf16.msra.mxu1 %v4385_v15 }
  0xc9   : > { %2667 = vmatpush1.bf16.msra.mxu0 %v5341_v16  ;;  %3661 = vmatprep.subr.bf16.mxu1 %v5031_v35  ;;  %v4417_v35 = vld [vmem:[%s5768_s1 + $0x624] ss:$8 sps:$4 sm:$0xff]  }
  0xca   : > { %2749 = vmatprep.subr.bf16.mxu0 %v4399_v18 }
  0xcb   : > { %2330 = vmatmul.mubr.bf16.vlgmr.msra.gmra.mrb[0].mxu1 %v4391_v20 }
  0xcc   : > { %2669 = vmatmul.mubr.bf16.vlgmr.msra.gmra.mrb[0].mxu0 %v4394_v21  ;;  %3677 = vmatpush1.bf16.msra.mxu1 %v5041_v39  ;;  %v4409_v39 = vld [vmem:[%s4740_s6 + $0xe4] ss:$52 sps:$4 sm:$0xff]  }
  0xcd   : > { %2750 = vmatpush1.bf16.msra.mxu0 %v4397_v22  ;;  %3662 = vmatprep.subr.bf16.mxu1 %v5050_v41  ;;  %v4415_v41 = vld [vmem:[%s5768_s1 + $0x620] ss:$8 sps:$4 sm:$0xff]  }
  0xce   : > { %2339 = vmatprep.mubr.bf16.mxu1 %v4400_v24  ;;  %2678 = vmatprep.mubr.bf16.mxu0 %v4402_v26 }
  0xcf   : > { %2751 = vmatprep.subr.bf16.mxu0 %v4408_v27 }
  0xd0   : > { %3678 = vmatpush1.bf16.msra.mxu1 %v5061_v45  ;;  %v4426_v45 = vld [vmem:[%s5768_s1 + $0x634] ss:$8 sps:$4 sm:$0xff]  }
  0xd1   : > { %2752 = vmatpush1.bf16.msra.mxu0 %v4406_v28  ;;  %3663 = vmatprep.subr.bf16.mxu1 %v5070_v47  ;;  %v4424_v47 = vld [vmem:[%s5768_s1 + $0x630] ss:$8 sps:$4 sm:$0xff]   ;;  %v516_v28 = vlaneseq }
  0xd2   : > { %2753 = vmatprep.subr.bf16.mxu0 %v4417_v35 }
  0xd3   : > { %2340 = vmatmul.mubr.bf16.gmra.mrb[4].mxu1 %v4404_v30 }
  0xd4   : > { %2679 = vmatmul.mubr.bf16.gmra.mrb[4].mxu0 %v4405_v32  ;;  %3679 = vmatpush1.bf16.msra.mxu1 %v5080_v51  ;;  %v4420_v51 = vld [vmem:[%s4740_s6 + $0x164] ss:$52 sps:$4 sm:$0xff]  }
  0xd5   : > { %2349 = vmatprep.mubr.bf16.mxu1 %v4409_v39  ;;  %3664 = vmatprep.subr.bf16.mxu1 %v5090_v53  ;;  %v4422_v53 = vld [vmem:[%s4740_s6 + $0x148] ss:$52 sps:$4 sm:$0xff]   ;;  %v517_v39 = vshrl.u32 %v516_v28, 7 }
  0xd6   : > { %2688 = vmatprep.mubr.bf16.mxu0 %v4411_v33  ;;  %2754 = vmatpush1.bf16.msra.mxu0 %v4415_v41 }
  0xd7   : > { %2755 = vmatprep.subr.bf16.mxu0 %v4426_v45  ;;  %v518_v41 = vsub.s32 0, %v517_v39  ;;  %v514_v45 = vld [vmem:[%s5769_s2] sm:$0x3] }
  0xd8   : > { %3680 = vmatpush1.bf16.msra.mxu1 %v5101_v57  ;;  %v4427_v57 = vld [vmem:[%s4740_s6 + $0x1b4] ss:$52 sps:$4 sm:$0xff]  }
  0xd9   : > { %3665 = vmatprep.subr.bf16.mxu1 %v5110_v59  ;;  %v4547_v59 = vmov 0  }
  0xda   : > { %2756 = vmatpush1.bf16.msra.mxu0 %v4424_v47  ;;  %v522_v47 = vsub.s32 1, %v517_v39 }
  0xdb   : > { %2350 = vmatmul.mubr.bf16.gmra.mrb[8].mxu1 %v4413_v34 }
  0xdc   : > { %2689 = vmatmul.mubr.bf16.gmra.mrb[8].mxu0 %v4414_v37  ;;  %3681 = vmatpush1.bf16.msra.mxu1 %v5120_v63  ;;  %v4429_v63 = vld [vmem:[%s4740_s6 + $0x1b0] ss:$52 sps:$4 sm:$0xff]  }
  0xdd   : > { %2359 = vmatprep.mubr.bf16.mxu1 %v4418_v40  ;;  %3666 = vmatprep.subr.bf16.mxu1 %v5130_v1  ;;  %v4430_v1 = vld [vmem:[%s4740_s6 + $0x30] ss:$52 sps:$4 sm:$0xff]  }
  0xde   : > { %2698 = vmatprep.mubr.bf16.mxu0 %v4420_v51  ;;  %v5502_v51 = vrot.slane %v514_v45, %v518_v41 }
  0xe0   : > { %3682 = vmatpush1.bf16.msra.mxu1 %v5141_v5  ;;  %v4431_v5 = vld [vmem:[%s4740_s6 + $0x21c] ss:$52 sps:$4 sm:$0xff]  }
  0xe1   : > { %3667 = vmatprep.subr.bf16.mxu1 %v5150_v7  ;;  %v4433_v7 = vld [vmem:[%s4740_s6 + $0x218] ss:$52 sps:$4 sm:$0xff]  }
  0xe3   : > { %2360 = vmatmul.mubr.bf16.gmra.mrb[12].mxu1 %v4422_v53 }
  0xe4   : > { %2699 = vmatmul.mubr.bf16.gmra.mrb[12].mxu0 %v4423_v42  ;;  %3683 = vmatpush1.bf16.msra.mxu1 %v5160_v11  ;;  %v4434_v11 = vld [vmem:[%s4740_s6 + $0x98] ss:$52 sps:$4 sm:$0xff]   ;;  %v5506_v42 = vrot.slane %v514_v45, %v522_v47 }
  0xe5   : > { %2369 = vmatprep.mubr.bf16.mxu1 %v4427_v57  ;;  %3668 = vmatprep.subr.bf16.mxu1 %v5170_v13  ;;  %v4435_v13 = vld [vmem:[%s4740_s6 + $0x284] ss:$52 sps:$4 sm:$0xff]  }
  0xe6   : > { %2781 = vmatprep.mubr.bf16.mxu0 %v4547_v59 }
  0xe8   : > { %3684 = vmatpush1.bf16.msra.mxu1 %v5181_v17  ;;  %v4437_v17 = vld [vmem:[%s4740_s6 + $0x280] ss:$52 sps:$4 sm:$0xff]  }
  0xe9   : > { %3669 = vmatprep.subr.bf16.mxu1 %v5190_v19  ;;  %v4438_v19 = vld [vmem:[%s4740_s6 + $0x100] ss:$52 sps:$4 sm:$0xff]  }
  0xeb   : > { %2370 = vmatmul.mubr.bf16.gmra.mrb[16].mxu1 %v4429_v63 }
  0xec   : > { %3597 = vmatmul.mubr.msk.bf16.vlgmr.msra.gmra.mrb[0].mxu0 %vm2046_vm0, %v4430_v1  ;;  %3685 = vmatpush1.bf16.msra.mxu1 %v5200_v23  ;;  %v4439_v23 = vld [vmem:[%s4740_s6 + $0x2ec] ss:$52 sps:$4 sm:$0xff]  }
  0xed   : > { %2379 = vmatprep.mubr.bf16.mxu1 %v4431_v5  ;;  %3670 = vmatprep.subr.bf16.mxu1 %v5210_v25  ;;  %v4441_v25 = vld [vmem:[%s4740_s6 + $0x2e8] ss:$52 sps:$4 sm:$0xff]  }
  0xee   : > { %2791 = vmatprep.mubr.bf16.mxu0 %v4547_v59 }
  0xf0   : > { %3686 = vmatpush1.bf16.msra.mxu1 %v5221_v29  ;;  %v4442_v29 = vld [vmem:[%s4740_s6 + $0x168] ss:$52 sps:$4 sm:$0xff]  }
  0xf1   : > { %3671 = vmatprep.subr.bf16.mxu1 %v5230_v31  ;;  %v4445_v31 = vld [vmem:[%s4740_s6 + $0x1cc] ss:$52 sps:$4 sm:$0xff]  }
  0xf3   : > { %2380 = vmatmul.mubr.bf16.gmra.mrb[20].mxu1 %v4433_v7 }
  0xf4   : > { %3598 = vmatmul.mubr.msk.bf16.gmra.mrb[4].mxu0 %vm2046_vm0, %v4434_v11  ;;  %3687 = vmatpush1.bf16.msra.mxu1 %v5240_v36  ;;  %v4443_v36 = vld [vmem:[%s4740_s6 + $0x1c8] ss:$52 sps:$4 sm:$0xff]  }
  0xf5   : > { %2389 = vmatprep.mubr.bf16.mxu1 %v4435_v13  ;;  %3672 = vmatprep.subr.bf16.mxu1 %v5250_v38  ;;  %v4446_v38 = vld [vmem:[%s4740_s6 + $0x1d0] ss:$52 sps:$4 sm:$0xff]  }
  0xf6   : > { %2801 = vmatprep.mubr.bf16.mxu0 %v4547_v59 }
  0xf8   : > { %3688 = vmatpush1.bf16.msra.mxu1 %v5260_v44  ;;  %v4449_v44 = vld [vmem:[%s4740_s6 + $0x230] ss:$52 sps:$4 sm:$0xff]  }
  0xf9   : > { %3673 = vmatprep.subr.bf16.mxu1 %v5270_v48  ;;  %v4451_v48 = vld [vmem:[%s4740_s6 + $0x29c] ss:$52 sps:$4 sm:$0xff]  }
  0xfb   : > { %2390 = vmatmul.mubr.bf16.gmra.mrb[24].mxu1 %v4437_v17 }
  0xfc   : > { %3599 = vmatmul.mubr.msk.bf16.gmra.mrb[8].mxu0 %vm2046_vm0, %v4438_v19  ;;  %3689 = vmatpush1.bf16.msra.mxu1 %v5281_v54  ;;  %v4457_v54 = vld [vmem:[%s4740_s6 + $0x300] ss:$52 sps:$4 sm:$0xff]  }
  0xfd   : > { %2399 = vmatprep.mubr.bf16.mxu1 %v4439_v23  ;;  %3674 = vmatprep.subr.bf16.mxu1 %v5290_v56 }
  0xfe   : > { %2811 = vmatprep.mubr.bf16.mxu0 %v4547_v59 }
 0x100   : > { %3690 = vmatpush1.bf16.msra.mxu1 %v5301_v62 }
 0x101   : > { %3675 = vmatprep.subr.bf16.mxu1 %v5310_v2 }
 0x103   : > { %2400 = vmatmul.mubr.bf16.gmra.mrb[28].mxu1 %v4441_v25 }
 0x104   : > { %3600 = vmatmul.mubr.msk.bf16.gmra.mrb[12].mxu0 %vm2046_vm0, %v4442_v29  ;;  %3691 = vmatpush1.bf16.msra.mxu1 %v5321_v8 }
 0x105   : > { %2708 = vmatprep.mubr.bf16.mxu1 %v4445_v31  ;;  %3676 = vmatprep.subr.bf16.mxu1 %v5330_v10 }
 0x106   : > { %2821 = vmatprep.mubr.bf16.mxu0 %v4547_v59 }
 0x108   : > { %3692 = vmatpush1.bf16.msra.mxu1 %v5341_v16 }
 0x10b   : > { %2709 = vmatmul.mubr.bf16.vlgmr.msra.gmra.mrb[32].mxu1 %v4443_v36 }
 0x10c   : > { %3601 = vmatmul.mubr.msk.bf16.gmra.mrb[32].mxu0 %vm2046_vm0, %v4446_v38  ;;  %2718 = vmatprep.mubr.bf16.mxu1 %v4447_v43 }
 0x10d   : > { %2831 = vmatprep.mubr.bf16.mxu0 %v4547_v59 }
 0x113   : > { %2719 = vmatmul.mubr.bf16.gmra.mrb[36].mxu1 %v4449_v44 }
 0x114   : > { %3602 = vmatmul.mubr.msk.bf16.gmra.mrb[36].mxu0 %vm2046_vm0, %v4450_v46  ;;  %2728 = vmatprep.mubr.bf16.mxu1 %v4451_v48 }
 0x115   : > { %2841 = vmatprep.mubr.bf16.mxu0 %v4547_v59 }
 0x11b   : > { %2729 = vmatmul.mubr.bf16.gmra.mrb[40].mxu1 %v4453_v49 }
 0x11c   : > { %3603 = vmatmul.mubr.msk.bf16.gmra.mrb[40].mxu0 %vm2046_vm0, %v4454_v50  ;;  %2738 = vmatprep.mubr.bf16.mxu1 %v4455_v52 }
 0x11d   : > { %2851 = vmatprep.mubr.bf16.mxu0 %v4547_v59 }
 0x123   : > { %2739 = vmatmul.mubr.bf16.gmra.mrb[44].mxu1 %v4457_v54 }
 0x124   : > { %3604 = vmatmul.mubr.msk.bf16.gmra.mrb[44].mxu0 %vm2046_vm0, %v4458_v55 }
 0x17f   : > { %v2597_v56 = vpop.f32.mrb[16].mxu0 }
 0x180   : > { %v5455_v58 = vpop.f32.mrb[17].mxu0 }
 0x181   : > { %v5457_v60 = vpop.f32.mrb[18].mxu0 }
 0x182   : > { %v5459_v61 = vpop.f32.mrb[19].mxu0 }
 0x187   : > { %v5461_v62 = vpop.f32.mrb[20].mxu0 }
 0x188   : > { %v5463_v0 = vpop.f32.mrb[21].mxu0 }
 0x189   : > { %v5465_v2 = vpop.f32.mrb[22].mxu0 }
 0x18a   : > { %v5467_v3 = vpop.f32.mrb[23].mxu0 }
 0x18f   : > { %v5469_v4 = vpop.f32.mrb[24].mxu0 }
 0x190   : > { %v5471_v6 = vpop.f32.mrb[25].mxu0 }
 0x191   : > { %v5473_v8 = vpop.f32.mrb[26].mxu0 }
 0x192   : > { %v5475_v9 = vpop.f32.mrb[27].mxu0 }
 0x197   : > { %v5477_v10 = vpop.f32.mrb[28].mxu0 }
 0x198   : > { %v5479_v12 = vpop.f32.mrb[29].mxu0 }
 0x199   : > { %v5481_v14 = vpop.f32.mrb[30].mxu0 }
 0x19a   : > { %v5483_v15 = vpop.f32.mrb[31].mxu0 }
 0x19e   : > { %v2331_v16 = vpop.f32.mrb[0].mxu1 }
 0x19f   : > { %v2333_v18 = vpop.f32.mrb[1].mxu1  ;;  %v3693_v57 = vadd.f32 %v2331_v16, %v5502_v51 }
 0x1a0   : > { %v2335_v20 = vpop.f32.mrb[2].mxu1  ;;  %v3695_v59 = vadd.f32 %v2333_v18, %v5506_v42 }
 0x1a1   : > { %v2337_v21 = vpop.f32.mrb[3].mxu1  ;;  %v3697_v5 = vadd.f32 %v2335_v20, %v5502_v51 }
 0x1a2   : > { %v3699_v19 = vadd.f32 %v2337_v21, %v5506_v42 }
 0x1a6   : > { %v2341_v22 = vpop.f32.mrb[4].mxu1 }
 0x1a7   : > { %v2343_v24 = vpop.f32.mrb[5].mxu1  ;;  %v3701_v28 = vadd.f32 %v2341_v22, %v5502_v51 }
 0x1a8   : > { %v2345_v26 = vpop.f32.mrb[6].mxu1  ;;  %v3703_v39 = vadd.f32 %v2343_v24, %v5506_v42 }
 0x1a9   : > { %v2347_v27 = vpop.f32.mrb[7].mxu1  ;;  %v3705_v45 = vadd.f32 %v2345_v26, %v5502_v51 }
 0x1aa   : > { %v3707_v22 = vadd.f32 %v2347_v27, %v5506_v42 }
 0x1ae   : > { %v5485_v35 = vpop.f32.mrb[8].mxu1 }
 0x1af   : > { %v5487_v30 = vpop.f32.mrb[9].mxu1 }
 0x1b0   : > { %v5489_v32 = vpop.f32.mrb[10].mxu1 }
 0x1b1   : > { %v5491_v33 = vpop.f32.mrb[11].mxu1 }
 0x1b6   : > { %v5496_v34 = vpop.f32.mrb[12].mxu1 }
 0x1b7   : > { %v5498_v37 = vpop.f32.mrb[13].mxu1 }
 0x1b8   : > { %v5500_v40 = vpop.f32.mrb[14].mxu1 }
 0x1b9   : > { %v5504_v53 = vpop.f32.mrb[15].mxu1 }
 0x1be   : > { %v2371_v63 = vpop.f32.mrb[16].mxu1 }
 0x1bf   : > { %v2783_v1 = vpop.f32.mrb[0].mxu0  ;;  %v3725_v7 = vadd.f32 %v2371_v63, %v5502_v51  ;;  %v2373_v13 = vpop.f32.mrb[17].mxu1 }
 0x1c0   : > { %v3694_v11 = vadd.f32 %v3693_v57, %v2783_v1  ;;  %v2785_v17 = vpop.f32.mrb[1].mxu0  ;;  %v3729_v23 = vadd.f32 %v2373_v13, %v5506_v42  ;;  %v2375_v29 = vpop.f32.mrb[18].mxu1 }
 0x1c1   : > { %v3696_v25 = vadd.f32 %v3695_v59, %v2785_v17  ;;  %v2787_v31 = vpop.f32.mrb[2].mxu0  ;;  %v3733_v38 = vadd.f32 %v2375_v29, %v5502_v51  ;;  %v2377_v44 = vpop.f32.mrb[19].mxu1  ;;  %v5516_v48 = vadd.f32 %v3725_v7, %v2597_v56 }
 0x1c2   : > { %v2862_v36 = vmax.f32 %v3694_v11, 0.0  ;;  %v3698_v43 = vadd.f32 %v3697_v5, %v2787_v31  ;;  %v2789_v46 = vpop.f32.mrb[3].mxu0  ;;  %v3737_v50 = vadd.f32 %v2377_v44, %v5506_v42  ;;  %v5520_v54 = vadd.f32 %v3729_v23, %v5455_v58 }
 0x1c3   : > { %v2863_v49 = vmax.f32 %v3696_v25, 0.0  ;;  %v3700_v52 = vadd.f32 %v3699_v19, %v2789_v46  ;;  %v5528_v18 = vadd.f32 %v3733_v38, %v5457_v60  ;;  %v3711_v46 = vadd.f32 %v5487_v30, %v5506_v42 }
 0x1c4   : > { %v2864_v16 = vmax.f32 %v3698_v43, 0.0  ;;  %v5531_v56 = vadd.f32 %v3737_v50, %v5459_v61 }
 0x1c5   : > { %v3640_v20 = vpack.c.bf16 %v2863_v49, %v2862_v36  ;;  %v2865_v21 = vmax.f32 %v3700_v52, 0.0 }
 0x1c6   : > { %v2381_v41 = vpop.f32.mrb[20].mxu1 }
 0x1c7   : > { %2993 = vst.msk [vmem:[%s5535_s12] sm:$0xff] %vm5523_vm3, %v3640_v20  ;;  %v3641_v58 = vpack.c.bf16 %v2865_v21, %v2864_v16  ;;  %v2793_v60 = vpop.f32.mrb[4].mxu0  ;;  %v3741_v47 = vadd.f32 %v2381_v41, %v5502_v51  ;;  %v2383_v57 = vpop.f32.mrb[21].mxu1 }
 0x1c8   : > { %v3702_v61 = vadd.f32 %v3701_v28, %v2793_v60  ;;  %v2795_v59 = vpop.f32.mrb[5].mxu0  ;;  %v3745_v24 = vadd.f32 %v2383_v57, %v5506_v42  ;;  %v2385_v1 = vpop.f32.mrb[22].mxu1 }
 0x1c9   : > { %2994 = vst.msk [vmem:[%s5535_s12 + $0x8] sm:$0xff] %vm5523_vm3, %v3641_v58  ;;  %v3704_v63 = vadd.f32 %v3703_v39, %v2795_v59  ;;  %v2797_v5 = vpop.f32.mrb[6].mxu0  ;;  %v3749_v11 = vadd.f32 %v2385_v1, %v5502_v51  ;;  %v2387_v13 = vpop.f32.mrb[23].mxu1  ;;  %v5549_v19 = vadd.f32 %v3741_v47, %v5461_v62  ;;  %v3709_v62 = vadd.f32 %v5485_v35, %v5502_v51 }
 0x1ca   : > { %v2866_v7 = vmax.f32 %v3702_v61, 0.0  ;;  %v3706_v26 = vadd.f32 %v3705_v45, %v2797_v5  ;;  %v2799_v17 = vpop.f32.mrb[7].mxu0  ;;  %v3753_v27 = vadd.f32 %v2387_v13, %v5506_v42  ;;  %v5553_v29 = vadd.f32 %v3745_v24, %v5463_v0 }
 0x1cb   : > { %v2867_v23 = vmax.f32 %v3704_v63, 0.0  ;;  %v3708_v25 = vadd.f32 %v3707_v22, %v2799_v17  ;;  %v5556_v36 = vadd.f32 %v3749_v11, %v5465_v2  ;;  %v3713_v2 = vadd.f32 %v5489_v32, %v5502_v51 }
 0x1cc   : > { %v2868_v31 = vmax.f32 %v3706_v26, 0.0  ;;  %v5559_v44 = vadd.f32 %v3753_v27, %v5467_v3  ;;  %v3715_v35 = vadd.f32 %v5491_v33, %v5506_v42 }
 0x1cd   : > { %v3642_v38 = vpack.c.bf16 %v2867_v23, %v2866_v7  ;;  %v2869_v43 = vmax.f32 %v3708_v25, 0.0  ;;  %v3719_v7 = vadd.f32 %v5498_v37, %v5506_v42 }
 0x1ce   : > { %v2391_v49 = vpop.f32.mrb[24].mxu1 }
 0x1cf   : > { %2995 = vst.msk [vmem:[%s5535_s12 + $0x10] sm:$0xff] %vm5523_vm3, %v3642_v38  ;;  %v3643_v0 = vpack.c.bf16 %v2869_v43, %v2868_v31  ;;  %v2803_v50 = vpop.f32.mrb[8].mxu0  ;;  %v3757_v52 = vadd.f32 %v2391_v49, %v5502_v51  ;;  %v2393_v3 = vpop.f32.mrb[25].mxu1 }
 0x1d0   : > { %v3710_v16 = vadd.f32 %v3709_v62, %v2803_v50  ;;  %v2805_v20 = vpop.f32.mrb[9].mxu0  ;;  %v3761_v30 = vadd.f32 %v2393_v3, %v5506_v42  ;;  %v2395_v28 = vpop.f32.mrb[26].mxu1 }
 0x1d1   : > { %2996 = vst.msk [vmem:[%s5535_s12 + $0x18] sm:$0xff] %vm5523_vm3, %v3643_v0  ;;  %v3712_v21 = vadd.f32 %v3711_v46, %v2805_v20  ;;  %v2807_v39 = vpop.f32.mrb[10].mxu0  ;;  %v3765_v41 = vadd.f32 %v2395_v28, %v5502_v51  ;;  %v2397_v60 = vpop.f32.mrb[27].mxu1  ;;  %v5579_v47 = vadd.f32 %v3757_v52, %v5469_v4  ;;  %v3717_v4 = vadd.f32 %v5496_v34, %v5502_v51 }
 0x1d2   : > { %v2870_v58 = vmax.f32 %v3710_v16, 0.0  ;;  %v3714_v32 = vadd.f32 %v3713_v2, %v2807_v39  ;;  %v2809_v45 = vpop.f32.mrb[11].mxu0  ;;  %v3769_v33 = vadd.f32 %v2397_v60, %v5506_v42  ;;  %v5583_v59 = vadd.f32 %v3761_v30, %v5471_v6 }
 0x1d3   : > { %v2871_v61 = vmax.f32 %v3712_v21, 0.0  ;;  %v3716_v57 = vadd.f32 %v3715_v35, %v2809_v45  ;;  %v5586_v24 = vadd.f32 %v3765_v41, %v5473_v8  ;;  %v3721_v8 = vadd.f32 %v5500_v40, %v5502_v51 }
 0x1d4   : > { %v2872_v22 = vmax.f32 %v3714_v32, 0.0  ;;  %v5589_v5 = vadd.f32 %v3769_v33, %v5475_v9  ;;  %v3723_v34 = vadd.f32 %v5504_v53, %v5506_v42 }
 0x1d5   : > { %v3644_v63 = vpack.c.bf16 %v2871_v61, %v2870_v58  ;;  %v2873_v1 = vmax.f32 %v3716_v57, 0.0 }
 0x1d6   : > { %v2401_v11 = vpop.f32.mrb[28].mxu1 }
 0x1d7   : > { %2997 = vst.msk [vmem:[%s5535_s12 + $0x20] sm:$0xff] %vm5523_vm3, %v3644_v63  ;;  %v3645_v6 = vpack.c.bf16 %v2873_v1, %v2872_v22  ;;  %v2813_v26 = vpop.f32.mrb[12].mxu0  ;;  %v3773_v13 = vadd.f32 %v2401_v11, %v5502_v51  ;;  %v2403_v9 = vpop.f32.mrb[29].mxu1 }
 0x1d8   : > { %v3718_v17 = vadd.f32 %v3717_v4, %v2813_v26  ;;  %v2815_v23 = vpop.f32.mrb[13].mxu0  ;;  %v3777_v37 = vadd.f32 %v2403_v9, %v5506_v42  ;;  %v2405_v25 = vpop.f32.mrb[30].mxu1 }
 0x1d9   : > { %2998 = vst.msk [vmem:[%s5535_s12 + $0x28] sm:$0xff] %vm5523_vm3, %v3645_v6  ;;  %v3720_v27 = vadd.f32 %v3719_v7, %v2815_v23  ;;  %v2817_v31 = vpop.f32.mrb[14].mxu0  ;;  %v3781_v40 = vadd.f32 %v2405_v25, %v5502_v51  ;;  %v2407_v62 = vpop.f32.mrb[31].mxu1  ;;  %v5609_v0 = vadd.f32 %v3773_v13, %v5477_v10 }
 0x1da   : > { %v2874_v38 = vmax.f32 %v3718_v17, 0.0  ;;  %v3722_v43 = vadd.f32 %v3721_v8, %v2817_v31  ;;  %v2819_v46 = vpop.f32.mrb[15].mxu0  ;;  %v3785_v53 = vadd.f32 %v2407_v62, %v5506_v42  ;;  %v5613_v2 = vadd.f32 %v3777_v37, %v5479_v12 }
 0x1db   : > { %v2875_v49 = vmax.f32 %v3720_v27, 0.0  ;;  %v3724_v50 = vadd.f32 %v3723_v34, %v2819_v46  ;;  %v5616_v16 = vadd.f32 %v3781_v40, %v5481_v14 }
 0x1dc   : > { %v2876_v52 = vmax.f32 %v3722_v43, 0.0  ;;  %v5619_v20 = vadd.f32 %v3785_v53, %v5483_v15 }
 0x1dd   : > { %v3646_v3 = vpack.c.bf16 %v2875_v49, %v2874_v38  ;;  %v2877_v51 = vmax.f32 %v3724_v50, 0.0 }
 0x1de   : > { %v2710_v35 = vpop.f32.mrb[32].mxu1 }
 0x1df   : > { %2999 = vst.msk [vmem:[%s5535_s12 + $0x30] sm:$0xff] %vm5523_vm3, %v3646_v3  ;;  %v3647_v10 = vpack.c.bf16 %v2877_v51, %v2876_v52  ;;  %v2823_v30 = vpop.f32.mrb[32].mxu0  ;;  %v3727_v42 = vadd.f32 %v5516_v48, %v2710_v35  ;;  %v2712_v21 = vpop.f32.mrb[33].mxu1 }
 0x1e0   : > { %v2825_v12 = vpop.f32.mrb[33].mxu0  ;;  %v3731_v14 = vadd.f32 %v5520_v54, %v2712_v21  ;;  %v2714_v28 = vpop.f32.mrb[34].mxu1 }
 0x1e1   : > { %3000 = vst.msk [vmem:[%s5535_s12 + $0x38] sm:$0xff] %vm5523_vm3, %v3647_v10  ;;  %v2827_v39 = vpop.f32.mrb[34].mxu0  ;;  %v3728_v58 = vadd.f32 %v3727_v42, %v2823_v30  ;;  %v3735_v15 = vadd.f32 %v5528_v18, %v2714_v28  ;;  %v2716_v41 = vpop.f32.mrb[35].mxu1 }
 0x1e2   : > { %v2829_v32 = vpop.f32.mrb[35].mxu0  ;;  %v3732_v60 = vadd.f32 %v3731_v14, %v2825_v12  ;;  %v3739_v45 = vadd.f32 %v5531_v56, %v2716_v41 }
 0x1e3   : > { %v2878_v61 = vmax.f32 %v3728_v58, 0.0  ;;  %v3736_v48 = vadd.f32 %v3735_v15, %v2827_v39 }
 0x1e4   : > { %v2879_v33 = vmax.f32 %v3732_v60, 0.0  ;;  %v3740_v57 = vadd.f32 %v3739_v45, %v2829_v32 }
 0x1e5   : > { %v2880_v22 = vmax.f32 %v3736_v48, 0.0 }
 0x1e6   : > { %v3648_v63 = vpack.c.bf16 %v2879_v33, %v2878_v61  ;;  %v2881_v1 = vmax.f32 %v3740_v57, 0.0  ;;  %v2720_v54 = vpop.f32.mrb[36].mxu1 }
 0x1e7   : > { %v2833_v4 = vpop.f32.mrb[36].mxu0  ;;  %v3743_v7 = vadd.f32 %v5549_v19, %v2720_v54  ;;  %v2722_v6 = vpop.f32.mrb[37].mxu1 }
 0x1e8   : > { %v2835_v18 = vpop.f32.mrb[37].mxu0  ;;  %3001 = vst.msk [vmem:[%s5535_s12 + $0x40] sm:$0xff] %vm5523_vm3, %v3648_v63  ;;  %v3649_v11 = vpack.c.bf16 %v2881_v1, %v2880_v22  ;;  %v3747_v56 = vadd.f32 %v5553_v29, %v2722_v6  ;;  %v2724_v26 = vpop.f32.mrb[38].mxu1 }
 0x1e9   : > { %v2837_v8 = vpop.f32.mrb[38].mxu0  ;;  %v3744_v13 = vadd.f32 %v3743_v7, %v2833_v4  ;;  %v3751_v17 = vadd.f32 %v5556_v36, %v2724_v26  ;;  %v2726_v9 = vpop.f32.mrb[39].mxu1 }
 0x1ea   : > { %v2839_v23 = vpop.f32.mrb[39].mxu0  ;;  %3002 = vst.msk [vmem:[%s5535_s12 + $0x48] sm:$0xff] %vm5523_vm3, %v3649_v11  ;;  %v3748_v19 = vadd.f32 %v3747_v56, %v2835_v18  ;;  %v3755_v34 = vadd.f32 %v5559_v44, %v2726_v9 }
 0x1eb   : > { %v2882_v37 = vmax.f32 %v3744_v13, 0.0  ;;  %v3752_v27 = vadd.f32 %v3751_v17, %v2837_v8 }
 0x1ec   : > { %v2883_v25 = vmax.f32 %v3748_v19, 0.0  ;;  %v3756_v31 = vadd.f32 %v3755_v34, %v2839_v23 }
 0x1ed   : > { %v2884_v38 = vmax.f32 %v3752_v27, 0.0 }
 0x1ee   : > { %v3650_v29 = vpack.c.bf16 %v2883_v25, %v2882_v37  ;;  %v2885_v40 = vmax.f32 %v3756_v31, 0.0  ;;  %v2730_v43 = vpop.f32.mrb[40].mxu1 }
 0x1ef   : > { %v2843_v62 = vpop.f32.mrb[40].mxu0  ;;  %v3759_v36 = vadd.f32 %v5579_v47, %v2730_v43  ;;  %v2732_v46 = vpop.f32.mrb[41].mxu1 }
 0x1f0   : > { %v2845_v49 = vpop.f32.mrb[41].mxu0  ;;  %3003 = vst.msk [vmem:[%s5535_s12 + $0x50] sm:$0xff] %vm5523_vm3, %v3650_v29  ;;  %v3651_v53 = vpack.c.bf16 %v2885_v40, %v2884_v38  ;;  %v3763_v44 = vadd.f32 %v5583_v59, %v2732_v46  ;;  %v2734_v50 = vpop.f32.mrb[42].mxu1 }
 0x1f1   : > { %v2847_v52 = vpop.f32.mrb[42].mxu0  ;;  %v3760_v3 = vadd.f32 %v3759_v36, %v2843_v62  ;;  %v3767_v51 = vadd.f32 %v5586_v24, %v2734_v50  ;;  %v2736_v10 = vpop.f32.mrb[43].mxu1 }
 0x1f2   : > { %v2849_v35 = vpop.f32.mrb[43].mxu0  ;;  %3004 = vst.msk [vmem:[%s5535_s12 + $0x58] sm:$0xff] %vm5523_vm3, %v3651_v53  ;;  %v3764_v47 = vadd.f32 %v3763_v44, %v2845_v49  ;;  %v3771_v30 = vadd.f32 %v5589_v5, %v2736_v10 }
 0x1f3   : > { %v2886_v42 = vmax.f32 %v3760_v3, 0.0  ;;  %v3768_v21 = vadd.f32 %v3767_v51, %v2847_v52 }
 0x1f4   : > { %v2887_v12 = vmax.f32 %v3764_v47, 0.0  ;;  %v3772_v14 = vadd.f32 %v3771_v30, %v2849_v35 }
 0x1f5   : > { %v2888_v28 = vmax.f32 %v3768_v21, 0.0 }
 0x1f6   : > { %v3652_v59 = vpack.c.bf16 %v2887_v12, %v2886_v42  ;;  %v2889_v39 = vmax.f32 %v3772_v14, 0.0  ;;  %v2740_v58 = vpop.f32.mrb[44].mxu1 }
 0x1f7   : > { %v2853_v15 = vpop.f32.mrb[44].mxu0  ;;  %v3775_v24 = vadd.f32 %v5609_v0, %v2740_v58  ;;  %v2742_v41 = vpop.f32.mrb[45].mxu1 }
 0x1f8   : > { %v2855_v32 = vpop.f32.mrb[45].mxu0  ;;  %3005 = vst.msk [vmem:[%s5535_s12 + $0x60] sm:$0xff] %vm5523_vm3, %v3652_v59  ;;  %v3653_v60 = vpack.c.bf16 %v2889_v39, %v2888_v28  ;;  %v3779_v5 = vadd.f32 %v5613_v2, %v2742_v41  ;;  %v2744_v45 = vpop.f32.mrb[46].mxu1 }
 0x1f9   : > { %v2857_v61 = vpop.f32.mrb[46].mxu0  ;;  %v3776_v48 = vadd.f32 %v3775_v24, %v2853_v15  ;;  %v3783_v33 = vadd.f32 %v5616_v16, %v2744_v45  ;;  %v2746_v57 = vpop.f32.mrb[47].mxu1 }
 0x1fa   : > { %v2859_v22 = vpop.f32.mrb[47].mxu0  ;;  %3006 = vst.msk [vmem:[%s5535_s12 + $0x68] sm:$0xff] %vm5523_vm3, %v3653_v60  ;;  %v3780_v0 = vadd.f32 %v3779_v5, %v2855_v32  ;;  %v3787_v63 = vadd.f32 %v5619_v20, %v2746_v57 }
 0x1fb   : > { %v2890_v1 = vmax.f32 %v3776_v48, 0.0  ;;  %v3784_v54 = vadd.f32 %v3783_v33, %v2857_v61 }
 0x1fc   : > { %v2891_v4 = vmax.f32 %v3780_v0, 0.0  ;;  %v3788_v7 = vadd.f32 %v3787_v63, %v2859_v22  ;;  %3015 = sbr.rel (!%p4593_p4) target bundleno = 564 (0x234), region = 36 }
 0x1fd   : > { %v2892_v2 = vmax.f32 %v3784_v54, 0.0 }
 0x1fe   : > { %v3654_v6 = vpack.c.bf16 %v2891_v4, %v2890_v1  ;;  %v2893_v18 = vmax.f32 %v3788_v7, 0.0 }
 0x200   : > { %3007 = vst.msk [vmem:[%s5535_s12 + $0x70] sm:$0xff] %vm5523_vm3, %v3654_v6  ;;  %v3655_v11 = vpack.c.bf16 %v2893_v18, %v2892_v2 }
 0x202   : > { %3008 = vst.msk [vmem:[%s5535_s12 + $0x78] sm:$0xff] %vm5523_vm3, %v3655_v11 }
 0x203   : > { %s5781_s23 = smov (!%p3018_p8, %s3017_s23), 16 }
 0x204   : > { %s3656_s28 = sshll.u32 %s5781_s23, 7 }
 0x205   : > { %p3628_p9 = scmp.eq.s32.totalorder %s3656_s28, 0 }
 0x206   : > { %s5680_s29 = sshrl.u32 (!%p3628_p9), %s5781_s23, 4 }
 0x207   : > { %3028 = sbr.rel (%p3628_p9) target bundleno = 564 (0x234), region = 40  ;;  %p3629_p10 = scmp.le.s32.totalorder (!%p3628_p9), %s5680_s29, 0 }
 0x20e   : > { %3242 = sbr.rel (%p3629_p10) target bundleno = 543 (0x21f), region = 116  ;;  %s5774_s15 = smov (!%p3629_p10), %s5674_s27 }
 0x20f   : > { %s5775_s20 = smov (!%p3629_p10), %s5535_s12  ;;  %s5689_s14 = smov (!%p3629_p10), 0  }
 0x210   : > { %s5691_s30 = smov (!%p3629_p10), 0  }
 0x215 LB: >> { %v3120_v55 = vld [vmem:[%s4521_s20] sm:$0xff]  ;;  %v3122_v16 = vld [vmem:[%s4521_s20 + $0x8] sm:$0xff]  ;;  %v3124_v20 = vld [vmem:[%s4521_s20 + $0x10] sm:$0xff]  ;;  %s3152_s4 = sadd.s32 1, %s4525_s14  ;;  %s3114_s30 = sadd.s32 1, %s4529_s30   ;;  %s4529_s30 = sphi %s5691_s30, %s3114_s30   ;;  %s4525_s14 = sphi %s5689_s14, %s5776_s14   ;;  %s4521_s20 = sphi %s5775_s20, %s3157_s20   ;;  %s4517_s15 = sphi %s5774_s15, %s3158_s15  }
 0x216   : >> { %3121 = vst [vmem:[%s4517_s15] sm:$0xff] %v3120_v55  ;;  %3123 = vst [vmem:[%s4517_s15 + $0x8] sm:$0xff] %v3122_v16  ;;  %v3126_v56 = vld [vmem:[%s4521_s20 + $0x18] sm:$0xff]  ;;  %v3128_v26 = vld [vmem:[%s4521_s20 + $0x20] sm:$0xff]  ;;  %p3153_p11 = scmp.ge.s32.totalorder %s3152_s4, %s5680_s29  ;;  %p3113_p12 = scmp.ge.s32.totalorder %s3114_s30, %s5680_s29 }
 0x217   : >> { %3125 = vst [vmem:[%s4517_s15 + $0x10] sm:$0xff] %v3124_v20  ;;  %v3130_v8 = vld [vmem:[%s4521_s20 + $0x28] sm:$0xff]  ;;  %3127 = vst [vmem:[%s4517_s15 + $0x18] sm:$0xff] %v3126_v56  ;;  %v3132_v13 = vld [vmem:[%s4521_s20 + $0x30] sm:$0xff] }
 0x218   : >> { %3129 = vst [vmem:[%s4517_s15 + $0x20] sm:$0xff] %v3128_v26  ;;  %3131 = vst [vmem:[%s4517_s15 + $0x28] sm:$0xff] %v3130_v8  ;;  %v3134_v17 = vld [vmem:[%s4521_s20 + $0x38] sm:$0xff]  ;;  %v3136_v9 = vld [vmem:[%s4521_s20 + $0x40] sm:$0xff]  ;;  %s5783_s4 = smov (%p3153_p11, %s3152_s4), 0  ;;  %3116 = sbr.rel (!%p3113_p12) target bundleno = 533 (0x215), region = 122 }
 0x219   : >> { %3133 = vst [vmem:[%s4517_s15 + $0x30] sm:$0xff] %v3132_v13  ;;  %3135 = vst [vmem:[%s4517_s15 + $0x38] sm:$0xff] %v3134_v17  ;;  %v3138_v23 = vld [vmem:[%s4521_s20 + $0x48] sm:$0xff]  ;;  %v3140_v19 = vld [vmem:[%s4521_s20 + $0x50] sm:$0xff]  ;;  %s3630_s5 = sshll.u32 %s5783_s4, 7  ;;  %s5776_s14 = smov %s5783_s4 }
 0x21a   : >> { %3137 = vst [vmem:[%s4517_s15 + $0x40] sm:$0xff] %v3136_v9  ;;  %v3142_v34 = vld [vmem:[%s4521_s20 + $0x58] sm:$0xff]  ;;  %3139 = vst [vmem:[%s4517_s15 + $0x48] sm:$0xff] %v3138_v23  ;;  %v3144_v37 = vld [vmem:[%s4521_s20 + $0x60] sm:$0xff] }
 0x21b   : >> { %3141 = vst [vmem:[%s4517_s15 + $0x50] sm:$0xff] %v3140_v19  ;;  %3143 = vst [vmem:[%s4517_s15 + $0x58] sm:$0xff] %v3142_v34  ;;  %v3146_v27 = vld [vmem:[%s4521_s20 + $0x68] sm:$0xff]  ;;  %v3148_v25 = vld [vmem:[%s4521_s20 + $0x70] sm:$0xff] }
 0x21c   : >> { %3145 = vst [vmem:[%s4517_s15 + $0x60] sm:$0xff] %v3144_v37  ;;  %3147 = vst [vmem:[%s4517_s15 + $0x68] sm:$0xff] %v3146_v27  ;;  %v3150_v31 = vld [vmem:[%s4521_s20 + $0x78] sm:$0xff]  ;;  %s3157_s20 = scalar_lea.vmem %s5535_s12, %s3630_s5 [#allocation2]  }
 0x21d   : >> { %3149 = vst [vmem:[%s4517_s15 + $0x70] sm:$0xff] %v3148_v25  ;;  %3151 = vst [vmem:[%s4517_s15 + $0x78] sm:$0xff] %v3150_v31  ;;  %s3158_s15 = scalar_lea.vmem %s5674_s27, %s3630_s5  }
 0x21f PF: > { %s5749_s7 = sand.u32 15, %s5781_s23   ;;  %s3659_s8 = sshll.u32 %s5680_s29, 7 }
 0x220   : > { %s3163_s9 = scalar_lea.vmem %s5535_s12, %s3659_s8 [#allocation2]   ;;  %s3165_s10 = scalar_lea.vmem %s5674_s27, %s3659_s8  }
 0x221   : > { %p3635_p13 = scmp.le.s32.totalorder %s5749_s7, 0 }
 0x222   : > { %s4531_s11 = smov (!%p3635_p13), %s3165_s10   ;;  %s4535_s17 = smov (!%p3635_p13), %s3163_s9  }
 0x223   : > { %3256 = sbr.rel (%p3635_p13) target bundleno = 564 (0x234), region = 127  ;;  %s4539_s6 = smov (!%p3635_p13), 0  }
 0x224   : > { %s4543_s18 = smov (!%p3635_p13), 0  }
 0x22a LB: >> { %v3175_v38 = vld [vmem:[%s4537_s17] sm:$0xff]  ;;  %s3177_s21 = sadd.s32 1, %s4541_s6  ;;  %s3169_s18 = sadd.s32 1, %s4545_s18   ;;  %s4545_s18 = sphi %s4543_s18, %s3169_s18   ;;  %s4541_s6 = sphi %s4539_s6, %s4540_s6   ;;  %s4537_s17 = sphi %s4535_s17, %s3182_s17   ;;  %s4533_s11 = sphi %s4531_s11, %s3183_s11  }
 0x22b   : >> { %3176 = vst [vmem:[%s4533_s11] sm:$0xff] %v3175_v38  ;;  %p3178_p0 = scmp.ge.s32.totalorder %s3177_s21, %s5749_s7  ;;  %p3168_p1 = scmp.ge.s32.totalorder %s3169_s18, %s5749_s7 }
 0x22d   : >> { %s5785_s21 = smov (%p3178_p0, %s3177_s21), 0  ;;  %3171 = sbr.rel (!%p3168_p1) target bundleno = 554 (0x22a), region = 133 }
 0x22e   : >> { %s3636_s22 = sshll.u32 %s5785_s21, 3  ;;  %s4540_s6 = smov %s5785_s21  }
 0x22f   : >> { %s3182_s17 = scalar_lea.vmem %s3163_s9, %s3636_s22 [#allocation2]   ;;  %s3183_s11 = scalar_lea.vmem %s3165_s10, %s3636_s22  }
 0x234 PF: > { %p10_p2 = scmp.ge.s32.totalorder %s4583_s16, 4   ;;  %s5777_s12 = smov %s4509_s13 }
 0x235   : > { %s5778_s13 = smov %s4591_s19  ;;  %s5779_s14 = smov %s4583_s16 }
 0x236   :  { %12 = sbr.rel (!%p10_p2) target bundleno = 2 (0x2), region = 144 }

// kernel: _lambda_.11
= control target key start
LH: loop header
LB: loop body
LE: loop exit
PB: predicated region body
PF: predicated region fallthrough
CT: control target
= control target key end

     0   :  { %vm72_vm0 = vcmask 1043456   ;;  %vm73_vm1 = vcmask 523268   ;;  %vm286_vm3 = vcmask 1040384   ;;  %vm287_vm4 = vcmask 520196   ;;  %s705_s0 = inlined_call_operand.vmem [shape: bf16[9,50,192], index: 0, kind: input, shape index: {}]   ;;  %s706_s1 = inlined_call_operand.vmem [shape: bf16[50,192], index: 1, kind: output, shape index: {}]  }
   0x1   :  { %v9_v0 = vld [vmem:[%s705_s0] sm:$0xff]  ;;  %v16_v1 = vld [vmem:[%s705_s0 + $0x38] sm:$0xff]  ;;  %v23_v2 = vld [vmem:[%s705_s0 + $0x70] sm:$0xff] }
   0x2   :  { %v30_v3 = vld [vmem:[%s705_s0 + $0xa8] sm:$0xff]  ;;  %vm357_vm2 = vmor %vm73_vm1, %vm72_vm0  ;;  %v37_v9 = vld [vmem:[%s705_s0 + $0xe0] sm:$0xff] }
   0x3   :  { %v10_v5 = vld [vmem:[%s705_s0 + $0x8] sm:$0xff]  ;;  %v77_v6 = vsel %vm357_vm2, %v9_v0, 4286644096  ;;  %v80_v7 = vsel %vm357_vm2, %v16_v1, 4286644096  ;;  %v17_v11 = vld [vmem:[%s705_s0 + $0x40] sm:$0xff]  ;;  %vm610_vm5 = vmor %vm287_vm4, %vm286_vm3 }
   0x4   :  { %v84_v8 = vsel %vm357_vm2, %v23_v2, 4286644096  ;;  %v82_v10 = vmax.bf16 %v80_v7, %v77_v6  ;;  %v88_v12 = vsel %vm357_vm2, %v30_v3, 4286644096  ;;  %v44_v13 = vld [vmem:[%s705_s0 + $0x118] sm:$0xff]  ;;  %v31_v16 = vld [vmem:[%s705_s0 + $0xb0] sm:$0xff] }
   0x5   :  { %v24_v15 = vld [vmem:[%s705_s0 + $0x78] sm:$0xff]  ;;  %v112_v17 = vsel %vm357_vm2, %v10_v5, 4286644096  ;;  %v51_v18 = vld [vmem:[%s705_s0 + $0x150] sm:$0xff]  ;;  %v92_v19 = vsel %vm357_vm2, %v37_v9, 4286644096 }
   0x6   :  { %v86_v14 = vmax.bf16 %v84_v8, %v82_v10  ;;  %v115_v20 = vsel %vm357_vm2, %v17_v11, 4286644096  ;;  %v38_v22 = vld [vmem:[%s705_s0 + $0xe8] sm:$0xff]  ;;  %v119_v24 = vsel %vm357_vm2, %v24_v15, 4286644096  ;;  %v11_v25 = vld [vmem:[%s705_s0 + $0x10] sm:$0xff] }
   0x7   :  { %v117_v23 = vmax.bf16 %v115_v20, %v112_v17  ;;  %v58_v26 = vld [vmem:[%s705_s0 + $0x188] sm:$0xff]  ;;  %v96_v27 = vsel %vm357_vm2, %v44_v13, 4286644096  ;;  %v123_v28 = vsel %vm357_vm2, %v31_v16, 4286644096  ;;  %v45_v31 = vld [vmem:[%s705_s0 + $0x120] sm:$0xff] }
   0x8   :  { %v90_v21 = vmax.bf16 %v88_v12, %v86_v14  ;;  %v100_v30 = vsel %vm357_vm2, %v51_v18, 4286644096  ;;  %v18_v33 = vld [vmem:[%s705_s0 + $0x48] sm:$0xff]  ;;  %v25_v34 = vld [vmem:[%s705_s0 + $0x80] sm:$0xff]  ;;  %v127_v36 = vsel %vm357_vm2, %v38_v22, 4286644096 }
   0x9   :  { %v121_v32 = vmax.bf16 %v119_v24, %v117_v23  ;;  %v65_v35 = vld [vmem:[%s705_s0 + $0x1c0] sm:$0xff]  ;;  %v32_v37 = vld [vmem:[%s705_s0 + $0xb8] sm:$0xff]  ;;  %v147_v38 = vsel %vm357_vm2, %v11_v25, 4286644096  ;;  %v104_v40 = vsel %vm357_vm2, %v58_v26, 4286644096 }
   0xa   :  { %v94_v29 = vmax.bf16 %v92_v19, %v90_v21  ;;  %v52_v41 = vld [vmem:[%s705_s0 + $0x158] sm:$0xff]  ;;  %v59_v42 = vld [vmem:[%s705_s0 + $0x190] sm:$0xff]  ;;  %v150_v44 = vsel %vm357_vm2, %v18_v33, 4286644096  ;;  %v131_v45 = vsel %vm357_vm2, %v45_v31, 4286644096 }
   0xb   :  { %v125_v43 = vmax.bf16 %v123_v28, %v121_v32  ;;  %v39_v46 = vld [vmem:[%s705_s0 + $0xf0] sm:$0xff]  ;;  %v152_v47 = vmax.bf16 %v150_v44, %v147_v38  ;;  %v154_v48 = vsel %vm357_vm2, %v25_v34, 4286644096  ;;  %v108_v50 = vsel %vm357_vm2, %v65_v35, 4286644096  ;;  %v12_v53 = vld [vmem:[%s705_s0 + $0x18] sm:$0xff] }
   0xc   :  { %v98_v39 = vmax.bf16 %v96_v27, %v94_v29  ;;  %v158_v52 = vsel %vm357_vm2, %v32_v37, 4286644096  ;;  %v19_v54 = vld [vmem:[%s705_s0 + $0x50] sm:$0xff]  ;;  %v135_v55 = vsel %vm357_vm2, %v52_v41, 4286644096  ;;  %v46_v57 = vld [vmem:[%s705_s0 + $0x128] sm:$0xff] }
   0xd   :  { %v129_v51 = vmax.bf16 %v127_v36, %v125_v43  ;;  %v139_v56 = vsel %vm357_vm2, %v59_v42, 4286644096  ;;  %v156_v58 = vmax.bf16 %v154_v48, %v152_v47  ;;  %v26_v59 = vld [vmem:[%s705_s0 + $0x88] sm:$0xff]  ;;  %v162_v63 = vsel %vm357_vm2, %v39_v46, 4286644096  ;;  %v33_v0 = vld [vmem:[%s705_s0 + $0xc0] sm:$0xff] }
   0xe   :  { %v102_v49 = vmax.bf16 %v100_v30, %v98_v39  ;;  %v66_v61 = vld [vmem:[%s705_s0 + $0x1c8] sm:$0xff]  ;;  %v182_v1 = vsel %vm357_vm2, %v12_v53, 4286644096  ;;  %v53_v2 = vld [vmem:[%s705_s0 + $0x160] sm:$0xff]  ;;  %v60_v3 = vld [vmem:[%s705_s0 + $0x198] sm:$0xff] }
   0xf   :  { %v133_v62 = vmax.bf16 %v131_v45, %v129_v51  ;;  %v160_v5 = vmax.bf16 %v158_v52, %v156_v58  ;;  %v185_v6 = vsel %vm357_vm2, %v19_v54, 4286644096  ;;  %v189_v7 = vsel %vm357_vm2, %v26_v59, 4286644096  ;;  %v40_v11 = vld [vmem:[%s705_s0 + $0xf8] sm:$0xff]  ;;  %v13_v13 = vld [vmem:[%s705_s0 + $0x20] sm:$0xff] }
  0x10   :  { %v106_v60 = vmax.bf16 %v104_v40, %v102_v49  ;;  %v166_v10 = vsel %vm357_vm2, %v46_v57, 4286644096  ;;  %v187_v12 = vmax.bf16 %v185_v6, %v182_v1  ;;  %v143_v14 = vsel %vm357_vm2, %v66_v61, 4286644096  ;;  %v20_v17 = vld [vmem:[%s705_s0 + $0x58] sm:$0xff]  ;;  %v27_v18 = vld [vmem:[%s705_s0 + $0x90] sm:$0xff] }
  0x11   :  { %v137_v9 = vmax.bf16 %v135_v55, %v133_v62  ;;  %v164_v15 = vmax.bf16 %v162_v63, %v160_v5  ;;  %v193_v16 = vsel %vm357_vm2, %v33_v0, 4286644096  ;;  %v170_v20 = vsel %vm357_vm2, %v53_v2, 4286644096  ;;  %v47_v22 = vld [vmem:[%s705_s0 + $0x130] sm:$0xff]  ;;  %v34_v27 = vld [vmem:[%s705_s0 + $0xc8] sm:$0xff] }
  0x12   :  { %v110_v8 = vmax.bf16 %v108_v50, %v106_v60  ;;  %v174_v21 = vsel %vm357_vm2, %v60_v3, 4286644096  ;;  %v191_v23 = vmax.bf16 %v189_v7, %v187_v12  ;;  %v67_v24 = vld [vmem:[%s705_s0 + $0x1d0] sm:$0xff]  ;;  %v197_v26 = vsel %vm357_vm2, %v40_v11, 4286644096  ;;  %v54_v30 = vld [vmem:[%s705_s0 + $0x168] sm:$0xff] }
  0x13   :  { %v141_v19 = vmax.bf16 %v139_v56, %v137_v9  ;;  %v168_v25 = vmax.bf16 %v166_v10, %v164_v15  ;;  %v217_v28 = vsel %vm357_vm2, %v13_v13, 4286644096  ;;  %v61_v31 = vld [vmem:[%s705_s0 + $0x1a0] sm:$0xff]  ;;  %v220_v33 = vsel %vm357_vm2, %v20_v17, 4286644096  ;;  %v14_v39 = vld [vmem:[%s705_s0 + $0x28] sm:$0xff] }
  0x14   :  { %324 = vst.msk [vmem:[%s706_s1] sm:$0xff] %vm357_vm2, %v110_v8  ;;  %v195_v32 = vmax.bf16 %v193_v16, %v191_v23  ;;  %v224_v34 = vsel %vm357_vm2, %v27_v18, 4286644096  ;;  %v201_v36 = vsel %vm357_vm2, %v47_v22, 4286644096  ;;  %v41_v37 = vld [vmem:[%s705_s0 + $0x100] sm:$0xff]  ;;  %v222_v38 = vmax.bf16 %v220_v33, %v217_v28 }
  0x15   :  { %v145_v29 = vmax.bf16 %v143_v14, %v141_v19  ;;  %v172_v35 = vmax.bf16 %v170_v20, %v168_v25  ;;  %v178_v40 = vsel %vm357_vm2, %v67_v24, 4286644096  ;;  %v228_v42 = vsel %vm357_vm2, %v34_v27, 4286644096  ;;  %v21_v43 = vld [vmem:[%s705_s0 + $0x60] sm:$0xff]  ;;  %v28_v44 = vld [vmem:[%s705_s0 + $0x98] sm:$0xff] }
  0x16   :  { %v199_v41 = vmax.bf16 %v197_v26, %v195_v32  ;;  %v68_v46 = vld [vmem:[%s705_s0 + $0x1d8] sm:$0xff]  ;;  %v205_v47 = vsel %vm357_vm2, %v54_v30, 4286644096  ;;  %v209_v48 = vsel %vm357_vm2, %v61_v31, 4286644096  ;;  %v226_v50 = vmax.bf16 %v224_v34, %v222_v38  ;;  %v55_v52 = vld [vmem:[%s705_s0 + $0x170] sm:$0xff] }
  0x17   :  { %325 = vst.msk [vmem:[%s706_s1 + $0x8] sm:$0xff] %vm357_vm2, %v145_v29  ;;  %v176_v45 = vmax.bf16 %v174_v21, %v172_v35  ;;  %v48_v49 = vld [vmem:[%s705_s0 + $0x138] sm:$0xff]  ;;  %v232_v53 = vsel %vm357_vm2, %v41_v37, 4286644096  ;;  %v35_v54 = vld [vmem:[%s705_s0 + $0xd0] sm:$0xff]  ;;  %v62_v62 = vld [vmem:[%s705_s0 + $0x1a8] sm:$0xff] }
  0x18   :  { %v203_v51 = vmax.bf16 %v201_v36, %v199_v41  ;;  %v252_v55 = vsel %vm357_vm2, %v14_v39, 4286644096  ;;  %v230_v57 = vmax.bf16 %v228_v42, %v226_v50  ;;  %v255_v58 = vsel %vm357_vm2, %v21_v43, 4286644096  ;;  %v42_v0 = vld [vmem:[%s705_s0 + $0x108] sm:$0xff]  ;;  %v49_v9 = vld [vmem:[%s705_s0 + $0x140] sm:$0xff] }
  0x19   :  { %v180_v56 = vmax.bf16 %v178_v40, %v176_v45  ;;  %v259_v59 = vsel %vm357_vm2, %v28_v44, 4286644096  ;;  %v213_v61 = vsel %vm357_vm2, %v68_v46, 4286644096  ;;  %v236_v63 = vsel %vm357_vm2, %v48_v49, 4286644096 }
  0x1a   :  { %v207_v60 = vmax.bf16 %v205_v47, %v203_v51  ;;  %v257_v1 = vmax.bf16 %v255_v58, %v252_v55  ;;  %v234_v2 = vmax.bf16 %v232_v53, %v230_v57  ;;  %v240_v3 = vsel %vm357_vm2, %v55_v52, 4286644096  ;;  %v15_v6 = vld [vmem:[%s705_s0 + $0x30] sm:$0x11]  ;;  %v22_v11 = vld [vmem:[%s705_s0 + $0x68] sm:$0x11] }
  0x1b   :  { %326 = vst.msk [vmem:[%s706_s1 + $0x10] sm:$0xff] %vm357_vm2, %v180_v56  ;;  %v263_v5 = vsel %vm357_vm2, %v35_v54, 4286644096  ;;  %v29_v12 = vld [vmem:[%s705_s0 + $0xa0] sm:$0x11]  ;;  %v56_v18 = vld [vmem:[%s705_s0 + $0x178] sm:$0xff] }
  0x1c   :  { %v211_v8 = vmax.bf16 %v209_v48, %v207_v60  ;;  %v261_v10 = vmax.bf16 %v259_v59, %v257_v1  ;;  %v69_v13 = vld [vmem:[%s705_s0 + $0x1e0] sm:$0xff]  ;;  %v238_v14 = vmax.bf16 %v236_v63, %v234_v2  ;;  %v244_v15 = vsel %vm357_vm2, %v62_v62, 4286644096  ;;  %v36_v20 = vld [vmem:[%s705_s0 + $0xd8] sm:$0x11]  ;;  %v63_v27 = vld [vmem:[%s705_s0 + $0x1b0] sm:$0xff] }
  0x1d   :  { %v267_v16 = vsel %vm357_vm2, %v42_v0, 4286644096  ;;  %v290_v21 = vsel %vm610_vm5, %v15_v6, 4286644096  ;;  %v271_v23 = vsel %vm357_vm2, %v49_v9, 4286644096 }
  0x1e   :  { %v215_v17 = vmax.bf16 %v213_v61, %v211_v8  ;;  %v265_v19 = vmax.bf16 %v263_v5, %v261_v10  ;;  %v242_v22 = vmax.bf16 %v240_v3, %v238_v14  ;;  %v293_v24 = vsel %vm610_vm5, %v22_v11, 4286644096  ;;  %v43_v29 = vld [vmem:[%s705_s0 + $0x110] sm:$0x11]  ;;  %v70_v34 = vld [vmem:[%s705_s0 + $0x1e8] sm:$0xff] }
  0x1f   :  { %v297_v25 = vsel %vm610_vm5, %v29_v12, 4286644096  ;;  %v248_v26 = vsel %vm357_vm2, %v69_v13, 4286644096  ;;  %v295_v30 = vmax.bf16 %v293_v24, %v290_v21  ;;  %v275_v32 = vsel %vm357_vm2, %v56_v18, 4286644096 }
  0x20   :  { %327 = vst.msk [vmem:[%s706_s1 + $0x18] sm:$0xff] %vm357_vm2, %v215_v17  ;;  %v269_v28 = vmax.bf16 %v267_v16, %v265_v19  ;;  %v246_v31 = vmax.bf16 %v244_v15, %v242_v22  ;;  %v301_v33 = vsel %vm610_vm5, %v36_v20, 4286644096  ;;  %v50_v36 = vld [vmem:[%s705_s0 + $0x148] sm:$0x11] }
  0x21   :  { %v299_v37 = vmax.bf16 %v297_v25, %v295_v30  ;;  %v279_v39 = vsel %vm357_vm2, %v63_v27, 4286644096  ;;  %v305_v40 = vsel %vm610_vm5, %v43_v29, 4286644096  ;;  %v57_v42 = vld [vmem:[%s705_s0 + $0x180] sm:$0x11] }
  0x22   :  { %v273_v35 = vmax.bf16 %v271_v23, %v269_v28  ;;  %v250_v38 = vmax.bf16 %v248_v26, %v246_v31  ;;  %v283_v44 = vsel %vm357_vm2, %v70_v34, 4286644096  ;;  %v309_v45 = vsel %vm610_vm5, %v50_v36, 4286644096  ;;  %v64_v47 = vld [vmem:[%s705_s0 + $0x1b8] sm:$0x11] }
  0x23   :  { %v303_v43 = vmax.bf16 %v301_v33, %v299_v37  ;;  %v313_v49 = vsel %vm610_vm5, %v57_v42, 4286644096  ;;  %v71_v51 = vld [vmem:[%s705_s0 + $0x1f0] sm:$0x11]  ;;  %v317_v53 = vsel %vm610_vm5, %v64_v47, 4286644096 }
  0x24   :  { %v277_v41 = vmax.bf16 %v275_v32, %v273_v35  ;;  %328 = vst.msk [vmem:[%s706_s1 + $0x20] sm:$0xff] %vm357_vm2, %v250_v38  ;;  %v321_v55 = vsel %vm610_vm5, %v71_v51, 4286644096 }
  0x25   :  { %v307_v48 = vmax.bf16 %v305_v40, %v303_v43 }
  0x26   :  { %v281_v46 = vmax.bf16 %v279_v39, %v277_v41 }
  0x27   :  { %v311_v52 = vmax.bf16 %v309_v45, %v307_v48 }
  0x28   :  { %v285_v50 = vmax.bf16 %v283_v44, %v281_v46 }
  0x29   :  { %v315_v54 = vmax.bf16 %v313_v49, %v311_v52 }
  0x2a   :  { %329 = vst.msk [vmem:[%s706_s1 + $0x28] sm:$0xff] %vm357_vm2, %v285_v50 }
  0x2b   :  { %v319_v56 = vmax.bf16 %v317_v53, %v315_v54 }
  0x2d   :  { %v323_v57 = vmax.bf16 %v321_v55, %v319_v56 }
  0x2f   :  { %330 = vst.msk [vmem:[%s706_s1 + $0x30] sm:$0x11] %vm610_vm5, %v323_v57 }

// kernel: _lambda_.12
= control target key start
LH: loop header
LB: loop body
LE: loop exit
PB: predicated region body
PF: predicated region fallthrough
CT: control target
= control target key end

     0   :  { %vm2496_vm0 = vcmask 523264   ;;  %s6379_s1 = inlined_call_operand.vmem [shape: bf16[1728,384], index: 1, kind: input, shape index: {}]   ;;  %s6380_s0 = inlined_call_operand.vmem [shape: bf16[50,1728], index: 0, kind: input, shape index: {}]   ;;  %s6381_s2 = inlined_call_operand.vmem [shape: f32[1,384], index: 2, kind: input, shape index: {}]   ;;  %s6382_s3 = inlined_call_operand.vmem [shape: bf16[50,384], index: 3, kind: output, shape index: {}]  }
   0x1   :  { %v4353_v0 = vld [vmem:[%s6379_s1 + $0x4] ss:$12 sps:$4 sm:$0xff]   ;;  %v4357_v2 = vld [vmem:[%s6379_s1] ss:$12 sps:$4 sm:$0xff]   ;;  %v4359_v4 = vld [vmem:[%s6379_s1 + $0x1c] ss:$12 sps:$4 sm:$0xff]  }
   0x2   :  { %v4355_v1 = vld [vmem:[%s6379_s1 + $0x184] ss:$12 sps:$4 sm:$0xff]   ;;  %2509 = vmatprep.subr.bf16.mxu1 %v4353_v0  ;;  %v4358_v3 = vld [vmem:[%s6379_s1 + $0x180] ss:$12 sps:$4 sm:$0xff]   ;;  %v4361_v5 = vld [vmem:[%s6379_s1 + $0x19c] ss:$12 sps:$4 sm:$0xff]  }
   0x3   :  { %2580 = vmatprep.subr.bf16.mxu0 %v4355_v1  ;;  %2510 = vmatpush1.bf16.msra.mxu1 %v4357_v2  ;;  %v4363_v6 = vld [vmem:[%s6379_s1 + $0x18] ss:$12 sps:$4 sm:$0xff]   ;;  %v4365_v8 = vld [vmem:[%s6379_s1 + $0x34] ss:$12 sps:$4 sm:$0xff]   ;;  %v4369_v10 = vld [vmem:[%s6379_s1 + $0x30] ss:$12 sps:$4 sm:$0xff]  }
   0x4   :  { %2581 = vmatpush1.bf16.msra.mxu0 %v4358_v3  ;;  %2511 = vmatprep.subr.bf16.mxu1 %v4359_v4  ;;  %v4364_v7 = vld [vmem:[%s6379_s1 + $0x198] ss:$12 sps:$4 sm:$0xff]   ;;  %v4367_v9 = vld [vmem:[%s6379_s1 + $0x1b4] ss:$12 sps:$4 sm:$0xff]   ;;  %v4370_v11 = vld [vmem:[%s6379_s1 + $0x1b0] ss:$12 sps:$4 sm:$0xff]  }
   0x5   :  { %2582 = vmatprep.subr.bf16.mxu0 %v4361_v5  ;;  %v4371_v12 = vld [vmem:[%s6379_s1 + $0x4c] ss:$12 sps:$4 sm:$0xff]   ;;  %v4375_v14 = vld [vmem:[%s6379_s1 + $0x48] ss:$12 sps:$4 sm:$0xff]   ;;  %v4377_v16 = vld [vmem:[%s6379_s1 + $0x64] ss:$12 sps:$4 sm:$0xff]  }
   0x6   :  { %v4373_v13 = vld [vmem:[%s6379_s1 + $0x1cc] ss:$12 sps:$4 sm:$0xff]   ;;  %v4376_v15 = vld [vmem:[%s6379_s1 + $0x1c8] ss:$12 sps:$4 sm:$0xff]   ;;  %v4379_v17 = vld [vmem:[%s6379_s1 + $0x1e4] ss:$12 sps:$4 sm:$0xff]  }
   0x7   :  { %2512 = vmatpush1.bf16.msra.mxu1 %v4363_v6  ;;  %v4381_v18 = vld [vmem:[%s6379_s1 + $0x60] ss:$12 sps:$4 sm:$0xff]   ;;  %v4383_v20 = vld [vmem:[%s6379_s1 + $0x7c] ss:$12 sps:$4 sm:$0xff]   ;;  %v4387_v22 = vld [vmem:[%s6379_s1 + $0x78] ss:$12 sps:$4 sm:$0xff]  }
   0x8   :  { %2583 = vmatpush1.bf16.msra.mxu0 %v4364_v7  ;;  %2513 = vmatprep.subr.bf16.mxu1 %v4365_v8  ;;  %v4382_v19 = vld [vmem:[%s6379_s1 + $0x1e0] ss:$12 sps:$4 sm:$0xff]   ;;  %v4385_v21 = vld [vmem:[%s6379_s1 + $0x1fc] ss:$12 sps:$4 sm:$0xff]   ;;  %v4388_v23 = vld [vmem:[%s6379_s1 + $0x1f8] ss:$12 sps:$4 sm:$0xff]  }
   0x9   :  { %2584 = vmatprep.subr.bf16.mxu0 %v4367_v9  ;;  %v4389_v24 = vld [vmem:[%s6379_s1 + $0x94] ss:$12 sps:$4 sm:$0xff]   ;;  %v4393_v26 = vld [vmem:[%s6379_s1 + $0x90] ss:$12 sps:$4 sm:$0xff]   ;;  %v4395_v28 = vld [vmem:[%s6379_s1 + $0xac] ss:$12 sps:$4 sm:$0xff]  }
   0xa   :  { %v4391_v25 = vld [vmem:[%s6379_s1 + $0x214] ss:$12 sps:$4 sm:$0xff]   ;;  %v4394_v27 = vld [vmem:[%s6379_s1 + $0x210] ss:$12 sps:$4 sm:$0xff]   ;;  %v4397_v29 = vld [vmem:[%s6379_s1 + $0x22c] ss:$12 sps:$4 sm:$0xff]  }
   0xb   :  { %2514 = vmatpush1.bf16.msra.mxu1 %v4369_v10  ;;  %v4399_v30 = vld [vmem:[%s6379_s1 + $0xa8] ss:$12 sps:$4 sm:$0xff]   ;;  %v4401_v32 = vld [vmem:[%s6379_s1 + $0xc4] ss:$12 sps:$4 sm:$0xff]   ;;  %v4405_v34 = vld [vmem:[%s6379_s1 + $0xc0] ss:$12 sps:$4 sm:$0xff]  }
   0xc   :  { %2585 = vmatpush1.bf16.msra.mxu0 %v4370_v11  ;;  %2515 = vmatprep.subr.bf16.mxu1 %v4371_v12  ;;  %v4400_v31 = vld [vmem:[%s6379_s1 + $0x228] ss:$12 sps:$4 sm:$0xff]   ;;  %v4403_v33 = vld [vmem:[%s6379_s1 + $0x244] ss:$12 sps:$4 sm:$0xff]   ;;  %v4406_v35 = vld [vmem:[%s6379_s1 + $0x240] ss:$12 sps:$4 sm:$0xff]  }
   0xd   :  { %2586 = vmatprep.subr.bf16.mxu0 %v4373_v13  ;;  %v4407_v36 = vld [vmem:[%s6379_s1 + $0xdc] ss:$12 sps:$4 sm:$0xff]   ;;  %v4411_v38 = vld [vmem:[%s6379_s1 + $0xd8] ss:$12 sps:$4 sm:$0xff]   ;;  %v4413_v40 = vld [vmem:[%s6379_s1 + $0xf4] ss:$12 sps:$4 sm:$0xff]  }
   0xe   :  { %v4409_v37 = vld [vmem:[%s6379_s1 + $0x25c] ss:$12 sps:$4 sm:$0xff]   ;;  %v4412_v39 = vld [vmem:[%s6379_s1 + $0x258] ss:$12 sps:$4 sm:$0xff]   ;;  %v4415_v41 = vld [vmem:[%s6379_s1 + $0x274] ss:$12 sps:$4 sm:$0xff]  }
   0xf   :  { %2516 = vmatpush1.bf16.msra.mxu1 %v4375_v14  ;;  %v4417_v42 = vld [vmem:[%s6379_s1 + $0xf0] ss:$12 sps:$4 sm:$0xff]   ;;  %v4419_v44 = vld [vmem:[%s6379_s1 + $0x10c] ss:$12 sps:$4 sm:$0xff]   ;;  %v4423_v46 = vld [vmem:[%s6379_s1 + $0x108] ss:$12 sps:$4 sm:$0xff]  }
  0x10   :  { %2587 = vmatpush1.bf16.msra.mxu0 %v4376_v15  ;;  %2517 = vmatprep.subr.bf16.mxu1 %v4377_v16  ;;  %v4418_v43 = vld [vmem:[%s6379_s1 + $0x270] ss:$12 sps:$4 sm:$0xff]   ;;  %v4421_v45 = vld [vmem:[%s6379_s1 + $0x28c] ss:$12 sps:$4 sm:$0xff]   ;;  %v4424_v47 = vld [vmem:[%s6379_s1 + $0x288] ss:$12 sps:$4 sm:$0xff]  }
  0x11   :  { %2588 = vmatprep.subr.bf16.mxu0 %v4379_v17  ;;  %v4425_v48 = vld [vmem:[%s6379_s1 + $0x124] ss:$12 sps:$4 sm:$0xff]   ;;  %v4429_v52 = vld [vmem:[%s6379_s1 + $0x120] ss:$12 sps:$4 sm:$0xff]   ;;  %v4431_v54 = vld [vmem:[%s6379_s1 + $0x13c] ss:$12 sps:$4 sm:$0xff]  }
  0x12   :  { %v5040_v49 = vld [vmem:[%s6380_s0 + $0x4] ss:$56 sps:$4 sm:$0xff]   ;;  %v4430_v53 = vld [vmem:[%s6379_s1 + $0x2a0] ss:$12 sps:$4 sm:$0xff]   ;;  %v4447_v0 = vld [vmem:[%s6379_s1 + $0x168] ss:$12 sps:$4 sm:$0xff]  }
  0x13   :  { %2518 = vmatpush1.bf16.msra.mxu1 %v4381_v18  ;;  %v4427_v50 = vld [vmem:[%s6379_s1 + $0x2a4] ss:$12 sps:$4 sm:$0xff]   ;;  %2541 = vmatprep.mubr.bf16.mxu1 %v5040_v49  ;;  %v4433_v55 = vld [vmem:[%s6379_s1 + $0x2bc] ss:$12 sps:$4 sm:$0xff]   ;;  %v4437_v58 = vld [vmem:[%s6379_s1 + $0x154] ss:$12 sps:$4 sm:$0xff]  }
  0x14   :  { %2589 = vmatpush1.bf16.msra.mxu0 %v4382_v19  ;;  %2519 = vmatprep.subr.bf16.mxu1 %v4383_v20  ;;  %v4454_v51 = vld [vmem:[%s6380_s0 + $0xc] ss:$56 sps:$4 sm:$0xff]   ;;  %v4439_v59 = vld [vmem:[%s6379_s1 + $0x2d4] ss:$12 sps:$4 sm:$0xff]   ;;  %v4441_v60 = vld [vmem:[%s6379_s1 + $0x150] ss:$12 sps:$4 sm:$0xff]  }
  0x15   :  { %2590 = vmatprep.subr.bf16.mxu0 %v4385_v21  ;;  %2612 = vmatprep.mubr.bf16.mxu0 %v4454_v51  ;;  %v4435_v56 = vld [vmem:[%s6379_s1 + $0x138] ss:$12 sps:$4 sm:$0xff]   ;;  %v4442_v61 = vld [vmem:[%s6379_s1 + $0x2d0] ss:$12 sps:$4 sm:$0xff]   ;;  %v4448_v1 = vld [vmem:[%s6379_s1 + $0x2e8] ss:$12 sps:$4 sm:$0xff]  }
  0x16   :  { %v4436_v57 = vld [vmem:[%s6379_s1 + $0x2b8] ss:$12 sps:$4 sm:$0xff]   ;;  %v5105_v5 = vld [vmem:[%s6380_s0 + $0x8] ss:$56 sps:$4 sm:$0xff]   ;;  %v5122_v10 = vld [vmem:[%s6380_s0 + $0x74] ss:$56 sps:$4 sm:$0xff]  }
  0x17   :  { %2520 = vmatpush1.bf16.msra.mxu1 %v4387_v22  ;;  %v4443_v62 = vld [vmem:[%s6379_s1 + $0x16c] ss:$12 sps:$4 sm:$0xff]   ;;  %v4457_v2 = vld [vmem:[%s6379_s1 + $0x304] ss:$12 sps:$4 sm:$0xff]   ;;  %v4463_v8 = vld [vmem:[%s6379_s1 + $0x31c] ss:$12 sps:$4 sm:$0xff]  }
  0x18   :  { %2591 = vmatpush1.bf16.msra.mxu0 %v4388_v23  ;;  %2521 = vmatprep.subr.bf16.mxu1 %v4389_v24  ;;  %v4445_v63 = vld [vmem:[%s6379_s1 + $0x2ec] ss:$12 sps:$4 sm:$0xff]   ;;  %v4460_v3 = vld [vmem:[%s6379_s1 + $0x904] ss:$12 sps:$4 sm:$0xff]   ;;  %v4466_v9 = vld [vmem:[%s6379_s1 + $0x91c] ss:$12 sps:$4 sm:$0xff]  }
  0x19   :  { %2592 = vmatprep.subr.bf16.mxu0 %v4391_v25  ;;  %v5100_v4 = vld [vmem:[%s6380_s0] ss:$56 sps:$4 sm:$0xff]   ;;  %v4467_v15 = vld [vmem:[%s6379_s1 + $0x330] ss:$12 sps:$4 sm:$0xff]   ;;  %v4473_v20 = vld [vmem:[%s6379_s1 + $0x348] ss:$12 sps:$4 sm:$0xff]  }
  0x1a   :  { %v4455_v6 = vld [vmem:[%s6379_s1 + $0x300] ss:$12 sps:$4 sm:$0xff]   ;;  %v4461_v11 = vld [vmem:[%s6379_s1 + $0x318] ss:$12 sps:$4 sm:$0xff]   ;;  %v4470_v16 = vld [vmem:[%s6379_s1 + $0x930] ss:$12 sps:$4 sm:$0xff]  }
  0x1b   :  { %2522 = vmatpush1.bf16.msra.mxu1 %v4393_v26  ;;  %v4458_v7 = vld [vmem:[%s6379_s1 + $0x900] ss:$12 sps:$4 sm:$0xff]   ;;  %v4464_v12 = vld [vmem:[%s6379_s1 + $0x918] ss:$12 sps:$4 sm:$0xff]   ;;  %v5148_v17 = vld [vmem:[%s6380_s0 + $0x70] ss:$56 sps:$4 sm:$0xff]  }
  0x1c   :  { %2593 = vmatpush1.bf16.msra.mxu0 %v4394_v27  ;;  %2523 = vmatprep.subr.bf16.mxu1 %v4395_v28  ;;  %v4469_v13 = vld [vmem:[%s6379_s1 + $0x334] ss:$12 sps:$4 sm:$0xff]   ;;  %v4475_v18 = vld [vmem:[%s6379_s1 + $0x34c] ss:$12 sps:$4 sm:$0xff]   ;;  %v5165_v22 = vld [vmem:[%s6380_s0 + $0xe4] ss:$56 sps:$4 sm:$0xff]  }
  0x1d   :  { %2594 = vmatprep.subr.bf16.mxu0 %v4397_v29  ;;  %v4472_v14 = vld [vmem:[%s6379_s1 + $0x934] ss:$12 sps:$4 sm:$0xff]   ;;  %v4478_v19 = vld [vmem:[%s6379_s1 + $0x94c] ss:$12 sps:$4 sm:$0xff]   ;;  %v4481_v24 = vld [vmem:[%s6379_s1 + $0x364] ss:$12 sps:$4 sm:$0xff]  }
  0x1e   :  { %v4476_v21 = vld [vmem:[%s6379_s1 + $0x948] ss:$12 sps:$4 sm:$0xff]   ;;  %v4484_v25 = vld [vmem:[%s6379_s1 + $0x964] ss:$12 sps:$4 sm:$0xff]   ;;  %v4479_v26 = vld [vmem:[%s6379_s1 + $0x360] ss:$12 sps:$4 sm:$0xff]  }
  0x1f   :  { %2524 = vmatpush1.bf16.msra.mxu1 %v4399_v30  ;;  %v5171_v23 = vld [vmem:[%s6380_s0 + $0x7c] ss:$56 sps:$4 sm:$0xff]   ;;  %v5186_v27 = vld [vmem:[%s6380_s0 + $0xe0] ss:$56 sps:$4 sm:$0xff]   ;;  %v4514_v51 = vld [vmem:[%s6379_s1 + $0x9c4] ss:$12 sps:$4 sm:$0xff]  }
  0x20   :  { %2595 = vmatpush1.bf16.msra.mxu0 %v4400_v31  ;;  %2525 = vmatprep.subr.bf16.mxu1 %v4401_v32  ;;  %v5192_v28 = vld [vmem:[%s6380_s0 + $0x78] ss:$56 sps:$4 sm:$0xff]   ;;  %v4482_v30 = vld [vmem:[%s6379_s1 + $0x960] ss:$12 sps:$4 sm:$0xff]   ;;  %v4487_v31 = vld [vmem:[%s6379_s1 + $0x37c] ss:$12 sps:$4 sm:$0xff]  }
  0x21   :  { %2596 = vmatprep.subr.bf16.mxu0 %v4403_v33  ;;  %v57_v29 = vld [vmem:[%s6380_s0 + $0x150] sm:$0x11]  ;;  %v4490_v32 = vld [vmem:[%s6379_s1 + $0x97c] ss:$12 sps:$4 sm:$0xff]   ;;  %v4485_v33 = vld [vmem:[%s6379_s1 + $0x378] ss:$12 sps:$4 sm:$0xff]  }
  0x23   :  { %2526 = vmatpush1.bf16.msra.mxu1 %v4405_v34  ;;  %v4488_v34 = vld [vmem:[%s6379_s1 + $0x978] ss:$12 sps:$4 sm:$0xff]  }
  0x24   :  { %2597 = vmatpush1.bf16.msra.mxu0 %v4406_v35  ;;  %2527 = vmatprep.subr.bf16.mxu1 %v4407_v36  ;;  %v5212_v35 = vcombine.high %v57_v29, %v57_v29  ;;  %v5219_v36 = vld [vmem:[%s6380_s0 + $0xec] ss:$56 sps:$4 sm:$0xff]  }
  0x25   :  { %2598 = vmatprep.subr.bf16.mxu0 %v4409_v37  ;;  %v4496_v37 = vld [vmem:[%s6379_s1 + $0x394] ss:$12 sps:$4 sm:$0xff]  }
  0x27   :  { %2528 = vmatpush1.bf16.msra.mxu1 %v4411_v38  ;;  %v4499_v38 = vld [vmem:[%s6379_s1 + $0x994] ss:$12 sps:$4 sm:$0xff]  }
  0x28   :  { %2599 = vmatpush1.bf16.msra.mxu0 %v4412_v39  ;;  %2529 = vmatprep.subr.bf16.mxu1 %v4413_v40  ;;  %v5232_v39 = vld [vmem:[%s6380_s0 + $0xe8] ss:$56 sps:$4 sm:$0xff]   ;;  %v4494_v40 = vld [vmem:[%s6379_s1 + $0x390] ss:$12 sps:$4 sm:$0xff]  }
  0x29   :  { %2600 = vmatprep.subr.bf16.mxu0 %v4415_v41  ;;  %v5237_v41 = vcombine.low %v57_v29, %v57_v29  ;;  %v4567_v29 = vld [vmem:[%s6379_s1 + $0x110] ss:$12 sps:$4 sm:$0xff]  }
  0x2b   :  { %2530 = vmatpush1.bf16.msra.mxu1 %v4417_v42  ;;  %v4497_v42 = vld [vmem:[%s6379_s1 + $0x990] ss:$12 sps:$4 sm:$0xff]  }
  0x2c   :  { %2601 = vmatpush1.bf16.msra.mxu0 %v4418_v43  ;;  %2531 = vmatprep.subr.bf16.mxu1 %v4419_v44  ;;  %v4502_v43 = vld [vmem:[%s6379_s1 + $0x3ac] ss:$12 sps:$4 sm:$0xff]  }
  0x2d   :  { %2602 = vmatprep.subr.bf16.mxu0 %v4421_v45  ;;  %v4505_v44 = vld [vmem:[%s6379_s1 + $0x9ac] ss:$12 sps:$4 sm:$0xff]   ;;  %v4500_v45 = vld [vmem:[%s6379_s1 + $0x3a8] ss:$12 sps:$4 sm:$0xff]  }
  0x2f   :  { %2532 = vmatpush1.bf16.msra.mxu1 %v4423_v46  ;;  %v4540_v46 = vld [vmem:[%s6380_s0 + $0x34] ss:$56 sps:$4 sm:$0xff]  }
  0x30   :  { %2603 = vmatpush1.bf16.msra.mxu0 %v4424_v47  ;;  %2533 = vmatprep.subr.bf16.mxu1 %v4425_v48  ;;  %v4503_v47 = vld [vmem:[%s6379_s1 + $0x9a8] ss:$12 sps:$4 sm:$0xff]   ;;  %v58_v48 = vld [vmem:[%s6380_s0 + $0x158] sm:$0x11] }
  0x31   :  { %2604 = vmatprep.subr.bf16.mxu0 %v4427_v50  ;;  %v4511_v50 = vld [vmem:[%s6379_s1 + $0x3c4] ss:$12 sps:$4 sm:$0xff]  }
  0x33   :  { %2534 = vmatpush1.bf16.msra.mxu1 %v4429_v52  ;;  %v5268_v52 = vcombine.high %v58_v48, %v58_v48 }
  0x34   :  { %2605 = vmatpush1.bf16.msra.mxu0 %v4430_v53  ;;  %2535 = vmatprep.subr.bf16.mxu1 %v4431_v54  ;;  %v4509_v53 = vld [vmem:[%s6379_s1 + $0x3c0] ss:$12 sps:$4 sm:$0xff]   ;;  %v5274_v54 = vcombine.low %v58_v48, %v58_v48 }
  0x35   :  { %2606 = vmatprep.subr.bf16.mxu0 %v4433_v55  ;;  %v4512_v55 = vld [vmem:[%s6379_s1 + $0x9c0] ss:$12 sps:$4 sm:$0xff]  }
  0x36   :  { %v4584_v48 = vld [vmem:[%s6379_s1 + $0x80] ss:$12 sps:$4 sm:$0xff]  }
  0x37   :  { %2536 = vmatpush1.bf16.msra.mxu1 %v4435_v56  ;;  %v4517_v56 = vld [vmem:[%s6379_s1 + $0x3dc] ss:$12 sps:$4 sm:$0xff]  }
  0x38   :  { %2607 = vmatpush1.bf16.msra.mxu0 %v4436_v57  ;;  %2537 = vmatprep.subr.bf16.mxu1 %v4437_v58  ;;  %v4520_v57 = vld [vmem:[%s6379_s1 + $0x9dc] ss:$12 sps:$4 sm:$0xff]   ;;  %v4515_v58 = vld [vmem:[%s6379_s1 + $0x3d8] ss:$12 sps:$4 sm:$0xff]  }
  0x39   :  { %2608 = vmatprep.subr.bf16.mxu0 %v4439_v59  ;;  %v4518_v59 = vld [vmem:[%s6379_s1 + $0x9d8] ss:$12 sps:$4 sm:$0xff]  }
  0x3b   :  { %2538 = vmatpush1.bf16.msra.mxu1 %v4441_v60  ;;  %v4527_v60 = vld [vmem:[%s6379_s1 + $0x3f4] ss:$12 sps:$4 sm:$0xff]  }
  0x3c   :  { %2609 = vmatpush1.bf16.msra.mxu0 %v4442_v61  ;;  %2539 = vmatprep.subr.bf16.mxu1 %v4443_v62  ;;  %v4530_v61 = vld [vmem:[%s6379_s1 + $0x9f4] ss:$12 sps:$4 sm:$0xff]  }
  0x3d   :  { %2610 = vmatprep.subr.bf16.mxu0 %v4445_v63  ;;  %v5302_v62 = vld [vmem:[%s6380_s0 + $0x14] ss:$56 sps:$4 sm:$0xff]   ;;  %v4525_v63 = vld [vmem:[%s6379_s1 + $0x3f0] ss:$12 sps:$4 sm:$0xff]  }
  0x3f   :  { %2540 = vmatpush1.bf16.msra.mxu1 %v4447_v0  ;;  %v4528_v0 = vld [vmem:[%s6379_s1 + $0x9f0] ss:$12 sps:$4 sm:$0xff]  }
  0x40   :  { %2611 = vmatpush1.bf16.msra.mxu0 %v4448_v1  ;;  %2935 = vmatprep.subr.bf16.mxu1 %v4460_v3  ;;  %v4534_v1 = vld [vmem:[%s6379_s1 + $0x40c] ss:$12 sps:$4 sm:$0xff]   ;;  %v4532_v3 = vld [vmem:[%s6379_s1 + $0x408] ss:$12 sps:$4 sm:$0xff]  }
  0x41   :  { %2651 = vmatprep.subr.bf16.mxu0 %v4457_v2  ;;  %v4537_v2 = vld [vmem:[%s6379_s1 + $0xa0c] ss:$12 sps:$4 sm:$0xff]  }
  0x42   :  { %2542 = vmatmul.mubr.bf16.vlgmr.msra.gmra.mrb[0].mxu1 %v5100_v4 }
  0x43   :  { %2613 = vmatmul.mubr.bf16.vlgmr.msra.gmra.mrb[0].mxu0 %v5105_v5  ;;  %2936 = vmatpush1.bf16.msra.mxu1 %v4458_v7  ;;  %v4545_v7 = vld [vmem:[%s6379_s1 + $0x424] ss:$12 sps:$4 sm:$0xff]  }
  0x44   :  { %2652 = vmatpush1.bf16.msra.mxu0 %v4455_v6  ;;  %2937 = vmatprep.subr.bf16.mxu1 %v4466_v9  ;;  %v4535_v6 = vld [vmem:[%s6379_s1 + $0xa08] ss:$12 sps:$4 sm:$0xff]  }
  0x45   :  { %2653 = vmatprep.subr.bf16.mxu0 %v4463_v8  ;;  %2551 = vmatprep.mubr.bf16.mxu1 %v5122_v10  ;;  %v4546_v8 = vld [vmem:[%s6379_s1 + $0xc8] ss:$12 sps:$4 sm:$0xff]  }
  0x46   :  { %2622 = vmatprep.mubr.bf16.mxu0 %v5171_v23  ;;  %v4538_v9 = vld [vmem:[%s6380_s0 + $0x30] ss:$56 sps:$4 sm:$0xff]  }
  0x47   :  { %2938 = vmatpush1.bf16.msra.mxu1 %v4464_v12  ;;  %v4548_v12 = vld [vmem:[%s6379_s1 + $0x8] ss:$12 sps:$4 sm:$0xff]  }
  0x48   :  { %2654 = vmatpush1.bf16.msra.mxu0 %v4461_v11  ;;  %2939 = vmatprep.subr.bf16.mxu1 %v4472_v14  ;;  %v4543_v11 = vld [vmem:[%s6379_s1 + $0x420] ss:$12 sps:$4 sm:$0xff]  }
  0x49   :  { %2655 = vmatprep.subr.bf16.mxu0 %v4469_v13  ;;  %v4551_v13 = vld [vmem:[%s6379_s1 + $0x43c] ss:$12 sps:$4 sm:$0xff]   ;;  %v4552_v14 = vld [vmem:[%s6379_s1 + $0xe0] ss:$12 sps:$4 sm:$0xff]  }
  0x4a   :  { %2552 = vmatmul.mubr.bf16.gmra.mrb[4].mxu1 %v5148_v17 }
  0x4b   :  { %2940 = vmatpush1.bf16.msra.mxu1 %v4470_v16  ;;  %2561 = vmatprep.mubr.bf16.mxu1 %v5165_v22  ;;  %v4549_v16 = vld [vmem:[%s6379_s1 + $0x438] ss:$12 sps:$4 sm:$0xff]  }
  0x4c   :  { %2656 = vmatpush1.bf16.msra.mxu0 %v4467_v15  ;;  %2941 = vmatprep.subr.bf16.mxu1 %v4478_v19  ;;  %v4554_v15 = vld [vmem:[%s6380_s0 + $0xa4] ss:$56 sps:$4 sm:$0xff]   ;;  %v4559_v19 = vld [vmem:[%s6379_s1 + $0x454] ss:$12 sps:$4 sm:$0xff]  }
  0x4d   :  { %2657 = vmatprep.subr.bf16.mxu0 %v4475_v18  ;;  %2623 = vmatmul.mubr.bf16.gmra.mrb[4].mxu0 %v5192_v28  ;;  %v4553_v18 = vld [vmem:[%s6379_s1 + $0x20] ss:$12 sps:$4 sm:$0xff]  }
  0x4e   :  { %2632 = vmatprep.mubr.bf16.mxu0 %v5219_v36 }
  0x4f   :  { %2942 = vmatpush1.bf16.msra.mxu1 %v4476_v21  ;;  %v4557_v21 = vld [vmem:[%s6379_s1 + $0x450] ss:$12 sps:$4 sm:$0xff]  }
  0x50   :  { %2658 = vmatpush1.bf16.msra.mxu0 %v4473_v20  ;;  %2943 = vmatprep.subr.bf16.mxu1 %v4484_v25  ;;  %v4561_v20 = vld [vmem:[%s6379_s1 + $0xf8] ss:$12 sps:$4 sm:$0xff]  }
  0x51   :  { %2659 = vmatprep.subr.bf16.mxu0 %v4481_v24  ;;  %v4560_v24 = vld [vmem:[%s6380_s0 + $0xa0] ss:$56 sps:$4 sm:$0xff]  }
  0x52   :  { %2562 = vmatmul.mubr.bf16.gmra.mrb[8].mxu1 %v5186_v27  ;;  %v4563_v25 = vld [vmem:[%s6379_s1 + $0x38] ss:$12 sps:$4 sm:$0xff]  }
  0x53   :  { %2944 = vmatpush1.bf16.msra.mxu1 %v4482_v30  ;;  %2571 = vmatprep.mubr.bf16.mxu1 %v5212_v35  ;;  %v4569_v30 = vld [vmem:[%s6380_s0 + $0x114] ss:$56 sps:$4 sm:$0xff]  }
  0x54   :  { %2660 = vmatpush1.bf16.msra.mxu0 %v4479_v26  ;;  %2945 = vmatprep.subr.bf16.mxu1 %v4490_v32  ;;  %v4566_v26 = vld [vmem:[%s6379_s1 + $0x46c] ss:$12 sps:$4 sm:$0xff]   ;;  %v4568_v32 = vld [vmem:[%s6379_s1 + $0x50] ss:$12 sps:$4 sm:$0xff]  }
  0x55   :  { %2661 = vmatprep.subr.bf16.mxu0 %v4487_v31  ;;  %2633 = vmatmul.mubr.bf16.gmra.mrb[8].mxu0 %v5232_v39  ;;  %v4564_v31 = vld [vmem:[%s6379_s1 + $0x468] ss:$12 sps:$4 sm:$0xff]  }
  0x56   :  { %2642 = vmatprep.mubr.bf16.mxu0 %v5268_v52 }
  0x57   :  { %2946 = vmatpush1.bf16.msra.mxu1 %v4488_v34  ;;  %v5390_v34 = vld [vmem:[%s6380_s0 + $0x10] ss:$56 sps:$4 sm:$0xff]  }
  0x58   :  { %2662 = vmatpush1.bf16.msra.mxu0 %v4485_v33  ;;  %2947 = vmatprep.subr.bf16.mxu1 %v4499_v38  ;;  %v4576_v33 = vld [vmem:[%s6379_s1 + $0x484] ss:$12 sps:$4 sm:$0xff]   ;;  %v4574_v38 = vld [vmem:[%s6379_s1 + $0x480] ss:$12 sps:$4 sm:$0xff]  }
  0x59   :  { %2663 = vmatprep.subr.bf16.mxu0 %v4496_v37  ;;  %v4578_v37 = vld [vmem:[%s6379_s1 + $0x128] ss:$12 sps:$4 sm:$0xff]  }
  0x5a   :  { %2572 = vmatmul.mubr.bf16.gmra.mrb[12].mxu1 %v5237_v41 }
  0x5b   :  { %2948 = vmatpush1.bf16.msra.mxu1 %v4497_v42  ;;  %3946 = vmatprep.mubr.msk.bf16.mxu1 %vm2496_vm0, %v4540_v46  ;;  %v4579_v42 = vld [vmem:[%s6379_s1 + $0x68] ss:$12 sps:$4 sm:$0xff]  }
  0x5c   :  { %2664 = vmatpush1.bf16.msra.mxu0 %v4494_v40  ;;  %2949 = vmatprep.subr.bf16.mxu1 %v4505_v44  ;;  %v4577_v40 = vld [vmem:[%s6380_s0 + $0x110] ss:$56 sps:$4 sm:$0xff]  }
  0x5d   :  { %2665 = vmatprep.subr.bf16.mxu0 %v4502_v43  ;;  %2643 = vmatmul.mubr.bf16.gmra.mrb[12].mxu0 %v5274_v54  ;;  %v63_v43 = vld [vmem:[%s6380_s0 + $0x180] sm:$0x11]  ;;  %v4582_v44 = vld [vmem:[%s6379_s1 + $0x49c] ss:$12 sps:$4 sm:$0xff]  }
  0x5e   :  { %2683 = vmatprep.mubr.bf16.mxu0 %v5302_v62  ;;  %v5414_v46 = vcombine.high %v63_v43, %v63_v43 }
  0x5f   :  { %2950 = vmatpush1.bf16.msra.mxu1 %v4503_v47  ;;  %v4580_v47 = vld [vmem:[%s6379_s1 + $0x498] ss:$12 sps:$4 sm:$0xff]  }
  0x60   :  { %2666 = vmatpush1.bf16.msra.mxu0 %v4500_v45  ;;  %2951 = vmatprep.subr.bf16.mxu1 %v4514_v51  ;;  %v4583_v45 = vld [vmem:[%s6379_s1 + $0x140] ss:$12 sps:$4 sm:$0xff]   ;;  %v4590_v51 = vld [vmem:[%s6379_s1 + $0x158] ss:$12 sps:$4 sm:$0xff]  }
  0x61   :  { %2667 = vmatprep.subr.bf16.mxu0 %v4511_v50  ;;  %v4588_v50 = vld [vmem:[%s6379_s1 + $0x4b4] ss:$12 sps:$4 sm:$0xff]  }
  0x63   :  { %2952 = vmatpush1.bf16.msra.mxu1 %v4512_v55  ;;  %v5434_v55 = vcombine.low %v63_v43, %v63_v43  ;;  %v4639_v43 = vld [vmem:[%s6379_s1 + $0x230] ss:$12 sps:$4 sm:$0xff]  }
  0x64   :  { %2668 = vmatpush1.bf16.msra.mxu0 %v4509_v53  ;;  %2953 = vmatprep.subr.bf16.mxu1 %v4520_v57  ;;  %v4586_v53 = vld [vmem:[%s6379_s1 + $0x4b0] ss:$12 sps:$4 sm:$0xff]  }
  0x65   :  { %2669 = vmatprep.subr.bf16.mxu0 %v4517_v56  ;;  %v4591_v56 = vld [vmem:[%s6379_s1 + $0x98] ss:$12 sps:$4 sm:$0xff]  }
  0x66   :  { %v5442_v57 = vld [vmem:[%s6380_s0 + $0x84] ss:$56 sps:$4 sm:$0xff]  }
  0x67   :  { %2954 = vmatpush1.bf16.msra.mxu1 %v4518_v59  ;;  %v4595_v59 = vld [vmem:[%s6379_s1 + $0x170] ss:$12 sps:$4 sm:$0xff]  }
  0x68   :  { %2670 = vmatpush1.bf16.msra.mxu0 %v4515_v58  ;;  %2955 = vmatprep.subr.bf16.mxu1 %v4530_v61  ;;  %v4594_v58 = vld [vmem:[%s6379_s1 + $0x4cc] ss:$12 sps:$4 sm:$0xff]  }
  0x69   :  { %2671 = vmatprep.subr.bf16.mxu0 %v4527_v60  ;;  %v4592_v60 = vld [vmem:[%s6379_s1 + $0x4c8] ss:$12 sps:$4 sm:$0xff]   ;;  %v5458_v61 = vld [vmem:[%s6380_s0 + $0x80] ss:$56 sps:$4 sm:$0xff]  }
  0x6b   :  { %2956 = vmatpush1.bf16.msra.mxu1 %v4528_v0  ;;  %v4599_v0 = vld [vmem:[%s6379_s1 + $0x4e4] ss:$12 sps:$4 sm:$0xff]  }
  0x6c   :  { %2672 = vmatpush1.bf16.msra.mxu0 %v4525_v63  ;;  %2957 = vmatprep.subr.bf16.mxu1 %v4537_v2  ;;  %v4596_v63 = vld [vmem:[%s6379_s1 + $0xb0] ss:$12 sps:$4 sm:$0xff]   ;;  %v4597_v2 = vld [vmem:[%s6379_s1 + $0x4e0] ss:$12 sps:$4 sm:$0xff]  }
  0x6d   :  { %2673 = vmatprep.subr.bf16.mxu0 %v4534_v1  ;;  %v4600_v1 = vld [vmem:[%s6379_s1 + $0x248] ss:$12 sps:$4 sm:$0xff]  }
  0x6f   :  { %2958 = vmatpush1.bf16.msra.mxu1 %v4535_v6  ;;  %v5480_v6 = vld [vmem:[%s6380_s0 + $0xf4] ss:$56 sps:$4 sm:$0xff]  }
  0x70   :  { %2674 = vmatpush1.bf16.msra.mxu0 %v4532_v3  ;;  %3982 = vmatprep.subr.bf16.mxu1 %v4546_v8  ;;  %v4601_v3 = vld [vmem:[%s6379_s1 + $0x188] ss:$12 sps:$4 sm:$0xff]   ;;  %v4602_v8 = vld [vmem:[%s6379_s1 + $0x4f8] ss:$12 sps:$4 sm:$0xff]  }
  0x71   :  { %2675 = vmatprep.subr.bf16.mxu0 %v4545_v7  ;;  %v4605_v7 = vld [vmem:[%s6379_s1 + $0x260] ss:$12 sps:$4 sm:$0xff]  }
  0x72   :  { %2968 = vmatmul.mubr.bf16.vlgmr.msra.gmra.mrb[16].mxu1 %v4538_v9  ;;  %v5496_v9 = vld [vmem:[%s6380_s0 + $0xf0] ss:$56 sps:$4 sm:$0xff]  }
  0x73   :  { %3983 = vmatpush3.bf16.msra.mxu1 %v4548_v12  ;;  %3947 = vmatprep.mubr.msk.bf16.mxu1 %vm2496_vm0, %v4554_v15  ;;  %v4609_v12 = vld [vmem:[%s6379_s1 + $0x514] ss:$12 sps:$4 sm:$0xff]  }
  0x74   :  { %2676 = vmatpush1.bf16.msra.mxu0 %v4543_v11  ;;  %3984 = vmatprep.subr.bf16.mxu1 %v4552_v14  ;;  %v4606_v11 = vld [vmem:[%s6379_s1 + $0x1a0] ss:$12 sps:$4 sm:$0xff]   ;;  %v4611_v14 = vld [vmem:[%s6379_s1 + $0x1b8] ss:$12 sps:$4 sm:$0xff]  }
  0x75   :  { %2677 = vmatprep.subr.bf16.mxu0 %v4551_v13  ;;  %v4607_v13 = vld [vmem:[%s6379_s1 + $0x510] ss:$12 sps:$4 sm:$0xff]   ;;  %v59_v15 = vld [vmem:[%s6380_s0 + $0x160] sm:$0x11] }
  0x77   :  { %3985 = vmatpush3.bf16.msra.mxu1 %v4553_v18  ;;  %v4615_v18 = vld [vmem:[%s6379_s1 + $0x290] ss:$12 sps:$4 sm:$0xff]  }
  0x78   :  { %2678 = vmatpush1.bf16.msra.mxu0 %v4549_v16  ;;  %3986 = vmatprep.subr.bf16.mxu1 %v4561_v20  ;;  %v5521_v16 = vcombine.high %v59_v15, %v59_v15  ;;  %v4612_v20 = vld [vmem:[%s6379_s1 + $0x528] ss:$12 sps:$4 sm:$0xff]  }
  0x79   :  { %2679 = vmatprep.subr.bf16.mxu0 %v4559_v19  ;;  %v5527_v19 = vcombine.low %v59_v15, %v59_v15  ;;  %v4682_v15 = vld [vmem:[%s6379_s1 + $0x398] ss:$12 sps:$4 sm:$0xff]  }
  0x7a   :  { %2978 = vmatmul.mubr.bf16.gmra.mrb[20].mxu1 %v4560_v24  ;;  %v4619_v24 = vld [vmem:[%s6379_s1 + $0x544] ss:$12 sps:$4 sm:$0xff]  }
  0x7b   :  { %3987 = vmatpush3.bf16.msra.mxu1 %v4563_v25  ;;  %3948 = vmatprep.mubr.msk.bf16.mxu1 %vm2496_vm0, %v4569_v30  ;;  %v4617_v25 = vld [vmem:[%s6379_s1 + $0x540] ss:$12 sps:$4 sm:$0xff]  }
  0x7c   :  { %2680 = vmatpush1.bf16.msra.mxu0 %v4557_v21  ;;  %3988 = vmatprep.subr.bf16.mxu1 %v4567_v29  ;;  %v4616_v21 = vld [vmem:[%s6379_s1 + $0x1d0] ss:$12 sps:$4 sm:$0xff]   ;;  %v4625_v30 = vld [vmem:[%s6379_s1 + $0x2c0] ss:$12 sps:$4 sm:$0xff]  }
  0x7d   :  { %2681 = vmatprep.subr.bf16.mxu0 %v4566_v26  ;;  %v4621_v26 = vld [vmem:[%s6379_s1 + $0x1e8] ss:$12 sps:$4 sm:$0xff]  }
  0x7e   :  { %v5553_v29 = vld [vmem:[%s6380_s0 + $0x1c] ss:$56 sps:$4 sm:$0xff]  }
  0x7f   :  { %3989 = vmatpush3.bf16.msra.mxu1 %v4568_v32  ;;  %v4626_v32 = vld [vmem:[%s6379_s1 + $0x200] ss:$12 sps:$4 sm:$0xff]  }
  0x80   :  { %2682 = vmatpush1.bf16.msra.mxu0 %v4564_v31  ;;  %3990 = vmatprep.subr.bf16.mxu1 %v4578_v37  ;;  %v4622_v31 = vld [vmem:[%s6379_s1 + $0x558] ss:$12 sps:$4 sm:$0xff]   ;;  %v4629_v37 = vld [vmem:[%s6379_s1 + $0x570] ss:$12 sps:$4 sm:$0xff]  }
  0x81   :  { %2722 = vmatprep.subr.bf16.mxu0 %v4576_v33  ;;  %v4631_v33 = vld [vmem:[%s6379_s1 + $0x574] ss:$12 sps:$4 sm:$0xff]  }
  0x82   :  { %2988 = vmatmul.mubr.bf16.gmra.mrb[24].mxu1 %v4577_v40  ;;  %v4637_v40 = vld [vmem:[%s6379_s1 + $0x58c] ss:$12 sps:$4 sm:$0xff]  }
  0x83   :  { %2684 = vmatmul.mubr.bf16.vlgmr.msra.gmra.mrb[0].mxu0 %v5390_v34  ;;  %3991 = vmatpush3.bf16.msra.mxu1 %v4579_v42  ;;  %v4635_v42 = vld [vmem:[%s6379_s1 + $0x588] ss:$12 sps:$4 sm:$0xff]  }
  0x84   :  { %2723 = vmatpush1.bf16.msra.mxu0 %v4574_v38  ;;  %3992 = vmatprep.subr.bf16.mxu1 %v4583_v45  ;;  %v4634_v38 = vld [vmem:[%s6379_s1 + $0x218] ss:$12 sps:$4 sm:$0xff]   ;;  %v4645_v45 = vld [vmem:[%s6379_s1 + $0x3c8] ss:$12 sps:$4 sm:$0xff]  }
  0x85   :  { %2724 = vmatprep.subr.bf16.mxu0 %v4582_v44  ;;  %3949 = vmatprep.mubr.msk.bf16.mxu1 %vm2496_vm0, %v5414_v46  ;;  %v4644_v44 = vld [vmem:[%s6379_s1 + $0x5a4] ss:$12 sps:$4 sm:$0xff]  }
  0x86   :  { %2693 = vmatprep.mubr.bf16.mxu0 %v5442_v57 }
  0x87   :  { %3993 = vmatpush3.bf16.msra.mxu1 %v4584_v48  ;;  %v4647_v48 = vld [vmem:[%s6379_s1 + $0x308] ss:$12 sps:$4 sm:$0xff]  }
  0x88   :  { %2725 = vmatpush1.bf16.msra.mxu0 %v4580_v47  ;;  %3994 = vmatprep.subr.bf16.mxu1 %v4590_v51  ;;  %v4642_v47 = vld [vmem:[%s6379_s1 + $0x5a0] ss:$12 sps:$4 sm:$0xff]  }
  0x89   :  { %2726 = vmatprep.subr.bf16.mxu0 %v4588_v50  ;;  %v4650_v50 = vld [vmem:[%s6379_s1 + $0x5bc] ss:$12 sps:$4 sm:$0xff]   ;;  %v4651_v51 = vld [vmem:[%s6379_s1 + $0x3e0] ss:$12 sps:$4 sm:$0xff]  }
  0x8a   :  { %2998 = vmatmul.mubr.bf16.gmra.mrb[28].mxu1 %v5434_v55 }
  0x8b   :  { %3995 = vmatpush3.bf16.msra.mxu1 %v4591_v56  ;;  %3038 = vmatprep.mubr.bf16.mxu1 %v5040_v49  ;;  %v4604_v49 = vld [vmem:[%s6379_s1 + $0x4fc] ss:$12 sps:$4 sm:$0xff]   ;;  %v4652_v56 = vld [vmem:[%s6379_s1 + $0x320] ss:$12 sps:$4 sm:$0xff]  }
  0x8c   :  { %2727 = vmatpush1.bf16.msra.mxu0 %v4586_v53  ;;  %3996 = vmatprep.subr.bf16.mxu1 %v4595_v59  ;;  %v4648_v53 = vld [vmem:[%s6379_s1 + $0x5b8] ss:$12 sps:$4 sm:$0xff]  }
  0x8d   :  { %2728 = vmatprep.subr.bf16.mxu0 %v4594_v58  ;;  %2694 = vmatmul.mubr.bf16.gmra.mrb[4].mxu0 %v5458_v61  ;;  %v4656_v58 = vld [vmem:[%s6379_s1 + $0x5d4] ss:$12 sps:$4 sm:$0xff]   ;;  %v4657_v59 = vld [vmem:[%s6379_s1 + $0x3f8] ss:$12 sps:$4 sm:$0xff]  }
  0x8e   :  { %2703 = vmatprep.mubr.bf16.mxu0 %v5480_v6 }
  0x8f   :  { %3997 = vmatpush3.bf16.msra.mxu1 %v4596_v63  ;;  %v4662_v63 = vld [vmem:[%s6379_s1 + $0x5ec] ss:$12 sps:$4 sm:$0xff]  }
  0x90   :  { %2729 = vmatpush1.bf16.msra.mxu0 %v4592_v60  ;;  %4022 = vmatprep.subr.bf16.mxu1 %v4600_v1  ;;  %v4659_v60 = vld [vmem:[%s6379_s1 + $0x338] ss:$12 sps:$4 sm:$0xff]   ;;  %v4664_v1 = vld [vmem:[%s6379_s1 + $0x350] ss:$12 sps:$4 sm:$0xff]  }
  0x91   :  { %2730 = vmatprep.subr.bf16.mxu0 %v4599_v0  ;;  %v4660_v0 = vld [vmem:[%s6379_s1 + $0x5e8] ss:$12 sps:$4 sm:$0xff]  }
  0x92   :  { %3039 = vmatmul.mubr.bf16.vlgmr.msra.gmra.mrb[32].mxu1 %v5100_v4  ;;  %v4610_v4 = vld [vmem:[%s6379_s1 + $0x278] ss:$12 sps:$4 sm:$0xff]  }
  0x93   :  { %4023 = vmatpush3.bf16.msra.mxu1 %v4601_v3  ;;  %3046 = vmatprep.mubr.bf16.mxu1 %v5122_v10  ;;  %v4614_v10 = vld [vmem:[%s6379_s1 + $0x52c] ss:$12 sps:$4 sm:$0xff]   ;;  %v4671_v3 = vld [vmem:[%s6379_s1 + $0x428] ss:$12 sps:$4 sm:$0xff]  }
  0x94   :  { %2731 = vmatpush1.bf16.msra.mxu0 %v4597_v2  ;;  %4024 = vmatprep.subr.bf16.mxu1 %v4605_v7  ;;  %v4670_v2 = vld [vmem:[%s6379_s1 + $0x604] ss:$12 sps:$4 sm:$0xff]   ;;  %v4672_v7 = vld [vmem:[%s6379_s1 + $0x368] ss:$12 sps:$4 sm:$0xff]  }
  0x95   :  { %2732 = vmatprep.subr.bf16.mxu0 %v4604_v49  ;;  %2704 = vmatmul.mubr.bf16.gmra.mrb[8].mxu0 %v5496_v9  ;;  %v4668_v49 = vld [vmem:[%s6379_s1 + $0x600] ss:$12 sps:$4 sm:$0xff]  }
  0x96   :  { %2713 = vmatprep.mubr.bf16.mxu0 %v5521_v16 }
  0x97   :  { %4025 = vmatpush3.bf16.msra.mxu1 %v4606_v11  ;;  %v5676_v11 = vld [vmem:[%s6380_s0 + $0x8c] ss:$56 sps:$4 sm:$0xff]  }
  0x98   :  { %2733 = vmatpush1.bf16.msra.mxu0 %v4602_v8  ;;  %4026 = vmatprep.subr.bf16.mxu1 %v4610_v4  ;;  %v4675_v8 = vld [vmem:[%s6379_s1 + $0x61c] ss:$12 sps:$4 sm:$0xff]   ;;  %v4677_v4 = vld [vmem:[%s6379_s1 + $0x380] ss:$12 sps:$4 sm:$0xff]  }
  0x99   :  { %2734 = vmatprep.subr.bf16.mxu0 %v4609_v12  ;;  %v4673_v12 = vld [vmem:[%s6379_s1 + $0x618] ss:$12 sps:$4 sm:$0xff]  }
  0x9a   :  { %3047 = vmatmul.mubr.bf16.gmra.mrb[36].mxu1 %v5148_v17  ;;  %v4620_v17 = vld [vmem:[%s6379_s1 + $0x2a8] ss:$12 sps:$4 sm:$0xff]  }
  0x9b   :  { %4027 = vmatpush3.bf16.msra.mxu1 %v4611_v14  ;;  %3054 = vmatprep.mubr.bf16.mxu1 %v5165_v22  ;;  %v4624_v22 = vld [vmem:[%s6379_s1 + $0x55c] ss:$12 sps:$4 sm:$0xff]  }
  0x9c   :  { %2735 = vmatpush1.bf16.msra.mxu0 %v4607_v13  ;;  %4028 = vmatprep.subr.bf16.mxu1 %v4615_v18  ;;  %v4680_v13 = vld [vmem:[%s6379_s1 + $0x634] ss:$12 sps:$4 sm:$0xff]   ;;  %v4678_v14 = vld [vmem:[%s6379_s1 + $0x630] ss:$12 sps:$4 sm:$0xff]  }
  0x9d   :  { %2736 = vmatprep.subr.bf16.mxu0 %v4614_v10  ;;  %2714 = vmatmul.mubr.bf16.gmra.mrb[12].mxu0 %v5527_v19  ;;  %v5703_v10 = vld [vmem:[%s6380_s0 + $0x88] ss:$56 sps:$4 sm:$0xff]   ;;  %v4686_v18 = vld [vmem:[%s6379_s1 + $0x470] ss:$12 sps:$4 sm:$0xff]  }
  0x9e   :  { %2754 = vmatprep.mubr.bf16.mxu0 %v5553_v29 }
  0x9f   :  { %4029 = vmatpush3.bf16.msra.mxu1 %v4616_v21  ;;  %v4683_v21 = vld [vmem:[%s6379_s1 + $0x648] ss:$12 sps:$4 sm:$0xff]  }
  0xa0   :  { %2737 = vmatpush1.bf16.msra.mxu0 %v4612_v20  ;;  %4030 = vmatprep.subr.bf16.mxu1 %v4620_v17  ;;  %v5714_v20 = vld [vmem:[%s6380_s0 + $0xfc] ss:$56 sps:$4 sm:$0xff]   ;;  %v4690_v17 = vld [vmem:[%s6379_s1 + $0x664] ss:$12 sps:$4 sm:$0xff]  }
  0xa1   :  { %2738 = vmatprep.subr.bf16.mxu0 %v4619_v24  ;;  %v4687_v24 = vld [vmem:[%s6379_s1 + $0x3b0] ss:$12 sps:$4 sm:$0xff]  }
  0xa2   :  { %3055 = vmatmul.mubr.bf16.gmra.mrb[40].mxu1 %v5186_v27  ;;  %v4632_v27 = vld [vmem:[%s6379_s1 + $0x2d8] ss:$12 sps:$4 sm:$0xff]  }
  0xa3   :  { %4031 = vmatpush3.bf16.msra.mxu1 %v4621_v26  ;;  %3062 = vmatprep.mubr.bf16.mxu1 %v5212_v35  ;;  %v4638_v35 = vld [vmem:[%s6379_s1 + $0x2f0] ss:$12 sps:$4 sm:$0xff]   ;;  %v4692_v26 = vld [vmem:[%s6379_s1 + $0x488] ss:$12 sps:$4 sm:$0xff]  }
  0xa4   :  { %2739 = vmatpush1.bf16.msra.mxu0 %v4617_v25  ;;  %4032 = vmatprep.subr.bf16.mxu1 %v4625_v30  ;;  %v4688_v25 = vld [vmem:[%s6379_s1 + $0x660] ss:$12 sps:$4 sm:$0xff]  }
  0xa5   :  { %2740 = vmatprep.subr.bf16.mxu0 %v4624_v22  ;;  %v5741_v22 = vld [vmem:[%s6380_s0 + $0xf8] ss:$56 sps:$4 sm:$0xff]   ;;  %v4696_v30 = vld [vmem:[%s6379_s1 + $0x560] ss:$12 sps:$4 sm:$0xff]  }
  0xa7   :  { %4033 = vmatpush3.bf16.msra.mxu1 %v4626_v32  ;;  %v4693_v32 = vld [vmem:[%s6379_s1 + $0x678] ss:$12 sps:$4 sm:$0xff]  }
  0xa8   :  { %2741 = vmatpush1.bf16.msra.mxu0 %v4622_v31  ;;  %4034 = vmatprep.subr.bf16.mxu1 %v4632_v27  ;;  %v60_v31 = vld [vmem:[%s6380_s0 + $0x168] sm:$0x11] }
  0xa9   :  { %2742 = vmatprep.subr.bf16.mxu0 %v4631_v33  ;;  %v5755_v33 = vcombine.high %v60_v31, %v60_v31  ;;  %v4697_v27 = vld [vmem:[%s6379_s1 + $0x4a0] ss:$12 sps:$4 sm:$0xff]  }
  0xaa   :  { %3063 = vmatmul.mubr.bf16.gmra.mrb[44].mxu1 %v5237_v41  ;;  %v4862_v41 = vld [vmem:[%s6380_s0 + $0xc] ss:$56 sps:$4 sm:$0xff]  }
  0xab   :  { %4035 = vmatpush3.bf16.msra.mxu1 %v4634_v38  ;;  %3102 = vmatprep.mubr.bf16.mxu1 %v4862_v41  ;;  %v4701_v38 = vld [vmem:[%s6379_s1 + $0x578] ss:$12 sps:$4 sm:$0xff]  }
  0xac   :  { %2743 = vmatpush1.bf16.msra.mxu0 %v4629_v37  ;;  %4036 = vmatprep.subr.bf16.mxu1 %v4638_v35  ;;  %v4700_v37 = vld [vmem:[%s6379_s1 + $0x694] ss:$12 sps:$4 sm:$0xff]   ;;  %v4702_v35 = vld [vmem:[%s6379_s1 + $0x4b8] ss:$12 sps:$4 sm:$0xff]  }
  0xad   :  { %2744 = vmatprep.subr.bf16.mxu0 %v4637_v40  ;;  %v5773_v40 = vcombine.low %v60_v31, %v60_v31  ;;  %v4710_v41 = vld [vmem:[%s6379_s1 + $0x6c4] ss:$12 sps:$4 sm:$0xff]  }
  0xae   :  { %v4794_v31 = vld [vmem:[%s6380_s0 + $0x90] ss:$56 sps:$4 sm:$0xff]  }
  0xaf   :  { %4037 = vmatpush3.bf16.msra.mxu1 %v4639_v43  ;;  %v4703_v43 = vld [vmem:[%s6379_s1 + $0x6a8] ss:$12 sps:$4 sm:$0xff]  }
  0xb0   :  { %2745 = vmatpush1.bf16.msra.mxu0 %v4635_v42  ;;  %4062 = vmatprep.subr.bf16.mxu1 %v4645_v45  ;;  %v4706_v42 = vld [vmem:[%s6379_s1 + $0x590] ss:$12 sps:$4 sm:$0xff]  }
  0xb1   :  { %2746 = vmatprep.subr.bf16.mxu0 %v4644_v44  ;;  %v5790_v44 = vld [vmem:[%s6380_s0 + $0x24] ss:$56 sps:$4 sm:$0xff]  }
  0xb2   :  { %3103 = vmatmul.mubr.bf16.vlgmr.msra.gmra.mrb[48].mxu1 %v5105_v5  ;;  %v4654_v5 = vld [vmem:[%s6379_s1 + $0x5d0] ss:$12 sps:$4 sm:$0xff]  }
  0xb3   :  { %4063 = vmatpush3.bf16.msra.mxu1 %v4647_v48  ;;  %3110 = vmatprep.mubr.bf16.mxu1 %v5171_v23  ;;  %v4663_v23 = vld [vmem:[%s6379_s1 + $0x410] ss:$12 sps:$4 sm:$0xff]   ;;  %v4712_v48 = vld [vmem:[%s6379_s1 + $0x4e8] ss:$12 sps:$4 sm:$0xff]  }
  0xb4   :  { %2747 = vmatpush1.bf16.msra.mxu0 %v4642_v47  ;;  %4064 = vmatprep.subr.bf16.mxu1 %v4651_v51  ;;  %v4707_v45 = vld [vmem:[%s6379_s1 + $0x4d0] ss:$12 sps:$4 sm:$0xff]   ;;  %v4711_v47 = vld [vmem:[%s6379_s1 + $0x5a8] ss:$12 sps:$4 sm:$0xff]   ;;  %v4713_v51 = vld [vmem:[%s6379_s1 + $0x6d8] ss:$12 sps:$4 sm:$0xff]  }
  0xb5   :  { %2748 = vmatprep.subr.bf16.mxu0 %v4650_v50  ;;  %v4715_v50 = vld [vmem:[%s6379_s1 + $0x6dc] ss:$12 sps:$4 sm:$0xff]  }
  0xb7   :  { %4065 = vmatpush3.bf16.msra.mxu1 %v4652_v56  ;;  %v4722_v56 = vld [vmem:[%s6379_s1 + $0x6f4] ss:$12 sps:$4 sm:$0xff]  }
  0xb8   :  { %2749 = vmatpush1.bf16.msra.mxu0 %v4648_v53  ;;  %4066 = vmatprep.subr.bf16.mxu1 %v4657_v59  ;;  %v4717_v53 = vld [vmem:[%s6379_s1 + $0x500] ss:$12 sps:$4 sm:$0xff]   ;;  %v4725_v59 = vld [vmem:[%s6379_s1 + $0x518] ss:$12 sps:$4 sm:$0xff]  }
  0xb9   :  { %2750 = vmatprep.subr.bf16.mxu0 %v4656_v58  ;;  %v4720_v58 = vld [vmem:[%s6379_s1 + $0x6f0] ss:$12 sps:$4 sm:$0xff]  }
  0xba   :  { %3111 = vmatmul.mubr.bf16.gmra.mrb[52].mxu1 %v5192_v28  ;;  %v5655_v28 = vld [vmem:[%s6380_s0 + $0x18] ss:$56 sps:$4 sm:$0xff]  }
  0xbb   :  { %4067 = vmatpush3.bf16.msra.mxu1 %v4659_v60  ;;  %3118 = vmatprep.mubr.bf16.mxu1 %v5219_v36  ;;  %v4676_v36 = vld [vmem:[%s6379_s1 + $0x440] ss:$12 sps:$4 sm:$0xff]   ;;  %v4726_v60 = vld [vmem:[%s6379_s1 + $0x708] ss:$12 sps:$4 sm:$0xff]  }
  0xbc   :  { %2751 = vmatpush1.bf16.msra.mxu0 %v4654_v5  ;;  %4068 = vmatprep.subr.bf16.mxu1 %v4663_v23  ;;  %v4728_v5 = vld [vmem:[%s6379_s1 + $0x70c] ss:$12 sps:$4 sm:$0xff]   ;;  %v4735_v23 = vld [vmem:[%s6379_s1 + $0x724] ss:$12 sps:$4 sm:$0xff]  }
  0xbd   :  { %2752 = vmatprep.subr.bf16.mxu0 %v4662_v63  ;;  %v4730_v63 = vld [vmem:[%s6379_s1 + $0x530] ss:$12 sps:$4 sm:$0xff]  }
  0xbf   :  { %4069 = vmatpush3.bf16.msra.mxu1 %v4664_v1  ;;  %v4738_v1 = vld [vmem:[%s6379_s1 + $0x608] ss:$12 sps:$4 sm:$0xff]  }
  0xc0   :  { %2753 = vmatpush1.bf16.msra.mxu0 %v4660_v0  ;;  %4070 = vmatprep.subr.bf16.mxu1 %v4671_v3  ;;  %v4733_v0 = vld [vmem:[%s6379_s1 + $0x720] ss:$12 sps:$4 sm:$0xff]   ;;  %v4739_v3 = vld [vmem:[%s6379_s1 + $0x738] ss:$12 sps:$4 sm:$0xff]  }
  0xc1   :  { %2793 = vmatprep.subr.bf16.mxu0 %v4670_v2  ;;  %v4741_v2 = vld [vmem:[%s6379_s1 + $0x73c] ss:$12 sps:$4 sm:$0xff]  }
  0xc2   :  { %3119 = vmatmul.mubr.bf16.gmra.mrb[56].mxu1 %v5232_v39  ;;  %v4681_v39 = vld [vmem:[%s6379_s1 + $0x458] ss:$12 sps:$4 sm:$0xff]  }
  0xc3   :  { %2755 = vmatmul.mubr.bf16.vlgmr.msra.gmra.mrb[0].mxu0 %v5655_v28  ;;  %4071 = vmatpush3.bf16.msra.mxu1 %v4672_v7  ;;  %v4747_v7 = vld [vmem:[%s6379_s1 + $0x754] ss:$12 sps:$4 sm:$0xff]  }
  0xc4   :  { %2794 = vmatpush1.bf16.msra.mxu0 %v4668_v49  ;;  %4072 = vmatprep.subr.bf16.mxu1 %v4676_v36  ;;  %v4743_v49 = vld [vmem:[%s6379_s1 + $0x620] ss:$12 sps:$4 sm:$0xff]   ;;  %v4750_v36 = vld [vmem:[%s6379_s1 + $0x638] ss:$12 sps:$4 sm:$0xff]  }
  0xc5   :  { %2795 = vmatprep.subr.bf16.mxu0 %v4675_v8  ;;  %3126 = vmatprep.mubr.bf16.mxu1 %v5268_v52  ;;  %v4685_v52 = vld [vmem:[%s6379_s1 + $0x64c] ss:$12 sps:$4 sm:$0xff]   ;;  %v4745_v8 = vld [vmem:[%s6379_s1 + $0x750] ss:$12 sps:$4 sm:$0xff]  }
  0xc6   :  { %2764 = vmatprep.mubr.bf16.mxu0 %v5676_v11 }
  0xc7   :  { %4073 = vmatpush3.bf16.msra.mxu1 %v4677_v4  ;;  %v4751_v4 = vld [vmem:[%s6379_s1 + $0x768] ss:$12 sps:$4 sm:$0xff]  }
  0xc8   :  { %2796 = vmatpush1.bf16.msra.mxu0 %v4673_v12  ;;  %4074 = vmatprep.subr.bf16.mxu1 %v4681_v39  ;;  %v4753_v12 = vld [vmem:[%s6379_s1 + $0x76c] ss:$12 sps:$4 sm:$0xff]   ;;  %v4761_v39 = vld [vmem:[%s6379_s1 + $0x784] ss:$12 sps:$4 sm:$0xff]  }
  0xc9   :  { %2797 = vmatprep.subr.bf16.mxu0 %v4680_v13  ;;  %v4755_v13 = vld [vmem:[%s6379_s1 + $0x650] ss:$12 sps:$4 sm:$0xff]  }
  0xca   :  { %3127 = vmatmul.mubr.bf16.gmra.mrb[60].mxu1 %v5274_v54  ;;  %v4691_v54 = vld [vmem:[%s6379_s1 + $0x548] ss:$12 sps:$4 sm:$0xff]  }
  0xcb   :  { %2765 = vmatmul.mubr.bf16.gmra.mrb[4].mxu0 %v5703_v10  ;;  %4075 = vmatpush3.bf16.msra.mxu1 %v4682_v15  ;;  %v4756_v15 = vld [vmem:[%s6380_s0 + $0x20] ss:$56 sps:$4 sm:$0xff]  }
  0xcc   :  { %2798 = vmatpush1.bf16.msra.mxu0 %v4678_v14  ;;  %4076 = vmatprep.subr.bf16.mxu1 %v4686_v18  ;;  %v4762_v14 = vld [vmem:[%s6379_s1 + $0x728] ss:$12 sps:$4 sm:$0xff]  }
  0xcd   :  { %2799 = vmatprep.subr.bf16.mxu0 %v4685_v52  ;;  %3166 = vmatprep.mubr.bf16.mxu1 %v5302_v62  ;;  %v4695_v62 = vld [vmem:[%s6379_s1 + $0x67c] ss:$12 sps:$4 sm:$0xff]  }
  0xce   :  { %2774 = vmatprep.mubr.bf16.mxu0 %v5714_v20  ;;  %v4763_v52 = vld [vmem:[%s6379_s1 + $0x668] ss:$12 sps:$4 sm:$0xff]  }
  0xcf   :  { %4077 = vmatpush3.bf16.msra.mxu1 %v4687_v24  ;;  %v4766_v18 = vld [vmem:[%s6379_s1 + $0x79c] ss:$12 sps:$4 sm:$0xff]   ;;  %v4768_v24 = vld [vmem:[%s6379_s1 + $0x680] ss:$12 sps:$4 sm:$0xff]  }
  0xd0   :  { %2800 = vmatpush1.bf16.msra.mxu0 %v4683_v21  ;;  %4102 = vmatprep.subr.bf16.mxu1 %v4691_v54  ;;  %v4764_v21 = vld [vmem:[%s6379_s1 + $0x798] ss:$12 sps:$4 sm:$0xff]   ;;  %v4789_v54 = vld [vmem:[%s6380_s0 + $0x94] ss:$56 sps:$4 sm:$0xff]  }
  0xd1   :  { %2801 = vmatprep.subr.bf16.mxu0 %v4690_v17  ;;  %v4771_v17 = vld [vmem:[%s6379_s1 + $0x7b4] ss:$12 sps:$4 sm:$0xff]  }
  0xd2   :  { %3167 = vmatmul.mubr.bf16.vlgmr.msra.gmra.mrb[64].mxu1 %v5390_v34  ;;  %v4698_v34 = vld [vmem:[%s6379_s1 + $0x690] ss:$12 sps:$4 sm:$0xff]  }
  0xd3   :  { %2775 = vmatmul.mubr.bf16.gmra.mrb[8].mxu0 %v5741_v22  ;;  %4103 = vmatpush3.bf16.msra.mxu1 %v4692_v26  ;;  %v4769_v26 = vld [vmem:[%s6379_s1 + $0x7b0] ss:$12 sps:$4 sm:$0xff]  }
  0xd4   :  { %2802 = vmatpush1.bf16.msra.mxu0 %v4688_v25  ;;  %4104 = vmatprep.subr.bf16.mxu1 %v4696_v30  ;;  %v4772_v25 = vld [vmem:[%s6379_s1 + $0x758] ss:$12 sps:$4 sm:$0xff]   ;;  %v4777_v30 = vld [vmem:[%s6379_s1 + $0x770] ss:$12 sps:$4 sm:$0xff]  }
  0xd5   :  { %2803 = vmatprep.subr.bf16.mxu0 %v4695_v62  ;;  %3174 = vmatprep.mubr.bf16.mxu1 %v5442_v57  ;;  %v4705_v57 = vld [vmem:[%s6379_s1 + $0x6ac] ss:$12 sps:$4 sm:$0xff]  }
  0xd6   :  { %2784 = vmatprep.mubr.bf16.mxu0 %v5755_v33  ;;  %v4776_v62 = vld [vmem:[%s6379_s1 + $0x7cc] ss:$12 sps:$4 sm:$0xff]  }
  0xd7   :  { %4105 = vmatpush3.bf16.msra.mxu1 %v4697_v27  ;;  %v4802_v27 = vld [vmem:[%s6380_s0 + $0x104] ss:$56 sps:$4 sm:$0xff]  }
  0xd8   :  { %2804 = vmatpush1.bf16.msra.mxu0 %v4693_v32  ;;  %4106 = vmatprep.subr.bf16.mxu1 %v4701_v38  ;;  %v4774_v32 = vld [vmem:[%s6379_s1 + $0x7c8] ss:$12 sps:$4 sm:$0xff]  }
  0xd9   :  { %2805 = vmatprep.subr.bf16.mxu0 %v4700_v37  ;;  %v4781_v37 = vld [vmem:[%s6379_s1 + $0x7e4] ss:$12 sps:$4 sm:$0xff]   ;;  %v4782_v38 = vld [vmem:[%s6379_s1 + $0x848] ss:$12 sps:$4 sm:$0xff]  }
  0xda   :  { %3175 = vmatmul.mubr.bf16.gmra.mrb[68].mxu1 %v5458_v61  ;;  %v4708_v61 = vld [vmem:[%s6379_s1 + $0x6c0] ss:$12 sps:$4 sm:$0xff]  }
  0xdb   :  { %2785 = vmatmul.mubr.bf16.gmra.mrb[12].mxu0 %v5773_v40  ;;  %4107 = vmatpush3.bf16.msra.mxu1 %v4702_v35  ;;  %v4786_v35 = vld [vmem:[%s6379_s1 + $0x7fc] ss:$12 sps:$4 sm:$0xff]  }
  0xdc   :  { %2806 = vmatpush1.bf16.msra.mxu0 %v4698_v34  ;;  %4108 = vmatprep.subr.bf16.mxu1 %v4706_v42  ;;  %v4779_v34 = vld [vmem:[%s6379_s1 + $0x7e0] ss:$12 sps:$4 sm:$0xff]  }
  0xdd   :  { %2807 = vmatprep.subr.bf16.mxu0 %v4705_v57  ;;  %3182 = vmatprep.mubr.bf16.mxu1 %v5480_v6  ;;  %v4716_v6 = vld [vmem:[%s6379_s1 + $0x5c0] ss:$12 sps:$4 sm:$0xff]  }
  0xde   :  { %2825 = vmatprep.mubr.bf16.mxu0 %v5790_v44  ;;  %v4787_v57 = vld [vmem:[%s6379_s1 + $0x860] ss:$12 sps:$4 sm:$0xff]  }
  0xdf   :  { %4109 = vmatpush3.bf16.msra.mxu1 %v4707_v45  ;;  %v4807_v42 = vld [vmem:[%s6380_s0 + $0x100] ss:$56 sps:$4 sm:$0xff]  }
  0xe0   :  { %2808 = vmatpush1.bf16.msra.mxu0 %v4703_v43  ;;  %4110 = vmatprep.subr.bf16.mxu1 %v4711_v47  ;;  %v61_v43 = vld [vmem:[%s6380_s0 + $0x170] sm:$0x11]  ;;  %v4788_v45 = vld [vmem:[%s6379_s1 + $0x7a0] ss:$12 sps:$4 sm:$0xff]  }
  0xe1   :  { %2809 = vmatprep.subr.bf16.mxu0 %v4710_v41  ;;  %v4793_v41 = vld [vmem:[%s6379_s1 + $0x814] ss:$12 sps:$4 sm:$0xff]   ;;  %v3617_v47 = vcombine.high %v61_v43, %v61_v43 }
  0xe2   :  { %3183 = vmatmul.mubr.bf16.gmra.mrb[72].mxu1 %v5496_v9  ;;  %v4723_v9 = vld [vmem:[%s6379_s1 + $0x5d8] ss:$12 sps:$4 sm:$0xff]  }
  0xe3   :  { %4111 = vmatpush3.bf16.msra.mxu1 %v4712_v48  ;;  %3190 = vmatprep.mubr.bf16.mxu1 %v5521_v16  ;;  %v4729_v16 = vld [vmem:[%s6379_s1 + $0x5f0] ss:$12 sps:$4 sm:$0xff]  }
  0xe4   :  { %2810 = vmatpush1.bf16.msra.mxu0 %v4708_v61  ;;  %4112 = vmatprep.subr.bf16.mxu1 %v4716_v6  ;;  %v4795_v61 = vld [vmem:[%s6379_s1 + $0x878] ss:$12 sps:$4 sm:$0xff]  }
  0xe5   :  { %2811 = vmatprep.subr.bf16.mxu0 %v4715_v50  ;;  %v4791_v50 = vld [vmem:[%s6379_s1 + $0x810] ss:$12 sps:$4 sm:$0xff]   ;;  %v4796_v6 = vld [vmem:[%s6379_s1 + $0x7b8] ss:$12 sps:$4 sm:$0xff]  }
  0xe7   :  { %4113 = vmatpush3.bf16.msra.mxu1 %v4717_v53 }
  0xe8   :  { %2812 = vmatpush1.bf16.msra.mxu0 %v4713_v51  ;;  %4114 = vmatprep.subr.bf16.mxu1 %v4723_v9 }
  0xe9   :  { %2813 = vmatprep.subr.bf16.mxu0 %v4722_v56  ;;  %v4799_v56 = vld [vmem:[%s6379_s1 + $0x82c] ss:$12 sps:$4 sm:$0xff]  }
  0xea   :  { %3191 = vmatmul.mubr.bf16.gmra.mrb[76].mxu1 %v5527_v19  ;;  %v4736_v19 = vld [vmem:[%s6379_s1 + $0x6c8] ss:$12 sps:$4 sm:$0xff]  }
  0xeb   :  { %4115 = vmatpush3.bf16.msra.mxu1 %v4725_v59  ;;  %3230 = vmatprep.mubr.bf16.mxu1 %v5553_v29  ;;  %v4742_v29 = vld [vmem:[%s6379_s1 + $0x6e0] ss:$12 sps:$4 sm:$0xff]   ;;  %v3616_v59 = vcombine.low %v61_v43, %v61_v43  ;;  %v4848_v43 = vld [vmem:[%s6379_s1 + $0x950] ss:$12 sps:$4 sm:$0xff]  }
  0xec   :  { %2814 = vmatpush1.bf16.msra.mxu0 %v4720_v58  ;;  %4116 = vmatprep.subr.bf16.mxu1 %v4729_v16  ;;  %v4800_v58 = vld [vmem:[%s6379_s1 + $0x890] ss:$12 sps:$4 sm:$0xff]  }
  0xed   :  { %2815 = vmatprep.subr.bf16.mxu0 %v4728_v5  ;;  %v4797_v5 = vld [vmem:[%s6379_s1 + $0x828] ss:$12 sps:$4 sm:$0xff]   ;;  %v4801_v16 = vld [vmem:[%s6379_s1 + $0x7d0] ss:$12 sps:$4 sm:$0xff]  }
  0xef   :  { %4117 = vmatpush3.bf16.msra.mxu1 %v4730_v63  ;;  %v4806_v63 = vld [vmem:[%s6379_s1 + $0x844] ss:$12 sps:$4 sm:$0xff]  }
  0xf0   :  { %2816 = vmatpush1.bf16.msra.mxu0 %v4726_v60  ;;  %4142 = vmatprep.subr.bf16.mxu1 %v4736_v19  ;;  %v4829_v60 = vld [vmem:[%s6380_s0 + $0x2c] ss:$56 sps:$4 sm:$0xff]  }
  0xf1   :  { %2817 = vmatprep.subr.bf16.mxu0 %v4735_v23  ;;  %v4808_v23 = vld [vmem:[%s6379_s1 + $0x8a8] ss:$12 sps:$4 sm:$0xff]  }
  0xf2   :  { %3231 = vmatmul.mubr.bf16.vlgmr.msra.gmra.mrb[80].mxu1 %v5655_v28  ;;  %v4748_v28 = vld [vmem:[%s6379_s1 + $0x6f8] ss:$12 sps:$4 sm:$0xff]  }
  0xf3   :  { %4143 = vmatpush3.bf16.msra.mxu1 %v4738_v1  ;;  %3238 = vmatprep.mubr.bf16.mxu1 %v5676_v11  ;;  %v4754_v11 = vld [vmem:[%s6379_s1 + $0x710] ss:$12 sps:$4 sm:$0xff]   ;;  %v4804_v1 = vld [vmem:[%s6379_s1 + $0x840] ss:$12 sps:$4 sm:$0xff]  }
  0xf4   :  { %2818 = vmatpush1.bf16.msra.mxu0 %v4733_v0  ;;  %4144 = vmatprep.subr.bf16.mxu1 %v4742_v29 }
  0xf5   :  { %2819 = vmatprep.subr.bf16.mxu0 %v4741_v2  ;;  %v4809_v2 = vld [vmem:[%s6379_s1 + $0x7e8] ss:$12 sps:$4 sm:$0xff]  }
  0xf7   :  { %4145 = vmatpush3.bf16.msra.mxu1 %v4743_v49  ;;  %v4813_v49 = vld [vmem:[%s6379_s1 + $0x8c0] ss:$12 sps:$4 sm:$0xff]  }
  0xf8   :  { %2820 = vmatpush1.bf16.msra.mxu0 %v4739_v3  ;;  %4146 = vmatprep.subr.bf16.mxu1 %v4748_v28  ;;  %v4812_v3 = vld [vmem:[%s6379_s1 + $0x85c] ss:$12 sps:$4 sm:$0xff]   ;;  %v4810_v28 = vld [vmem:[%s6379_s1 + $0x858] ss:$12 sps:$4 sm:$0xff]  }
  0xf9   :  { %2821 = vmatprep.subr.bf16.mxu0 %v4747_v7 }
  0xfa   :  { %3239 = vmatmul.mubr.bf16.gmra.mrb[84].mxu1 %v5703_v10  ;;  %v4759_v10 = vld [vmem:[%s6379_s1 + $0x780] ss:$12 sps:$4 sm:$0xff]  }
  0xfb   :  { %4147 = vmatpush3.bf16.msra.mxu1 %v4750_v36  ;;  %3246 = vmatprep.mubr.bf16.mxu1 %v5714_v20  ;;  %v4767_v20 = vld [vmem:[%s6379_s1 + $0x740] ss:$12 sps:$4 sm:$0xff]  }
  0xfc   :  { %2822 = vmatpush1.bf16.msra.mxu0 %v4745_v8  ;;  %4148 = vmatprep.subr.bf16.mxu1 %v4754_v11  ;;  %v4814_v8 = vld [vmem:[%s6379_s1 + $0x800] ss:$12 sps:$4 sm:$0xff]  }
  0xfd   :  { %2823 = vmatprep.subr.bf16.mxu0 %v4753_v12  ;;  %v4818_v36 = vld [vmem:[%s6379_s1 + $0x874] ss:$12 sps:$4 sm:$0xff]   ;;  %v4820_v12 = vld [vmem:[%s6379_s1 + $0x8d8] ss:$12 sps:$4 sm:$0xff]  }
  0xff   :  { %4149 = vmatpush3.bf16.msra.mxu1 %v4755_v13  ;;  %v4816_v13 = vld [vmem:[%s6379_s1 + $0x870] ss:$12 sps:$4 sm:$0xff]  }
 0x100   :  { %2824 = vmatpush1.bf16.msra.mxu0 %v4751_v4  ;;  %4150 = vmatprep.subr.bf16.mxu1 %v4762_v14 }
 0x101   :  { %2864 = vmatprep.subr.bf16.mxu0 %v4761_v39  ;;  %v4821_v39 = vld [vmem:[%s6379_s1 + $0x818] ss:$12 sps:$4 sm:$0xff]  }
 0x102   :  { %3247 = vmatmul.mubr.bf16.gmra.mrb[88].mxu1 %v5741_v22  ;;  %v4773_v22 = vld [vmem:[%s6379_s1 + $0x698] ss:$12 sps:$4 sm:$0xff]  }
 0x103   :  { %2826 = vmatmul.mubr.bf16.vlgmr.msra.gmra.mrb[0].mxu0 %v4756_v15  ;;  %4151 = vmatpush3.bf16.msra.mxu1 %v4763_v52 }
 0x104   :  { %2865 = vmatpush1.bf16.msra.mxu0 %v4759_v10  ;;  %4152 = vmatprep.subr.bf16.mxu1 %v4767_v20  ;;  %v4825_v10 = vld [vmem:[%s6379_s1 + $0x8f0] ss:$12 sps:$4 sm:$0xff]  }
 0x105   :  { %2866 = vmatprep.subr.bf16.mxu0 %v4766_v18  ;;  %3254 = vmatprep.mubr.bf16.mxu1 %v5755_v33  ;;  %v4778_v33 = vld [vmem:[%s6379_s1 + $0x6b0] ss:$12 sps:$4 sm:$0xff]   ;;  %v4822_v18 = vld [vmem:[%s6379_s1 + $0x888] ss:$12 sps:$4 sm:$0xff]  }
 0x106   :  { %2835 = vmatprep.mubr.bf16.mxu0 %v4789_v54  ;;  %v4826_v20 = vld [vmem:[%s6379_s1 + $0x830] ss:$12 sps:$4 sm:$0xff]  }
 0x107   :  { %4153 = vmatpush3.bf16.msra.mxu1 %v4768_v24 }
 0x108   :  { %2867 = vmatpush1.bf16.msra.mxu0 %v4764_v21  ;;  %4154 = vmatprep.subr.bf16.mxu1 %v4772_v25  ;;  %v4832_v21 = vld [vmem:[%s6379_s1 + $0x8a4] ss:$12 sps:$4 sm:$0xff]   ;;  %v4830_v25 = vld [vmem:[%s6379_s1 + $0x8a0] ss:$12 sps:$4 sm:$0xff]  }
 0x109   :  { %2868 = vmatprep.subr.bf16.mxu0 %v4771_v17  ;;  %v4827_v17 = vld [vmem:[%s6380_s0 + $0x28] ss:$56 sps:$4 sm:$0xff]  }
 0x10a   :  { %3255 = vmatmul.mubr.bf16.gmra.mrb[92].mxu1 %v5773_v40  ;;  %v4783_v40 = vld [vmem:[%s6379_s1 + $0x788] ss:$12 sps:$4 sm:$0xff]  }
 0x10b   :  { %2836 = vmatmul.mubr.bf16.gmra.mrb[4].mxu0 %v4794_v31  ;;  %4155 = vmatpush3.bf16.msra.mxu1 %v4773_v22 }
 0x10c   :  { %2869 = vmatpush1.bf16.msra.mxu0 %v4769_v26  ;;  %4156 = vmatprep.subr.bf16.mxu1 %v4777_v30  ;;  %v4833_v26 = vld [vmem:[%s6379_s1 + $0x908] ss:$12 sps:$4 sm:$0xff]  }
 0x10d   :  { %2870 = vmatprep.subr.bf16.mxu0 %v4776_v62  ;;  %3294 = vmatprep.mubr.bf16.mxu1 %v5790_v44  ;;  %v4784_v44 = vld [vmem:[%s6379_s1 + $0x7f8] ss:$12 sps:$4 sm:$0xff]   ;;  %v4869_v62 = vmov 0   ;;  %v4836_v30 = vld [vmem:[%s6379_s1 + $0x8bc] ss:$12 sps:$4 sm:$0xff]  }
 0x10e   :  { %2845 = vmatprep.mubr.bf16.mxu0 %v4802_v27 }
 0x10f   :  { %4157 = vmatpush3.bf16.msra.mxu1 %v4778_v33  ;;  %v4834_v33 = vld [vmem:[%s6379_s1 + $0x8b8] ss:$12 sps:$4 sm:$0xff]  }
 0x110   :  { %2871 = vmatpush1.bf16.msra.mxu0 %v4774_v32  ;;  %4182 = vmatprep.subr.bf16.mxu1 %v4782_v38  ;;  %v4838_v32 = vld [vmem:[%s6380_s0 + $0x9c] ss:$56 sps:$4 sm:$0xff]   ;;  %v4843_v38 = vld [vmem:[%s6380_s0 + $0x98] ss:$56 sps:$4 sm:$0xff]  }
 0x111   :  { %2872 = vmatprep.subr.bf16.mxu0 %v4781_v37  ;;  %v4842_v37 = vld [vmem:[%s6379_s1 + $0x8d4] ss:$12 sps:$4 sm:$0xff]  }
 0x112   :  { %3295 = vmatmul.mubr.bf16.vlgmr.msra.gmra.mrb[96].mxu1 %v4756_v15  ;;  %v4824_v15 = vld [vmem:[%s6379_s1 + $0x88c] ss:$12 sps:$4 sm:$0xff]  }
 0x113   :  { %2846 = vmatmul.mubr.bf16.gmra.mrb[8].mxu0 %v4807_v42  ;;  %4183 = vmatpush3.bf16.msra.mxu1 %v4783_v40  ;;  %v4844_v40 = vld [vmem:[%s6379_s1 + $0x938] ss:$12 sps:$4 sm:$0xff]  }
 0x114   :  { %2873 = vmatpush1.bf16.msra.mxu0 %v4779_v34  ;;  %4184 = vmatprep.subr.bf16.mxu1 %v4787_v57  ;;  %v4840_v34 = vld [vmem:[%s6379_s1 + $0x8d0] ss:$12 sps:$4 sm:$0xff]   ;;  %v4849_v57 = vld [vmem:[%s6380_s0 + $0x10c] ss:$56 sps:$4 sm:$0xff]  }
 0x115   :  { %2874 = vmatprep.subr.bf16.mxu0 %v4786_v35  ;;  %v6003_v48 = vpop.f32.mrb[0].mxu1  ;;  %3302 = vmatprep.mubr.bf16.mxu1 %v4789_v54  ;;  %v4847_v35 = vld [vmem:[%s6379_s1 + $0x8ec] ss:$12 sps:$4 sm:$0xff]  }
 0x116   :  { %2855 = vmatprep.mubr.bf16.mxu0 %v3617_v47  ;;  %v6011_v51 = vpop.f32.mrb[1].mxu1 }
 0x117   :  { %v6013_v53 = vpop.f32.mrb[2].mxu1  ;;  %4185 = vmatpush3.bf16.msra.mxu1 %v4788_v45  ;;  %v62_v45 = vld [vmem:[%s6380_s0 + $0x178] sm:$0x11] }
 0x118   :  { %2875 = vmatpush1.bf16.msra.mxu0 %v4784_v44  ;;  %v6018_v9 = vpop.f32.mrb[3].mxu1  ;;  %4186 = vmatprep.subr.bf16.mxu1 %v4795_v61  ;;  %v4851_v44 = vld [vmem:[%s6380_s0 + $0x108] ss:$56 sps:$4 sm:$0xff]  }
 0x119   :  { %2876 = vmatprep.subr.bf16.mxu0 %v4793_v41  ;;  %v4852_v41 = vld [vmem:[%s6379_s1 + $0x968] ss:$12 sps:$4 sm:$0xff]   ;;  %v4853_v61 = vld [vmem:[%s6379_s1 + $0x980] ss:$12 sps:$4 sm:$0xff]  }
 0x11a   :  { %3303 = vmatmul.mubr.bf16.gmra.mrb[100].mxu1 %v4794_v31 }
 0x11b   :  { %2856 = vmatmul.mubr.bf16.gmra.mrb[12].mxu0 %v3616_v59  ;;  %4187 = vmatpush3.bf16.msra.mxu1 %v4796_v6 }
 0x11c   :  { %2877 = vmatpush1.bf16.msra.mxu0 %v4791_v50  ;;  %4188 = vmatprep.subr.bf16.mxu1 %v4800_v58 }
 0x11d   :  { %2878 = vmatprep.subr.bf16.mxu0 %v4799_v56  ;;  %3310 = vmatprep.mubr.bf16.mxu1 %v4802_v27  ;;  %v6038_v19 = vpop.f32.mrb[4].mxu1  ;;  %v4837_v27 = vld [vmem:[%s6379_s1 + $0x920] ss:$12 sps:$4 sm:$0xff]   ;;  %v3618_v56 = vcombine.low %v62_v45, %v62_v45 }
 0x11e   :  { %2896 = vmatprep.mubr.bf16.mxu0 %v4829_v60  ;;  %v6040_v0 = vpop.f32.mrb[5].mxu1 }
 0x11f   :  { %4189 = vmatpush3.bf16.msra.mxu1 %v4801_v16  ;;  %v6048_v29 = vpop.f32.mrb[6].mxu1  ;;  %v4857_v16 = vld [vmem:[%s6379_s1 + $0x9b0] ss:$12 sps:$4 sm:$0xff]  }
 0x120   :  { %2879 = vmatpush1.bf16.msra.mxu0 %v4797_v5  ;;  %4190 = vmatprep.subr.bf16.mxu1 %v4808_v23  ;;  %v6056_v7 = vpop.f32.mrb[7].mxu1 }
 0x121   :  { %2880 = vmatprep.subr.bf16.mxu0 %v4806_v63  ;;  %v4863_v63 = vld [vmem:[%s6380_s0 + $0xa4] ss:$56 sps:$4 sm:$0xff]  }
 0x122   :  { %3311 = vmatmul.mubr.bf16.gmra.mrb[104].mxu1 %v4807_v42  ;;  %v4845_v42 = vld [vmem:[%s6379_s1 + $0x8e8] ss:$12 sps:$4 sm:$0xff]  }
 0x123   :  { %4191 = vmatpush3.bf16.msra.mxu1 %v4809_v2  ;;  %3318 = vmatprep.mubr.bf16.mxu1 %v3617_v47  ;;  %v3619_v47 = vcombine.high %v62_v45, %v62_v45  ;;  %v4858_v2 = vld [vmem:[%s6379_s1 + $0x9c8] ss:$12 sps:$4 sm:$0xff]  }
 0x124   :  { %2881 = vmatpush1.bf16.msra.mxu0 %v4804_v1  ;;  %4192 = vmatprep.subr.bf16.mxu1 %v4813_v49  ;;  %v4859_v49 = vld [vmem:[%s6379_s1 + $0x9e0] ss:$12 sps:$4 sm:$0xff]  }
 0x125   :  { %2882 = vmatprep.subr.bf16.mxu0 %v4812_v3  ;;  %v6070_v11 = vpop.f32.mrb[8].mxu1 }
 0x126   :  { %v6072_v4 = vpop.f32.mrb[9].mxu1 }
 0x127   :  { %4193 = vmatpush3.bf16.msra.mxu1 %v4814_v8  ;;  %v6080_v14 = vpop.f32.mrb[10].mxu1 }
 0x128   :  { %2883 = vmatpush1.bf16.msra.mxu0 %v4810_v28  ;;  %4194 = vmatprep.subr.bf16.mxu1 %v4820_v12  ;;  %v6088_v52 = vpop.f32.mrb[11].mxu1  ;;  %v4860_v12 = vld [vmem:[%s6379_s1 + $0x9f8] ss:$12 sps:$4 sm:$0xff]  }
 0x129   :  { %2884 = vmatprep.subr.bf16.mxu0 %v4818_v36 }
 0x12a   :  { %3319 = vmatmul.mubr.bf16.gmra.mrb[108].mxu1 %v3616_v59  ;;  %v4856_v59 = vld [vmem:[%s6379_s1 + $0x998] ss:$12 sps:$4 sm:$0xff]  }
 0x12b   :  { %4195 = vmatpush3.bf16.msra.mxu1 %v4821_v39  ;;  %3358 = vmatprep.mubr.bf16.mxu1 %v4829_v60  ;;  %v4861_v39 = vld [vmem:[%s6379_s1 + $0xa10] ss:$12 sps:$4 sm:$0xff]  }
 0x12c   :  { %2885 = vmatpush1.bf16.msra.mxu0 %v4816_v13  ;;  %4196 = vmatprep.subr.bf16.mxu1 %v4825_v10  ;;  %v4864_v10 = vld [vmem:[%s6380_s0 + $0x34] ss:$56 sps:$4 sm:$0xff]  }
 0x12d   :  { %2886 = vmatprep.subr.bf16.mxu0 %v4824_v15  ;;  %v6099_v24 = vpop.f32.mrb[12].mxu1 }
 0x12e   :  { %v6104_v54 = vpop.f32.mrb[13].mxu1 }
 0x12f   :  { %4197 = vmatpush3.bf16.msra.mxu1 %v4826_v20  ;;  %v2577_v22 = vpop.f32.mrb[14].mxu1 }
 0x130   :  { %2887 = vmatpush1.bf16.msra.mxu0 %v4822_v18  ;;  %4222 = vmatprep.subr.bf16.mxu1 %v4869_v62  ;;  %v2578_v31 = vpop.f32.mrb[15].mxu1 }
 0x131   :  { %2888 = vmatprep.subr.bf16.mxu0 %v4832_v21 }
 0x132   :  { %3359 = vmatmul.mubr.bf16.vlgmr.msra.gmra.mrb[112].mxu1 %v4827_v17 }
 0x133   :  { %4234 = vmatpush1.bf16.msra.mxu1 %v4833_v26  ;;  %3366 = vmatprep.mubr.bf16.mxu1 %v4838_v32 }
 0x134   :  { %2889 = vmatpush1.bf16.msra.mxu0 %v4830_v25  ;;  %4223 = vmatprep.subr.bf16.mxu1 %v4869_v62  ;;  %v4866_v25 = vld [vmem:[%s6380_s0 + $0x114] ss:$56 sps:$4 sm:$0xff]  }
 0x135   :  { %2890 = vmatprep.subr.bf16.mxu0 %v4836_v30 }
 0x137   :  { %4235 = vmatpush1.bf16.msra.mxu1 %v4837_v27 }
 0x138   :  { %2891 = vmatpush1.bf16.msra.mxu0 %v4834_v33  ;;  %4224 = vmatprep.subr.bf16.mxu1 %v4869_v62 }
 0x139   :  { %2892 = vmatprep.subr.bf16.mxu0 %v4842_v37 }
 0x13a   :  { %3367 = vmatmul.mubr.bf16.gmra.mrb[116].mxu1 %v4843_v38 }
 0x13b   :  { %4236 = vmatpush1.bf16.msra.mxu1 %v4844_v40  ;;  %3374 = vmatprep.mubr.bf16.mxu1 %v4849_v57 }
 0x13c   :  { %2893 = vmatpush1.bf16.msra.mxu0 %v4840_v34  ;;  %4225 = vmatprep.subr.bf16.mxu1 %v4869_v62 }
 0x13d   :  { %2894 = vmatprep.subr.bf16.mxu0 %v4847_v35 }
 0x13f   :  { %4237 = vmatpush1.bf16.msra.mxu1 %v4848_v43 }
 0x140   :  { %2895 = vmatpush1.bf16.msra.mxu0 %v4845_v42  ;;  %4226 = vmatprep.subr.bf16.mxu1 %v4869_v62  ;;  %v4868_v42 = vld [vmem:[%s6380_s0 + $0x30] ss:$56 sps:$4 sm:$0xff]  }
 0x141   :  { %3390 = vmatprep.subr.bf16.mxu0 %v4869_v62 }
 0x142   :  { %3375 = vmatmul.mubr.bf16.gmra.mrb[120].mxu1 %v4851_v44 }
 0x143   :  { %2897 = vmatmul.mubr.bf16.vlgmr.msra.gmra.mrb[0].mxu0 %v4827_v17  ;;  %4238 = vmatpush1.bf16.msra.mxu1 %v4852_v41  ;;  %v4865_v17 = vld [vmem:[%s6380_s0 + $0xa0] ss:$56 sps:$4 sm:$0xff]  }
 0x144   :  { %3391 = vmatpush1.bf16.msra.mxu0 %v4833_v26  ;;  %4227 = vmatprep.subr.bf16.mxu1 %v4869_v62 }
 0x145   :  { %3392 = vmatprep.subr.bf16.mxu0 %v4869_v62  ;;  %v6168_v50 = vpop.f32.mrb[16].mxu1  ;;  %2906 = vmatprep.mubr.bf16.mxu0 %v4838_v32 }
 0x146   :  { %3382 = vmatprep.mubr.bf16.mxu1 %v3619_v47  ;;  %v6170_v6 = vpop.f32.mrb[17].mxu1 }
 0x147   :  { %v6172_v58 = vpop.f32.mrb[18].mxu1  ;;  %4239 = vmatpush1.bf16.msra.mxu1 %v4853_v61 }
 0x148   :  { %3393 = vmatpush1.bf16.msra.mxu0 %v4837_v27  ;;  %v6177_v5 = vpop.f32.mrb[19].mxu1  ;;  %4228 = vmatprep.subr.bf16.mxu1 %v4869_v62  ;;  %v4867_v27 = vld [vmem:[%s6380_s0 + $0x110] ss:$56 sps:$4 sm:$0xff]  }
 0x149   :  { %3394 = vmatprep.subr.bf16.mxu0 %v4869_v62 }
 0x14a   :  { %3383 = vmatmul.mubr.bf16.gmra.mrb[124].mxu1 %v3618_v56 }
 0x14b   :  { %2907 = vmatmul.mubr.bf16.gmra.mrb[4].mxu0 %v4843_v38  ;;  %4240 = vmatpush1.bf16.msra.mxu1 %v4856_v59 }
 0x14c   :  { %3395 = vmatpush1.bf16.msra.mxu0 %v4844_v40  ;;  %4229 = vmatprep.subr.bf16.mxu1 %v4869_v62 }
 0x14d   :  { %3396 = vmatprep.subr.bf16.mxu0 %v4869_v62  ;;  %v6186_v60 = vpop.f32.mrb[20].mxu1  ;;  %2916 = vmatprep.mubr.bf16.mxu0 %v4849_v57 }
 0x14e   :  { %3951 = vmatprep.mubr.msk.bf16.mxu1 %vm2496_vm0, %v4863_v63  ;;  %v6192_v23 = vpop.f32.mrb[21].mxu1 }
 0x14f   :  { %v6194_v1 = vpop.f32.mrb[22].mxu1  ;;  %4241 = vmatpush1.bf16.msra.mxu1 %v4857_v16 }
 0x150   :  { %3397 = vmatpush1.bf16.msra.mxu0 %v4848_v43  ;;  %v6199_v3 = vpop.f32.mrb[23].mxu1  ;;  %4230 = vmatprep.subr.bf16.mxu1 %v4869_v62 }
 0x151   :  { %3398 = vmatprep.subr.bf16.mxu0 %v4869_v62 }
 0x153   :  { %2917 = vmatmul.mubr.bf16.gmra.mrb[8].mxu0 %v4851_v44  ;;  %4242 = vmatpush1.bf16.msra.mxu1 %v4858_v2 }
 0x154   :  { %3399 = vmatpush1.bf16.msra.mxu0 %v4852_v41  ;;  %4231 = vmatprep.subr.bf16.mxu1 %v4869_v62 }
 0x155   :  { %3400 = vmatprep.subr.bf16.mxu0 %v4869_v62  ;;  %v6208_v28 = vpop.f32.mrb[24].mxu1  ;;  %2926 = vmatprep.mubr.bf16.mxu0 %v3619_v47 }
 0x156   :  { %v6210_v8 = vpop.f32.mrb[25].mxu1 }
 0x157   :  { %v6212_v36 = vpop.f32.mrb[26].mxu1  ;;  %4243 = vmatpush1.bf16.msra.mxu1 %v4859_v49 }
 0x158   :  { %3401 = vmatpush1.bf16.msra.mxu0 %v4853_v61  ;;  %v6217_v13 = vpop.f32.mrb[27].mxu1  ;;  %4232 = vmatprep.subr.bf16.mxu1 %v4869_v62 }
 0x159   :  { %3402 = vmatprep.subr.bf16.mxu0 %v4869_v62 }
 0x15b   :  { %2927 = vmatmul.mubr.bf16.gmra.mrb[12].mxu0 %v3618_v56  ;;  %4244 = vmatpush1.bf16.msra.mxu1 %v4860_v12 }
 0x15c   :  { %3403 = vmatpush1.bf16.msra.mxu0 %v4856_v59  ;;  %4233 = vmatprep.subr.bf16.mxu1 %v4869_v62 }
 0x15d   :  { %3404 = vmatprep.subr.bf16.mxu0 %v4869_v62  ;;  %v6226_v15 = vpop.f32.mrb[28].mxu1  ;;  %3950 = vmatprep.mubr.msk.bf16.mxu0 %vm2496_vm0, %v4864_v10 }
 0x15e   :  { %v6232_v18 = vpop.f32.mrb[29].mxu1 }
 0x15f   :  { %v3003_v20 = vpop.f32.mrb[30].mxu1  ;;  %4245 = vmatpush1.bf16.msra.mxu1 %v4861_v39 }
 0x160   :  { %3405 = vmatpush1.bf16.msra.mxu0 %v4857_v16  ;;  %v3004_v21 = vpop.f32.mrb[31].mxu1 }
 0x161   :  { %3406 = vmatprep.subr.bf16.mxu0 %v4869_v62 }
 0x162   :  { %3431 = vmatmul.mubr.bf16.vlgmr.msra.gmra.mrb[128].mxu1 %v4865_v17 }
 0x163   :  { %3952 = vmatprep.mubr.msk.bf16.mxu1 %vm2496_vm0, %v4866_v25 }
 0x164   :  { %3407 = vmatpush1.bf16.msra.mxu0 %v4858_v2 }
 0x165   :  { %3408 = vmatprep.subr.bf16.mxu0 %v4869_v62  ;;  %v3998_v26 = vpop.f32.mrb[32].mxu1 }
 0x166   :  { %v3999_v22 = vpop.f32.mrb[33].mxu1 }
 0x167   :  { %v4000_v30 = vadd.f32 %v3999_v22, %v3998_v26  ;;  %v4001_v31 = vpop.f32.mrb[34].mxu1 }
 0x168   :  { %3409 = vmatpush1.bf16.msra.mxu0 %v4859_v49  ;;  %v4002_v32 = vpop.f32.mrb[35].mxu1 }
 0x169   :  { %3410 = vmatprep.subr.bf16.mxu0 %v4869_v62  ;;  %v4003_v33 = vadd.f32 %v4002_v32, %v4001_v31 }
 0x16a   :  { %3439 = vmatmul.mubr.bf16.gmra.mrb[132].mxu1 %v4867_v27 }
 0x16b   :  { %3953 = vmatprep.mubr.msk.bf16.mxu1 %vm2496_vm0, %v5414_v46 }
 0x16c   :  { %3411 = vmatpush1.bf16.msra.mxu0 %v4860_v12 }
 0x16d   :  { %3412 = vmatprep.subr.bf16.mxu0 %v4869_v62  ;;  %v4004_v37 = vpop.f32.mrb[36].mxu1  ;;  %v498_v62 = vlaneseq }
 0x16e   :  { %v4005_v38 = vpop.f32.mrb[37].mxu1 }
 0x16f   :  { %v4006_v34 = vadd.f32 %v4005_v38, %v4004_v37  ;;  %v4007_v40 = vpop.f32.mrb[38].mxu1  ;;  %v6254_v61 = vshrl.u32 %v498_v62, 7 }
 0x170   :  { %3413 = vmatpush1.bf16.msra.mxu0 %v4861_v39  ;;  %v4008_v35 = vpop.f32.mrb[39].mxu1 }
 0x171   :  { %v4009_v57 = vadd.f32 %v4008_v35, %v4007_v40  ;;  %v508_v16 = vsub.s32 2, %v6254_v61 }
 0x172   :  { %3447 = vmatmul.mubr.bf16.gmra.mrb[136].mxu1 %v5434_v55  ;;  %v6260_v55 = vld [vmem:[%s6381_s2] sm:$0x7] }
 0x173   :  { %3423 = vmatmul.mubr.bf16.vlgmr.msra.gmra.mrb[16].mxu0 %v4868_v42  ;;  %v509_v12 = vrot.slane %v6260_v55, %v508_v16 }
 0x175   :  { %v4010_v43 = vpop.f32.mrb[40].mxu1  ;;  %v3041_v20 = vadd.f32 %v4000_v30, %v509_v12  ;;  %v3044_v26 = vadd.f32 %v4003_v33, %v509_v12  ;;  %v3049_v38 = vadd.f32 %v4006_v34, %v509_v12 }
 0x176   :  { %v4011_v44 = vpop.f32.mrb[41].mxu1 }
 0x177   :  { %v4012_v45 = vadd.f32 %v4011_v44, %v4010_v43  ;;  %v4013_v46 = vpop.f32.mrb[42].mxu1  ;;  %v3052_v43 = vadd.f32 %v4009_v57, %v509_v12 }
 0x178   :  { %v4014_v41 = vpop.f32.mrb[43].mxu1 }
 0x179   :  { %v4015_v47 = vadd.f32 %v4014_v41, %v4013_v46  ;;  %v3057_v30 = vadd.f32 %v4012_v45, %v509_v12 }
 0x17b   :  { %v3060_v33 = vadd.f32 %v4015_v47, %v509_v12 }
 0x17d   :  { %v4016_v56 = vpop.f32.mrb[44].mxu1 }
 0x17e   :  { %v4017_v59 = vpop.f32.mrb[45].mxu1 }
 0x17f   :  { %v4018_v63 = vadd.f32 %v4017_v59, %v4016_v56  ;;  %v4019_v2 = vpop.f32.mrb[46].mxu1 }
 0x180   :  { %v4020_v49 = vpop.f32.mrb[47].mxu1 }
 0x181   :  { %v3065_v34 = vadd.f32 %v4018_v63, %v509_v12 }
 0x185   :  { %v4038_v39 = vpop.f32.mrb[48].mxu1 }
 0x186   :  { %v4039_v10 = vpop.f32.mrb[49].mxu1 }
 0x187   :  { %v4040_v21 = vadd.f32 %v4039_v10, %v4038_v39  ;;  %v4041_v17 = vpop.f32.mrb[50].mxu1 }
 0x188   :  { %v4042_v25 = vpop.f32.mrb[51].mxu1 }
 0x189   :  { %v3105_v22 = vadd.f32 %v4040_v21, %v3041_v20  ;;  %v4043_v31 = vadd.f32 %v4042_v25, %v4041_v17 }
 0x18b   :  { %v3108_v32 = vadd.f32 %v4043_v31, %v3044_v26 }
 0x18d   :  { %v4044_v27 = vpop.f32.mrb[52].mxu1 }
 0x18e   :  { %v4045_v37 = vpop.f32.mrb[53].mxu1 }
 0x18f   :  { %v4046_v40 = vadd.f32 %v4045_v37, %v4044_v27  ;;  %v4047_v35 = vpop.f32.mrb[54].mxu1 }
 0x190   :  { %v4048_v42 = vpop.f32.mrb[55].mxu1 }
 0x191   :  { %v3113_v44 = vadd.f32 %v4046_v40, %v3049_v38  ;;  %v4049_v46 = vadd.f32 %v4048_v42, %v4047_v35 }
 0x193   :  { %v3116_v41 = vadd.f32 %v4049_v46, %v3052_v43 }
 0x195   :  { %v4050_v62 = vpop.f32.mrb[56].mxu1 }
 0x196   :  { %v4051_v56 = vpop.f32.mrb[57].mxu1 }
 0x197   :  { %v4052_v59 = vadd.f32 %v4051_v56, %v4050_v62  ;;  %v4053_v16 = vpop.f32.mrb[58].mxu1 }
 0x198   :  { %v4054_v2 = vpop.f32.mrb[59].mxu1 }
 0x199   :  { %v3121_v49 = vadd.f32 %v4052_v59, %v3057_v30  ;;  %v4055_v39 = vadd.f32 %v4054_v2, %v4053_v16 }
 0x19b   :  { %v3124_v10 = vadd.f32 %v4055_v39, %v3060_v33 }
 0x19d   :  { %v4056_v20 = vpop.f32.mrb[60].mxu1 }
 0x19e   :  { %v4057_v21 = vpop.f32.mrb[61].mxu1 }
 0x19f   :  { %v4058_v17 = vadd.f32 %v4057_v21, %v4056_v20  ;;  %v4059_v25 = vpop.f32.mrb[62].mxu1 }
 0x1a0   :  { %v4060_v26 = vpop.f32.mrb[63].mxu1 }
 0x1a1   :  { %v3129_v57 = vadd.f32 %v4058_v17, %v3065_v34 }
 0x1a5   :  { %v4078_v31 = vpop.f32.mrb[64].mxu1 }
 0x1a6   :  { %v4079_v27 = vpop.f32.mrb[65].mxu1 }
 0x1a7   :  { %v4080_v37 = vadd.f32 %v4079_v27, %v4078_v31  ;;  %v4081_v38 = vpop.f32.mrb[66].mxu1 }
 0x1a8   :  { %v4082_v40 = vpop.f32.mrb[67].mxu1 }
 0x1a9   :  { %v3169_v45 = vadd.f32 %v4080_v37, %v3105_v22  ;;  %v4083_v35 = vadd.f32 %v4082_v40, %v4081_v38 }
 0x1ab   :  { %v3172_v42 = vadd.f32 %v4083_v35, %v3108_v32 }
 0x1ad   :  { %v4084_v43 = vpop.f32.mrb[68].mxu1 }
 0x1ae   :  { %v4085_v47 = vpop.f32.mrb[69].mxu1 }
 0x1af   :  { %v4086_v46 = vadd.f32 %v4085_v47, %v4084_v43  ;;  %v4087_v62 = vpop.f32.mrb[70].mxu1 }
 0x1b0   :  { %v4088_v56 = vpop.f32.mrb[71].mxu1 }
 0x1b1   :  { %v3177_v30 = vadd.f32 %v4086_v46, %v3113_v44  ;;  %v4089_v59 = vadd.f32 %v4088_v56, %v4087_v62 }
 0x1b3   :  { %v3180_v63 = vadd.f32 %v4089_v59, %v3116_v41 }
 0x1b5   :  { %v4090_v12 = vpop.f32.mrb[72].mxu1 }
 0x1b6   :  { %v4091_v16 = vpop.f32.mrb[73].mxu1 }
 0x1b7   :  { %v4092_v2 = vadd.f32 %v4091_v16, %v4090_v12  ;;  %v4093_v33 = vpop.f32.mrb[74].mxu1 }
 0x1b8   :  { %v4094_v39 = vpop.f32.mrb[75].mxu1 }
 0x1b9   :  { %v3185_v20 = vadd.f32 %v4092_v2, %v3121_v49  ;;  %v4095_v21 = vadd.f32 %v4094_v39, %v4093_v33 }
 0x1bb   :  { %v3188_v34 = vadd.f32 %v4095_v21, %v3124_v10 }
 0x1bd   :  { %v4096_v17 = vpop.f32.mrb[76].mxu1 }
 0x1be   :  { %v4097_v22 = vpop.f32.mrb[77].mxu1 }
 0x1bf   :  { %v4098_v25 = vadd.f32 %v4097_v22, %v4096_v17  ;;  %v4099_v32 = vpop.f32.mrb[78].mxu1 }
 0x1c0   :  { %v4100_v26 = vpop.f32.mrb[79].mxu1 }
 0x1c1   :  { %v3193_v31 = vadd.f32 %v4098_v25, %v3129_v57 }
 0x1c5   :  { %v4118_v27 = vpop.f32.mrb[80].mxu1 }
 0x1c6   :  { %v4119_v37 = vpop.f32.mrb[81].mxu1 }
 0x1c7   :  { %v4120_v38 = vadd.f32 %v4119_v37, %v4118_v27  ;;  %v4121_v44 = vpop.f32.mrb[82].mxu1 }
 0x1c8   :  { %v4122_v40 = vpop.f32.mrb[83].mxu1 }
 0x1c9   :  { %v3233_v41 = vadd.f32 %v4120_v38, %v3169_v45  ;;  %v4123_v35 = vadd.f32 %v4122_v40, %v4121_v44 }
 0x1cb   :  { %v3236_v43 = vadd.f32 %v4123_v35, %v3172_v42 }
 0x1cd   :  { %v4124_v47 = vpop.f32.mrb[84].mxu1 }
 0x1ce   :  { %v4125_v46 = vpop.f32.mrb[85].mxu1 }
 0x1cf   :  { %v4126_v62 = vadd.f32 %v4125_v46, %v4124_v47  ;;  %v4127_v49 = vpop.f32.mrb[86].mxu1 }
 0x1d0   :  { %v4128_v56 = vpop.f32.mrb[87].mxu1 }
 0x1d1   :  { %v3241_v10 = vadd.f32 %v4126_v62, %v3177_v30  ;;  %v4129_v59 = vadd.f32 %v4128_v56, %v4127_v49 }
 0x1d3   :  { %v3244_v12 = vadd.f32 %v4129_v59, %v3180_v63 }
 0x1d5   :  { %v4130_v16 = vpop.f32.mrb[88].mxu1 }
 0x1d6   :  { %v4131_v2 = vpop.f32.mrb[89].mxu1 }
 0x1d7   :  { %v4132_v33 = vadd.f32 %v4131_v2, %v4130_v16  ;;  %v4133_v57 = vpop.f32.mrb[90].mxu1 }
 0x1d8   :  { %v4134_v39 = vpop.f32.mrb[91].mxu1 }
 0x1d9   :  { %v3249_v21 = vadd.f32 %v4132_v33, %v3185_v20  ;;  %v4135_v17 = vadd.f32 %v4134_v39, %v4133_v57 }
 0x1db   :  { %v3252_v22 = vadd.f32 %v4135_v17, %v3188_v34 }
 0x1dd   :  { %v4136_v25 = vpop.f32.mrb[92].mxu1 }
 0x1de   :  { %v4137_v45 = vpop.f32.mrb[93].mxu1 }
 0x1df   :  { %v4138_v32 = vadd.f32 %v4137_v45, %v4136_v25  ;;  %v4139_v42 = vpop.f32.mrb[94].mxu1 }
 0x1e0   :  { %v4140_v26 = vpop.f32.mrb[95].mxu1 }
 0x1e1   :  { %v3257_v27 = vadd.f32 %v4138_v32, %v3193_v31 }
 0x1e5   :  { %v4158_v37 = vpop.f32.mrb[96].mxu1 }
 0x1e6   :  { %v4159_v38 = vpop.f32.mrb[97].mxu1 }
 0x1e7   :  { %v4160_v44 = vadd.f32 %v4159_v38, %v4158_v37  ;;  %v4161_v30 = vpop.f32.mrb[98].mxu1 }
 0x1e8   :  { %v4162_v40 = vpop.f32.mrb[99].mxu1 }
 0x1e9   :  { %v3297_v63 = vadd.f32 %v4160_v44, %v3233_v41  ;;  %v4163_v35 = vadd.f32 %v4162_v40, %v4161_v30 }
 0x1eb   :  { %v3300_v47 = vadd.f32 %v4163_v35, %v3236_v43 }
 0x1ed   :  { %v4164_v46 = vpop.f32.mrb[100].mxu1 }
 0x1ee   :  { %v4165_v62 = vpop.f32.mrb[101].mxu1 }
 0x1ef   :  { %v4166_v49 = vadd.f32 %v4165_v62, %v4164_v46  ;;  %v4167_v20 = vpop.f32.mrb[102].mxu1 }
 0x1f0   :  { %v4168_v56 = vpop.f32.mrb[103].mxu1 }
 0x1f1   :  { %v3305_v34 = vadd.f32 %v4166_v49, %v3241_v10  ;;  %v4169_v59 = vadd.f32 %v4168_v56, %v4167_v20 }
 0x1f3   :  { %v3308_v16 = vadd.f32 %v4169_v59, %v3244_v12 }
 0x1f5   :  { %v4170_v2 = vpop.f32.mrb[104].mxu1 }
 0x1f6   :  { %v4171_v33 = vpop.f32.mrb[105].mxu1 }
 0x1f7   :  { %v4172_v57 = vadd.f32 %v4171_v33, %v4170_v2  ;;  %v4173_v31 = vpop.f32.mrb[106].mxu1 }
 0x1f8   :  { %v4174_v39 = vpop.f32.mrb[107].mxu1 }
 0x1f9   :  { %v3313_v17 = vadd.f32 %v4172_v57, %v3249_v21  ;;  %v4175_v25 = vadd.f32 %v4174_v39, %v4173_v31  ;;  %v500_v21 = vsub.s32 0, %v6254_v61 }
 0x1fb   :  { %v3316_v45 = vadd.f32 %v4175_v25, %v3252_v22  ;;  %v504_v22 = vsub.s32 1, %v6254_v61 }
 0x1fd   :  { %v4176_v32 = vpop.f32.mrb[108].mxu1  ;;  %v6275_v2 = vrot.slane %v6260_v55, %v504_v22 }
 0x1fe   :  { %v4177_v41 = vpop.f32.mrb[109].mxu1 }
 0x1ff   :  { %v4178_v42 = vadd.f32 %v4177_v41, %v4176_v32  ;;  %v4179_v43 = vpop.f32.mrb[110].mxu1  ;;  %v2546_v61 = vadd.f32 %v6011_v51, %v6275_v2 }
 0x200   :  { %v4180_v26 = vpop.f32.mrb[111].mxu1 }
 0x201   :  { %v6263_v37 = vadd.f32 %v4178_v42, %v3257_v27  ;;  %v6272_v27 = vrot.slane %v6260_v55, %v500_v21 }
 0x203   :  { %v2544_v57 = vadd.f32 %v6003_v48, %v6272_v27  ;;  %v2548_v25 = vadd.f32 %v6013_v53, %v6272_v27 }
 0x205   :  { %v4198_v38 = vpop.f32.mrb[112].mxu1 }
 0x206   :  { %v4199_v44 = vpop.f32.mrb[113].mxu1 }
 0x207   :  { %v4200_v10 = vadd.f32 %v4199_v44, %v4198_v38  ;;  %v4201_v30 = vpop.f32.mrb[114].mxu1 }
 0x208   :  { %v4202_v12 = vpop.f32.mrb[115].mxu1 }
 0x209   :  { %v4203_v40 = vadd.f32 %v4202_v12, %v4201_v30  ;;  %v6265_v35 = vadd.f32 %v4200_v10, %v3297_v63 }
 0x20b   :  { %v6267_v46 = vadd.f32 %v4203_v40, %v3300_v47 }
 0x20d   :  { %v4204_v62 = vpop.f32.mrb[116].mxu1 }
 0x20e   :  { %v4205_v49 = vpop.f32.mrb[117].mxu1 }
 0x20f   :  { %v4206_v20 = vadd.f32 %v4205_v49, %v4204_v62  ;;  %v4207_v56 = vpop.f32.mrb[118].mxu1 }
 0x210   :  { %v4208_v59 = vpop.f32.mrb[119].mxu1 }
 0x211   :  { %v4209_v33 = vadd.f32 %v4208_v59, %v4207_v56  ;;  %v6277_v63 = vadd.f32 %v4206_v20, %v3305_v34  ;;  %v2550_v34 = vadd.f32 %v6018_v9, %v6275_v2  ;;  %v2556_v20 = vadd.f32 %v6040_v0, %v6275_v2 }
 0x213   :  { %v6279_v47 = vadd.f32 %v4209_v33, %v3308_v16  ;;  %v2558_v33 = vadd.f32 %v6048_v29, %v6272_v27 }
 0x215   :  { %v4210_v39 = vpop.f32.mrb[120].mxu1 }
 0x216   :  { %v2898_v31 = vpop.f32.mrb[0].mxu0  ;;  %v4211_v55 = vpop.f32.mrb[121].mxu1 }
 0x217   :  { %v4247_v32 = vadd.f32 %v2898_v31, %v2544_v57  ;;  %v2900_v41 = vpop.f32.mrb[1].mxu0  ;;  %v4212_v16 = vadd.f32 %v4211_v55, %v4210_v39  ;;  %v4213_v26 = vpop.f32.mrb[122].mxu1 }
 0x218   :  { %v4250_v42 = vadd.f32 %v2900_v41, %v2546_v61  ;;  %v2902_v43 = vpop.f32.mrb[2].mxu0  ;;  %v4214_v51 = vpop.f32.mrb[123].mxu1 }
 0x219   :  { %v4248_v48 = vadd.f32 %v4247_v32, %v6168_v50  ;;  %v4253_v38 = vadd.f32 %v2902_v43, %v2548_v25  ;;  %v2904_v44 = vpop.f32.mrb[3].mxu0  ;;  %v4215_v12 = vadd.f32 %v4214_v51, %v4213_v26  ;;  %v6291_v53 = vadd.f32 %v4212_v16, %v3313_v17 }
 0x21a   :  { %v4251_v10 = vadd.f32 %v4250_v42, %v6170_v6  ;;  %v4256_v30 = vadd.f32 %v2904_v44, %v2550_v34  ;;  %v2554_v50 = vadd.f32 %v6038_v19, %v6272_v27 }
 0x21b   :  { %v3454_v40 = vmax.f32 %v4248_v48, 0.0  ;;  %v4254_v21 = vadd.f32 %v4253_v38, %v6172_v58  ;;  %v6295_v62 = vadd.f32 %v4215_v12, %v3316_v45  ;;  %v2566_v38 = vadd.f32 %v6072_v4, %v6275_v2 }
 0x21c   :  { %v3455_v22 = vmax.f32 %v4251_v10, 0.0  ;;  %v4257_v9 = vadd.f32 %v4256_v30, %v6177_v5  ;;  %v2560_v5 = vadd.f32 %v6056_v7, %v6275_v2 }
 0x21d   :  { %v3457_v49 = vmax.f32 %v4254_v21, 0.0  ;;  %v4216_v17 = vpop.f32.mrb[124].mxu1 }
 0x21e   :  { %v3968_v6 = vpack.c.bf16 %v3455_v22, %v3454_v40  ;;  %v3458_v56 = vmax.f32 %v4257_v9, 0.0  ;;  %v2908_v59 = vpop.f32.mrb[4].mxu0  ;;  %v4217_v61 = vpop.f32.mrb[125].mxu1 }
 0x21f   :  { %v4259_v58 = vadd.f32 %v2908_v59, %v2554_v50  ;;  %v2910_v57 = vpop.f32.mrb[5].mxu0  ;;  %v4218_v0 = vadd.f32 %v4217_v61, %v4216_v17  ;;  %v4219_v39 = vpop.f32.mrb[126].mxu1 }
 0x220   :  { %3548 = vst [vmem:[%s6382_s3] sm:$0xff] %v3968_v6  ;;  %v3970_v19 = vpack.c.bf16 %v3458_v56, %v3457_v49  ;;  %v4262_v45 = vadd.f32 %v2910_v57, %v2556_v20  ;;  %v2912_v31 = vpop.f32.mrb[6].mxu0  ;;  %v4220_v29 = vpop.f32.mrb[127].mxu1  ;;  %v2574_v20 = vadd.f32 %v6099_v24, %v6272_v27 }
 0x221   :  { %v4260_v25 = vadd.f32 %v4259_v58, %v6186_v60  ;;  %v4265_v32 = vadd.f32 %v2912_v31, %v2558_v33  ;;  %v2914_v41 = vpop.f32.mrb[7].mxu0  ;;  %v6314_v34 = vadd.f32 %v4218_v0, %v6263_v37  ;;  %v2564_v60 = vadd.f32 %v6070_v11, %v6272_v27 }
 0x222   :  { %3550 = vst [vmem:[%s6382_s3 + $0xc] sm:$0xff] %v3970_v19  ;;  %v4263_v7 = vadd.f32 %v4262_v45, %v6192_v23  ;;  %v4268_v55 = vadd.f32 %v2914_v41, %v2560_v5  ;;  %v2568_v37 = vadd.f32 %v6080_v14, %v6272_v27 }
 0x223   :  { %v3460_v42 = vmax.f32 %v4260_v25, 0.0  ;;  %v4266_v16 = vadd.f32 %v4265_v32, %v6194_v1  ;;  %v2570_v1 = vadd.f32 %v6088_v52, %v6275_v2 }
 0x224   :  { %v3461_v43 = vmax.f32 %v4263_v7, 0.0  ;;  %v4269_v26 = vadd.f32 %v4268_v55, %v6199_v3 }
 0x225   :  { %v3463_v48 = vmax.f32 %v4266_v16, 0.0 }
 0x226   :  { %v3972_v44 = vpack.c.bf16 %v3461_v43, %v3460_v42  ;;  %v3464_v51 = vmax.f32 %v4269_v26, 0.0  ;;  %v2918_v23 = vpop.f32.mrb[8].mxu0 }
 0x227   :  { %v4271_v10 = vadd.f32 %v2918_v23, %v2564_v60  ;;  %v2920_v30 = vpop.f32.mrb[9].mxu0 }
 0x228   :  { %3552 = vst [vmem:[%s6382_s3 + $0x18] sm:$0xff] %v3972_v44  ;;  %v3974_v11 = vpack.c.bf16 %v3464_v51, %v3463_v48  ;;  %v4274_v3 = vadd.f32 %v2920_v30, %v2566_v38  ;;  %v2922_v12 = vpop.f32.mrb[10].mxu0 }
 0x229   :  { %v4272_v4 = vadd.f32 %v4271_v10, %v6208_v28  ;;  %v4277_v40 = vadd.f32 %v2922_v12, %v2568_v37  ;;  %v2924_v21 = vpop.f32.mrb[11].mxu0  ;;  %v2576_v28 = vadd.f32 %v6104_v54, %v6275_v2 }
 0x22a   :  { %3554 = vst [vmem:[%s6382_s3 + $0x24] sm:$0xff] %v3974_v11  ;;  %v4275_v14 = vadd.f32 %v4274_v3, %v6210_v8  ;;  %v4280_v22 = vadd.f32 %v2924_v21, %v2570_v1 }
 0x22b   :  { %v3466_v9 = vmax.f32 %v4272_v4, 0.0  ;;  %v4278_v52 = vadd.f32 %v4277_v40, %v6212_v36 }
 0x22c   :  { %v3467_v50 = vmax.f32 %v4275_v14, 0.0  ;;  %v4281_v49 = vadd.f32 %v4280_v22, %v6217_v13 }
 0x22d   :  { %v3469_v6 = vmax.f32 %v4278_v52, 0.0 }
 0x22e   :  { %v3976_v56 = vpack.c.bf16 %v3467_v50, %v3466_v9  ;;  %v3470_v59 = vmax.f32 %v4281_v49, 0.0  ;;  %v2928_v17 = vpop.f32.mrb[12].mxu0 }
 0x22f   :  { %v4283_v33 = vadd.f32 %v2928_v17, %v2574_v20  ;;  %v2930_v58 = vpop.f32.mrb[13].mxu0 }
 0x230   :  { %3556 = vst [vmem:[%s6382_s3 + $0x30] sm:$0xff] %v3976_v56  ;;  %v3978_v8 = vpack.c.bf16 %v3470_v59, %v3469_v6  ;;  %v4286_v36 = vadd.f32 %v2930_v58, %v2576_v28  ;;  %v2932_v57 = vpop.f32.mrb[14].mxu0 }
 0x231   :  { %v4284_v13 = vadd.f32 %v4283_v33, %v6226_v15  ;;  %v2933_v61 = vpop.f32.mrb[15].mxu0 }
 0x232   :  { %3558 = vst [vmem:[%s6382_s3 + $0x3c] sm:$0xff] %v3978_v8  ;;  %v4287_v24 = vadd.f32 %v4286_v36, %v6232_v18 }
 0x233   :  { %v3472_v54 = vmax.f32 %v4284_v13, 0.0 }
 0x234   :  { %v3473_v27 = vmax.f32 %v4287_v24, 0.0 }
 0x235   :  { %v3432_v5 = vpop.f32.mrb[128].mxu1 }
 0x236   :  { %v3980_v2 = vpack.c.bf16 %v3473_v27, %v3472_v54  ;;  %v3433_v19 = vadd.f32 %v3432_v5, %v6277_v63  ;;  %v3434_v45 = vpop.f32.mrb[129].mxu1 }
 0x237   :  { %v3435_v0 = vpop.f32.mrb[130].mxu1 }
 0x238   :  { %3560 = vst [vmem:[%s6382_s3 + $0x48] sm:$0x11] %v3980_v2  ;;  %v3462_v15 = vmax.f32 %v3433_v19, 0.0  ;;  %v3436_v31 = vadd.f32 %v3435_v0, %v6279_v47  ;;  %v3437_v39 = vpop.f32.mrb[131].mxu1 }
 0x23a   :  { %v3973_v25 = vpack.c.bf16 %v3462_v15, %v3462_v15  ;;  %v3465_v32 = vmax.f32 %v3436_v31, 0.0 }
 0x23c   :  { %3553 = vst [vmem:[%s6382_s3 + $0x20] sm:$0xf] %v3973_v25  ;;  %v3975_v18 = vpack.c.bf16 %v3465_v32, %v3465_v32 }
 0x23d   :  { %v3440_v41 = vpop.f32.mrb[132].mxu1 }
 0x23e   :  { %3555 = vst [vmem:[%s6382_s3 + $0x2c] sm:$0xf] %v3975_v18  ;;  %v3441_v63 = vadd.f32 %v3440_v41, %v6291_v53  ;;  %v3442_v29 = vpop.f32.mrb[133].mxu1 }
 0x23f   :  { %v3443_v7 = vpop.f32.mrb[134].mxu1 }
 0x240   :  { %v3468_v55 = vmax.f32 %v3441_v63, 0.0  ;;  %v3444_v47 = vadd.f32 %v3443_v7, %v6295_v62  ;;  %v3445_v42 = vpop.f32.mrb[135].mxu1 }
 0x242   :  { %v3977_v16 = vpack.c.bf16 %v3468_v55, %v3468_v55  ;;  %v3471_v43 = vmax.f32 %v3444_v47, 0.0 }
 0x244   :  { %3557 = vst [vmem:[%s6382_s3 + $0x38] sm:$0xf] %v3977_v16  ;;  %v3979_v26 = vpack.c.bf16 %v3471_v43, %v3471_v43 }
 0x245   :  { %v3448_v48 = vpop.f32.mrb[136].mxu1 }
 0x246   :  { %v3424_v60 = vpop.f32.mrb[16].mxu0  ;;  %3559 = vst [vmem:[%s6382_s3 + $0x44] sm:$0xf] %v3979_v26  ;;  %v3449_v38 = vadd.f32 %v3448_v48, %v6314_v34  ;;  %v3450_v62 = vpop.f32.mrb[137].mxu1 }
 0x247   :  { %v3425_v53 = vadd.f32 %v3424_v60, %v6265_v35  ;;  %v3426_v44 = vpop.f32.mrb[17].mxu0  ;;  %v3451_v23 = vpop.f32.mrb[138].mxu1 }
 0x248   :  { %v3427_v51 = vpop.f32.mrb[18].mxu0  ;;  %v3474_v10 = vmax.f32 %v3449_v38, 0.0  ;;  %v3452_v11 = vpop.f32.mrb[139].mxu1 }
 0x249   :  { %v3456_v37 = vmax.f32 %v3425_v53, 0.0  ;;  %v3428_v30 = vadd.f32 %v3427_v51, %v6267_v46  ;;  %v3429_v1 = vpop.f32.mrb[19].mxu0 }
 0x24a   :  { %v3981_v12 = vpack.c.bf16 %v3474_v10, %v3474_v10 }
 0x24b   :  { %v3969_v3 = vpack.c.bf16 %v3456_v37, %v3456_v37  ;;  %v3459_v4 = vmax.f32 %v3428_v30, 0.0 }
 0x24c   :  { %3561 = vst [vmem:[%s6382_s3 + $0x50] sm:$0x1] %v3981_v12 }
 0x24d   :  { %3549 = vst [vmem:[%s6382_s3 + $0x8] sm:$0xf] %v3969_v3  ;;  %v3971_v35 = vpack.c.bf16 %v3459_v4, %v3459_v4 }
 0x24f   :  { %3551 = vst [vmem:[%s6382_s3 + $0x14] sm:$0xf] %v3971_v35 }

// kernel: _lambda_.13
= control target key start
LH: loop header
LB: loop body
LE: loop exit
PB: predicated region body
PF: predicated region fallthrough
CT: control target
= control target key end

     0   :  { %s7503_s1 = inlined_call_operand.vmem [shape: bf16[3456,256], index: 1, kind: input, shape index: {}]   ;;  %s7504_s0 = inlined_call_operand.vmem [shape: bf16[50,3456], index: 0, kind: input, shape index: {}]   ;;  %s7505_s2 = inlined_call_operand.vmem [shape: f32[1,256], index: 2, kind: input, shape index: {}]   ;;  %s7506_s3 = inlined_call_operand.vmem [shape: bf16[50,256], index: 3, kind: output, shape index: {}]  }
   0x1   :  { %v5058_v0 = vld [vmem:[%s7503_s1 + $0x4] ss:$8 sps:$4 sm:$0xff]   ;;  %v5062_v2 = vld [vmem:[%s7503_s1] ss:$8 sps:$4 sm:$0xff]   ;;  %v5064_v4 = vld [vmem:[%s7503_s1 + $0x14] ss:$8 sps:$4 sm:$0xff]  }
   0x2   :  { %v5060_v1 = vld [vmem:[%s7503_s1 + $0x704] ss:$8 sps:$4 sm:$0xff]   ;;  %3220 = vmatprep.subr.bf16.mxu1 %v5058_v0  ;;  %v5063_v3 = vld [vmem:[%s7503_s1 + $0x700] ss:$8 sps:$4 sm:$0xff]   ;;  %v5066_v5 = vld [vmem:[%s7503_s1 + $0x714] ss:$8 sps:$4 sm:$0xff]  }
   0x3   :  { %3717 = vmatprep.subr.bf16.mxu0 %v5060_v1  ;;  %3221 = vmatpush1.bf16.msra.mxu1 %v5062_v2  ;;  %v5068_v6 = vld [vmem:[%s7503_s1 + $0x10] ss:$8 sps:$4 sm:$0xff]   ;;  %v5070_v8 = vld [vmem:[%s7503_s1 + $0x24] ss:$8 sps:$4 sm:$0xff]   ;;  %v5074_v10 = vld [vmem:[%s7503_s1 + $0x20] ss:$8 sps:$4 sm:$0xff]  }
   0x4   :  { %3718 = vmatpush1.bf16.msra.mxu0 %v5063_v3  ;;  %3222 = vmatprep.subr.bf16.mxu1 %v5064_v4  ;;  %v5069_v7 = vld [vmem:[%s7503_s1 + $0x710] ss:$8 sps:$4 sm:$0xff]   ;;  %v5072_v9 = vld [vmem:[%s7503_s1 + $0x724] ss:$8 sps:$4 sm:$0xff]   ;;  %v5075_v11 = vld [vmem:[%s7503_s1 + $0x720] ss:$8 sps:$4 sm:$0xff]  }
   0x5   :  { %3719 = vmatprep.subr.bf16.mxu0 %v5066_v5  ;;  %v5076_v12 = vld [vmem:[%s7503_s1 + $0x34] ss:$8 sps:$4 sm:$0xff]   ;;  %v5080_v14 = vld [vmem:[%s7503_s1 + $0x30] ss:$8 sps:$4 sm:$0xff]   ;;  %v5082_v16 = vld [vmem:[%s7503_s1 + $0x44] ss:$8 sps:$4 sm:$0xff]  }
   0x6   :  { %v5078_v13 = vld [vmem:[%s7503_s1 + $0x734] ss:$8 sps:$4 sm:$0xff]   ;;  %v5081_v15 = vld [vmem:[%s7503_s1 + $0x730] ss:$8 sps:$4 sm:$0xff]   ;;  %v5084_v17 = vld [vmem:[%s7503_s1 + $0x744] ss:$8 sps:$4 sm:$0xff]  }
   0x7   :  { %3223 = vmatpush1.bf16.msra.mxu1 %v5068_v6  ;;  %v5086_v18 = vld [vmem:[%s7503_s1 + $0x40] ss:$8 sps:$4 sm:$0xff]   ;;  %v5088_v20 = vld [vmem:[%s7503_s1 + $0x54] ss:$8 sps:$4 sm:$0xff]   ;;  %v5092_v22 = vld [vmem:[%s7503_s1 + $0x50] ss:$8 sps:$4 sm:$0xff]  }
   0x8   :  { %3720 = vmatpush1.bf16.msra.mxu0 %v5069_v7  ;;  %3224 = vmatprep.subr.bf16.mxu1 %v5070_v8  ;;  %v5087_v19 = vld [vmem:[%s7503_s1 + $0x740] ss:$8 sps:$4 sm:$0xff]   ;;  %v5090_v21 = vld [vmem:[%s7503_s1 + $0x754] ss:$8 sps:$4 sm:$0xff]   ;;  %v5093_v23 = vld [vmem:[%s7503_s1 + $0x750] ss:$8 sps:$4 sm:$0xff]  }
   0x9   :  { %3721 = vmatprep.subr.bf16.mxu0 %v5072_v9  ;;  %v5094_v24 = vld [vmem:[%s7503_s1 + $0x64] ss:$8 sps:$4 sm:$0xff]   ;;  %v5098_v26 = vld [vmem:[%s7503_s1 + $0x60] ss:$8 sps:$4 sm:$0xff]   ;;  %v5100_v28 = vld [vmem:[%s7503_s1 + $0x74] ss:$8 sps:$4 sm:$0xff]  }
   0xa   :  { %v5096_v25 = vld [vmem:[%s7503_s1 + $0x764] ss:$8 sps:$4 sm:$0xff]   ;;  %v5099_v27 = vld [vmem:[%s7503_s1 + $0x760] ss:$8 sps:$4 sm:$0xff]   ;;  %v5102_v29 = vld [vmem:[%s7503_s1 + $0x774] ss:$8 sps:$4 sm:$0xff]  }
   0xb   :  { %3225 = vmatpush1.bf16.msra.mxu1 %v5074_v10  ;;  %v5104_v30 = vld [vmem:[%s7503_s1 + $0x70] ss:$8 sps:$4 sm:$0xff]   ;;  %v5106_v32 = vld [vmem:[%s7503_s1 + $0x84] ss:$8 sps:$4 sm:$0xff]   ;;  %v5110_v34 = vld [vmem:[%s7503_s1 + $0x80] ss:$8 sps:$4 sm:$0xff]  }
   0xc   :  { %3722 = vmatpush1.bf16.msra.mxu0 %v5075_v11  ;;  %3226 = vmatprep.subr.bf16.mxu1 %v5076_v12  ;;  %v5105_v31 = vld [vmem:[%s7503_s1 + $0x770] ss:$8 sps:$4 sm:$0xff]   ;;  %v5108_v33 = vld [vmem:[%s7503_s1 + $0x784] ss:$8 sps:$4 sm:$0xff]   ;;  %v5111_v35 = vld [vmem:[%s7503_s1 + $0x780] ss:$8 sps:$4 sm:$0xff]  }
   0xd   :  { %3723 = vmatprep.subr.bf16.mxu0 %v5078_v13  ;;  %v5112_v36 = vld [vmem:[%s7503_s1 + $0x94] ss:$8 sps:$4 sm:$0xff]   ;;  %v5116_v38 = vld [vmem:[%s7503_s1 + $0x90] ss:$8 sps:$4 sm:$0xff]   ;;  %v5118_v40 = vld [vmem:[%s7503_s1 + $0xa4] ss:$8 sps:$4 sm:$0xff]  }
   0xe   :  { %v5114_v37 = vld [vmem:[%s7503_s1 + $0x794] ss:$8 sps:$4 sm:$0xff]   ;;  %v5117_v39 = vld [vmem:[%s7503_s1 + $0x790] ss:$8 sps:$4 sm:$0xff]   ;;  %v5120_v41 = vld [vmem:[%s7503_s1 + $0x7a4] ss:$8 sps:$4 sm:$0xff]  }
   0xf   :  { %3227 = vmatpush1.bf16.msra.mxu1 %v5080_v14  ;;  %v5122_v42 = vld [vmem:[%s7503_s1 + $0xa0] ss:$8 sps:$4 sm:$0xff]   ;;  %v5124_v44 = vld [vmem:[%s7503_s1 + $0xb4] ss:$8 sps:$4 sm:$0xff]   ;;  %v5128_v46 = vld [vmem:[%s7503_s1 + $0xb0] ss:$8 sps:$4 sm:$0xff]  }
  0x10   :  { %3724 = vmatpush1.bf16.msra.mxu0 %v5081_v15  ;;  %3228 = vmatprep.subr.bf16.mxu1 %v5082_v16  ;;  %v5123_v43 = vld [vmem:[%s7503_s1 + $0x7a0] ss:$8 sps:$4 sm:$0xff]   ;;  %v5126_v45 = vld [vmem:[%s7503_s1 + $0x7b4] ss:$8 sps:$4 sm:$0xff]   ;;  %v5129_v47 = vld [vmem:[%s7503_s1 + $0x7b0] ss:$8 sps:$4 sm:$0xff]  }
  0x11   :  { %3725 = vmatprep.subr.bf16.mxu0 %v5084_v17  ;;  %v5156_v48 = vld [vmem:[%s7504_s0 + $0x4] ss:$108 sps:$4 sm:$0xff]   ;;  %v5162_v51 = vld [vmem:[%s7504_s0 + $0x3c] ss:$108 sps:$4 sm:$0xff]   ;;  %v5154_v4 = vld [vmem:[%s7504_s0] ss:$108 sps:$4 sm:$0xff]  }
  0x12   :  { %v5130_v49 = vld [vmem:[%s7503_s1 + $0xc4] ss:$8 sps:$4 sm:$0xff]   ;;  %3252 = vmatprep.mubr.bf16.mxu1 %v5156_v48  ;;  %v5134_v52 = vld [vmem:[%s7503_s1 + $0xc0] ss:$8 sps:$4 sm:$0xff]   ;;  %v5136_v54 = vld [vmem:[%s7503_s1 + $0xd4] ss:$8 sps:$4 sm:$0xff]   ;;  %3749 = vmatprep.mubr.bf16.mxu0 %v5162_v51 }
  0x13   :  { %3229 = vmatpush1.bf16.msra.mxu1 %v5086_v18  ;;  %v5132_v50 = vld [vmem:[%s7503_s1 + $0x7c4] ss:$8 sps:$4 sm:$0xff]   ;;  %v5135_v53 = vld [vmem:[%s7503_s1 + $0x7c0] ss:$8 sps:$4 sm:$0xff]   ;;  %v5138_v55 = vld [vmem:[%s7503_s1 + $0x7d4] ss:$8 sps:$4 sm:$0xff]  }
  0x14   :  { %3726 = vmatpush1.bf16.msra.mxu0 %v5087_v19  ;;  %3230 = vmatprep.subr.bf16.mxu1 %v5088_v20  ;;  %v5140_v56 = vld [vmem:[%s7503_s1 + $0xd0] ss:$8 sps:$4 sm:$0xff]   ;;  %v5142_v58 = vld [vmem:[%s7503_s1 + $0xe4] ss:$8 sps:$4 sm:$0xff]   ;;  %v5146_v60 = vld [vmem:[%s7503_s1 + $0xe0] ss:$8 sps:$4 sm:$0xff]  }
  0x15   :  { %3727 = vmatprep.subr.bf16.mxu0 %v5090_v21  ;;  %v5141_v57 = vld [vmem:[%s7503_s1 + $0x7d0] ss:$8 sps:$4 sm:$0xff]   ;;  %v5144_v59 = vld [vmem:[%s7503_s1 + $0x7e4] ss:$8 sps:$4 sm:$0xff]   ;;  %v5147_v61 = vld [vmem:[%s7503_s1 + $0x7e0] ss:$8 sps:$4 sm:$0xff]  }
  0x16   :  { %v5148_v62 = vld [vmem:[%s7503_s1 + $0xf4] ss:$8 sps:$4 sm:$0xff]   ;;  %v5152_v0 = vld [vmem:[%s7503_s1 + $0xf0] ss:$8 sps:$4 sm:$0xff]   ;;  %v5159_v2 = vld [vmem:[%s7503_s1 + $0x104] ss:$8 sps:$4 sm:$0xff]  }
  0x17   :  { %3231 = vmatpush1.bf16.msra.mxu1 %v5092_v22  ;;  %v5150_v63 = vld [vmem:[%s7503_s1 + $0x7f4] ss:$8 sps:$4 sm:$0xff]   ;;  %v5153_v1 = vld [vmem:[%s7503_s1 + $0x7f0] ss:$8 sps:$4 sm:$0xff]   ;;  %v5165_v3 = vld [vmem:[%s7503_s1 + $0x804] ss:$8 sps:$4 sm:$0xff]  }
  0x18   :  { %3728 = vmatpush1.bf16.msra.mxu0 %v5093_v23  ;;  %3232 = vmatprep.subr.bf16.mxu1 %v5094_v24  ;;  %v5157_v5 = vld [vmem:[%s7503_s1 + $0x100] ss:$8 sps:$4 sm:$0xff]   ;;  %v5160_v6 = vld [vmem:[%s7504_s0 + $0x38] ss:$108 sps:$4 sm:$0xff]   ;;  %v5168_v8 = vld [vmem:[%s7503_s1 + $0x114] ss:$8 sps:$4 sm:$0xff]  }
  0x19   :  { %3729 = vmatprep.subr.bf16.mxu0 %v5096_v25  ;;  %v5163_v7 = vld [vmem:[%s7503_s1 + $0x800] ss:$8 sps:$4 sm:$0xff]   ;;  %v5171_v9 = vld [vmem:[%s7503_s1 + $0x814] ss:$8 sps:$4 sm:$0xff]   ;;  %v5166_v10 = vld [vmem:[%s7503_s1 + $0x110] ss:$8 sps:$4 sm:$0xff]  }
  0x1a   :  { %v5169_v11 = vld [vmem:[%s7503_s1 + $0x810] ss:$8 sps:$4 sm:$0xff]   ;;  %v5174_v12 = vld [vmem:[%s7503_s1 + $0x124] ss:$8 sps:$4 sm:$0xff]   ;;  %v5172_v14 = vld [vmem:[%s7503_s1 + $0x120] ss:$8 sps:$4 sm:$0xff]  }
  0x1b   :  { %3233 = vmatpush1.bf16.msra.mxu1 %v5098_v26  ;;  %v5177_v13 = vld [vmem:[%s7503_s1 + $0x824] ss:$8 sps:$4 sm:$0xff]   ;;  %v5175_v15 = vld [vmem:[%s7503_s1 + $0x820] ss:$8 sps:$4 sm:$0xff]   ;;  %v5180_v16 = vld [vmem:[%s7503_s1 + $0x134] ss:$8 sps:$4 sm:$0xff]  }
  0x1c   :  { %3730 = vmatpush1.bf16.msra.mxu0 %v5099_v27  ;;  %3234 = vmatprep.subr.bf16.mxu1 %v5100_v28  ;;  %v5220_v17 = vld [vmem:[%s7504_s0 + $0xdc] ss:$108 sps:$4 sm:$0xff]   ;;  %v5178_v19 = vld [vmem:[%s7503_s1 + $0x130] ss:$8 sps:$4 sm:$0xff]   ;;  %v5225_v21 = vld [vmem:[%s7504_s0 + $0x114] ss:$108 sps:$4 sm:$0xff]  }
  0x1d   :  { %3731 = vmatprep.subr.bf16.mxu0 %v5102_v29  ;;  %v5183_v18 = vld [vmem:[%s7503_s1 + $0x834] ss:$8 sps:$4 sm:$0xff]   ;;  %v5181_v20 = vld [vmem:[%s7503_s1 + $0x830] ss:$8 sps:$4 sm:$0xff]   ;;  %v5186_v22 = vld [vmem:[%s7503_s1 + $0x144] ss:$8 sps:$4 sm:$0xff]  }
  0x1e   :  { %v5189_v23 = vld [vmem:[%s7503_s1 + $0x844] ss:$8 sps:$4 sm:$0xff]   ;;  %v5231_v25 = vld [vmem:[%s7504_s0 + $0x110] ss:$108 sps:$4 sm:$0xff]   ;;  %v5184_v26 = vld [vmem:[%s7503_s1 + $0x140] ss:$8 sps:$4 sm:$0xff]  }
  0x1f   :  { %3235 = vmatpush1.bf16.msra.mxu1 %v5104_v30  ;;  %v5230_v24 = vld [vmem:[%s7504_s0 + $0xd8] ss:$108 sps:$4 sm:$0xff]   ;;  %v5187_v27 = vld [vmem:[%s7503_s1 + $0x840] ss:$8 sps:$4 sm:$0xff]   ;;  %v5192_v28 = vld [vmem:[%s7503_s1 + $0x154] ss:$8 sps:$4 sm:$0xff]  }
  0x20   :  { %3732 = vmatpush1.bf16.msra.mxu0 %v5105_v31  ;;  %3236 = vmatprep.subr.bf16.mxu1 %v5106_v32  ;;  %v5238_v29 = vld [vmem:[%s7504_s0 + $0x1b4] ss:$108 sps:$4 sm:$0xff]   ;;  %v5190_v31 = vld [vmem:[%s7503_s1 + $0x150] ss:$8 sps:$4 sm:$0xff]   ;;  %v5213_v51 = vld [vmem:[%s7503_s1 + $0x884] ss:$8 sps:$4 sm:$0xff]  }
  0x21   :  { %3733 = vmatprep.subr.bf16.mxu0 %v5108_v33  ;;  %v5195_v30 = vld [vmem:[%s7503_s1 + $0x854] ss:$8 sps:$4 sm:$0xff]   ;;  %v5193_v32 = vld [vmem:[%s7503_s1 + $0x850] ss:$8 sps:$4 sm:$0xff]  }
  0x22   :  { %v5243_v33 = vld [vmem:[%s7504_s0 + $0x1ec] ss:$108 sps:$4 sm:$0xff]  }
  0x23   :  { %3237 = vmatpush1.bf16.msra.mxu1 %v5110_v34  ;;  %v5198_v34 = vld [vmem:[%s7503_s1 + $0x164] ss:$8 sps:$4 sm:$0xff]   ;;  %v5202_v48 = vld [vmem:[%s7503_s1 + $0x170] ss:$8 sps:$4 sm:$0xff]  }
  0x24   :  { %3734 = vmatpush1.bf16.msra.mxu0 %v5111_v35  ;;  %3238 = vmatprep.subr.bf16.mxu1 %v5112_v36  ;;  %v5201_v35 = vld [vmem:[%s7503_s1 + $0x864] ss:$8 sps:$4 sm:$0xff]   ;;  %v5248_v36 = vld [vmem:[%s7504_s0 + $0x1b0] ss:$108 sps:$4 sm:$0xff]  }
  0x25   :  { %3735 = vmatprep.subr.bf16.mxu0 %v5114_v37  ;;  %v5249_v37 = vld [vmem:[%s7504_s0 + $0x1e8] ss:$108 sps:$4 sm:$0xff]  }
  0x27   :  { %3239 = vmatpush1.bf16.msra.mxu1 %v5116_v38  ;;  %v5196_v38 = vld [vmem:[%s7503_s1 + $0x160] ss:$8 sps:$4 sm:$0xff]  }
  0x28   :  { %3736 = vmatpush1.bf16.msra.mxu0 %v5117_v39  ;;  %3240 = vmatprep.subr.bf16.mxu1 %v5118_v40  ;;  %v5199_v39 = vld [vmem:[%s7503_s1 + $0x860] ss:$8 sps:$4 sm:$0xff]  }
  0x29   :  { %3737 = vmatprep.subr.bf16.mxu0 %v5120_v41  ;;  %v99_v40 = vld [vmem:[%s7504_s0 + $0x288] sm:$0x11]  ;;  %v5204_v41 = vld [vmem:[%s7503_s1 + $0x174] ss:$8 sps:$4 sm:$0xff]  }
  0x2b   :  { %3241 = vmatpush1.bf16.msra.mxu1 %v5122_v42  ;;  %v5207_v42 = vld [vmem:[%s7503_s1 + $0x874] ss:$8 sps:$4 sm:$0xff]  }
  0x2c   :  { %3738 = vmatpush1.bf16.msra.mxu0 %v5123_v43  ;;  %3242 = vmatprep.subr.bf16.mxu1 %v5124_v44  ;;  %v4365_v43 = vcombine.high %v99_v40, %v99_v40  ;;  %v106_v44 = vld [vmem:[%s7504_s0 + $0x2c0] sm:$0x11] }
  0x2d   :  { %3739 = vmatprep.subr.bf16.mxu0 %v5126_v45  ;;  %v4379_v45 = vcombine.high %v106_v44, %v106_v44 }
  0x2f   :  { %3243 = vmatpush1.bf16.msra.mxu1 %v5128_v46  ;;  %v4364_v46 = vcombine.low %v99_v40, %v99_v40  ;;  %v5356_v40 = vld [vmem:[%s7504_s0 + $0x1bc] ss:$108 sps:$4 sm:$0xff]  }
  0x30   :  { %3740 = vmatpush1.bf16.msra.mxu0 %v5129_v47  ;;  %3244 = vmatprep.subr.bf16.mxu1 %v5130_v49  ;;  %v4378_v47 = vcombine.low %v106_v44, %v106_v44  ;;  %v5205_v49 = vld [vmem:[%s7503_s1 + $0x870] ss:$8 sps:$4 sm:$0xff]   ;;  %v5304_v44 = vld [vmem:[%s7503_s1 + $0x244] ss:$8 sps:$4 sm:$0xff]  }
  0x31   :  { %3741 = vmatprep.subr.bf16.mxu0 %v5132_v50  ;;  %v5210_v50 = vld [vmem:[%s7503_s1 + $0x184] ss:$8 sps:$4 sm:$0xff]  }
  0x33   :  { %3245 = vmatpush1.bf16.msra.mxu1 %v5134_v52  ;;  %v5208_v52 = vld [vmem:[%s7503_s1 + $0x180] ss:$8 sps:$4 sm:$0xff]  }
  0x34   :  { %3742 = vmatpush1.bf16.msra.mxu0 %v5135_v53  ;;  %3246 = vmatprep.subr.bf16.mxu1 %v5136_v54  ;;  %v5274_v53 = vld [vmem:[%s7504_s0 + $0xc] ss:$108 sps:$4 sm:$0xff]   ;;  %v5211_v54 = vld [vmem:[%s7503_s1 + $0x880] ss:$8 sps:$4 sm:$0xff]  }
  0x35   :  { %3743 = vmatprep.subr.bf16.mxu0 %v5138_v55  ;;  %v5216_v55 = vld [vmem:[%s7503_s1 + $0x194] ss:$8 sps:$4 sm:$0xff]  }
  0x37   :  { %3247 = vmatpush1.bf16.msra.mxu1 %v5140_v56  ;;  %v5219_v56 = vld [vmem:[%s7503_s1 + $0x894] ss:$8 sps:$4 sm:$0xff]  }
  0x38   :  { %3744 = vmatpush1.bf16.msra.mxu0 %v5141_v57  ;;  %3248 = vmatprep.subr.bf16.mxu1 %v5142_v58  ;;  %v5280_v57 = vld [vmem:[%s7504_s0 + $0x44] ss:$108 sps:$4 sm:$0xff]  }
  0x39   :  { %3745 = vmatprep.subr.bf16.mxu0 %v5144_v59  ;;  %v5214_v58 = vld [vmem:[%s7503_s1 + $0x190] ss:$8 sps:$4 sm:$0xff]  }
  0x3a   :  { %v5217_v59 = vld [vmem:[%s7503_s1 + $0x890] ss:$8 sps:$4 sm:$0xff]  }
  0x3b   :  { %3249 = vmatpush1.bf16.msra.mxu1 %v5146_v60  ;;  %v5224_v60 = vld [vmem:[%s7503_s1 + $0x1a4] ss:$8 sps:$4 sm:$0xff]  }
  0x3c   :  { %3746 = vmatpush1.bf16.msra.mxu0 %v5147_v61  ;;  %3250 = vmatprep.subr.bf16.mxu1 %v5148_v62  ;;  %v5229_v61 = vld [vmem:[%s7503_s1 + $0x8a4] ss:$8 sps:$4 sm:$0xff]   ;;  %v5222_v62 = vld [vmem:[%s7503_s1 + $0x1a0] ss:$8 sps:$4 sm:$0xff]  }
  0x3d   :  { %3747 = vmatprep.subr.bf16.mxu0 %v5150_v63  ;;  %v5227_v63 = vld [vmem:[%s7503_s1 + $0x8a0] ss:$8 sps:$4 sm:$0xff]  }
  0x3f   :  { %3251 = vmatpush1.bf16.msra.mxu1 %v5152_v0  ;;  %v5234_v0 = vld [vmem:[%s7503_s1 + $0x1b4] ss:$8 sps:$4 sm:$0xff]  }
  0x40   :  { %3748 = vmatpush1.bf16.msra.mxu0 %v5153_v1  ;;  %3291 = vmatprep.subr.bf16.mxu1 %v5159_v2  ;;  %v5237_v1 = vld [vmem:[%s7503_s1 + $0x8b4] ss:$8 sps:$4 sm:$0xff]   ;;  %v5232_v2 = vld [vmem:[%s7503_s1 + $0x1b0] ss:$8 sps:$4 sm:$0xff]  }
  0x41   :  { %3788 = vmatprep.subr.bf16.mxu0 %v5165_v3  ;;  %v5235_v3 = vld [vmem:[%s7503_s1 + $0x8b0] ss:$8 sps:$4 sm:$0xff]  }
  0x42   :  { %3253 = vmatmul.mubr.bf16.vlgmr.msra.gmra.mrb[0].mxu1 %v5154_v4  ;;  %v5242_v4 = vld [vmem:[%s7503_s1 + $0x1c4] ss:$8 sps:$4 sm:$0xff]  }
  0x43   :  { %3750 = vmatmul.mubr.bf16.vlgmr.msra.gmra.mrb[0].mxu0 %v5160_v6  ;;  %3292 = vmatpush1.bf16.msra.mxu1 %v5157_v5  ;;  %v5247_v5 = vld [vmem:[%s7503_s1 + $0x8c4] ss:$8 sps:$4 sm:$0xff]   ;;  %v5240_v6 = vld [vmem:[%s7503_s1 + $0x1c0] ss:$8 sps:$4 sm:$0xff]  }
  0x44   :  { %3789 = vmatpush1.bf16.msra.mxu0 %v5163_v7  ;;  %3293 = vmatprep.subr.bf16.mxu1 %v5168_v8  ;;  %v5245_v7 = vld [vmem:[%s7503_s1 + $0x8c0] ss:$8 sps:$4 sm:$0xff]   ;;  %v5252_v8 = vld [vmem:[%s7503_s1 + $0x1d4] ss:$8 sps:$4 sm:$0xff]  }
  0x45   :  { %3790 = vmatprep.subr.bf16.mxu0 %v5171_v9  ;;  %3262 = vmatprep.mubr.bf16.mxu1 %v5220_v17  ;;  %v5255_v9 = vld [vmem:[%s7503_s1 + $0x8d4] ss:$8 sps:$4 sm:$0xff]  }
  0x46   :  { %3759 = vmatprep.mubr.bf16.mxu0 %v5225_v21  ;;  %v5271_v17 = vld [vmem:[%s7503_s1 + $0x8f4] ss:$8 sps:$4 sm:$0xff]   ;;  %v5283_v21 = vld [vmem:[%s7503_s1 + $0x904] ss:$8 sps:$4 sm:$0xff]  }
  0x47   :  { %3294 = vmatpush1.bf16.msra.mxu1 %v5166_v10  ;;  %v5250_v10 = vld [vmem:[%s7503_s1 + $0x1d0] ss:$8 sps:$4 sm:$0xff]  }
  0x48   :  { %3791 = vmatpush1.bf16.msra.mxu0 %v5169_v11  ;;  %3295 = vmatprep.subr.bf16.mxu1 %v5174_v12  ;;  %v5253_v11 = vld [vmem:[%s7503_s1 + $0x8d0] ss:$8 sps:$4 sm:$0xff]   ;;  %v5259_v12 = vld [vmem:[%s7503_s1 + $0x1e4] ss:$8 sps:$4 sm:$0xff]  }
  0x49   :  { %3792 = vmatprep.subr.bf16.mxu0 %v5177_v13  ;;  %v5263_v13 = vld [vmem:[%s7503_s1 + $0x8e4] ss:$8 sps:$4 sm:$0xff]  }
  0x4a   :  { %3263 = vmatmul.mubr.bf16.gmra.mrb[4].mxu1 %v5230_v24  ;;  %v5278_v24 = vld [vmem:[%s7504_s0 + $0x40] ss:$108 sps:$4 sm:$0xff]  }
  0x4b   :  { %3296 = vmatpush1.bf16.msra.mxu1 %v5172_v14  ;;  %3760 = vmatmul.mubr.bf16.gmra.mrb[4].mxu0 %v5231_v25  ;;  %v5257_v14 = vld [vmem:[%s7503_s1 + $0x1e0] ss:$8 sps:$4 sm:$0xff]  }
  0x4c   :  { %3793 = vmatpush1.bf16.msra.mxu0 %v5175_v15  ;;  %3297 = vmatprep.subr.bf16.mxu1 %v5180_v16  ;;  %v5261_v15 = vld [vmem:[%s7503_s1 + $0x8e0] ss:$8 sps:$4 sm:$0xff]   ;;  %v5268_v16 = vld [vmem:[%s7503_s1 + $0x1f4] ss:$8 sps:$4 sm:$0xff]  }
  0x4d   :  { %3794 = vmatprep.subr.bf16.mxu0 %v5183_v18  ;;  %3272 = vmatprep.mubr.bf16.mxu1 %v5238_v29  ;;  %v5266_v18 = vld [vmem:[%s7503_s1 + $0x1f0] ss:$8 sps:$4 sm:$0xff]   ;;  %v5281_v25 = vld [vmem:[%s7503_s1 + $0x900] ss:$8 sps:$4 sm:$0xff]  }
  0x4e   :  { %3769 = vmatprep.mubr.bf16.mxu0 %v5243_v33  ;;  %v5343_v29 = vld [vmem:[%s7504_s0 + $0x11c] ss:$108 sps:$4 sm:$0xff]   ;;  %v5295_v33 = vld [vmem:[%s7503_s1 + $0x924] ss:$8 sps:$4 sm:$0xff]  }
  0x4f   :  { %3298 = vmatpush1.bf16.msra.mxu1 %v5178_v19  ;;  %v5269_v19 = vld [vmem:[%s7503_s1 + $0x8f0] ss:$8 sps:$4 sm:$0xff]  }
  0x50   :  { %3795 = vmatpush1.bf16.msra.mxu0 %v5181_v20  ;;  %3299 = vmatprep.subr.bf16.mxu1 %v5186_v22  ;;  %v5277_v20 = vld [vmem:[%s7503_s1 + $0x204] ss:$8 sps:$4 sm:$0xff]   ;;  %v5272_v22 = vld [vmem:[%s7504_s0 + $0x8] ss:$108 sps:$4 sm:$0xff]  }
  0x51   :  { %3796 = vmatprep.subr.bf16.mxu0 %v5189_v23  ;;  %v5275_v23 = vld [vmem:[%s7503_s1 + $0x200] ss:$8 sps:$4 sm:$0xff]  }
  0x52   :  { %3273 = vmatmul.mubr.bf16.gmra.mrb[8].mxu1 %v5248_v36  ;;  %v5349_v36 = vld [vmem:[%s7504_s0 + $0x118] ss:$108 sps:$4 sm:$0xff]  }
  0x53   :  { %3300 = vmatpush1.bf16.msra.mxu1 %v5184_v26  ;;  %3770 = vmatmul.mubr.bf16.gmra.mrb[8].mxu0 %v5249_v37  ;;  %v5286_v26 = vld [vmem:[%s7503_s1 + $0x214] ss:$8 sps:$4 sm:$0xff]   ;;  %v5293_v37 = vld [vmem:[%s7503_s1 + $0x920] ss:$8 sps:$4 sm:$0xff]  }
  0x54   :  { %3797 = vmatpush1.bf16.msra.mxu0 %v5187_v27  ;;  %3301 = vmatprep.subr.bf16.mxu1 %v5192_v28  ;;  %v5289_v27 = vld [vmem:[%s7503_s1 + $0x914] ss:$8 sps:$4 sm:$0xff]   ;;  %v5338_v28 = vld [vmem:[%s7504_s0 + $0xe4] ss:$108 sps:$4 sm:$0xff]  }
  0x55   :  { %3798 = vmatprep.subr.bf16.mxu0 %v5195_v30  ;;  %3282 = vmatprep.mubr.bf16.mxu1 %v4365_v43  ;;  %v5284_v30 = vld [vmem:[%s7503_s1 + $0x210] ss:$8 sps:$4 sm:$0xff]  }
  0x56   :  { %3779 = vmatprep.mubr.bf16.mxu0 %v4379_v45  ;;  %v5299_v43 = vld [vmem:[%s7503_s1 + $0x930] ss:$8 sps:$4 sm:$0xff]   ;;  %v5307_v45 = vld [vmem:[%s7503_s1 + $0x944] ss:$8 sps:$4 sm:$0xff]  }
  0x57   :  { %3302 = vmatpush1.bf16.msra.mxu1 %v5190_v31  ;;  %v5287_v31 = vld [vmem:[%s7503_s1 + $0x910] ss:$8 sps:$4 sm:$0xff]  }
  0x58   :  { %3799 = vmatpush1.bf16.msra.mxu0 %v5193_v32  ;;  %3303 = vmatprep.subr.bf16.mxu1 %v5198_v34  ;;  %v5292_v32 = vld [vmem:[%s7503_s1 + $0x224] ss:$8 sps:$4 sm:$0xff]   ;;  %v5290_v34 = vld [vmem:[%s7503_s1 + $0x220] ss:$8 sps:$4 sm:$0xff]  }
  0x59   :  { %3800 = vmatprep.subr.bf16.mxu0 %v5201_v35  ;;  %v5348_v35 = vld [vmem:[%s7504_s0 + $0xe0] ss:$108 sps:$4 sm:$0xff]  }
  0x5a   :  { %3283 = vmatmul.mubr.bf16.gmra.mrb[12].mxu1 %v4364_v46  ;;  %v5302_v46 = vld [vmem:[%s7503_s1 + $0x240] ss:$8 sps:$4 sm:$0xff]  }
  0x5b   :  { %3304 = vmatpush1.bf16.msra.mxu1 %v5196_v38  ;;  %3780 = vmatmul.mubr.bf16.gmra.mrb[12].mxu0 %v4378_v47  ;;  %v5298_v38 = vld [vmem:[%s7503_s1 + $0x234] ss:$8 sps:$4 sm:$0xff]   ;;  %v5305_v47 = vld [vmem:[%s7503_s1 + $0x940] ss:$8 sps:$4 sm:$0xff]  }
  0x5c   :  { %3801 = vmatpush1.bf16.msra.mxu0 %v5199_v39  ;;  %3305 = vmatprep.subr.bf16.mxu1 %v5204_v41  ;;  %v5301_v39 = vld [vmem:[%s7503_s1 + $0x934] ss:$8 sps:$4 sm:$0xff]  }
  0x5d   :  { %3802 = vmatprep.subr.bf16.mxu0 %v5207_v42  ;;  %3323 = vmatprep.mubr.bf16.mxu1 %v5274_v53  ;;  %v5361_v41 = vld [vmem:[%s7504_s0 + $0x1f4] ss:$108 sps:$4 sm:$0xff]   ;;  %v5296_v42 = vld [vmem:[%s7503_s1 + $0x230] ss:$8 sps:$4 sm:$0xff]  }
  0x5e   :  { %3820 = vmatprep.mubr.bf16.mxu0 %v5280_v57  ;;  %v5313_v53 = vld [vmem:[%s7503_s1 + $0x954] ss:$8 sps:$4 sm:$0xff]   ;;  %v5311_v57 = vld [vmem:[%s7503_s1 + $0x950] ss:$8 sps:$4 sm:$0xff]  }
  0x5f   :  { %3306 = vmatpush1.bf16.msra.mxu1 %v5202_v48  ;;  %v5366_v48 = vld [vmem:[%s7504_s0 + $0x1b8] ss:$108 sps:$4 sm:$0xff]  }
  0x60   :  { %3803 = vmatpush1.bf16.msra.mxu0 %v5205_v49  ;;  %3307 = vmatprep.subr.bf16.mxu1 %v5210_v50  ;;  %v5367_v49 = vld [vmem:[%s7504_s0 + $0x1f0] ss:$108 sps:$4 sm:$0xff]  }
  0x61   :  { %3804 = vmatprep.subr.bf16.mxu0 %v5213_v51  ;;  %v100_v50 = vld [vmem:[%s7504_s0 + $0x290] sm:$0x11]  ;;  %v107_v51 = vld [vmem:[%s7504_s0 + $0x2c8] sm:$0x11] }
  0x63   :  { %3308 = vmatpush1.bf16.msra.mxu1 %v5208_v52  ;;  %v5310_v52 = vld [vmem:[%s7503_s1 + $0x254] ss:$8 sps:$4 sm:$0xff]  }
  0x64   :  { %3805 = vmatpush1.bf16.msra.mxu0 %v5211_v54  ;;  %3309 = vmatprep.subr.bf16.mxu1 %v5216_v55  ;;  %v4367_v54 = vcombine.high %v100_v50, %v100_v50  ;;  %v4381_v55 = vcombine.high %v107_v51, %v107_v51 }
  0x65   :  { %3806 = vmatprep.subr.bf16.mxu0 %v5219_v56  ;;  %v5308_v56 = vld [vmem:[%s7503_s1 + $0x250] ss:$8 sps:$4 sm:$0xff]  }
  0x67   :  { %3310 = vmatpush1.bf16.msra.mxu1 %v5214_v58  ;;  %v5316_v58 = vld [vmem:[%s7503_s1 + $0x264] ss:$8 sps:$4 sm:$0xff]  }
  0x68   :  { %3807 = vmatpush1.bf16.msra.mxu0 %v5217_v59  ;;  %3311 = vmatprep.subr.bf16.mxu1 %v5224_v60  ;;  %v5319_v59 = vld [vmem:[%s7503_s1 + $0x964] ss:$8 sps:$4 sm:$0xff]   ;;  %v5314_v60 = vld [vmem:[%s7503_s1 + $0x260] ss:$8 sps:$4 sm:$0xff]  }
  0x69   :  { %3808 = vmatprep.subr.bf16.mxu0 %v5229_v61  ;;  %v5317_v61 = vld [vmem:[%s7503_s1 + $0x960] ss:$8 sps:$4 sm:$0xff]  }
  0x6b   :  { %3312 = vmatpush1.bf16.msra.mxu1 %v5222_v62  ;;  %v4366_v62 = vcombine.low %v100_v50, %v100_v50  ;;  %v5410_v50 = vld [vmem:[%s7503_s1 + $0x324] ss:$8 sps:$4 sm:$0xff]  }
  0x6c   :  { %3809 = vmatpush1.bf16.msra.mxu0 %v5227_v63  ;;  %3313 = vmatprep.subr.bf16.mxu1 %v5234_v0  ;;  %v4380_v63 = vcombine.low %v107_v51, %v107_v51  ;;  %v5322_v0 = vld [vmem:[%s7503_s1 + $0x274] ss:$8 sps:$4 sm:$0xff]   ;;  %v5413_v51 = vld [vmem:[%s7503_s1 + $0xa24] ss:$8 sps:$4 sm:$0xff]  }
  0x6d   :  { %3810 = vmatprep.subr.bf16.mxu0 %v5237_v1  ;;  %v5325_v1 = vld [vmem:[%s7503_s1 + $0x974] ss:$8 sps:$4 sm:$0xff]  }
  0x6f   :  { %3314 = vmatpush1.bf16.msra.mxu1 %v5232_v2  ;;  %v5392_v2 = vld [vmem:[%s7504_s0 + $0x14] ss:$108 sps:$4 sm:$0xff]  }
  0x70   :  { %3811 = vmatpush1.bf16.msra.mxu0 %v5235_v3  ;;  %3315 = vmatprep.subr.bf16.mxu1 %v5242_v4  ;;  %v5398_v3 = vld [vmem:[%s7504_s0 + $0x4c] ss:$108 sps:$4 sm:$0xff]  }
  0x71   :  { %3812 = vmatprep.subr.bf16.mxu0 %v5247_v5  ;;  %v5320_v4 = vld [vmem:[%s7503_s1 + $0x270] ss:$8 sps:$4 sm:$0xff]  }
  0x72   :  { %v5323_v5 = vld [vmem:[%s7503_s1 + $0x970] ss:$8 sps:$4 sm:$0xff]  }
  0x73   :  { %3316 = vmatpush1.bf16.msra.mxu1 %v5240_v6  ;;  %v5328_v6 = vld [vmem:[%s7503_s1 + $0x284] ss:$8 sps:$4 sm:$0xff]  }
  0x74   :  { %3813 = vmatpush1.bf16.msra.mxu0 %v5245_v7  ;;  %3317 = vmatprep.subr.bf16.mxu1 %v5252_v8  ;;  %v5331_v7 = vld [vmem:[%s7503_s1 + $0x984] ss:$8 sps:$4 sm:$0xff]   ;;  %v5326_v8 = vld [vmem:[%s7503_s1 + $0x280] ss:$8 sps:$4 sm:$0xff]  }
  0x75   :  { %3814 = vmatprep.subr.bf16.mxu0 %v5255_v9  ;;  %v5329_v9 = vld [vmem:[%s7503_s1 + $0x980] ss:$8 sps:$4 sm:$0xff]  }
  0x77   :  { %3318 = vmatpush1.bf16.msra.mxu1 %v5250_v10  ;;  %v5334_v10 = vld [vmem:[%s7503_s1 + $0x294] ss:$8 sps:$4 sm:$0xff]  }
  0x78   :  { %3815 = vmatpush1.bf16.msra.mxu0 %v5253_v11  ;;  %3319 = vmatprep.subr.bf16.mxu1 %v5259_v12  ;;  %v5337_v11 = vld [vmem:[%s7503_s1 + $0x994] ss:$8 sps:$4 sm:$0xff]   ;;  %v5332_v12 = vld [vmem:[%s7503_s1 + $0x290] ss:$8 sps:$4 sm:$0xff]  }
  0x79   :  { %3816 = vmatprep.subr.bf16.mxu0 %v5263_v13  ;;  %v5335_v13 = vld [vmem:[%s7503_s1 + $0x990] ss:$8 sps:$4 sm:$0xff]  }
  0x7b   :  { %3320 = vmatpush1.bf16.msra.mxu1 %v5257_v14  ;;  %v5342_v14 = vld [vmem:[%s7503_s1 + $0x2a4] ss:$8 sps:$4 sm:$0xff]  }
  0x7c   :  { %3817 = vmatpush1.bf16.msra.mxu0 %v5261_v15  ;;  %3321 = vmatprep.subr.bf16.mxu1 %v5268_v16  ;;  %v5347_v15 = vld [vmem:[%s7503_s1 + $0x9a4] ss:$8 sps:$4 sm:$0xff]   ;;  %v5340_v16 = vld [vmem:[%s7503_s1 + $0x2a0] ss:$8 sps:$4 sm:$0xff]  }
  0x7d   :  { %3818 = vmatprep.subr.bf16.mxu0 %v5271_v17  ;;  %v5345_v17 = vld [vmem:[%s7503_s1 + $0x9a0] ss:$8 sps:$4 sm:$0xff]  }
  0x7f   :  { %3322 = vmatpush1.bf16.msra.mxu1 %v5266_v18  ;;  %v5352_v18 = vld [vmem:[%s7503_s1 + $0x2b4] ss:$8 sps:$4 sm:$0xff]  }
  0x80   :  { %3819 = vmatpush1.bf16.msra.mxu0 %v5269_v19  ;;  %3362 = vmatprep.subr.bf16.mxu1 %v5277_v20  ;;  %v5355_v19 = vld [vmem:[%s7503_s1 + $0x9b4] ss:$8 sps:$4 sm:$0xff]   ;;  %v5350_v20 = vld [vmem:[%s7503_s1 + $0x2b0] ss:$8 sps:$4 sm:$0xff]  }
  0x81   :  { %3859 = vmatprep.subr.bf16.mxu0 %v5283_v21  ;;  %v5353_v21 = vld [vmem:[%s7503_s1 + $0x9b0] ss:$8 sps:$4 sm:$0xff]  }
  0x82   :  { %3324 = vmatmul.mubr.bf16.vlgmr.msra.gmra.mrb[0].mxu1 %v5272_v22  ;;  %v5360_v22 = vld [vmem:[%s7503_s1 + $0x2c4] ss:$8 sps:$4 sm:$0xff]  }
  0x83   :  { %3821 = vmatmul.mubr.bf16.vlgmr.msra.gmra.mrb[0].mxu0 %v5278_v24  ;;  %3363 = vmatpush1.bf16.msra.mxu1 %v5275_v23  ;;  %v5365_v23 = vld [vmem:[%s7503_s1 + $0x9c4] ss:$8 sps:$4 sm:$0xff]   ;;  %v5358_v24 = vld [vmem:[%s7503_s1 + $0x2c0] ss:$8 sps:$4 sm:$0xff]  }
  0x84   :  { %3860 = vmatpush1.bf16.msra.mxu0 %v5281_v25  ;;  %3364 = vmatprep.subr.bf16.mxu1 %v5286_v26  ;;  %v5363_v25 = vld [vmem:[%s7503_s1 + $0x9c0] ss:$8 sps:$4 sm:$0xff]   ;;  %v5370_v26 = vld [vmem:[%s7503_s1 + $0x2d4] ss:$8 sps:$4 sm:$0xff]  }
  0x85   :  { %3861 = vmatprep.subr.bf16.mxu0 %v5289_v27  ;;  %3333 = vmatprep.mubr.bf16.mxu1 %v5338_v28  ;;  %v5373_v27 = vld [vmem:[%s7503_s1 + $0x9d4] ss:$8 sps:$4 sm:$0xff]   ;;  %v5368_v28 = vld [vmem:[%s7503_s1 + $0x2d0] ss:$8 sps:$4 sm:$0xff]  }
  0x86   :  { %3830 = vmatprep.mubr.bf16.mxu0 %v5343_v29  ;;  %v5371_v29 = vld [vmem:[%s7503_s1 + $0x9d0] ss:$8 sps:$4 sm:$0xff]  }
  0x87   :  { %3365 = vmatpush1.bf16.msra.mxu1 %v5284_v30  ;;  %v5377_v30 = vld [vmem:[%s7503_s1 + $0x2e4] ss:$8 sps:$4 sm:$0xff]  }
  0x88   :  { %3862 = vmatpush1.bf16.msra.mxu0 %v5287_v31  ;;  %3366 = vmatprep.subr.bf16.mxu1 %v5292_v32  ;;  %v5381_v31 = vld [vmem:[%s7503_s1 + $0x9e4] ss:$8 sps:$4 sm:$0xff]   ;;  %v5375_v32 = vld [vmem:[%s7503_s1 + $0x2e0] ss:$8 sps:$4 sm:$0xff]  }
  0x89   :  { %3863 = vmatprep.subr.bf16.mxu0 %v5295_v33  ;;  %v5379_v33 = vld [vmem:[%s7503_s1 + $0x9e0] ss:$8 sps:$4 sm:$0xff]  }
  0x8a   :  { %3334 = vmatmul.mubr.bf16.gmra.mrb[4].mxu1 %v5348_v35  ;;  %v5389_v35 = vld [vmem:[%s7503_s1 + $0x9f4] ss:$8 sps:$4 sm:$0xff]  }
  0x8b   :  { %3831 = vmatmul.mubr.bf16.gmra.mrb[4].mxu0 %v5349_v36  ;;  %3367 = vmatpush1.bf16.msra.mxu1 %v5290_v34  ;;  %v5386_v34 = vld [vmem:[%s7503_s1 + $0x2f4] ss:$8 sps:$4 sm:$0xff]   ;;  %v5384_v36 = vld [vmem:[%s7503_s1 + $0x2f0] ss:$8 sps:$4 sm:$0xff]  }
  0x8c   :  { %3864 = vmatpush1.bf16.msra.mxu0 %v5293_v37  ;;  %3368 = vmatprep.subr.bf16.mxu1 %v5298_v38  ;;  %v5387_v37 = vld [vmem:[%s7503_s1 + $0x9f0] ss:$8 sps:$4 sm:$0xff]   ;;  %v5395_v38 = vld [vmem:[%s7503_s1 + $0x304] ss:$8 sps:$4 sm:$0xff]  }
  0x8d   :  { %3865 = vmatprep.subr.bf16.mxu0 %v5301_v39  ;;  %3343 = vmatprep.mubr.bf16.mxu1 %v5356_v40  ;;  %v5401_v39 = vld [vmem:[%s7503_s1 + $0xa04] ss:$8 sps:$4 sm:$0xff]   ;;  %v5390_v40 = vld [vmem:[%s7504_s0 + $0x10] ss:$108 sps:$4 sm:$0xff]  }
  0x8e   :  { %3840 = vmatprep.mubr.bf16.mxu0 %v5361_v41  ;;  %v5393_v41 = vld [vmem:[%s7503_s1 + $0x300] ss:$8 sps:$4 sm:$0xff]  }
  0x8f   :  { %3369 = vmatpush1.bf16.msra.mxu1 %v5296_v42  ;;  %v5396_v42 = vld [vmem:[%s7504_s0 + $0x48] ss:$108 sps:$4 sm:$0xff]  }
  0x90   :  { %3866 = vmatpush1.bf16.msra.mxu0 %v5299_v43  ;;  %3370 = vmatprep.subr.bf16.mxu1 %v5304_v44  ;;  %v5399_v43 = vld [vmem:[%s7503_s1 + $0xa00] ss:$8 sps:$4 sm:$0xff]   ;;  %v5404_v44 = vld [vmem:[%s7503_s1 + $0x314] ss:$8 sps:$4 sm:$0xff]  }
  0x91   :  { %3867 = vmatprep.subr.bf16.mxu0 %v5307_v45  ;;  %v5407_v45 = vld [vmem:[%s7503_s1 + $0xa14] ss:$8 sps:$4 sm:$0xff]  }
  0x92   :  { %3344 = vmatmul.mubr.bf16.gmra.mrb[8].mxu1 %v5366_v48  ;;  %v5402_v48 = vld [vmem:[%s7503_s1 + $0x310] ss:$8 sps:$4 sm:$0xff]  }
  0x93   :  { %3841 = vmatmul.mubr.bf16.gmra.mrb[8].mxu0 %v5367_v49  ;;  %3371 = vmatpush1.bf16.msra.mxu1 %v5302_v46  ;;  %v5456_v46 = vld [vmem:[%s7504_s0 + $0xec] ss:$108 sps:$4 sm:$0xff]  }
  0x94   :  { %3868 = vmatpush1.bf16.msra.mxu0 %v5305_v47  ;;  %3372 = vmatprep.subr.bf16.mxu1 %v5310_v52  ;;  %v5461_v47 = vld [vmem:[%s7504_s0 + $0x124] ss:$108 sps:$4 sm:$0xff]   ;;  %v5408_v52 = vld [vmem:[%s7503_s1 + $0x320] ss:$8 sps:$4 sm:$0xff]  }
  0x95   :  { %3869 = vmatprep.subr.bf16.mxu0 %v5313_v53  ;;  %3353 = vmatprep.mubr.bf16.mxu1 %v4367_v54  ;;  %v5405_v49 = vld [vmem:[%s7503_s1 + $0xa10] ss:$8 sps:$4 sm:$0xff]   ;;  %v5466_v53 = vld [vmem:[%s7504_s0 + $0xe8] ss:$108 sps:$4 sm:$0xff]   ;;  %v5467_v54 = vld [vmem:[%s7504_s0 + $0x120] ss:$108 sps:$4 sm:$0xff]  }
  0x96   :  { %3850 = vmatprep.mubr.bf16.mxu0 %v4381_v55  ;;  %v5411_v55 = vld [vmem:[%s7503_s1 + $0xa20] ss:$8 sps:$4 sm:$0xff]  }
  0x97   :  { %3373 = vmatpush1.bf16.msra.mxu1 %v5308_v56  ;;  %v5416_v56 = vld [vmem:[%s7503_s1 + $0x334] ss:$8 sps:$4 sm:$0xff]  }
  0x98   :  { %3870 = vmatpush1.bf16.msra.mxu0 %v5311_v57  ;;  %3374 = vmatprep.subr.bf16.mxu1 %v5316_v58  ;;  %v5419_v57 = vld [vmem:[%s7503_s1 + $0xa34] ss:$8 sps:$4 sm:$0xff]   ;;  %v5474_v58 = vld [vmem:[%s7504_s0 + $0x1c4] ss:$108 sps:$4 sm:$0xff]  }
  0x99   :  { %3871 = vmatprep.subr.bf16.mxu0 %v5319_v59  ;;  %v5414_v59 = vld [vmem:[%s7503_s1 + $0x330] ss:$8 sps:$4 sm:$0xff]  }
  0x9a   :  { %3354 = vmatmul.mubr.bf16.gmra.mrb[12].mxu1 %v4366_v62  ;;  %v5422_v62 = vld [vmem:[%s7503_s1 + $0x344] ss:$8 sps:$4 sm:$0xff]  }
  0x9b   :  { %3851 = vmatmul.mubr.bf16.gmra.mrb[12].mxu0 %v4380_v63  ;;  %3375 = vmatpush1.bf16.msra.mxu1 %v5314_v60  ;;  %v5479_v60 = vld [vmem:[%s7504_s0 + $0x1fc] ss:$108 sps:$4 sm:$0xff]   ;;  %v5425_v63 = vld [vmem:[%s7503_s1 + $0xa44] ss:$8 sps:$4 sm:$0xff]  }
  0x9c   :  { %3872 = vmatpush1.bf16.msra.mxu0 %v5317_v61  ;;  %3376 = vmatprep.subr.bf16.mxu1 %v5322_v0  ;;  %v5417_v61 = vld [vmem:[%s7503_s1 + $0xa30] ss:$8 sps:$4 sm:$0xff]   ;;  %v5484_v0 = vld [vmem:[%s7504_s0 + $0x1c0] ss:$108 sps:$4 sm:$0xff]  }
  0x9d   :  { %3873 = vmatprep.subr.bf16.mxu0 %v5325_v1  ;;  %3394 = vmatprep.mubr.bf16.mxu1 %v5392_v2  ;;  %v5485_v1 = vld [vmem:[%s7504_s0 + $0x1f8] ss:$108 sps:$4 sm:$0xff]  }
  0x9e   :  { %3891 = vmatprep.mubr.bf16.mxu0 %v5398_v3  ;;  %v101_v2 = vld [vmem:[%s7504_s0 + $0x298] sm:$0x11]  ;;  %v108_v3 = vld [vmem:[%s7504_s0 + $0x2d0] sm:$0x11] }
  0x9f   :  { %3377 = vmatpush1.bf16.msra.mxu1 %v5320_v4  ;;  %v5420_v4 = vld [vmem:[%s7503_s1 + $0x340] ss:$8 sps:$4 sm:$0xff]  }
  0xa0   :  { %3874 = vmatpush1.bf16.msra.mxu0 %v5323_v5  ;;  %3378 = vmatprep.subr.bf16.mxu1 %v5328_v6  ;;  %v5423_v5 = vld [vmem:[%s7503_s1 + $0xa40] ss:$8 sps:$4 sm:$0xff]   ;;  %v5428_v6 = vld [vmem:[%s7503_s1 + $0x354] ss:$8 sps:$4 sm:$0xff]  }
  0xa1   :  { %3875 = vmatprep.subr.bf16.mxu0 %v5331_v7  ;;  %v5431_v7 = vld [vmem:[%s7503_s1 + $0xa54] ss:$8 sps:$4 sm:$0xff]  }
  0xa3   :  { %3379 = vmatpush1.bf16.msra.mxu1 %v5326_v8  ;;  %v4369_v8 = vcombine.high %v101_v2, %v101_v2 }
  0xa4   :  { %3876 = vmatpush1.bf16.msra.mxu0 %v5329_v9  ;;  %3380 = vmatprep.subr.bf16.mxu1 %v5334_v10  ;;  %v4383_v9 = vcombine.high %v108_v3, %v108_v3  ;;  %v5426_v10 = vld [vmem:[%s7503_s1 + $0x350] ss:$8 sps:$4 sm:$0xff]  }
  0xa5   :  { %3877 = vmatprep.subr.bf16.mxu0 %v5337_v11  ;;  %v5429_v11 = vld [vmem:[%s7503_s1 + $0xa50] ss:$8 sps:$4 sm:$0xff]  }
  0xa7   :  { %3381 = vmatpush1.bf16.msra.mxu1 %v5332_v12  ;;  %v5434_v12 = vld [vmem:[%s7503_s1 + $0x364] ss:$8 sps:$4 sm:$0xff]  }
  0xa8   :  { %3878 = vmatpush1.bf16.msra.mxu0 %v5335_v13  ;;  %3382 = vmatprep.subr.bf16.mxu1 %v5342_v14  ;;  %v5437_v13 = vld [vmem:[%s7503_s1 + $0xa64] ss:$8 sps:$4 sm:$0xff]   ;;  %v5432_v14 = vld [vmem:[%s7503_s1 + $0x360] ss:$8 sps:$4 sm:$0xff]  }
  0xa9   :  { %3879 = vmatprep.subr.bf16.mxu0 %v5347_v15  ;;  %v4368_v15 = vcombine.low %v101_v2, %v101_v2  ;;  %v5520_v2 = vld [vmem:[%s7503_s1 + $0x410] ss:$8 sps:$4 sm:$0xff]  }
  0xab   :  { %3383 = vmatpush1.bf16.msra.mxu1 %v5340_v16  ;;  %v4382_v16 = vcombine.low %v108_v3, %v108_v3  ;;  %v5523_v3 = vld [vmem:[%s7503_s1 + $0xb10] ss:$8 sps:$4 sm:$0xff]  }
  0xac   :  { %3880 = vmatpush1.bf16.msra.mxu0 %v5345_v17  ;;  %3384 = vmatprep.subr.bf16.mxu1 %v5352_v18  ;;  %v5435_v17 = vld [vmem:[%s7503_s1 + $0xa60] ss:$8 sps:$4 sm:$0xff]   ;;  %v5440_v18 = vld [vmem:[%s7503_s1 + $0x374] ss:$8 sps:$4 sm:$0xff]  }
  0xad   :  { %3881 = vmatprep.subr.bf16.mxu0 %v5355_v19  ;;  %v5443_v19 = vld [vmem:[%s7503_s1 + $0xa74] ss:$8 sps:$4 sm:$0xff]  }
  0xaf   :  { %3385 = vmatpush1.bf16.msra.mxu1 %v5350_v20  ;;  %v5510_v20 = vld [vmem:[%s7504_s0 + $0x1c] ss:$108 sps:$4 sm:$0xff]  }
  0xb0   :  { %3882 = vmatpush1.bf16.msra.mxu0 %v5353_v21  ;;  %3386 = vmatprep.subr.bf16.mxu1 %v5360_v22  ;;  %v5516_v21 = vld [vmem:[%s7504_s0 + $0x54] ss:$108 sps:$4 sm:$0xff]   ;;  %v5438_v22 = vld [vmem:[%s7503_s1 + $0x370] ss:$8 sps:$4 sm:$0xff]  }
  0xb1   :  { %3883 = vmatprep.subr.bf16.mxu0 %v5365_v23  ;;  %v5441_v23 = vld [vmem:[%s7503_s1 + $0xa70] ss:$8 sps:$4 sm:$0xff]  }
  0xb3   :  { %3387 = vmatpush1.bf16.msra.mxu1 %v5358_v24  ;;  %v5446_v24 = vld [vmem:[%s7503_s1 + $0x384] ss:$8 sps:$4 sm:$0xff]  }
  0xb4   :  { %3884 = vmatpush1.bf16.msra.mxu0 %v5363_v25  ;;  %3388 = vmatprep.subr.bf16.mxu1 %v5370_v26  ;;  %v5449_v25 = vld [vmem:[%s7503_s1 + $0xa84] ss:$8 sps:$4 sm:$0xff]   ;;  %v5444_v26 = vld [vmem:[%s7503_s1 + $0x380] ss:$8 sps:$4 sm:$0xff]  }
  0xb5   :  { %3885 = vmatprep.subr.bf16.mxu0 %v5373_v27  ;;  %v5447_v27 = vld [vmem:[%s7503_s1 + $0xa80] ss:$8 sps:$4 sm:$0xff]  }
  0xb7   :  { %3389 = vmatpush1.bf16.msra.mxu1 %v5368_v28  ;;  %v5452_v28 = vld [vmem:[%s7503_s1 + $0x394] ss:$8 sps:$4 sm:$0xff]  }
  0xb8   :  { %3886 = vmatpush1.bf16.msra.mxu0 %v5371_v29  ;;  %3390 = vmatprep.subr.bf16.mxu1 %v5377_v30  ;;  %v5455_v29 = vld [vmem:[%s7503_s1 + $0xa94] ss:$8 sps:$4 sm:$0xff]   ;;  %v5450_v30 = vld [vmem:[%s7503_s1 + $0x390] ss:$8 sps:$4 sm:$0xff]  }
  0xb9   :  { %3887 = vmatprep.subr.bf16.mxu0 %v5381_v31  ;;  %v5453_v31 = vld [vmem:[%s7503_s1 + $0xa90] ss:$8 sps:$4 sm:$0xff]  }
  0xbb   :  { %3391 = vmatpush1.bf16.msra.mxu1 %v5375_v32  ;;  %v5460_v32 = vld [vmem:[%s7503_s1 + $0x3a4] ss:$8 sps:$4 sm:$0xff]  }
  0xbc   :  { %3888 = vmatpush1.bf16.msra.mxu0 %v5379_v33  ;;  %3392 = vmatprep.subr.bf16.mxu1 %v5386_v34  ;;  %v5465_v33 = vld [vmem:[%s7503_s1 + $0xaa4] ss:$8 sps:$4 sm:$0xff]   ;;  %v5458_v34 = vld [vmem:[%s7503_s1 + $0x3a0] ss:$8 sps:$4 sm:$0xff]  }
  0xbd   :  { %3889 = vmatprep.subr.bf16.mxu0 %v5389_v35  ;;  %v5463_v35 = vld [vmem:[%s7503_s1 + $0xaa0] ss:$8 sps:$4 sm:$0xff]  }
  0xbf   :  { %3393 = vmatpush1.bf16.msra.mxu1 %v5384_v36  ;;  %v5470_v36 = vld [vmem:[%s7503_s1 + $0x3b4] ss:$8 sps:$4 sm:$0xff]  }
  0xc0   :  { %3890 = vmatpush1.bf16.msra.mxu0 %v5387_v37  ;;  %3433 = vmatprep.subr.bf16.mxu1 %v5395_v38  ;;  %v5473_v37 = vld [vmem:[%s7503_s1 + $0xab4] ss:$8 sps:$4 sm:$0xff]   ;;  %v5468_v38 = vld [vmem:[%s7503_s1 + $0x3b0] ss:$8 sps:$4 sm:$0xff]  }
  0xc1   :  { %3930 = vmatprep.subr.bf16.mxu0 %v5401_v39  ;;  %v5471_v39 = vld [vmem:[%s7503_s1 + $0xab0] ss:$8 sps:$4 sm:$0xff]  }
  0xc2   :  { %3395 = vmatmul.mubr.bf16.vlgmr.msra.gmra.mrb[0].mxu1 %v5390_v40  ;;  %v5478_v40 = vld [vmem:[%s7503_s1 + $0x3c4] ss:$8 sps:$4 sm:$0xff]  }
  0xc3   :  { %3892 = vmatmul.mubr.bf16.vlgmr.msra.gmra.mrb[0].mxu0 %v5396_v42  ;;  %3434 = vmatpush1.bf16.msra.mxu1 %v5393_v41  ;;  %v5483_v41 = vld [vmem:[%s7503_s1 + $0xac4] ss:$8 sps:$4 sm:$0xff]   ;;  %v5476_v42 = vld [vmem:[%s7503_s1 + $0x3c0] ss:$8 sps:$4 sm:$0xff]  }
  0xc4   :  { %3931 = vmatpush1.bf16.msra.mxu0 %v5399_v43  ;;  %3435 = vmatprep.subr.bf16.mxu1 %v5404_v44  ;;  %v5481_v43 = vld [vmem:[%s7503_s1 + $0xac0] ss:$8 sps:$4 sm:$0xff]   ;;  %v5488_v44 = vld [vmem:[%s7503_s1 + $0x3d4] ss:$8 sps:$4 sm:$0xff]  }
  0xc5   :  { %3932 = vmatprep.subr.bf16.mxu0 %v5407_v45  ;;  %3404 = vmatprep.mubr.bf16.mxu1 %v5456_v46  ;;  %v5491_v45 = vld [vmem:[%s7503_s1 + $0xad4] ss:$8 sps:$4 sm:$0xff]   ;;  %v5486_v46 = vld [vmem:[%s7503_s1 + $0x3d0] ss:$8 sps:$4 sm:$0xff]  }
  0xc6   :  { %3901 = vmatprep.mubr.bf16.mxu0 %v5461_v47  ;;  %v5489_v47 = vld [vmem:[%s7503_s1 + $0xad0] ss:$8 sps:$4 sm:$0xff]  }
  0xc7   :  { %3436 = vmatpush1.bf16.msra.mxu1 %v5402_v48  ;;  %v5495_v48 = vld [vmem:[%s7503_s1 + $0x3e4] ss:$8 sps:$4 sm:$0xff]  }
  0xc8   :  { %3933 = vmatpush1.bf16.msra.mxu0 %v5405_v49  ;;  %3437 = vmatprep.subr.bf16.mxu1 %v5410_v50  ;;  %v5499_v49 = vld [vmem:[%s7503_s1 + $0xae4] ss:$8 sps:$4 sm:$0xff]   ;;  %v5493_v50 = vld [vmem:[%s7503_s1 + $0x3e0] ss:$8 sps:$4 sm:$0xff]  }
  0xc9   :  { %3934 = vmatprep.subr.bf16.mxu0 %v5413_v51  ;;  %v5497_v51 = vld [vmem:[%s7503_s1 + $0xae0] ss:$8 sps:$4 sm:$0xff]  }
  0xca   :  { %3405 = vmatmul.mubr.bf16.gmra.mrb[4].mxu1 %v5466_v53  ;;  %v5507_v53 = vld [vmem:[%s7503_s1 + $0xaf4] ss:$8 sps:$4 sm:$0xff]  }
  0xcb   :  { %3902 = vmatmul.mubr.bf16.gmra.mrb[4].mxu0 %v5467_v54  ;;  %3438 = vmatpush1.bf16.msra.mxu1 %v5408_v52  ;;  %v5504_v52 = vld [vmem:[%s7503_s1 + $0x3f4] ss:$8 sps:$4 sm:$0xff]   ;;  %v5502_v54 = vld [vmem:[%s7503_s1 + $0x3f0] ss:$8 sps:$4 sm:$0xff]  }
  0xcc   :  { %3935 = vmatpush1.bf16.msra.mxu0 %v5411_v55  ;;  %3439 = vmatprep.subr.bf16.mxu1 %v5416_v56  ;;  %v5505_v55 = vld [vmem:[%s7503_s1 + $0xaf0] ss:$8 sps:$4 sm:$0xff]   ;;  %v5513_v56 = vld [vmem:[%s7503_s1 + $0x404] ss:$8 sps:$4 sm:$0xff]  }
  0xcd   :  { %3936 = vmatprep.subr.bf16.mxu0 %v5419_v57  ;;  %3414 = vmatprep.mubr.bf16.mxu1 %v5474_v58  ;;  %v5519_v57 = vld [vmem:[%s7503_s1 + $0xb04] ss:$8 sps:$4 sm:$0xff]  }
  0xce   :  { %3911 = vmatprep.mubr.bf16.mxu0 %v5479_v60  ;;  %v5508_v58 = vld [vmem:[%s7504_s0 + $0x18] ss:$108 sps:$4 sm:$0xff]   ;;  %v5514_v60 = vld [vmem:[%s7504_s0 + $0x50] ss:$108 sps:$4 sm:$0xff]  }
  0xcf   :  { %3440 = vmatpush1.bf16.msra.mxu1 %v5414_v59  ;;  %v5511_v59 = vld [vmem:[%s7503_s1 + $0x400] ss:$8 sps:$4 sm:$0xff]  }
  0xd0   :  { %3937 = vmatpush1.bf16.msra.mxu0 %v5417_v61  ;;  %3441 = vmatprep.subr.bf16.mxu1 %v5422_v62  ;;  %v5517_v61 = vld [vmem:[%s7503_s1 + $0xb00] ss:$8 sps:$4 sm:$0xff]   ;;  %v5522_v62 = vld [vmem:[%s7503_s1 + $0x414] ss:$8 sps:$4 sm:$0xff]  }
  0xd1   :  { %3938 = vmatprep.subr.bf16.mxu0 %v5425_v63  ;;  %v5525_v63 = vld [vmem:[%s7503_s1 + $0xb14] ss:$8 sps:$4 sm:$0xff]  }
  0xd2   :  { %3415 = vmatmul.mubr.bf16.gmra.mrb[8].mxu1 %v5484_v0  ;;  %v5574_v0 = vld [vmem:[%s7504_s0 + $0xf4] ss:$108 sps:$4 sm:$0xff]  }
  0xd3   :  { %3912 = vmatmul.mubr.bf16.gmra.mrb[8].mxu0 %v5485_v1  ;;  %3442 = vmatpush1.bf16.msra.mxu1 %v5420_v4  ;;  %v5579_v1 = vld [vmem:[%s7504_s0 + $0x12c] ss:$108 sps:$4 sm:$0xff]  }
  0xd4   :  { %3939 = vmatpush1.bf16.msra.mxu0 %v5423_v5  ;;  %3443 = vmatprep.subr.bf16.mxu1 %v5428_v6  ;;  %v5528_v4 = vld [vmem:[%s7503_s1 + $0x424] ss:$8 sps:$4 sm:$0xff]   ;;  %v5526_v6 = vld [vmem:[%s7503_s1 + $0x420] ss:$8 sps:$4 sm:$0xff]  }
  0xd5   :  { %3940 = vmatprep.subr.bf16.mxu0 %v5431_v7  ;;  %3424 = vmatprep.mubr.bf16.mxu1 %v4369_v8  ;;  %v5531_v5 = vld [vmem:[%s7503_s1 + $0xb24] ss:$8 sps:$4 sm:$0xff]   ;;  %v5529_v7 = vld [vmem:[%s7503_s1 + $0xb20] ss:$8 sps:$4 sm:$0xff]   ;;  %v5584_v8 = vld [vmem:[%s7504_s0 + $0xf0] ss:$108 sps:$4 sm:$0xff]  }
  0xd6   :  { %3921 = vmatprep.mubr.bf16.mxu0 %v4383_v9  ;;  %v5585_v9 = vld [vmem:[%s7504_s0 + $0x128] ss:$108 sps:$4 sm:$0xff]  }
  0xd7   :  { %3444 = vmatpush1.bf16.msra.mxu1 %v5426_v10  ;;  %v5534_v10 = vld [vmem:[%s7503_s1 + $0x434] ss:$8 sps:$4 sm:$0xff]  }
  0xd8   :  { %3941 = vmatpush1.bf16.msra.mxu0 %v5429_v11  ;;  %3445 = vmatprep.subr.bf16.mxu1 %v5434_v12  ;;  %v5537_v11 = vld [vmem:[%s7503_s1 + $0xb34] ss:$8 sps:$4 sm:$0xff]   ;;  %v5592_v12 = vld [vmem:[%s7504_s0 + $0x1cc] ss:$108 sps:$4 sm:$0xff]  }
  0xd9   :  { %3942 = vmatprep.subr.bf16.mxu0 %v5437_v13  ;;  %v5597_v13 = vld [vmem:[%s7504_s0 + $0x204] ss:$108 sps:$4 sm:$0xff]  }
  0xda   :  { %3425 = vmatmul.mubr.bf16.gmra.mrb[12].mxu1 %v4368_v15  ;;  %v5535_v15 = vld [vmem:[%s7503_s1 + $0xb30] ss:$8 sps:$4 sm:$0xff]  }
  0xdb   :  { %3922 = vmatmul.mubr.bf16.gmra.mrb[12].mxu0 %v4382_v16  ;;  %3446 = vmatpush1.bf16.msra.mxu1 %v5432_v14  ;;  %v5532_v14 = vld [vmem:[%s7503_s1 + $0x430] ss:$8 sps:$4 sm:$0xff]   ;;  %v5540_v16 = vld [vmem:[%s7503_s1 + $0x444] ss:$8 sps:$4 sm:$0xff]  }
  0xdc   :  { %3943 = vmatpush1.bf16.msra.mxu0 %v5435_v17  ;;  %3447 = vmatprep.subr.bf16.mxu1 %v5440_v18  ;;  %v5543_v17 = vld [vmem:[%s7503_s1 + $0xb44] ss:$8 sps:$4 sm:$0xff]   ;;  %v5538_v18 = vld [vmem:[%s7503_s1 + $0x440] ss:$8 sps:$4 sm:$0xff]  }
  0xdd   :  { %3944 = vmatprep.subr.bf16.mxu0 %v5443_v19  ;;  %3465 = vmatprep.mubr.bf16.mxu1 %v5510_v20  ;;  %v5541_v19 = vld [vmem:[%s7503_s1 + $0xb40] ss:$8 sps:$4 sm:$0xff]  }
  0xde   :  { %3962 = vmatprep.mubr.bf16.mxu0 %v5516_v21  ;;  %v5602_v20 = vld [vmem:[%s7504_s0 + $0x1c8] ss:$108 sps:$4 sm:$0xff]   ;;  %v5603_v21 = vld [vmem:[%s7504_s0 + $0x200] ss:$108 sps:$4 sm:$0xff]  }
  0xdf   :  { %3448 = vmatpush1.bf16.msra.mxu1 %v5438_v22  ;;  %v102_v22 = vld [vmem:[%s7504_s0 + $0x2a0] sm:$0x11] }
  0xe0   :  { %3945 = vmatpush1.bf16.msra.mxu0 %v5441_v23  ;;  %3449 = vmatprep.subr.bf16.mxu1 %v5446_v24  ;;  %v109_v23 = vld [vmem:[%s7504_s0 + $0x2d8] sm:$0x11] }
  0xe1   :  { %3946 = vmatprep.subr.bf16.mxu0 %v5449_v25  ;;  %v5546_v24 = vld [vmem:[%s7503_s1 + $0x454] ss:$8 sps:$4 sm:$0xff]  }
  0xe2   :  { %v5549_v25 = vld [vmem:[%s7503_s1 + $0xb54] ss:$8 sps:$4 sm:$0xff]  }
  0xe3   :  { %3450 = vmatpush1.bf16.msra.mxu1 %v5444_v26  ;;  %v4371_v26 = vcombine.high %v102_v22, %v102_v22 }
  0xe4   :  { %3947 = vmatpush1.bf16.msra.mxu0 %v5447_v27  ;;  %3451 = vmatprep.subr.bf16.mxu1 %v5452_v28  ;;  %v4385_v27 = vcombine.high %v109_v23, %v109_v23  ;;  %v5544_v28 = vld [vmem:[%s7503_s1 + $0x450] ss:$8 sps:$4 sm:$0xff]  }
  0xe5   :  { %3948 = vmatprep.subr.bf16.mxu0 %v5455_v29  ;;  %v5547_v29 = vld [vmem:[%s7503_s1 + $0xb50] ss:$8 sps:$4 sm:$0xff]  }
  0xe7   :  { %3452 = vmatpush1.bf16.msra.mxu1 %v5450_v30  ;;  %v5552_v30 = vld [vmem:[%s7503_s1 + $0x464] ss:$8 sps:$4 sm:$0xff]  }
  0xe8   :  { %3949 = vmatpush1.bf16.msra.mxu0 %v5453_v31  ;;  %3453 = vmatprep.subr.bf16.mxu1 %v5460_v32  ;;  %v5555_v31 = vld [vmem:[%s7503_s1 + $0xb64] ss:$8 sps:$4 sm:$0xff]   ;;  %v4370_v32 = vcombine.low %v102_v22, %v102_v22 }
  0xe9   :  { %3950 = vmatprep.subr.bf16.mxu0 %v5465_v33  ;;  %v4384_v33 = vcombine.low %v109_v23, %v109_v23  ;;  %v5646_v22 = vld [vmem:[%s7503_s1 + $0x524] ss:$8 sps:$4 sm:$0xff]  }
  0xea   :  { %v5649_v23 = vld [vmem:[%s7503_s1 + $0xc24] ss:$8 sps:$4 sm:$0xff]  }
  0xeb   :  { %3454 = vmatpush1.bf16.msra.mxu1 %v5458_v34  ;;  %v5550_v34 = vld [vmem:[%s7503_s1 + $0x460] ss:$8 sps:$4 sm:$0xff]  }
  0xec   :  { %3951 = vmatpush1.bf16.msra.mxu0 %v5463_v35  ;;  %3455 = vmatprep.subr.bf16.mxu1 %v5470_v36  ;;  %v5553_v35 = vld [vmem:[%s7503_s1 + $0xb60] ss:$8 sps:$4 sm:$0xff]   ;;  %v5558_v36 = vld [vmem:[%s7503_s1 + $0x474] ss:$8 sps:$4 sm:$0xff]  }
  0xed   :  { %3952 = vmatprep.subr.bf16.mxu0 %v5473_v37  ;;  %v5561_v37 = vld [vmem:[%s7503_s1 + $0xb74] ss:$8 sps:$4 sm:$0xff]  }
  0xef   :  { %3456 = vmatpush1.bf16.msra.mxu1 %v5468_v38  ;;  %v5628_v38 = vld [vmem:[%s7504_s0 + $0x24] ss:$108 sps:$4 sm:$0xff]  }
  0xf0   :  { %3953 = vmatpush1.bf16.msra.mxu0 %v5471_v39  ;;  %3457 = vmatprep.subr.bf16.mxu1 %v5478_v40  ;;  %v5634_v39 = vld [vmem:[%s7504_s0 + $0x5c] ss:$108 sps:$4 sm:$0xff]   ;;  %v5556_v40 = vld [vmem:[%s7503_s1 + $0x470] ss:$8 sps:$4 sm:$0xff]  }
  0xf1   :  { %3954 = vmatprep.subr.bf16.mxu0 %v5483_v41  ;;  %v5559_v41 = vld [vmem:[%s7503_s1 + $0xb70] ss:$8 sps:$4 sm:$0xff]  }
  0xf3   :  { %3458 = vmatpush1.bf16.msra.mxu1 %v5476_v42  ;;  %v5564_v42 = vld [vmem:[%s7503_s1 + $0x484] ss:$8 sps:$4 sm:$0xff]  }
  0xf4   :  { %3955 = vmatpush1.bf16.msra.mxu0 %v5481_v43  ;;  %3459 = vmatprep.subr.bf16.mxu1 %v5488_v44  ;;  %v5567_v43 = vld [vmem:[%s7503_s1 + $0xb84] ss:$8 sps:$4 sm:$0xff]   ;;  %v5562_v44 = vld [vmem:[%s7503_s1 + $0x480] ss:$8 sps:$4 sm:$0xff]  }
  0xf5   :  { %3956 = vmatprep.subr.bf16.mxu0 %v5491_v45  ;;  %v5565_v45 = vld [vmem:[%s7503_s1 + $0xb80] ss:$8 sps:$4 sm:$0xff]  }
  0xf7   :  { %3460 = vmatpush1.bf16.msra.mxu1 %v5486_v46  ;;  %v5570_v46 = vld [vmem:[%s7503_s1 + $0x494] ss:$8 sps:$4 sm:$0xff]  }
  0xf8   :  { %3957 = vmatpush1.bf16.msra.mxu0 %v5489_v47  ;;  %3461 = vmatprep.subr.bf16.mxu1 %v5495_v48  ;;  %v5573_v47 = vld [vmem:[%s7503_s1 + $0xb94] ss:$8 sps:$4 sm:$0xff]   ;;  %v5568_v48 = vld [vmem:[%s7503_s1 + $0x490] ss:$8 sps:$4 sm:$0xff]  }
  0xf9   :  { %3958 = vmatprep.subr.bf16.mxu0 %v5499_v49  ;;  %v5571_v49 = vld [vmem:[%s7503_s1 + $0xb90] ss:$8 sps:$4 sm:$0xff]  }
  0xfb   :  { %3462 = vmatpush1.bf16.msra.mxu1 %v5493_v50  ;;  %v5578_v50 = vld [vmem:[%s7503_s1 + $0x4a4] ss:$8 sps:$4 sm:$0xff]  }
  0xfc   :  { %3959 = vmatpush1.bf16.msra.mxu0 %v5497_v51  ;;  %3463 = vmatprep.subr.bf16.mxu1 %v5504_v52  ;;  %v5583_v51 = vld [vmem:[%s7503_s1 + $0xba4] ss:$8 sps:$4 sm:$0xff]   ;;  %v5576_v52 = vld [vmem:[%s7503_s1 + $0x4a0] ss:$8 sps:$4 sm:$0xff]  }
  0xfd   :  { %3960 = vmatprep.subr.bf16.mxu0 %v5507_v53  ;;  %v5581_v53 = vld [vmem:[%s7503_s1 + $0xba0] ss:$8 sps:$4 sm:$0xff]  }
  0xff   :  { %3464 = vmatpush1.bf16.msra.mxu1 %v5502_v54  ;;  %v5588_v54 = vld [vmem:[%s7503_s1 + $0x4b4] ss:$8 sps:$4 sm:$0xff]  }
 0x100   :  { %3961 = vmatpush1.bf16.msra.mxu0 %v5505_v55  ;;  %3504 = vmatprep.subr.bf16.mxu1 %v5513_v56  ;;  %v5591_v55 = vld [vmem:[%s7503_s1 + $0xbb4] ss:$8 sps:$4 sm:$0xff]   ;;  %v5586_v56 = vld [vmem:[%s7503_s1 + $0x4b0] ss:$8 sps:$4 sm:$0xff]  }
 0x101   :  { %4001 = vmatprep.subr.bf16.mxu0 %v5519_v57  ;;  %v5589_v57 = vld [vmem:[%s7503_s1 + $0xbb0] ss:$8 sps:$4 sm:$0xff]  }
 0x102   :  { %3466 = vmatmul.mubr.bf16.vlgmr.msra.gmra.mrb[0].mxu1 %v5508_v58  ;;  %v5596_v58 = vld [vmem:[%s7503_s1 + $0x4c4] ss:$8 sps:$4 sm:$0xff]  }
 0x103   :  { %3963 = vmatmul.mubr.bf16.vlgmr.msra.gmra.mrb[0].mxu0 %v5514_v60  ;;  %3505 = vmatpush1.bf16.msra.mxu1 %v5511_v59  ;;  %v5601_v59 = vld [vmem:[%s7503_s1 + $0xbc4] ss:$8 sps:$4 sm:$0xff]   ;;  %v5594_v60 = vld [vmem:[%s7503_s1 + $0x4c0] ss:$8 sps:$4 sm:$0xff]  }
 0x104   :  { %4002 = vmatpush1.bf16.msra.mxu0 %v5517_v61  ;;  %3506 = vmatprep.subr.bf16.mxu1 %v5522_v62  ;;  %v5599_v61 = vld [vmem:[%s7503_s1 + $0xbc0] ss:$8 sps:$4 sm:$0xff]   ;;  %v5606_v62 = vld [vmem:[%s7503_s1 + $0x4d4] ss:$8 sps:$4 sm:$0xff]  }
 0x105   :  { %4003 = vmatprep.subr.bf16.mxu0 %v5525_v63  ;;  %3475 = vmatprep.mubr.bf16.mxu1 %v5574_v0  ;;  %v5609_v63 = vld [vmem:[%s7503_s1 + $0xbd4] ss:$8 sps:$4 sm:$0xff]   ;;  %v5604_v0 = vld [vmem:[%s7503_s1 + $0x4d0] ss:$8 sps:$4 sm:$0xff]  }
 0x106   :  { %3972 = vmatprep.mubr.bf16.mxu0 %v5579_v1  ;;  %v5607_v1 = vld [vmem:[%s7503_s1 + $0xbd0] ss:$8 sps:$4 sm:$0xff]  }
 0x107   :  { %3507 = vmatpush1.bf16.msra.mxu1 %v5520_v2  ;;  %v5613_v2 = vld [vmem:[%s7503_s1 + $0x4e4] ss:$8 sps:$4 sm:$0xff]  }
 0x108   :  { %4004 = vmatpush1.bf16.msra.mxu0 %v5523_v3  ;;  %3508 = vmatprep.subr.bf16.mxu1 %v5528_v4  ;;  %v5617_v3 = vld [vmem:[%s7503_s1 + $0xbe4] ss:$8 sps:$4 sm:$0xff]   ;;  %v5611_v4 = vld [vmem:[%s7503_s1 + $0x4e0] ss:$8 sps:$4 sm:$0xff]  }
 0x109   :  { %4005 = vmatprep.subr.bf16.mxu0 %v5531_v5  ;;  %v5615_v5 = vld [vmem:[%s7503_s1 + $0xbe0] ss:$8 sps:$4 sm:$0xff]  }
 0x10a   :  { %3476 = vmatmul.mubr.bf16.gmra.mrb[4].mxu1 %v5584_v8  ;;  %v5620_v8 = vld [vmem:[%s7503_s1 + $0x4f0] ss:$8 sps:$4 sm:$0xff]  }
 0x10b   :  { %3973 = vmatmul.mubr.bf16.gmra.mrb[4].mxu0 %v5585_v9  ;;  %3509 = vmatpush1.bf16.msra.mxu1 %v5526_v6  ;;  %v5622_v6 = vld [vmem:[%s7503_s1 + $0x4f4] ss:$8 sps:$4 sm:$0xff]   ;;  %v5623_v9 = vld [vmem:[%s7503_s1 + $0xbf0] ss:$8 sps:$4 sm:$0xff]  }
 0x10c   :  { %4006 = vmatpush1.bf16.msra.mxu0 %v5529_v7  ;;  %3510 = vmatprep.subr.bf16.mxu1 %v5534_v10  ;;  %v5625_v7 = vld [vmem:[%s7503_s1 + $0xbf4] ss:$8 sps:$4 sm:$0xff]   ;;  %v5626_v10 = vld [vmem:[%s7504_s0 + $0x20] ss:$108 sps:$4 sm:$0xff]  }
 0x10d   :  { %4007 = vmatprep.subr.bf16.mxu0 %v5537_v11  ;;  %3485 = vmatprep.mubr.bf16.mxu1 %v5592_v12  ;;  %v5631_v11 = vld [vmem:[%s7503_s1 + $0x504] ss:$8 sps:$4 sm:$0xff]  }
 0x10e   :  { %3982 = vmatprep.mubr.bf16.mxu0 %v5597_v13  ;;  %v5637_v12 = vld [vmem:[%s7503_s1 + $0xc04] ss:$8 sps:$4 sm:$0xff]   ;;  %v5629_v13 = vld [vmem:[%s7503_s1 + $0x500] ss:$8 sps:$4 sm:$0xff]  }
 0x10f   :  { %3511 = vmatpush1.bf16.msra.mxu1 %v5532_v14  ;;  %v5632_v14 = vld [vmem:[%s7504_s0 + $0x58] ss:$108 sps:$4 sm:$0xff]  }
 0x110   :  { %4008 = vmatpush1.bf16.msra.mxu0 %v5535_v15  ;;  %3512 = vmatprep.subr.bf16.mxu1 %v5540_v16  ;;  %v5635_v15 = vld [vmem:[%s7503_s1 + $0xc00] ss:$8 sps:$4 sm:$0xff]   ;;  %v5640_v16 = vld [vmem:[%s7503_s1 + $0x514] ss:$8 sps:$4 sm:$0xff]  }
 0x111   :  { %4009 = vmatprep.subr.bf16.mxu0 %v5543_v17  ;;  %v5643_v17 = vld [vmem:[%s7503_s1 + $0xc14] ss:$8 sps:$4 sm:$0xff]  }
 0x112   :  { %3486 = vmatmul.mubr.bf16.gmra.mrb[8].mxu1 %v5602_v20  ;;  %v5638_v20 = vld [vmem:[%s7503_s1 + $0x510] ss:$8 sps:$4 sm:$0xff]  }
 0x113   :  { %3983 = vmatmul.mubr.bf16.gmra.mrb[8].mxu0 %v5603_v21  ;;  %3513 = vmatpush1.bf16.msra.mxu1 %v5538_v18  ;;  %v5692_v18 = vld [vmem:[%s7504_s0 + $0x134] ss:$108 sps:$4 sm:$0xff]   ;;  %v5641_v21 = vld [vmem:[%s7503_s1 + $0xc10] ss:$8 sps:$4 sm:$0xff]  }
 0x114   :  { %4010 = vmatpush1.bf16.msra.mxu0 %v5541_v19  ;;  %3514 = vmatprep.subr.bf16.mxu1 %v5546_v24  ;;  %v5694_v19 = vld [vmem:[%s7504_s0 + $0xfc] ss:$108 sps:$4 sm:$0xff]  }
 0x115   :  { %4011 = vmatprep.subr.bf16.mxu0 %v5549_v25  ;;  %3495 = vmatprep.mubr.bf16.mxu1 %v4371_v26  ;;  %v5644_v24 = vld [vmem:[%s7503_s1 + $0x520] ss:$8 sps:$4 sm:$0xff]   ;;  %v5699_v26 = vld [vmem:[%s7504_s0 + $0x130] ss:$108 sps:$4 sm:$0xff]  }
 0x116   :  { %3992 = vmatprep.mubr.bf16.mxu0 %v4385_v27  ;;  %v5647_v25 = vld [vmem:[%s7503_s1 + $0xc20] ss:$8 sps:$4 sm:$0xff]   ;;  %v5703_v27 = vld [vmem:[%s7504_s0 + $0xf8] ss:$108 sps:$4 sm:$0xff]  }
 0x117   :  { %3515 = vmatpush1.bf16.msra.mxu1 %v5544_v28  ;;  %v5652_v28 = vld [vmem:[%s7503_s1 + $0x534] ss:$8 sps:$4 sm:$0xff]  }
 0x118   :  { %4012 = vmatpush1.bf16.msra.mxu0 %v5547_v29  ;;  %3516 = vmatprep.subr.bf16.mxu1 %v5552_v30  ;;  %v5655_v29 = vld [vmem:[%s7503_s1 + $0xc34] ss:$8 sps:$4 sm:$0xff]   ;;  %v5710_v30 = vld [vmem:[%s7504_s0 + $0x20c] ss:$108 sps:$4 sm:$0xff]  }
 0x119   :  { %4013 = vmatprep.subr.bf16.mxu0 %v5555_v31  ;;  %v5650_v31 = vld [vmem:[%s7503_s1 + $0x530] ss:$8 sps:$4 sm:$0xff]  }
 0x11a   :  { %3496 = vmatmul.mubr.bf16.gmra.mrb[12].mxu1 %v4370_v32  ;;  %v5712_v32 = vld [vmem:[%s7504_s0 + $0x1d4] ss:$108 sps:$4 sm:$0xff]  }
 0x11b   :  { %3993 = vmatmul.mubr.bf16.gmra.mrb[12].mxu0 %v4384_v33  ;;  %3517 = vmatpush1.bf16.msra.mxu1 %v5550_v34  ;;  %v5653_v33 = vld [vmem:[%s7503_s1 + $0xc30] ss:$8 sps:$4 sm:$0xff]   ;;  %v5658_v34 = vld [vmem:[%s7503_s1 + $0x544] ss:$8 sps:$4 sm:$0xff]  }
 0x11c   :  { %4014 = vmatpush1.bf16.msra.mxu0 %v5553_v35  ;;  %3518 = vmatprep.subr.bf16.mxu1 %v5558_v36  ;;  %v5661_v35 = vld [vmem:[%s7503_s1 + $0xc44] ss:$8 sps:$4 sm:$0xff]   ;;  %v5717_v36 = vld [vmem:[%s7504_s0 + $0x208] ss:$108 sps:$4 sm:$0xff]  }
 0x11d   :  { %4015 = vmatprep.subr.bf16.mxu0 %v5561_v37  ;;  %3536 = vmatprep.mubr.bf16.mxu1 %v5628_v38  ;;  %v5656_v37 = vld [vmem:[%s7503_s1 + $0x540] ss:$8 sps:$4 sm:$0xff]   ;;  %v5721_v38 = vld [vmem:[%s7504_s0 + $0x1d0] ss:$108 sps:$4 sm:$0xff]  }
 0x11e   :  { %4033 = vmatprep.mubr.bf16.mxu0 %v5634_v39  ;;  %v110_v39 = vld [vmem:[%s7504_s0 + $0x2e0] sm:$0x11] }
 0x11f   :  { %3519 = vmatpush1.bf16.msra.mxu1 %v5556_v40  ;;  %v103_v40 = vld [vmem:[%s7504_s0 + $0x2a8] sm:$0x11] }
 0x120   :  { %4016 = vmatpush1.bf16.msra.mxu0 %v5559_v41  ;;  %3520 = vmatprep.subr.bf16.mxu1 %v5564_v42  ;;  %v5659_v41 = vld [vmem:[%s7503_s1 + $0xc40] ss:$8 sps:$4 sm:$0xff]   ;;  %v5664_v42 = vld [vmem:[%s7503_s1 + $0x554] ss:$8 sps:$4 sm:$0xff]  }
 0x121   :  { %4017 = vmatprep.subr.bf16.mxu0 %v5567_v43  ;;  %v5667_v43 = vld [vmem:[%s7503_s1 + $0xc54] ss:$8 sps:$4 sm:$0xff]  }
 0x123   :  { %3521 = vmatpush1.bf16.msra.mxu1 %v5562_v44  ;;  %v4387_v44 = vcombine.high %v110_v39, %v110_v39 }
 0x124   :  { %4018 = vmatpush1.bf16.msra.mxu0 %v5565_v45  ;;  %3522 = vmatprep.subr.bf16.mxu1 %v5570_v46  ;;  %v4373_v45 = vcombine.high %v103_v40, %v103_v40  ;;  %v5662_v46 = vld [vmem:[%s7503_s1 + $0x550] ss:$8 sps:$4 sm:$0xff]  }
 0x125   :  { %4019 = vmatprep.subr.bf16.mxu0 %v5573_v47  ;;  %v5665_v47 = vld [vmem:[%s7503_s1 + $0xc50] ss:$8 sps:$4 sm:$0xff]  }
 0x127   :  { %3523 = vmatpush1.bf16.msra.mxu1 %v5568_v48  ;;  %v5670_v48 = vld [vmem:[%s7503_s1 + $0x564] ss:$8 sps:$4 sm:$0xff]  }
 0x128   :  { %4020 = vmatpush1.bf16.msra.mxu0 %v5571_v49  ;;  %3524 = vmatprep.subr.bf16.mxu1 %v5578_v50  ;;  %v5673_v49 = vld [vmem:[%s7503_s1 + $0xc64] ss:$8 sps:$4 sm:$0xff]   ;;  %v5668_v50 = vld [vmem:[%s7503_s1 + $0x560] ss:$8 sps:$4 sm:$0xff]  }
 0x129   :  { %4021 = vmatprep.subr.bf16.mxu0 %v5583_v51  ;;  %v5671_v51 = vld [vmem:[%s7503_s1 + $0xc60] ss:$8 sps:$4 sm:$0xff]  }
 0x12b   :  { %3525 = vmatpush1.bf16.msra.mxu1 %v5576_v52  ;;  %v4386_v52 = vcombine.low %v110_v39, %v110_v39  ;;  %v5759_v39 = vld [vmem:[%s7503_s1 + $0xd10] ss:$8 sps:$4 sm:$0xff]  }
 0x12c   :  { %4022 = vmatpush1.bf16.msra.mxu0 %v5581_v53  ;;  %3526 = vmatprep.subr.bf16.mxu1 %v5588_v54  ;;  %v4372_v53 = vcombine.low %v103_v40, %v103_v40  ;;  %v5676_v54 = vld [vmem:[%s7503_s1 + $0x574] ss:$8 sps:$4 sm:$0xff]   ;;  %v5766_v40 = vld [vmem:[%s7503_s1 + $0x624] ss:$8 sps:$4 sm:$0xff]  }
 0x12d   :  { %4023 = vmatprep.subr.bf16.mxu0 %v5591_v55  ;;  %v5679_v55 = vld [vmem:[%s7503_s1 + $0xc74] ss:$8 sps:$4 sm:$0xff]  }
 0x12f   :  { %3527 = vmatpush1.bf16.msra.mxu1 %v5586_v56  ;;  %v5746_v56 = vld [vmem:[%s7504_s0 + $0x64] ss:$108 sps:$4 sm:$0xff]  }
 0x130   :  { %4024 = vmatpush1.bf16.msra.mxu0 %v5589_v57  ;;  %3528 = vmatprep.subr.bf16.mxu1 %v5596_v58  ;;  %v5749_v57 = vld [vmem:[%s7504_s0 + $0x2c] ss:$108 sps:$4 sm:$0xff]  }
 0x131   :  { %4025 = vmatprep.subr.bf16.mxu0 %v5601_v59  ;;  %v5674_v58 = vld [vmem:[%s7503_s1 + $0x570] ss:$8 sps:$4 sm:$0xff]  }
 0x132   :  { %v5677_v59 = vld [vmem:[%s7503_s1 + $0xc70] ss:$8 sps:$4 sm:$0xff]  }
 0x133   :  { %3529 = vmatpush1.bf16.msra.mxu1 %v5594_v60  ;;  %v5682_v60 = vld [vmem:[%s7503_s1 + $0x584] ss:$8 sps:$4 sm:$0xff]  }
 0x134   :  { %4026 = vmatpush1.bf16.msra.mxu0 %v5599_v61  ;;  %3530 = vmatprep.subr.bf16.mxu1 %v5606_v62  ;;  %v5685_v61 = vld [vmem:[%s7503_s1 + $0xc84] ss:$8 sps:$4 sm:$0xff]   ;;  %v5680_v62 = vld [vmem:[%s7503_s1 + $0x580] ss:$8 sps:$4 sm:$0xff]  }
 0x135   :  { %4027 = vmatprep.subr.bf16.mxu0 %v5609_v63  ;;  %v5683_v63 = vld [vmem:[%s7503_s1 + $0xc80] ss:$8 sps:$4 sm:$0xff]  }
 0x137   :  { %3531 = vmatpush1.bf16.msra.mxu1 %v5604_v0  ;;  %v5688_v0 = vld [vmem:[%s7503_s1 + $0x594] ss:$8 sps:$4 sm:$0xff]  }
 0x138   :  { %4028 = vmatpush1.bf16.msra.mxu0 %v5607_v1  ;;  %3532 = vmatprep.subr.bf16.mxu1 %v5613_v2  ;;  %v5691_v1 = vld [vmem:[%s7503_s1 + $0xc94] ss:$8 sps:$4 sm:$0xff]   ;;  %v5686_v2 = vld [vmem:[%s7503_s1 + $0x590] ss:$8 sps:$4 sm:$0xff]  }
 0x139   :  { %4029 = vmatprep.subr.bf16.mxu0 %v5617_v3  ;;  %v5689_v3 = vld [vmem:[%s7503_s1 + $0xc90] ss:$8 sps:$4 sm:$0xff]  }
 0x13b   :  { %3533 = vmatpush1.bf16.msra.mxu1 %v5611_v4  ;;  %v5698_v4 = vld [vmem:[%s7503_s1 + $0x5a4] ss:$8 sps:$4 sm:$0xff]  }
 0x13c   :  { %4030 = vmatpush1.bf16.msra.mxu0 %v5615_v5  ;;  %3534 = vmatprep.subr.bf16.mxu1 %v5622_v6  ;;  %v5702_v5 = vld [vmem:[%s7503_s1 + $0xca4] ss:$8 sps:$4 sm:$0xff]   ;;  %v5696_v6 = vld [vmem:[%s7503_s1 + $0x5a0] ss:$8 sps:$4 sm:$0xff]  }
 0x13d   :  { %4031 = vmatprep.subr.bf16.mxu0 %v5625_v7  ;;  %v5700_v7 = vld [vmem:[%s7503_s1 + $0xca0] ss:$8 sps:$4 sm:$0xff]  }
 0x13f   :  { %3535 = vmatpush1.bf16.msra.mxu1 %v5620_v8  ;;  %v5706_v8 = vld [vmem:[%s7503_s1 + $0x5b4] ss:$8 sps:$4 sm:$0xff]  }
 0x140   :  { %4032 = vmatpush1.bf16.msra.mxu0 %v5623_v9  ;;  %3575 = vmatprep.subr.bf16.mxu1 %v5631_v11  ;;  %v5709_v9 = vld [vmem:[%s7503_s1 + $0xcb4] ss:$8 sps:$4 sm:$0xff]   ;;  %v5707_v11 = vld [vmem:[%s7503_s1 + $0xcb0] ss:$8 sps:$4 sm:$0xff]  }
 0x141   :  { %4072 = vmatprep.subr.bf16.mxu0 %v5637_v12  ;;  %v5716_v12 = vld [vmem:[%s7503_s1 + $0x5c4] ss:$8 sps:$4 sm:$0xff]  }
 0x142   :  { %3537 = vmatmul.mubr.bf16.vlgmr.msra.gmra.mrb[0].mxu1 %v5626_v10  ;;  %v5704_v10 = vld [vmem:[%s7503_s1 + $0x5b0] ss:$8 sps:$4 sm:$0xff]  }
 0x143   :  { %4034 = vmatmul.mubr.bf16.vlgmr.msra.gmra.mrb[0].mxu0 %v5632_v14  ;;  %3576 = vmatpush1.bf16.msra.mxu1 %v5629_v13  ;;  %v5720_v13 = vld [vmem:[%s7503_s1 + $0xcc4] ss:$8 sps:$4 sm:$0xff]   ;;  %v5714_v14 = vld [vmem:[%s7503_s1 + $0x5c0] ss:$8 sps:$4 sm:$0xff]  }
 0x144   :  { %4073 = vmatpush1.bf16.msra.mxu0 %v5635_v15  ;;  %3577 = vmatprep.subr.bf16.mxu1 %v5640_v16  ;;  %v5718_v15 = vld [vmem:[%s7503_s1 + $0xcc0] ss:$8 sps:$4 sm:$0xff]   ;;  %v5724_v16 = vld [vmem:[%s7503_s1 + $0x5d4] ss:$8 sps:$4 sm:$0xff]  }
 0x145   :  { %4074 = vmatprep.subr.bf16.mxu0 %v5643_v17  ;;  %4043 = vmatprep.mubr.bf16.mxu0 %v5692_v18  ;;  %v5727_v17 = vld [vmem:[%s7503_s1 + $0xcd4] ss:$8 sps:$4 sm:$0xff]   ;;  %v5722_v18 = vld [vmem:[%s7503_s1 + $0x5d0] ss:$8 sps:$4 sm:$0xff]  }
 0x146   :  { %3546 = vmatprep.mubr.bf16.mxu1 %v5694_v19  ;;  %v5725_v19 = vld [vmem:[%s7503_s1 + $0xcd0] ss:$8 sps:$4 sm:$0xff]  }
 0x147   :  { %3578 = vmatpush1.bf16.msra.mxu1 %v5638_v20  ;;  %v5732_v20 = vld [vmem:[%s7503_s1 + $0x5e4] ss:$8 sps:$4 sm:$0xff]  }
 0x148   :  { %4075 = vmatpush1.bf16.msra.mxu0 %v5641_v21  ;;  %3579 = vmatprep.subr.bf16.mxu1 %v5646_v22  ;;  %v5736_v21 = vld [vmem:[%s7503_s1 + $0xce4] ss:$8 sps:$4 sm:$0xff]   ;;  %v5730_v22 = vld [vmem:[%s7503_s1 + $0x5e0] ss:$8 sps:$4 sm:$0xff]  }
 0x149   :  { %4076 = vmatprep.subr.bf16.mxu0 %v5649_v23  ;;  %v5734_v23 = vld [vmem:[%s7503_s1 + $0xce0] ss:$8 sps:$4 sm:$0xff]  }
 0x14a   :  { %3547 = vmatmul.mubr.bf16.gmra.mrb[4].mxu1 %v5703_v27  ;;  %v5741_v27 = vld [vmem:[%s7503_s1 + $0xcf0] ss:$8 sps:$4 sm:$0xff]  }
 0x14b   :  { %4044 = vmatmul.mubr.bf16.gmra.mrb[4].mxu0 %v5699_v26  ;;  %3580 = vmatpush1.bf16.msra.mxu1 %v5644_v24  ;;  %v5740_v24 = vld [vmem:[%s7503_s1 + $0x5f4] ss:$8 sps:$4 sm:$0xff]   ;;  %v5738_v26 = vld [vmem:[%s7503_s1 + $0x5f0] ss:$8 sps:$4 sm:$0xff]  }
 0x14c   :  { %4077 = vmatpush1.bf16.msra.mxu0 %v5647_v25  ;;  %3581 = vmatprep.subr.bf16.mxu1 %v5652_v28  ;;  %v5743_v25 = vld [vmem:[%s7503_s1 + $0xcf4] ss:$8 sps:$4 sm:$0xff]   ;;  %v5752_v28 = vld [vmem:[%s7503_s1 + $0x604] ss:$8 sps:$4 sm:$0xff]  }
 0x14d   :  { %4078 = vmatprep.subr.bf16.mxu0 %v5655_v29  ;;  %4053 = vmatprep.mubr.bf16.mxu0 %v5710_v30  ;;  %v5755_v29 = vld [vmem:[%s7503_s1 + $0xd04] ss:$8 sps:$4 sm:$0xff]  }
 0x14e   :  { %3556 = vmatprep.mubr.bf16.mxu1 %v5712_v32  ;;  %v5744_v30 = vld [vmem:[%s7504_s0 + $0x60] ss:$108 sps:$4 sm:$0xff]  }
 0x14f   :  { %3582 = vmatpush1.bf16.msra.mxu1 %v5650_v31  ;;  %v5747_v31 = vld [vmem:[%s7504_s0 + $0x28] ss:$108 sps:$4 sm:$0xff]  }
 0x150   :  { %4079 = vmatpush1.bf16.msra.mxu0 %v5653_v33  ;;  %3583 = vmatprep.subr.bf16.mxu1 %v5658_v34  ;;  %v5750_v32 = vld [vmem:[%s7503_s1 + $0x600] ss:$8 sps:$4 sm:$0xff]   ;;  %v5758_v34 = vld [vmem:[%s7503_s1 + $0x614] ss:$8 sps:$4 sm:$0xff]  }
 0x151   :  { %4080 = vmatprep.subr.bf16.mxu0 %v5661_v35  ;;  %v5753_v33 = vld [vmem:[%s7503_s1 + $0xd00] ss:$8 sps:$4 sm:$0xff]   ;;  %v5761_v35 = vld [vmem:[%s7503_s1 + $0xd14] ss:$8 sps:$4 sm:$0xff]  }
 0x152   :  { %3557 = vmatmul.mubr.bf16.gmra.mrb[8].mxu1 %v5721_v38  ;;  %v5756_v38 = vld [vmem:[%s7503_s1 + $0x610] ss:$8 sps:$4 sm:$0xff]  }
 0x153   :  { %4054 = vmatmul.mubr.bf16.gmra.mrb[8].mxu0 %v5717_v36  ;;  %3584 = vmatpush1.bf16.msra.mxu1 %v5656_v37  ;;  %v5762_v36 = vld [vmem:[%s7504_s0 + $0x13c] ss:$108 sps:$4 sm:$0xff]   ;;  %v5813_v37 = vld [vmem:[%s7504_s0 + $0x104] ss:$108 sps:$4 sm:$0xff]  }
 0x154   :  { %4081 = vmatpush1.bf16.msra.mxu0 %v5659_v41  ;;  %3585 = vmatprep.subr.bf16.mxu1 %v5664_v42  ;;  %v5770_v41 = vld [vmem:[%s7503_s1 + $0xd24] ss:$8 sps:$4 sm:$0xff]  }
 0x155   :  { %4082 = vmatprep.subr.bf16.mxu0 %v5667_v43  ;;  %4063 = vmatprep.mubr.bf16.mxu0 %v4387_v44  ;;  %v5767_v42 = vld [vmem:[%s7504_s0 + $0x138] ss:$108 sps:$4 sm:$0xff]   ;;  %v5815_v43 = vld [vmem:[%s7504_s0 + $0x100] ss:$108 sps:$4 sm:$0xff]  }
 0x156   :  { %3566 = vmatprep.mubr.bf16.mxu1 %v4373_v45  ;;  %v5764_v44 = vld [vmem:[%s7503_s1 + $0x620] ss:$8 sps:$4 sm:$0xff]  }
 0x157   :  { %3586 = vmatpush1.bf16.msra.mxu1 %v5662_v46  ;;  %v5768_v45 = vld [vmem:[%s7503_s1 + $0xd20] ss:$8 sps:$4 sm:$0xff]   ;;  %v5773_v46 = vld [vmem:[%s7503_s1 + $0x634] ss:$8 sps:$4 sm:$0xff]  }
 0x158   :  { %4083 = vmatpush1.bf16.msra.mxu0 %v5665_v47  ;;  %3587 = vmatprep.subr.bf16.mxu1 %v5670_v48  ;;  %v5776_v47 = vld [vmem:[%s7503_s1 + $0xd34] ss:$8 sps:$4 sm:$0xff]  }
 0x159   :  { %4084 = vmatprep.subr.bf16.mxu0 %v5673_v49  ;;  %v5777_v48 = vld [vmem:[%s7504_s0 + $0x214] ss:$108 sps:$4 sm:$0xff]   ;;  %v5823_v49 = vld [vmem:[%s7504_s0 + $0x1dc] ss:$108 sps:$4 sm:$0xff]  }
 0x15a   :  { %3567 = vmatmul.mubr.bf16.gmra.mrb[12].mxu1 %v4372_v53  ;;  %v5785_v53 = vld [vmem:[%s7503_s1 + $0xd44] ss:$8 sps:$4 sm:$0xff]  }
 0x15b   :  { %4064 = vmatmul.mubr.bf16.gmra.mrb[12].mxu0 %v4386_v52  ;;  %3588 = vmatpush1.bf16.msra.mxu1 %v5668_v50  ;;  %v5771_v50 = vld [vmem:[%s7503_s1 + $0x630] ss:$8 sps:$4 sm:$0xff]   ;;  %v5781_v52 = vld [vmem:[%s7503_s1 + $0x644] ss:$8 sps:$4 sm:$0xff]  }
 0x15c   :  { %4085 = vmatpush1.bf16.msra.mxu0 %v5671_v51  ;;  %3589 = vmatprep.subr.bf16.mxu1 %v5676_v54  ;;  %v5774_v51 = vld [vmem:[%s7503_s1 + $0xd30] ss:$8 sps:$4 sm:$0xff]  }
 0x15d   :  { %4086 = vmatprep.subr.bf16.mxu0 %v5679_v55  ;;  %4104 = vmatprep.mubr.bf16.mxu0 %v5746_v56  ;;  %v5782_v54 = vld [vmem:[%s7504_s0 + $0x210] ss:$108 sps:$4 sm:$0xff]   ;;  %v111_v55 = vld [vmem:[%s7504_s0 + $0x2e8] sm:$0x11]  ;;  %v5825_v56 = vld [vmem:[%s7504_s0 + $0x1d8] ss:$108 sps:$4 sm:$0xff]  }
 0x15e   :  { %3607 = vmatprep.mubr.bf16.mxu1 %v5749_v57  ;;  %v104_v57 = vld [vmem:[%s7504_s0 + $0x2b0] sm:$0x11] }
 0x15f   :  { %3590 = vmatpush1.bf16.msra.mxu1 %v5674_v58  ;;  %v5779_v58 = vld [vmem:[%s7503_s1 + $0x640] ss:$8 sps:$4 sm:$0xff]  }
 0x160   :  { %4087 = vmatpush1.bf16.msra.mxu0 %v5677_v59  ;;  %3591 = vmatprep.subr.bf16.mxu1 %v5682_v60  ;;  %v5783_v59 = vld [vmem:[%s7503_s1 + $0xd40] ss:$8 sps:$4 sm:$0xff]   ;;  %v5788_v60 = vld [vmem:[%s7503_s1 + $0x654] ss:$8 sps:$4 sm:$0xff]  }
 0x161   :  { %4088 = vmatprep.subr.bf16.mxu0 %v5685_v61  ;;  %v5791_v61 = vld [vmem:[%s7503_s1 + $0xd54] ss:$8 sps:$4 sm:$0xff]  }
 0x163   :  { %3592 = vmatpush1.bf16.msra.mxu1 %v5680_v62  ;;  %v4389_v62 = vcombine.high %v111_v55, %v111_v55 }
 0x164   :  { %4089 = vmatpush1.bf16.msra.mxu0 %v5683_v63  ;;  %3593 = vmatprep.subr.bf16.mxu1 %v5688_v0  ;;  %v4375_v63 = vcombine.high %v104_v57, %v104_v57  ;;  %v5786_v0 = vld [vmem:[%s7503_s1 + $0x650] ss:$8 sps:$4 sm:$0xff]  }
 0x165   :  { %4090 = vmatprep.subr.bf16.mxu0 %v5691_v1  ;;  %v5789_v1 = vld [vmem:[%s7503_s1 + $0xd50] ss:$8 sps:$4 sm:$0xff]  }
 0x167   :  { %3594 = vmatpush1.bf16.msra.mxu1 %v5686_v2  ;;  %v5795_v2 = vld [vmem:[%s7503_s1 + $0x664] ss:$8 sps:$4 sm:$0xff]  }
 0x168   :  { %4091 = vmatpush1.bf16.msra.mxu0 %v5689_v3  ;;  %3595 = vmatprep.subr.bf16.mxu1 %v5698_v4  ;;  %v5799_v3 = vld [vmem:[%s7503_s1 + $0xd64] ss:$8 sps:$4 sm:$0xff]   ;;  %v4388_v4 = vcombine.low %v111_v55, %v111_v55 }
 0x169   :  { %4092 = vmatprep.subr.bf16.mxu0 %v5702_v5  ;;  %v4374_v5 = vcombine.low %v104_v57, %v104_v57 }
 0x16b   :  { %3596 = vmatpush1.bf16.msra.mxu1 %v5696_v6  ;;  %v5793_v6 = vld [vmem:[%s7503_s1 + $0x660] ss:$8 sps:$4 sm:$0xff]  }
 0x16c   :  { %4093 = vmatpush1.bf16.msra.mxu0 %v5700_v7  ;;  %3597 = vmatprep.subr.bf16.mxu1 %v5706_v8  ;;  %v5797_v7 = vld [vmem:[%s7503_s1 + $0xd60] ss:$8 sps:$4 sm:$0xff]   ;;  %v5802_v8 = vld [vmem:[%s7503_s1 + $0x674] ss:$8 sps:$4 sm:$0xff]  }
 0x16d   :  { %4094 = vmatprep.subr.bf16.mxu0 %v5709_v9  ;;  %v5805_v9 = vld [vmem:[%s7503_s1 + $0xd74] ss:$8 sps:$4 sm:$0xff]  }
 0x16f   :  { %3598 = vmatpush1.bf16.msra.mxu1 %v5704_v10  ;;  %v5844_v10 = vld [vmem:[%s7504_s0 + $0x34] ss:$108 sps:$4 sm:$0xff]  }
 0x170   :  { %4095 = vmatpush1.bf16.msra.mxu0 %v5707_v11  ;;  %3599 = vmatprep.subr.bf16.mxu1 %v5716_v12  ;;  %v5800_v11 = vld [vmem:[%s7503_s1 + $0x670] ss:$8 sps:$4 sm:$0xff]  }
 0x171   :  { %4096 = vmatprep.subr.bf16.mxu0 %v5720_v13  ;;  %v5803_v12 = vld [vmem:[%s7503_s1 + $0xd70] ss:$8 sps:$4 sm:$0xff]   ;;  %v5808_v13 = vld [vmem:[%s7503_s1 + $0x684] ss:$8 sps:$4 sm:$0xff]  }
 0x173   :  { %3600 = vmatpush1.bf16.msra.mxu1 %v5714_v14  ;;  %v5853_v14 = vmov 0  }
 0x174   :  { %4097 = vmatpush1.bf16.msra.mxu0 %v5718_v15  ;;  %3601 = vmatprep.subr.bf16.mxu1 %v5724_v16  ;;  %v5809_v15 = vld [vmem:[%s7504_s0 + $0x68] ss:$108 sps:$4 sm:$0xff]  }
 0x175   :  { %4098 = vmatprep.subr.bf16.mxu0 %v5727_v17  ;;  %v5806_v16 = vld [vmem:[%s7503_s1 + $0x680] ss:$8 sps:$4 sm:$0xff]   ;;  %v5812_v17 = vld [vmem:[%s7503_s1 + $0x694] ss:$8 sps:$4 sm:$0xff]  }
 0x177   :  { %3602 = vmatpush1.bf16.msra.mxu1 %v5722_v18  ;;  %v5810_v18 = vld [vmem:[%s7503_s1 + $0x690] ss:$8 sps:$4 sm:$0xff]  }
 0x178   :  { %4099 = vmatpush1.bf16.msra.mxu0 %v5725_v19  ;;  %3603 = vmatprep.subr.bf16.mxu1 %v5732_v20  ;;  %v5818_v19 = vld [vmem:[%s7503_s1 + $0x6a4] ss:$8 sps:$4 sm:$0xff]  }
 0x179   :  { %4100 = vmatprep.subr.bf16.mxu0 %v5736_v21  ;;  %v5819_v20 = vld [vmem:[%s7504_s0 + $0x140] ss:$108 sps:$4 sm:$0xff]  }
 0x17a   :  { %v5816_v21 = vld [vmem:[%s7503_s1 + $0x6a0] ss:$8 sps:$4 sm:$0xff]  }
 0x17b   :  { %3604 = vmatpush1.bf16.msra.mxu1 %v5730_v22  ;;  %v5822_v22 = vld [vmem:[%s7503_s1 + $0x6b4] ss:$8 sps:$4 sm:$0xff]  }
 0x17c   :  { %4101 = vmatpush1.bf16.msra.mxu0 %v5734_v23  ;;  %3605 = vmatprep.subr.bf16.mxu1 %v5740_v24  ;;  %v5820_v23 = vld [vmem:[%s7503_s1 + $0x6b0] ss:$8 sps:$4 sm:$0xff]   ;;  %v5828_v24 = vld [vmem:[%s7503_s1 + $0x6c4] ss:$8 sps:$4 sm:$0xff]  }
 0x17d   :  { %4102 = vmatprep.subr.bf16.mxu0 %v5743_v25  ;;  %v5829_v25 = vld [vmem:[%s7504_s0 + $0x218] ss:$108 sps:$4 sm:$0xff]  }
 0x17f   :  { %3606 = vmatpush1.bf16.msra.mxu1 %v5738_v26  ;;  %v5826_v26 = vld [vmem:[%s7503_s1 + $0x6c0] ss:$8 sps:$4 sm:$0xff]  }
 0x180   :  { %4103 = vmatpush1.bf16.msra.mxu0 %v5741_v27  ;;  %3646 = vmatprep.subr.bf16.mxu1 %v5752_v28  ;;  %v5832_v27 = vld [vmem:[%s7503_s1 + $0x6d4] ss:$8 sps:$4 sm:$0xff]   ;;  %v5830_v28 = vld [vmem:[%s7503_s1 + $0x6d0] ss:$8 sps:$4 sm:$0xff]  }
 0x181   :  { %4143 = vmatprep.subr.bf16.mxu0 %v5755_v29  ;;  %v5837_v29 = vld [vmem:[%s7503_s1 + $0x6e4] ss:$8 sps:$4 sm:$0xff]  }
 0x182   :  { %3608 = vmatmul.mubr.bf16.vlgmr.msra.gmra.mrb[0].mxu1 %v5747_v31  ;;  %v5835_v31 = vld [vmem:[%s7503_s1 + $0x6e0] ss:$8 sps:$4 sm:$0xff]  }
 0x183   :  { %4105 = vmatmul.mubr.bf16.vlgmr.msra.gmra.mrb[0].mxu0 %v5744_v30  ;;  %3647 = vmatpush1.bf16.msra.mxu1 %v5750_v32  ;;  %v5838_v30 = vld [vmem:[%s7504_s0 + $0x2f0] ss:$0 sps:$4 sm:$0x11]   ;;  %v5841_v32 = vld [vmem:[%s7503_s1 + $0x6f4] ss:$8 sps:$4 sm:$0xff]  }
 0x184   :  { %4144 = vmatpush1.bf16.msra.mxu0 %v5753_v33  ;;  %3648 = vmatprep.subr.bf16.mxu1 %v5758_v34  ;;  %v5839_v33 = vld [vmem:[%s7503_s1 + $0x6f0] ss:$8 sps:$4 sm:$0xff]  }
 0x185   :  { %4145 = vmatprep.subr.bf16.mxu0 %v5761_v35  ;;  %4114 = vmatprep.mubr.bf16.mxu0 %v5762_v36  ;;  %v5842_v34 = vld [vmem:[%s7504_s0 + $0x30] ss:$108 sps:$4 sm:$0xff]   ;;  %v5845_v35 = vld [vmem:[%s7504_s0 + $0x10c] ss:$108 sps:$4 sm:$0xff]   ;;  %v5847_v36 = vld [vmem:[%s7504_s0 + $0x108] ss:$108 sps:$4 sm:$0xff]  }
 0x186   :  { %3617 = vmatprep.mubr.bf16.mxu1 %v5813_v37  ;;  %v5848_v37 = vld [vmem:[%s7504_s0 + $0x1e4] ss:$108 sps:$4 sm:$0xff]  }
 0x187   :  { %3649 = vmatpush1.bf16.msra.mxu1 %v5756_v38  ;;  %v105_v38 = vld [vmem:[%s7504_s0 + $0x2b8] sm:$0x11] }
 0x188   :  { %4146 = vmatpush1.bf16.msra.mxu0 %v5759_v39  ;;  %3650 = vmatprep.subr.bf16.mxu1 %v5766_v40  ;;  %v5850_v39 = vld [vmem:[%s7504_s0 + $0x1e0] ss:$108 sps:$4 sm:$0xff]   ;;  %v4377_v40 = vcombine.high %v105_v38, %v105_v38 }
 0x189   :  { %4147 = vmatprep.subr.bf16.mxu0 %v5770_v41  ;;  %v4376_v41 = vcombine.low %v105_v38, %v105_v38 }
 0x18a   :  { %3618 = vmatmul.mubr.bf16.gmra.mrb[4].mxu1 %v5815_v43 }
 0x18b   :  { %4115 = vmatmul.mubr.bf16.gmra.mrb[4].mxu0 %v5767_v42  ;;  %3651 = vmatpush1.bf16.msra.mxu1 %v5764_v44 }
 0x18c   :  { %4148 = vmatpush1.bf16.msra.mxu0 %v5768_v45  ;;  %3652 = vmatprep.subr.bf16.mxu1 %v5773_v46 }
 0x18d   :  { %4149 = vmatprep.subr.bf16.mxu0 %v5776_v47  ;;  %4124 = vmatprep.mubr.bf16.mxu0 %v5777_v48 }
 0x18e   :  { %3627 = vmatprep.mubr.bf16.mxu1 %v5823_v49 }
 0x18f   :  { %3653 = vmatpush1.bf16.msra.mxu1 %v5771_v50 }
 0x190   :  { %4150 = vmatpush1.bf16.msra.mxu0 %v5774_v51  ;;  %3654 = vmatprep.subr.bf16.mxu1 %v5781_v52  ;;  %v547_v52 = vlaneseq }
 0x191   :  { %4151 = vmatprep.subr.bf16.mxu0 %v5785_v53 }
 0x192   :  { %3628 = vmatmul.mubr.bf16.gmra.mrb[8].mxu1 %v5825_v56  ;;  %v548_v55 = vshrl.u32 %v547_v52, 7 }
 0x193   :  { %4125 = vmatmul.mubr.bf16.gmra.mrb[8].mxu0 %v5782_v54  ;;  %3655 = vmatpush1.bf16.msra.mxu1 %v5779_v58 }
 0x194   :  { %4152 = vmatpush1.bf16.msra.mxu0 %v5783_v59  ;;  %3656 = vmatprep.subr.bf16.mxu1 %v5788_v60  ;;  %v549_v58 = vsub.s32 0, %v548_v55  ;;  %v545_v60 = vld [vmem:[%s7505_s2] sm:$0x3] }
 0x195   :  { %4153 = vmatprep.subr.bf16.mxu0 %v5791_v61  ;;  %4134 = vmatprep.mubr.bf16.mxu0 %v4389_v62  ;;  %v553_v61 = vsub.s32 1, %v548_v55 }
 0x196   :  { %3637 = vmatprep.mubr.bf16.mxu1 %v4375_v63  ;;  %v550_v63 = vrot.slane %v545_v60, %v549_v58 }
 0x197   :  { %3657 = vmatpush1.bf16.msra.mxu1 %v5786_v0  ;;  %v7468_v0 = vrot.slane %v545_v60, %v553_v61 }
 0x198   :  { %4154 = vmatpush1.bf16.msra.mxu0 %v5789_v1  ;;  %3658 = vmatprep.subr.bf16.mxu1 %v5795_v2 }
 0x199   :  { %4155 = vmatprep.subr.bf16.mxu0 %v5799_v3 }
 0x19a   :  { %3638 = vmatmul.mubr.bf16.gmra.mrb[12].mxu1 %v4374_v5 }
 0x19b   :  { %4135 = vmatmul.mubr.bf16.gmra.mrb[12].mxu0 %v4388_v4  ;;  %3659 = vmatpush1.bf16.msra.mxu1 %v5793_v6 }
 0x19c   :  { %4156 = vmatpush1.bf16.msra.mxu0 %v5797_v7  ;;  %3660 = vmatprep.subr.bf16.mxu1 %v5802_v8 }
 0x19d   :  { %4157 = vmatprep.subr.bf16.mxu0 %v5805_v9  ;;  %4175 = vmatprep.mubr.bf16.mxu0 %v5853_v14 }
 0x19e   :  { %3678 = vmatprep.mubr.bf16.mxu1 %v5844_v10 }
 0x19f   :  { %3661 = vmatpush1.bf16.msra.mxu1 %v5800_v11 }
 0x1a0   :  { %4158 = vmatpush1.bf16.msra.mxu0 %v5803_v12  ;;  %3662 = vmatprep.subr.bf16.mxu1 %v5808_v13 }
 0x1a3   :  { %4176 = vmatmul.mubr.bf16.vlgmr.msra.gmra.mrb[0].mxu0 %v5809_v15  ;;  %3663 = vmatpush1.bf16.msra.mxu1 %v5806_v16 }
 0x1a4   :  { %4185 = vmatprep.mubr.bf16.mxu0 %v5853_v14  ;;  %3664 = vmatprep.subr.bf16.mxu1 %v5812_v17 }
 0x1a7   :  { %3665 = vmatpush1.bf16.msra.mxu1 %v5810_v18 }
 0x1a8   :  { %3666 = vmatprep.subr.bf16.mxu1 %v5818_v19 }
 0x1ab   :  { %4186 = vmatmul.mubr.bf16.gmra.mrb[4].mxu0 %v5819_v20  ;;  %3667 = vmatpush1.bf16.msra.mxu1 %v5816_v21 }
 0x1ac   :  { %4195 = vmatprep.mubr.bf16.mxu0 %v5853_v14  ;;  %3668 = vmatprep.subr.bf16.mxu1 %v5822_v22 }
 0x1af   :  { %3669 = vmatpush1.bf16.msra.mxu1 %v5820_v23 }
 0x1b0   :  { %3670 = vmatprep.subr.bf16.mxu1 %v5828_v24 }
 0x1b3   :  { %4196 = vmatmul.mubr.bf16.gmra.mrb[8].mxu0 %v5829_v25  ;;  %3671 = vmatpush1.bf16.msra.mxu1 %v5826_v26 }
 0x1b4   :  { %4205 = vmatprep.mubr.bf16.mxu0 %v5853_v14  ;;  %3672 = vmatprep.subr.bf16.mxu1 %v5832_v27 }
 0x1b7   :  { %3673 = vmatpush1.bf16.msra.mxu1 %v5830_v28 }
 0x1b8   :  { %3674 = vmatprep.subr.bf16.mxu1 %v5837_v29 }
 0x1bb   :  { %4206 = vmatmul.mubr.bf16.gmra.mrb[12].mxu0 %v5838_v30  ;;  %3675 = vmatpush1.bf16.msra.mxu1 %v5835_v31 }
 0x1bc   :  { %3676 = vmatprep.subr.bf16.mxu1 %v5841_v32 }
 0x1bf   :  { %3677 = vmatpush1.bf16.msra.mxu1 %v5839_v33 }
 0x1c2   :  { %3679 = vmatmul.mubr.bf16.vlgmr.msra.gmra.mrb[0].mxu1 %v5842_v34 }
 0x1c3   :  { %3688 = vmatprep.mubr.bf16.mxu1 %v5845_v35 }
 0x1ca   :  { %3689 = vmatmul.mubr.bf16.gmra.mrb[4].mxu1 %v5847_v36 }
 0x1cb   :  { %3698 = vmatprep.mubr.bf16.mxu1 %v5848_v37 }
 0x1d2   :  { %3699 = vmatmul.mubr.bf16.gmra.mrb[8].mxu1 %v5850_v39 }
 0x1d3   :  { %3708 = vmatprep.mubr.bf16.mxu1 %v4377_v40 }
 0x1da   :  { %3709 = vmatmul.mubr.bf16.gmra.mrb[12].mxu1 %v4376_v41 }
 0x276   :  { %v4177_v42 = vpop.f32.mrb[0].mxu0 }
 0x277   :  { %v4179_v43 = vpop.f32.mrb[1].mxu0 }
 0x278   :  { %v4181_v44 = vpop.f32.mrb[2].mxu0 }
 0x279   :  { %v4183_v45 = vpop.f32.mrb[3].mxu0 }
 0x27e   :  { %v4187_v46 = vpop.f32.mrb[4].mxu0 }
 0x27f   :  { %v4189_v47 = vpop.f32.mrb[5].mxu0 }
 0x280   :  { %v4191_v48 = vpop.f32.mrb[6].mxu0 }
 0x281   :  { %v4193_v49 = vpop.f32.mrb[7].mxu0 }
 0x286   :  { %v4197_v50 = vpop.f32.mrb[8].mxu0 }
 0x287   :  { %v7455_v51 = vpop.f32.mrb[9].mxu0 }
 0x288   :  { %v7457_v53 = vpop.f32.mrb[10].mxu0 }
 0x289   :  { %v7459_v54 = vpop.f32.mrb[11].mxu0 }
 0x28e   :  { %v7461_v56 = vpop.f32.mrb[12].mxu0 }
 0x28f   :  { %v7463_v57 = vpop.f32.mrb[13].mxu0 }
 0x290   :  { %v4211_v59 = vpop.f32.mrb[14].mxu0 }
 0x291   :  { %v4212_v62 = vpop.f32.mrb[15].mxu0 }
 0x295   :  { %v3680_v1 = vpop.f32.mrb[0].mxu1 }
 0x296   :  { %v4837_v2 = vadd.f32 %v3680_v1, %v550_v63  ;;  %v3682_v3 = vpop.f32.mrb[1].mxu1 }
 0x297   :  { %v4839_v4 = vadd.f32 %v3682_v3, %v7468_v0  ;;  %v3684_v5 = vpop.f32.mrb[2].mxu1 }
 0x298   :  { %v4838_v6 = vadd.f32 %v4837_v2, %v4177_v42  ;;  %v4841_v7 = vadd.f32 %v3684_v5, %v550_v63  ;;  %v3686_v8 = vpop.f32.mrb[3].mxu1 }
 0x299   :  { %v4840_v9 = vadd.f32 %v4839_v4, %v4179_v43  ;;  %v4843_v10 = vadd.f32 %v3686_v8, %v7468_v0 }
 0x29a   :  { %v4214_v11 = vmax.f32 %v4838_v6, 0.0  ;;  %v4842_v12 = vadd.f32 %v4841_v7, %v4181_v44 }
 0x29b   :  { %v4215_v13 = vmax.f32 %v4840_v9, 0.0  ;;  %v4844_v14 = vadd.f32 %v4843_v10, %v4183_v45 }
 0x29c   :  { %v4216_v15 = vmax.f32 %v4842_v12, 0.0 }
 0x29d   :  { %v4830_v16 = vpack.c.bf16 %v4215_v13, %v4214_v11  ;;  %v4217_v17 = vmax.f32 %v4844_v14, 0.0  ;;  %v3690_v18 = vpop.f32.mrb[4].mxu1 }
 0x29e   :  { %v4845_v19 = vadd.f32 %v3690_v18, %v550_v63  ;;  %v3692_v20 = vpop.f32.mrb[5].mxu1 }
 0x29f   :  { %4272 = vst [vmem:[%s7506_s3] sm:$0xff] %v4830_v16  ;;  %v4831_v21 = vpack.c.bf16 %v4217_v17, %v4216_v15  ;;  %v4847_v22 = vadd.f32 %v3692_v20, %v7468_v0  ;;  %v3694_v23 = vpop.f32.mrb[6].mxu1 }
 0x2a0   :  { %v4846_v24 = vadd.f32 %v4845_v19, %v4187_v46  ;;  %v4849_v25 = vadd.f32 %v3694_v23, %v550_v63  ;;  %v3696_v26 = vpop.f32.mrb[7].mxu1 }
 0x2a1   :  { %4273 = vst [vmem:[%s7506_s3 + $0x8] sm:$0xff] %v4831_v21  ;;  %v4848_v27 = vadd.f32 %v4847_v22, %v4189_v47  ;;  %v4851_v28 = vadd.f32 %v3696_v26, %v7468_v0 }
 0x2a2   :  { %v4218_v29 = vmax.f32 %v4846_v24, 0.0  ;;  %v4850_v30 = vadd.f32 %v4849_v25, %v4191_v48 }
 0x2a3   :  { %v4219_v31 = vmax.f32 %v4848_v27, 0.0  ;;  %v4852_v32 = vadd.f32 %v4851_v28, %v4193_v49 }
 0x2a4   :  { %v4220_v33 = vmax.f32 %v4850_v30, 0.0 }
 0x2a5   :  { %v4832_v34 = vpack.c.bf16 %v4219_v31, %v4218_v29  ;;  %v4221_v35 = vmax.f32 %v4852_v32, 0.0  ;;  %v3700_v36 = vpop.f32.mrb[8].mxu1 }
 0x2a6   :  { %v4853_v37 = vadd.f32 %v3700_v36, %v550_v63  ;;  %v3702_v38 = vpop.f32.mrb[9].mxu1 }
 0x2a7   :  { %4274 = vst [vmem:[%s7506_s3 + $0x10] sm:$0xff] %v4832_v34  ;;  %v4833_v39 = vpack.c.bf16 %v4221_v35, %v4220_v33  ;;  %v4855_v40 = vadd.f32 %v3702_v38, %v7468_v0  ;;  %v3704_v41 = vpop.f32.mrb[10].mxu1 }
 0x2a8   :  { %v4854_v42 = vadd.f32 %v4853_v37, %v4197_v50  ;;  %v4857_v43 = vadd.f32 %v3704_v41, %v550_v63  ;;  %v3706_v44 = vpop.f32.mrb[11].mxu1 }
 0x2a9   :  { %4275 = vst [vmem:[%s7506_s3 + $0x18] sm:$0xff] %v4833_v39  ;;  %v4856_v45 = vadd.f32 %v4855_v40, %v7455_v51  ;;  %v4859_v46 = vadd.f32 %v3706_v44, %v7468_v0 }
 0x2aa   :  { %v4222_v47 = vmax.f32 %v4854_v42, 0.0  ;;  %v4858_v48 = vadd.f32 %v4857_v43, %v7457_v53 }
 0x2ab   :  { %v4223_v49 = vmax.f32 %v4856_v45, 0.0  ;;  %v4860_v52 = vadd.f32 %v4859_v46, %v7459_v54 }
 0x2ac   :  { %v4224_v55 = vmax.f32 %v4858_v48, 0.0 }
 0x2ad   :  { %v4834_v58 = vpack.c.bf16 %v4223_v49, %v4222_v47  ;;  %v4225_v59 = vmax.f32 %v4860_v52, 0.0  ;;  %v3710_v50 = vpop.f32.mrb[12].mxu1 }
 0x2ae   :  { %v4861_v60 = vadd.f32 %v3710_v50, %v550_v63  ;;  %v3712_v61 = vpop.f32.mrb[13].mxu1 }
 0x2af   :  { %4276 = vst [vmem:[%s7506_s3 + $0x20] sm:$0xff] %v4834_v58  ;;  %v4835_v62 = vpack.c.bf16 %v4225_v59, %v4224_v55  ;;  %v4863_v51 = vadd.f32 %v3712_v61, %v7468_v0  ;;  %v3714_v1 = vpop.f32.mrb[14].mxu1 }
 0x2b0   :  { %v4862_v2 = vadd.f32 %v4861_v60, %v7461_v56  ;;  %v3715_v53 = vpop.f32.mrb[15].mxu1 }
 0x2b1   :  { %4277 = vst [vmem:[%s7506_s3 + $0x28] sm:$0xff] %v4835_v62  ;;  %v4864_v54 = vadd.f32 %v4863_v51, %v7463_v57 }
 0x2b2   :  { %v4226_v3 = vmax.f32 %v4862_v2, 0.0 }
 0x2b3   :  { %v4227_v63 = vmax.f32 %v4864_v54, 0.0 }
 0x2b5   :  { %v4836_v4 = vpack.c.bf16 %v4227_v63, %v4226_v3 }
 0x2b7   :  { %4278 = vst [vmem:[%s7506_s3 + $0x30] sm:$0x11] %v4836_v4 }

// kernel: _lambda_.15
= control target key start
LH: loop header
LB: loop body
LE: loop exit
PB: predicated region body
PF: predicated region fallthrough
CT: control target
= control target key end

     0   :  { %s70_s0 = inlined_call_operand.vmem [shape: bf16[9,8,256], index: 0, kind: input, shape index: {}]   ;;  %s71_s1 = inlined_call_operand.vmem [shape: bf16[8,256], index: 1, kind: output, shape index: {}]  }
   0x1   :  { %v8_v0 = vld [vmem:[%s70_s0] sm:$0xff]  ;;  %v9_v1 = vld [vmem:[%s70_s0 + $0x8] sm:$0xff]  ;;  %v10_v2 = vld [vmem:[%s70_s0 + $0x10] sm:$0xff] }
   0x2   :  { %v11_v3 = vld [vmem:[%s70_s0 + $0x18] sm:$0xff]  ;;  %v12_v4 = vld [vmem:[%s70_s0 + $0x20] sm:$0xff]  ;;  %v13_v5 = vld [vmem:[%s70_s0 + $0x28] sm:$0xff] }
   0x3   :  { %v14_v6 = vld [vmem:[%s70_s0 + $0x30] sm:$0xff]  ;;  %v15_v7 = vld [vmem:[%s70_s0 + $0x38] sm:$0xff]  ;;  %v16_v8 = vld [vmem:[%s70_s0 + $0x40] sm:$0xff]  ;;  %v17_v9 = vmax.bf16 %v12_v4, %v8_v0  ;;  %v18_v10 = vmax.bf16 %v13_v5, %v9_v1 }
   0x4   :  { %v19_v11 = vmax.bf16 %v14_v6, %v10_v2  ;;  %v20_v12 = vmax.bf16 %v15_v7, %v11_v3 }
   0x5   :  { %v21_v13 = vmax.bf16 %v17_v9, %v16_v8 }
   0x6   :  { %v23_v14 = vmax.bf16 %v20_v12, %v19_v11 }
   0x7   :  { %v22_v15 = vmax.bf16 %v21_v13, %v18_v10 }
   0x9   :  { %v24_v16 = vmax.bf16 %v23_v14, %v22_v15 }
   0xb   :  { %25 = vst [vmem:[%s71_s1] sm:$0xff] %v24_v16 }

// kernel: _lambda_.14
= control target key start
LH: loop header
LB: loop body
LE: loop exit
PB: predicated region body
PF: predicated region fallthrough
CT: control target
= control target key end

     0   :  { %s5060_s1 = inlined_call_operand.vmem [shape: bf16[2304,256], index: 1, kind: input, shape index: {}]   ;;  %s5061_s0 = inlined_call_operand.vmem [shape: bf16[50,2304], index: 0, kind: input, shape index: {}]   ;;  %s5062_s2 = inlined_call_operand.vmem [shape: f32[1,256], index: 2, kind: input, shape index: {}]   ;;  %s5063_s3 = inlined_call_operand.vmem [shape: bf16[50,256], index: 3, kind: output, shape index: {}]  }
   0x1   :  { %v3402_v0 = vld [vmem:[%s5060_s1 + $0x4] ss:$8 sps:$4 sm:$0xff]   ;;  %v3406_v2 = vld [vmem:[%s5060_s1] ss:$8 sps:$4 sm:$0xff]   ;;  %v3408_v4 = vld [vmem:[%s5060_s1 + $0x14] ss:$8 sps:$4 sm:$0xff]  }
   0x2   :  { %v3404_v1 = vld [vmem:[%s5060_s1 + $0x404] ss:$8 sps:$4 sm:$0xff]   ;;  %2150 = vmatprep.subr.bf16.mxu1 %v3402_v0  ;;  %v3407_v3 = vld [vmem:[%s5060_s1 + $0x400] ss:$8 sps:$4 sm:$0xff]   ;;  %v3410_v5 = vld [vmem:[%s5060_s1 + $0x414] ss:$8 sps:$4 sm:$0xff]  }
   0x3   :  { %2434 = vmatprep.subr.bf16.mxu0 %v3404_v1  ;;  %2151 = vmatpush1.bf16.msra.mxu1 %v3406_v2  ;;  %v3412_v6 = vld [vmem:[%s5060_s1 + $0x10] ss:$8 sps:$4 sm:$0xff]   ;;  %v3414_v8 = vld [vmem:[%s5060_s1 + $0x24] ss:$8 sps:$4 sm:$0xff]   ;;  %v3418_v10 = vld [vmem:[%s5060_s1 + $0x20] ss:$8 sps:$4 sm:$0xff]  }
   0x4   :  { %2435 = vmatpush1.bf16.msra.mxu0 %v3407_v3  ;;  %2152 = vmatprep.subr.bf16.mxu1 %v3408_v4  ;;  %v3413_v7 = vld [vmem:[%s5060_s1 + $0x410] ss:$8 sps:$4 sm:$0xff]   ;;  %v3416_v9 = vld [vmem:[%s5060_s1 + $0x424] ss:$8 sps:$4 sm:$0xff]   ;;  %v3419_v11 = vld [vmem:[%s5060_s1 + $0x420] ss:$8 sps:$4 sm:$0xff]  }
   0x5   :  { %2436 = vmatprep.subr.bf16.mxu0 %v3410_v5  ;;  %v3420_v12 = vld [vmem:[%s5060_s1 + $0x34] ss:$8 sps:$4 sm:$0xff]   ;;  %v3424_v14 = vld [vmem:[%s5060_s1 + $0x30] ss:$8 sps:$4 sm:$0xff]   ;;  %v3426_v16 = vld [vmem:[%s5060_s1 + $0x44] ss:$8 sps:$4 sm:$0xff]  }
   0x6   :  { %v3422_v13 = vld [vmem:[%s5060_s1 + $0x434] ss:$8 sps:$4 sm:$0xff]   ;;  %v3425_v15 = vld [vmem:[%s5060_s1 + $0x430] ss:$8 sps:$4 sm:$0xff]   ;;  %v3428_v17 = vld [vmem:[%s5060_s1 + $0x444] ss:$8 sps:$4 sm:$0xff]  }
   0x7   :  { %2153 = vmatpush1.bf16.msra.mxu1 %v3412_v6  ;;  %v3430_v18 = vld [vmem:[%s5060_s1 + $0x40] ss:$8 sps:$4 sm:$0xff]   ;;  %v3432_v20 = vld [vmem:[%s5060_s1 + $0x54] ss:$8 sps:$4 sm:$0xff]   ;;  %v3436_v22 = vld [vmem:[%s5060_s1 + $0x50] ss:$8 sps:$4 sm:$0xff]  }
   0x8   :  { %2437 = vmatpush1.bf16.msra.mxu0 %v3413_v7  ;;  %2154 = vmatprep.subr.bf16.mxu1 %v3414_v8  ;;  %v3431_v19 = vld [vmem:[%s5060_s1 + $0x440] ss:$8 sps:$4 sm:$0xff]   ;;  %v3434_v21 = vld [vmem:[%s5060_s1 + $0x454] ss:$8 sps:$4 sm:$0xff]   ;;  %v3437_v23 = vld [vmem:[%s5060_s1 + $0x450] ss:$8 sps:$4 sm:$0xff]  }
   0x9   :  { %2438 = vmatprep.subr.bf16.mxu0 %v3416_v9  ;;  %v3438_v24 = vld [vmem:[%s5060_s1 + $0x64] ss:$8 sps:$4 sm:$0xff]   ;;  %v3442_v26 = vld [vmem:[%s5060_s1 + $0x60] ss:$8 sps:$4 sm:$0xff]   ;;  %v3444_v28 = vld [vmem:[%s5060_s1 + $0x74] ss:$8 sps:$4 sm:$0xff]  }
   0xa   :  { %v3440_v25 = vld [vmem:[%s5060_s1 + $0x464] ss:$8 sps:$4 sm:$0xff]   ;;  %v3443_v27 = vld [vmem:[%s5060_s1 + $0x460] ss:$8 sps:$4 sm:$0xff]   ;;  %v3446_v29 = vld [vmem:[%s5060_s1 + $0x474] ss:$8 sps:$4 sm:$0xff]  }
   0xb   :  { %2155 = vmatpush1.bf16.msra.mxu1 %v3418_v10  ;;  %v3448_v30 = vld [vmem:[%s5060_s1 + $0x70] ss:$8 sps:$4 sm:$0xff]   ;;  %v3450_v32 = vld [vmem:[%s5060_s1 + $0x84] ss:$8 sps:$4 sm:$0xff]   ;;  %v3454_v34 = vld [vmem:[%s5060_s1 + $0x80] ss:$8 sps:$4 sm:$0xff]  }
   0xc   :  { %2439 = vmatpush1.bf16.msra.mxu0 %v3419_v11  ;;  %2156 = vmatprep.subr.bf16.mxu1 %v3420_v12  ;;  %v3449_v31 = vld [vmem:[%s5060_s1 + $0x470] ss:$8 sps:$4 sm:$0xff]   ;;  %v3452_v33 = vld [vmem:[%s5060_s1 + $0x484] ss:$8 sps:$4 sm:$0xff]   ;;  %v3455_v35 = vld [vmem:[%s5060_s1 + $0x480] ss:$8 sps:$4 sm:$0xff]  }
   0xd   :  { %2440 = vmatprep.subr.bf16.mxu0 %v3422_v13  ;;  %v3456_v36 = vld [vmem:[%s5060_s1 + $0x94] ss:$8 sps:$4 sm:$0xff]   ;;  %v3460_v38 = vld [vmem:[%s5060_s1 + $0x90] ss:$8 sps:$4 sm:$0xff]   ;;  %v3462_v40 = vld [vmem:[%s5060_s1 + $0xa4] ss:$8 sps:$4 sm:$0xff]  }
   0xe   :  { %v3458_v37 = vld [vmem:[%s5060_s1 + $0x494] ss:$8 sps:$4 sm:$0xff]   ;;  %v3461_v39 = vld [vmem:[%s5060_s1 + $0x490] ss:$8 sps:$4 sm:$0xff]   ;;  %v3464_v41 = vld [vmem:[%s5060_s1 + $0x4a4] ss:$8 sps:$4 sm:$0xff]  }
   0xf   :  { %2157 = vmatpush1.bf16.msra.mxu1 %v3424_v14  ;;  %v3466_v42 = vld [vmem:[%s5060_s1 + $0xa0] ss:$8 sps:$4 sm:$0xff]   ;;  %v3468_v44 = vld [vmem:[%s5060_s1 + $0xb4] ss:$8 sps:$4 sm:$0xff]   ;;  %v3472_v46 = vld [vmem:[%s5060_s1 + $0xb0] ss:$8 sps:$4 sm:$0xff]  }
  0x10   :  { %2441 = vmatpush1.bf16.msra.mxu0 %v3425_v15  ;;  %2158 = vmatprep.subr.bf16.mxu1 %v3426_v16  ;;  %v3467_v43 = vld [vmem:[%s5060_s1 + $0x4a0] ss:$8 sps:$4 sm:$0xff]   ;;  %v3470_v45 = vld [vmem:[%s5060_s1 + $0x4b4] ss:$8 sps:$4 sm:$0xff]   ;;  %v3473_v47 = vld [vmem:[%s5060_s1 + $0x4b0] ss:$8 sps:$4 sm:$0xff]  }
  0x11   :  { %2442 = vmatprep.subr.bf16.mxu0 %v3428_v17  ;;  %v3500_v48 = vld [vmem:[%s5061_s0 + $0x4] ss:$72 sps:$4 sm:$0xff]   ;;  %v3478_v52 = vld [vmem:[%s5060_s1 + $0xc0] ss:$8 sps:$4 sm:$0xff]   ;;  %v3480_v54 = vld [vmem:[%s5060_s1 + $0xd4] ss:$8 sps:$4 sm:$0xff]  }
  0x12   :  { %v3474_v49 = vld [vmem:[%s5060_s1 + $0xc4] ss:$8 sps:$4 sm:$0xff]   ;;  %2182 = vmatprep.mubr.bf16.mxu1 %v3500_v48  ;;  %v3479_v53 = vld [vmem:[%s5060_s1 + $0x4c0] ss:$8 sps:$4 sm:$0xff]   ;;  %v3482_v55 = vld [vmem:[%s5060_s1 + $0x4d4] ss:$8 sps:$4 sm:$0xff]  }
  0x13   :  { %2159 = vmatpush1.bf16.msra.mxu1 %v3430_v18  ;;  %v3476_v50 = vld [vmem:[%s5060_s1 + $0x4c4] ss:$8 sps:$4 sm:$0xff]   ;;  %v3484_v56 = vld [vmem:[%s5060_s1 + $0xd0] ss:$8 sps:$4 sm:$0xff]   ;;  %v3490_v60 = vld [vmem:[%s5060_s1 + $0xe0] ss:$8 sps:$4 sm:$0xff]  }
  0x14   :  { %2443 = vmatpush1.bf16.msra.mxu0 %v3431_v19  ;;  %2160 = vmatprep.subr.bf16.mxu1 %v3432_v20  ;;  %v3506_v51 = vld [vmem:[%s5061_s0 + $0x24] ss:$72 sps:$4 sm:$0xff]   ;;  %v3485_v57 = vld [vmem:[%s5060_s1 + $0x4d0] ss:$8 sps:$4 sm:$0xff]   ;;  %v3491_v61 = vld [vmem:[%s5060_s1 + $0x4e0] ss:$8 sps:$4 sm:$0xff]  }
  0x15   :  { %2444 = vmatprep.subr.bf16.mxu0 %v3434_v21  ;;  %2466 = vmatprep.mubr.bf16.mxu0 %v3506_v51  ;;  %v3486_v58 = vld [vmem:[%s5060_s1 + $0xe4] ss:$8 sps:$4 sm:$0xff]   ;;  %v3492_v62 = vld [vmem:[%s5060_s1 + $0xf4] ss:$8 sps:$4 sm:$0xff]   ;;  %v3496_v0 = vld [vmem:[%s5060_s1 + $0xf0] ss:$8 sps:$4 sm:$0xff]  }
  0x16   :  { %v3488_v59 = vld [vmem:[%s5060_s1 + $0x4e4] ss:$8 sps:$4 sm:$0xff]   ;;  %v3494_v63 = vld [vmem:[%s5060_s1 + $0x4f4] ss:$8 sps:$4 sm:$0xff]   ;;  %v3497_v1 = vld [vmem:[%s5060_s1 + $0x4f0] ss:$8 sps:$4 sm:$0xff]  }
  0x17   :  { %2161 = vmatpush1.bf16.msra.mxu1 %v3436_v22  ;;  %v3503_v2 = vld [vmem:[%s5060_s1 + $0x104] ss:$8 sps:$4 sm:$0xff]   ;;  %v3498_v4 = vld [vmem:[%s5061_s0] ss:$72 sps:$4 sm:$0xff]   ;;  %v3512_v8 = vld [vmem:[%s5060_s1 + $0x114] ss:$8 sps:$4 sm:$0xff]  }
  0x18   :  { %2445 = vmatpush1.bf16.msra.mxu0 %v3437_v23  ;;  %2162 = vmatprep.subr.bf16.mxu1 %v3438_v24  ;;  %v3509_v3 = vld [vmem:[%s5060_s1 + $0x504] ss:$8 sps:$4 sm:$0xff]   ;;  %v3501_v5 = vld [vmem:[%s5060_s1 + $0x100] ss:$8 sps:$4 sm:$0xff]   ;;  %v3515_v9 = vld [vmem:[%s5060_s1 + $0x514] ss:$8 sps:$4 sm:$0xff]  }
  0x19   :  { %2446 = vmatprep.subr.bf16.mxu0 %v3440_v25  ;;  %v3504_v6 = vld [vmem:[%s5061_s0 + $0x20] ss:$72 sps:$4 sm:$0xff]   ;;  %v3510_v10 = vld [vmem:[%s5060_s1 + $0x110] ss:$8 sps:$4 sm:$0xff]   ;;  %v3518_v12 = vld [vmem:[%s5060_s1 + $0x124] ss:$8 sps:$4 sm:$0xff]  }
  0x1a   :  { %v3507_v7 = vld [vmem:[%s5060_s1 + $0x500] ss:$8 sps:$4 sm:$0xff]   ;;  %v3513_v11 = vld [vmem:[%s5060_s1 + $0x510] ss:$8 sps:$4 sm:$0xff]   ;;  %v3521_v13 = vld [vmem:[%s5060_s1 + $0x524] ss:$8 sps:$4 sm:$0xff]  }
  0x1b   :  { %2163 = vmatpush1.bf16.msra.mxu1 %v3442_v26  ;;  %v3516_v14 = vld [vmem:[%s5060_s1 + $0x120] ss:$8 sps:$4 sm:$0xff]   ;;  %v3524_v16 = vld [vmem:[%s5060_s1 + $0x134] ss:$8 sps:$4 sm:$0xff]   ;;  %v3522_v19 = vld [vmem:[%s5060_s1 + $0x130] ss:$8 sps:$4 sm:$0xff]  }
  0x1c   :  { %2447 = vmatpush1.bf16.msra.mxu0 %v3443_v27  ;;  %2164 = vmatprep.subr.bf16.mxu1 %v3444_v28  ;;  %v3519_v15 = vld [vmem:[%s5060_s1 + $0x520] ss:$8 sps:$4 sm:$0xff]   ;;  %v3564_v17 = vld [vmem:[%s5061_s0 + $0x94] ss:$72 sps:$4 sm:$0xff]   ;;  %v3525_v20 = vld [vmem:[%s5060_s1 + $0x530] ss:$8 sps:$4 sm:$0xff]  }
  0x1d   :  { %2448 = vmatprep.subr.bf16.mxu0 %v3446_v29  ;;  %v3527_v18 = vld [vmem:[%s5060_s1 + $0x534] ss:$8 sps:$4 sm:$0xff]   ;;  %v3530_v22 = vld [vmem:[%s5060_s1 + $0x144] ss:$8 sps:$4 sm:$0xff]   ;;  %v3574_v24 = vld [vmem:[%s5061_s0 + $0x90] ss:$72 sps:$4 sm:$0xff]  }
  0x1e   :  { %v3569_v21 = vld [vmem:[%s5061_s0 + $0xb4] ss:$72 sps:$4 sm:$0xff]   ;;  %v3533_v23 = vld [vmem:[%s5060_s1 + $0x544] ss:$8 sps:$4 sm:$0xff]   ;;  %v3575_v25 = vld [vmem:[%s5061_s0 + $0xb0] ss:$72 sps:$4 sm:$0xff]  }
  0x1f   :  { %2165 = vmatpush1.bf16.msra.mxu1 %v3448_v30  ;;  %v3528_v26 = vld [vmem:[%s5060_s1 + $0x140] ss:$8 sps:$4 sm:$0xff]   ;;  %v3536_v28 = vld [vmem:[%s5060_s1 + $0x154] ss:$8 sps:$4 sm:$0xff]   ;;  %v3582_v29 = vld [vmem:[%s5061_s0 + $0x124] ss:$72 sps:$4 sm:$0xff]  }
  0x20   :  { %2449 = vmatpush1.bf16.msra.mxu0 %v3449_v31  ;;  %2166 = vmatprep.subr.bf16.mxu1 %v3450_v32  ;;  %v3531_v27 = vld [vmem:[%s5060_s1 + $0x540] ss:$8 sps:$4 sm:$0xff]   ;;  %v3539_v30 = vld [vmem:[%s5060_s1 + $0x554] ss:$8 sps:$4 sm:$0xff]   ;;  %v3534_v31 = vld [vmem:[%s5060_s1 + $0x150] ss:$8 sps:$4 sm:$0xff]  }
  0x21   :  { %2450 = vmatprep.subr.bf16.mxu0 %v3452_v33  ;;  %v3537_v32 = vld [vmem:[%s5060_s1 + $0x550] ss:$8 sps:$4 sm:$0xff]   ;;  %v3587_v33 = vld [vmem:[%s5061_s0 + $0x144] ss:$72 sps:$4 sm:$0xff]  }
  0x22   :  { %v3546_v48 = vld [vmem:[%s5060_s1 + $0x170] ss:$8 sps:$4 sm:$0xff]   ;;  %v3557_v51 = vld [vmem:[%s5060_s1 + $0x584] ss:$8 sps:$4 sm:$0xff]  }
  0x23   :  { %2167 = vmatpush1.bf16.msra.mxu1 %v3454_v34  ;;  %v3542_v34 = vld [vmem:[%s5060_s1 + $0x164] ss:$8 sps:$4 sm:$0xff]  }
  0x24   :  { %2451 = vmatpush1.bf16.msra.mxu0 %v3455_v35  ;;  %2168 = vmatprep.subr.bf16.mxu1 %v3456_v36  ;;  %v3545_v35 = vld [vmem:[%s5060_s1 + $0x564] ss:$8 sps:$4 sm:$0xff]   ;;  %v3592_v36 = vld [vmem:[%s5061_s0 + $0x120] ss:$72 sps:$4 sm:$0xff]  }
  0x25   :  { %2452 = vmatprep.subr.bf16.mxu0 %v3458_v37  ;;  %v3593_v37 = vld [vmem:[%s5061_s0 + $0x140] ss:$72 sps:$4 sm:$0xff]  }
  0x27   :  { %2169 = vmatpush1.bf16.msra.mxu1 %v3460_v38  ;;  %v3540_v38 = vld [vmem:[%s5060_s1 + $0x160] ss:$8 sps:$4 sm:$0xff]  }
  0x28   :  { %2453 = vmatpush1.bf16.msra.mxu0 %v3461_v39  ;;  %2170 = vmatprep.subr.bf16.mxu1 %v3462_v40  ;;  %v3543_v39 = vld [vmem:[%s5060_s1 + $0x560] ss:$8 sps:$4 sm:$0xff]   ;;  %v68_v40 = vld [vmem:[%s5061_s0 + $0x1b0] sm:$0x11] }
  0x29   :  { %2454 = vmatprep.subr.bf16.mxu0 %v3464_v41  ;;  %v3548_v41 = vld [vmem:[%s5060_s1 + $0x174] ss:$8 sps:$4 sm:$0xff]  }
  0x2b   :  { %2171 = vmatpush1.bf16.msra.mxu1 %v3466_v42  ;;  %v3551_v42 = vld [vmem:[%s5060_s1 + $0x574] ss:$8 sps:$4 sm:$0xff]  }
  0x2c   :  { %2455 = vmatpush1.bf16.msra.mxu0 %v3467_v43  ;;  %2172 = vmatprep.subr.bf16.mxu1 %v3468_v44  ;;  %v2913_v43 = vcombine.high %v68_v40, %v68_v40  ;;  %v72_v44 = vld [vmem:[%s5061_s0 + $0x1d0] sm:$0x11] }
  0x2d   :  { %2456 = vmatprep.subr.bf16.mxu0 %v3470_v45  ;;  %v2921_v45 = vcombine.high %v72_v44, %v72_v44 }
  0x2f   :  { %2173 = vmatpush1.bf16.msra.mxu1 %v3472_v46  ;;  %v2912_v46 = vcombine.low %v68_v40, %v68_v40  ;;  %v3700_v40 = vld [vmem:[%s5061_s0 + $0x12c] ss:$72 sps:$4 sm:$0xff]  }
  0x30   :  { %2457 = vmatpush1.bf16.msra.mxu0 %v3473_v47  ;;  %2174 = vmatprep.subr.bf16.mxu1 %v3474_v49  ;;  %v2920_v47 = vcombine.low %v72_v44, %v72_v44  ;;  %v3549_v49 = vld [vmem:[%s5060_s1 + $0x570] ss:$8 sps:$4 sm:$0xff]   ;;  %v3648_v44 = vld [vmem:[%s5060_s1 + $0x244] ss:$8 sps:$4 sm:$0xff]  }
  0x31   :  { %2458 = vmatprep.subr.bf16.mxu0 %v3476_v50  ;;  %v3554_v50 = vld [vmem:[%s5060_s1 + $0x184] ss:$8 sps:$4 sm:$0xff]  }
  0x33   :  { %2175 = vmatpush1.bf16.msra.mxu1 %v3478_v52  ;;  %v3552_v52 = vld [vmem:[%s5060_s1 + $0x180] ss:$8 sps:$4 sm:$0xff]  }
  0x34   :  { %2459 = vmatpush1.bf16.msra.mxu0 %v3479_v53  ;;  %2176 = vmatprep.subr.bf16.mxu1 %v3480_v54  ;;  %v3618_v53 = vld [vmem:[%s5061_s0 + $0xc] ss:$72 sps:$4 sm:$0xff]   ;;  %v3555_v54 = vld [vmem:[%s5060_s1 + $0x580] ss:$8 sps:$4 sm:$0xff]  }
  0x35   :  { %2460 = vmatprep.subr.bf16.mxu0 %v3482_v55  ;;  %v3560_v55 = vld [vmem:[%s5060_s1 + $0x194] ss:$8 sps:$4 sm:$0xff]  }
  0x37   :  { %2177 = vmatpush1.bf16.msra.mxu1 %v3484_v56  ;;  %v3563_v56 = vld [vmem:[%s5060_s1 + $0x594] ss:$8 sps:$4 sm:$0xff]  }
  0x38   :  { %2461 = vmatpush1.bf16.msra.mxu0 %v3485_v57  ;;  %2178 = vmatprep.subr.bf16.mxu1 %v3486_v58  ;;  %v3624_v57 = vld [vmem:[%s5061_s0 + $0x2c] ss:$72 sps:$4 sm:$0xff]   ;;  %v3558_v58 = vld [vmem:[%s5060_s1 + $0x190] ss:$8 sps:$4 sm:$0xff]  }
  0x39   :  { %2462 = vmatprep.subr.bf16.mxu0 %v3488_v59  ;;  %v3561_v59 = vld [vmem:[%s5060_s1 + $0x590] ss:$8 sps:$4 sm:$0xff]  }
  0x3b   :  { %2179 = vmatpush1.bf16.msra.mxu1 %v3490_v60  ;;  %v3568_v60 = vld [vmem:[%s5060_s1 + $0x1a4] ss:$8 sps:$4 sm:$0xff]  }
  0x3c   :  { %2463 = vmatpush1.bf16.msra.mxu0 %v3491_v61  ;;  %2180 = vmatprep.subr.bf16.mxu1 %v3492_v62  ;;  %v3573_v61 = vld [vmem:[%s5060_s1 + $0x5a4] ss:$8 sps:$4 sm:$0xff]   ;;  %v3566_v62 = vld [vmem:[%s5060_s1 + $0x1a0] ss:$8 sps:$4 sm:$0xff]  }
  0x3d   :  { %2464 = vmatprep.subr.bf16.mxu0 %v3494_v63  ;;  %v3571_v63 = vld [vmem:[%s5060_s1 + $0x5a0] ss:$8 sps:$4 sm:$0xff]  }
  0x3f   :  { %2181 = vmatpush1.bf16.msra.mxu1 %v3496_v0  ;;  %v3578_v0 = vld [vmem:[%s5060_s1 + $0x1b4] ss:$8 sps:$4 sm:$0xff]  }
  0x40   :  { %2465 = vmatpush1.bf16.msra.mxu0 %v3497_v1  ;;  %2221 = vmatprep.subr.bf16.mxu1 %v3503_v2  ;;  %v3581_v1 = vld [vmem:[%s5060_s1 + $0x5b4] ss:$8 sps:$4 sm:$0xff]   ;;  %v3576_v2 = vld [vmem:[%s5060_s1 + $0x1b0] ss:$8 sps:$4 sm:$0xff]  }
  0x41   :  { %2505 = vmatprep.subr.bf16.mxu0 %v3509_v3  ;;  %v3579_v3 = vld [vmem:[%s5060_s1 + $0x5b0] ss:$8 sps:$4 sm:$0xff]  }
  0x42   :  { %2183 = vmatmul.mubr.bf16.vlgmr.msra.gmra.mrb[0].mxu1 %v3498_v4  ;;  %v3586_v4 = vld [vmem:[%s5060_s1 + $0x1c4] ss:$8 sps:$4 sm:$0xff]  }
  0x43   :  { %2467 = vmatmul.mubr.bf16.vlgmr.msra.gmra.mrb[0].mxu0 %v3504_v6  ;;  %2222 = vmatpush1.bf16.msra.mxu1 %v3501_v5  ;;  %v3591_v5 = vld [vmem:[%s5060_s1 + $0x5c4] ss:$8 sps:$4 sm:$0xff]   ;;  %v3584_v6 = vld [vmem:[%s5060_s1 + $0x1c0] ss:$8 sps:$4 sm:$0xff]  }
  0x44   :  { %2506 = vmatpush1.bf16.msra.mxu0 %v3507_v7  ;;  %2223 = vmatprep.subr.bf16.mxu1 %v3512_v8  ;;  %v3589_v7 = vld [vmem:[%s5060_s1 + $0x5c0] ss:$8 sps:$4 sm:$0xff]   ;;  %v3596_v8 = vld [vmem:[%s5060_s1 + $0x1d4] ss:$8 sps:$4 sm:$0xff]  }
  0x45   :  { %2507 = vmatprep.subr.bf16.mxu0 %v3515_v9  ;;  %2192 = vmatprep.mubr.bf16.mxu1 %v3564_v17  ;;  %v3599_v9 = vld [vmem:[%s5060_s1 + $0x5d4] ss:$8 sps:$4 sm:$0xff]  }
  0x46   :  { %2476 = vmatprep.mubr.bf16.mxu0 %v3569_v21  ;;  %v3615_v17 = vld [vmem:[%s5060_s1 + $0x5f4] ss:$8 sps:$4 sm:$0xff]   ;;  %v3627_v21 = vld [vmem:[%s5060_s1 + $0x604] ss:$8 sps:$4 sm:$0xff]  }
  0x47   :  { %2224 = vmatpush1.bf16.msra.mxu1 %v3510_v10  ;;  %v3594_v10 = vld [vmem:[%s5060_s1 + $0x1d0] ss:$8 sps:$4 sm:$0xff]  }
  0x48   :  { %2508 = vmatpush1.bf16.msra.mxu0 %v3513_v11  ;;  %2225 = vmatprep.subr.bf16.mxu1 %v3518_v12  ;;  %v3597_v11 = vld [vmem:[%s5060_s1 + $0x5d0] ss:$8 sps:$4 sm:$0xff]   ;;  %v3603_v12 = vld [vmem:[%s5060_s1 + $0x1e4] ss:$8 sps:$4 sm:$0xff]  }
  0x49   :  { %2509 = vmatprep.subr.bf16.mxu0 %v3521_v13  ;;  %v3607_v13 = vld [vmem:[%s5060_s1 + $0x5e4] ss:$8 sps:$4 sm:$0xff]  }
  0x4a   :  { %2193 = vmatmul.mubr.bf16.gmra.mrb[4].mxu1 %v3574_v24  ;;  %v3622_v24 = vld [vmem:[%s5061_s0 + $0x28] ss:$72 sps:$4 sm:$0xff]  }
  0x4b   :  { %2226 = vmatpush1.bf16.msra.mxu1 %v3516_v14  ;;  %2477 = vmatmul.mubr.bf16.gmra.mrb[4].mxu0 %v3575_v25  ;;  %v3601_v14 = vld [vmem:[%s5060_s1 + $0x1e0] ss:$8 sps:$4 sm:$0xff]  }
  0x4c   :  { %2510 = vmatpush1.bf16.msra.mxu0 %v3519_v15  ;;  %2227 = vmatprep.subr.bf16.mxu1 %v3524_v16  ;;  %v3605_v15 = vld [vmem:[%s5060_s1 + $0x5e0] ss:$8 sps:$4 sm:$0xff]   ;;  %v3612_v16 = vld [vmem:[%s5060_s1 + $0x1f4] ss:$8 sps:$4 sm:$0xff]  }
  0x4d   :  { %2511 = vmatprep.subr.bf16.mxu0 %v3527_v18  ;;  %2202 = vmatprep.mubr.bf16.mxu1 %v3582_v29  ;;  %v3610_v18 = vld [vmem:[%s5060_s1 + $0x1f0] ss:$8 sps:$4 sm:$0xff]   ;;  %v3625_v25 = vld [vmem:[%s5060_s1 + $0x600] ss:$8 sps:$4 sm:$0xff]   ;;  %v3687_v29 = vld [vmem:[%s5061_s0 + $0xbc] ss:$72 sps:$4 sm:$0xff]  }
  0x4e   :  { %2486 = vmatprep.mubr.bf16.mxu0 %v3587_v33  ;;  %v3639_v33 = vld [vmem:[%s5060_s1 + $0x624] ss:$8 sps:$4 sm:$0xff]  }
  0x4f   :  { %2228 = vmatpush1.bf16.msra.mxu1 %v3522_v19  ;;  %v3613_v19 = vld [vmem:[%s5060_s1 + $0x5f0] ss:$8 sps:$4 sm:$0xff]  }
  0x50   :  { %2512 = vmatpush1.bf16.msra.mxu0 %v3525_v20  ;;  %2229 = vmatprep.subr.bf16.mxu1 %v3530_v22  ;;  %v3621_v20 = vld [vmem:[%s5060_s1 + $0x204] ss:$8 sps:$4 sm:$0xff]   ;;  %v3616_v22 = vld [vmem:[%s5061_s0 + $0x8] ss:$72 sps:$4 sm:$0xff]  }
  0x51   :  { %2513 = vmatprep.subr.bf16.mxu0 %v3533_v23  ;;  %v3619_v23 = vld [vmem:[%s5060_s1 + $0x200] ss:$8 sps:$4 sm:$0xff]  }
  0x52   :  { %2203 = vmatmul.mubr.bf16.gmra.mrb[8].mxu1 %v3592_v36  ;;  %v3693_v36 = vld [vmem:[%s5061_s0 + $0xb8] ss:$72 sps:$4 sm:$0xff]  }
  0x53   :  { %2230 = vmatpush1.bf16.msra.mxu1 %v3528_v26  ;;  %2487 = vmatmul.mubr.bf16.gmra.mrb[8].mxu0 %v3593_v37  ;;  %v3630_v26 = vld [vmem:[%s5060_s1 + $0x214] ss:$8 sps:$4 sm:$0xff]   ;;  %v3637_v37 = vld [vmem:[%s5060_s1 + $0x620] ss:$8 sps:$4 sm:$0xff]  }
  0x54   :  { %2514 = vmatpush1.bf16.msra.mxu0 %v3531_v27  ;;  %2231 = vmatprep.subr.bf16.mxu1 %v3536_v28  ;;  %v3633_v27 = vld [vmem:[%s5060_s1 + $0x614] ss:$8 sps:$4 sm:$0xff]  }
  0x55   :  { %2515 = vmatprep.subr.bf16.mxu0 %v3539_v30  ;;  %2212 = vmatprep.mubr.bf16.mxu1 %v2913_v43  ;;  %v3682_v28 = vld [vmem:[%s5061_s0 + $0x9c] ss:$72 sps:$4 sm:$0xff]   ;;  %v3628_v30 = vld [vmem:[%s5060_s1 + $0x210] ss:$8 sps:$4 sm:$0xff]  }
  0x56   :  { %2496 = vmatprep.mubr.bf16.mxu0 %v2921_v45  ;;  %v3643_v43 = vld [vmem:[%s5060_s1 + $0x630] ss:$8 sps:$4 sm:$0xff]   ;;  %v3651_v45 = vld [vmem:[%s5060_s1 + $0x644] ss:$8 sps:$4 sm:$0xff]  }
  0x57   :  { %2232 = vmatpush1.bf16.msra.mxu1 %v3534_v31  ;;  %v3631_v31 = vld [vmem:[%s5060_s1 + $0x610] ss:$8 sps:$4 sm:$0xff]  }
  0x58   :  { %2516 = vmatpush1.bf16.msra.mxu0 %v3537_v32  ;;  %2233 = vmatprep.subr.bf16.mxu1 %v3542_v34  ;;  %v3636_v32 = vld [vmem:[%s5060_s1 + $0x224] ss:$8 sps:$4 sm:$0xff]   ;;  %v3634_v34 = vld [vmem:[%s5060_s1 + $0x220] ss:$8 sps:$4 sm:$0xff]  }
  0x59   :  { %2517 = vmatprep.subr.bf16.mxu0 %v3545_v35  ;;  %v3692_v35 = vld [vmem:[%s5061_s0 + $0x98] ss:$72 sps:$4 sm:$0xff]  }
  0x5a   :  { %2213 = vmatmul.mubr.bf16.gmra.mrb[12].mxu1 %v2912_v46  ;;  %v3646_v46 = vld [vmem:[%s5060_s1 + $0x240] ss:$8 sps:$4 sm:$0xff]  }
  0x5b   :  { %2234 = vmatpush1.bf16.msra.mxu1 %v3540_v38  ;;  %2497 = vmatmul.mubr.bf16.gmra.mrb[12].mxu0 %v2920_v47  ;;  %v3642_v38 = vld [vmem:[%s5060_s1 + $0x234] ss:$8 sps:$4 sm:$0xff]   ;;  %v3649_v47 = vld [vmem:[%s5060_s1 + $0x640] ss:$8 sps:$4 sm:$0xff]  }
  0x5c   :  { %2518 = vmatpush1.bf16.msra.mxu0 %v3543_v39  ;;  %2235 = vmatprep.subr.bf16.mxu1 %v3548_v41  ;;  %v3645_v39 = vld [vmem:[%s5060_s1 + $0x634] ss:$8 sps:$4 sm:$0xff]  }
  0x5d   :  { %2519 = vmatprep.subr.bf16.mxu0 %v3551_v42  ;;  %2253 = vmatprep.mubr.bf16.mxu1 %v3618_v53  ;;  %v3705_v41 = vld [vmem:[%s5061_s0 + $0x14c] ss:$72 sps:$4 sm:$0xff]   ;;  %v3640_v42 = vld [vmem:[%s5060_s1 + $0x230] ss:$8 sps:$4 sm:$0xff]  }
  0x5e   :  { %2537 = vmatprep.mubr.bf16.mxu0 %v3624_v57  ;;  %v3657_v53 = vld [vmem:[%s5060_s1 + $0x654] ss:$8 sps:$4 sm:$0xff]   ;;  %v3655_v57 = vld [vmem:[%s5060_s1 + $0x650] ss:$8 sps:$4 sm:$0xff]  }
  0x5f   :  { %2236 = vmatpush1.bf16.msra.mxu1 %v3546_v48  ;;  %v3710_v48 = vld [vmem:[%s5061_s0 + $0x128] ss:$72 sps:$4 sm:$0xff]  }
  0x60   :  { %2520 = vmatpush1.bf16.msra.mxu0 %v3549_v49  ;;  %2237 = vmatprep.subr.bf16.mxu1 %v3554_v50  ;;  %v3711_v49 = vld [vmem:[%s5061_s0 + $0x148] ss:$72 sps:$4 sm:$0xff]   ;;  %v69_v50 = vld [vmem:[%s5061_s0 + $0x1b8] sm:$0x11] }
  0x61   :  { %2521 = vmatprep.subr.bf16.mxu0 %v3557_v51  ;;  %v73_v51 = vld [vmem:[%s5061_s0 + $0x1d8] sm:$0x11] }
  0x63   :  { %2238 = vmatpush1.bf16.msra.mxu1 %v3552_v52  ;;  %v3654_v52 = vld [vmem:[%s5060_s1 + $0x254] ss:$8 sps:$4 sm:$0xff]  }
  0x64   :  { %2522 = vmatpush1.bf16.msra.mxu0 %v3555_v54  ;;  %2239 = vmatprep.subr.bf16.mxu1 %v3560_v55  ;;  %v2915_v54 = vcombine.high %v69_v50, %v69_v50  ;;  %v2923_v55 = vcombine.high %v73_v51, %v73_v51 }
  0x65   :  { %2523 = vmatprep.subr.bf16.mxu0 %v3563_v56  ;;  %v3652_v56 = vld [vmem:[%s5060_s1 + $0x250] ss:$8 sps:$4 sm:$0xff]  }
  0x67   :  { %2240 = vmatpush1.bf16.msra.mxu1 %v3558_v58  ;;  %v3660_v58 = vld [vmem:[%s5060_s1 + $0x264] ss:$8 sps:$4 sm:$0xff]  }
  0x68   :  { %2524 = vmatpush1.bf16.msra.mxu0 %v3561_v59  ;;  %2241 = vmatprep.subr.bf16.mxu1 %v3568_v60  ;;  %v3663_v59 = vld [vmem:[%s5060_s1 + $0x664] ss:$8 sps:$4 sm:$0xff]   ;;  %v3658_v60 = vld [vmem:[%s5060_s1 + $0x260] ss:$8 sps:$4 sm:$0xff]  }
  0x69   :  { %2525 = vmatprep.subr.bf16.mxu0 %v3573_v61  ;;  %v3661_v61 = vld [vmem:[%s5060_s1 + $0x660] ss:$8 sps:$4 sm:$0xff]  }
  0x6b   :  { %2242 = vmatpush1.bf16.msra.mxu1 %v3566_v62  ;;  %v2914_v62 = vcombine.low %v69_v50, %v69_v50  ;;  %v3754_v50 = vld [vmem:[%s5060_s1 + $0x324] ss:$8 sps:$4 sm:$0xff]  }
  0x6c   :  { %2526 = vmatpush1.bf16.msra.mxu0 %v3571_v63  ;;  %2243 = vmatprep.subr.bf16.mxu1 %v3578_v0  ;;  %v2922_v63 = vcombine.low %v73_v51, %v73_v51  ;;  %v3666_v0 = vld [vmem:[%s5060_s1 + $0x274] ss:$8 sps:$4 sm:$0xff]   ;;  %v3757_v51 = vld [vmem:[%s5060_s1 + $0x724] ss:$8 sps:$4 sm:$0xff]  }
  0x6d   :  { %2527 = vmatprep.subr.bf16.mxu0 %v3581_v1  ;;  %v3669_v1 = vld [vmem:[%s5060_s1 + $0x674] ss:$8 sps:$4 sm:$0xff]  }
  0x6f   :  { %2244 = vmatpush1.bf16.msra.mxu1 %v3576_v2  ;;  %v3736_v2 = vld [vmem:[%s5061_s0 + $0x14] ss:$72 sps:$4 sm:$0xff]  }
  0x70   :  { %2528 = vmatpush1.bf16.msra.mxu0 %v3579_v3  ;;  %2245 = vmatprep.subr.bf16.mxu1 %v3586_v4  ;;  %v3742_v3 = vld [vmem:[%s5061_s0 + $0x34] ss:$72 sps:$4 sm:$0xff]   ;;  %v3664_v4 = vld [vmem:[%s5060_s1 + $0x270] ss:$8 sps:$4 sm:$0xff]  }
  0x71   :  { %2529 = vmatprep.subr.bf16.mxu0 %v3591_v5  ;;  %v3667_v5 = vld [vmem:[%s5060_s1 + $0x670] ss:$8 sps:$4 sm:$0xff]  }
  0x73   :  { %2246 = vmatpush1.bf16.msra.mxu1 %v3584_v6  ;;  %v3672_v6 = vld [vmem:[%s5060_s1 + $0x284] ss:$8 sps:$4 sm:$0xff]  }
  0x74   :  { %2530 = vmatpush1.bf16.msra.mxu0 %v3589_v7  ;;  %2247 = vmatprep.subr.bf16.mxu1 %v3596_v8  ;;  %v3675_v7 = vld [vmem:[%s5060_s1 + $0x684] ss:$8 sps:$4 sm:$0xff]   ;;  %v3670_v8 = vld [vmem:[%s5060_s1 + $0x280] ss:$8 sps:$4 sm:$0xff]  }
  0x75   :  { %2531 = vmatprep.subr.bf16.mxu0 %v3599_v9  ;;  %v3673_v9 = vld [vmem:[%s5060_s1 + $0x680] ss:$8 sps:$4 sm:$0xff]  }
  0x77   :  { %2248 = vmatpush1.bf16.msra.mxu1 %v3594_v10  ;;  %v3678_v10 = vld [vmem:[%s5060_s1 + $0x294] ss:$8 sps:$4 sm:$0xff]  }
  0x78   :  { %2532 = vmatpush1.bf16.msra.mxu0 %v3597_v11  ;;  %2249 = vmatprep.subr.bf16.mxu1 %v3603_v12  ;;  %v3681_v11 = vld [vmem:[%s5060_s1 + $0x694] ss:$8 sps:$4 sm:$0xff]   ;;  %v3676_v12 = vld [vmem:[%s5060_s1 + $0x290] ss:$8 sps:$4 sm:$0xff]  }
  0x79   :  { %2533 = vmatprep.subr.bf16.mxu0 %v3607_v13  ;;  %v3679_v13 = vld [vmem:[%s5060_s1 + $0x690] ss:$8 sps:$4 sm:$0xff]  }
  0x7b   :  { %2250 = vmatpush1.bf16.msra.mxu1 %v3601_v14  ;;  %v3686_v14 = vld [vmem:[%s5060_s1 + $0x2a4] ss:$8 sps:$4 sm:$0xff]  }
  0x7c   :  { %2534 = vmatpush1.bf16.msra.mxu0 %v3605_v15  ;;  %2251 = vmatprep.subr.bf16.mxu1 %v3612_v16  ;;  %v3691_v15 = vld [vmem:[%s5060_s1 + $0x6a4] ss:$8 sps:$4 sm:$0xff]   ;;  %v3684_v16 = vld [vmem:[%s5060_s1 + $0x2a0] ss:$8 sps:$4 sm:$0xff]  }
  0x7d   :  { %2535 = vmatprep.subr.bf16.mxu0 %v3615_v17  ;;  %v3689_v17 = vld [vmem:[%s5060_s1 + $0x6a0] ss:$8 sps:$4 sm:$0xff]  }
  0x7f   :  { %2252 = vmatpush1.bf16.msra.mxu1 %v3610_v18  ;;  %v3696_v18 = vld [vmem:[%s5060_s1 + $0x2b4] ss:$8 sps:$4 sm:$0xff]  }
  0x80   :  { %2536 = vmatpush1.bf16.msra.mxu0 %v3613_v19  ;;  %2292 = vmatprep.subr.bf16.mxu1 %v3621_v20  ;;  %v3699_v19 = vld [vmem:[%s5060_s1 + $0x6b4] ss:$8 sps:$4 sm:$0xff]   ;;  %v3694_v20 = vld [vmem:[%s5060_s1 + $0x2b0] ss:$8 sps:$4 sm:$0xff]  }
  0x81   :  { %2576 = vmatprep.subr.bf16.mxu0 %v3627_v21  ;;  %v3697_v21 = vld [vmem:[%s5060_s1 + $0x6b0] ss:$8 sps:$4 sm:$0xff]  }
  0x82   :  { %2254 = vmatmul.mubr.bf16.vlgmr.msra.gmra.mrb[0].mxu1 %v3616_v22  ;;  %v3704_v22 = vld [vmem:[%s5060_s1 + $0x2c4] ss:$8 sps:$4 sm:$0xff]  }
  0x83   :  { %2538 = vmatmul.mubr.bf16.vlgmr.msra.gmra.mrb[0].mxu0 %v3622_v24  ;;  %2293 = vmatpush1.bf16.msra.mxu1 %v3619_v23  ;;  %v3709_v23 = vld [vmem:[%s5060_s1 + $0x6c4] ss:$8 sps:$4 sm:$0xff]   ;;  %v3702_v24 = vld [vmem:[%s5060_s1 + $0x2c0] ss:$8 sps:$4 sm:$0xff]  }
  0x84   :  { %2577 = vmatpush1.bf16.msra.mxu0 %v3625_v25  ;;  %2294 = vmatprep.subr.bf16.mxu1 %v3630_v26  ;;  %v3707_v25 = vld [vmem:[%s5060_s1 + $0x6c0] ss:$8 sps:$4 sm:$0xff]   ;;  %v3714_v26 = vld [vmem:[%s5060_s1 + $0x2d4] ss:$8 sps:$4 sm:$0xff]  }
  0x85   :  { %2578 = vmatprep.subr.bf16.mxu0 %v3633_v27  ;;  %2263 = vmatprep.mubr.bf16.mxu1 %v3682_v28  ;;  %v3717_v27 = vld [vmem:[%s5060_s1 + $0x6d4] ss:$8 sps:$4 sm:$0xff]   ;;  %v3712_v28 = vld [vmem:[%s5060_s1 + $0x2d0] ss:$8 sps:$4 sm:$0xff]  }
  0x86   :  { %2547 = vmatprep.mubr.bf16.mxu0 %v3687_v29  ;;  %v3715_v29 = vld [vmem:[%s5060_s1 + $0x6d0] ss:$8 sps:$4 sm:$0xff]  }
  0x87   :  { %2295 = vmatpush1.bf16.msra.mxu1 %v3628_v30  ;;  %v3721_v30 = vld [vmem:[%s5060_s1 + $0x2e4] ss:$8 sps:$4 sm:$0xff]  }
  0x88   :  { %2579 = vmatpush1.bf16.msra.mxu0 %v3631_v31  ;;  %2296 = vmatprep.subr.bf16.mxu1 %v3636_v32  ;;  %v3725_v31 = vld [vmem:[%s5060_s1 + $0x6e4] ss:$8 sps:$4 sm:$0xff]   ;;  %v3719_v32 = vld [vmem:[%s5060_s1 + $0x2e0] ss:$8 sps:$4 sm:$0xff]  }
  0x89   :  { %2580 = vmatprep.subr.bf16.mxu0 %v3639_v33  ;;  %v3723_v33 = vld [vmem:[%s5060_s1 + $0x6e0] ss:$8 sps:$4 sm:$0xff]  }
  0x8a   :  { %2264 = vmatmul.mubr.bf16.gmra.mrb[4].mxu1 %v3692_v35  ;;  %v3733_v35 = vld [vmem:[%s5060_s1 + $0x6f4] ss:$8 sps:$4 sm:$0xff]  }
  0x8b   :  { %2548 = vmatmul.mubr.bf16.gmra.mrb[4].mxu0 %v3693_v36  ;;  %2297 = vmatpush1.bf16.msra.mxu1 %v3634_v34  ;;  %v3730_v34 = vld [vmem:[%s5060_s1 + $0x2f4] ss:$8 sps:$4 sm:$0xff]   ;;  %v3728_v36 = vld [vmem:[%s5060_s1 + $0x2f0] ss:$8 sps:$4 sm:$0xff]  }
  0x8c   :  { %2581 = vmatpush1.bf16.msra.mxu0 %v3637_v37  ;;  %2298 = vmatprep.subr.bf16.mxu1 %v3642_v38  ;;  %v3731_v37 = vld [vmem:[%s5060_s1 + $0x6f0] ss:$8 sps:$4 sm:$0xff]   ;;  %v3739_v38 = vld [vmem:[%s5060_s1 + $0x304] ss:$8 sps:$4 sm:$0xff]  }
  0x8d   :  { %2582 = vmatprep.subr.bf16.mxu0 %v3645_v39  ;;  %2273 = vmatprep.mubr.bf16.mxu1 %v3700_v40  ;;  %v3745_v39 = vld [vmem:[%s5060_s1 + $0x704] ss:$8 sps:$4 sm:$0xff]   ;;  %v3734_v40 = vld [vmem:[%s5061_s0 + $0x10] ss:$72 sps:$4 sm:$0xff]  }
  0x8e   :  { %2557 = vmatprep.mubr.bf16.mxu0 %v3705_v41  ;;  %v3737_v41 = vld [vmem:[%s5060_s1 + $0x300] ss:$8 sps:$4 sm:$0xff]  }
  0x8f   :  { %2299 = vmatpush1.bf16.msra.mxu1 %v3640_v42  ;;  %v3740_v42 = vld [vmem:[%s5061_s0 + $0x30] ss:$72 sps:$4 sm:$0xff]  }
  0x90   :  { %2583 = vmatpush1.bf16.msra.mxu0 %v3643_v43  ;;  %2300 = vmatprep.subr.bf16.mxu1 %v3648_v44  ;;  %v3743_v43 = vld [vmem:[%s5060_s1 + $0x700] ss:$8 sps:$4 sm:$0xff]   ;;  %v3748_v44 = vld [vmem:[%s5060_s1 + $0x314] ss:$8 sps:$4 sm:$0xff]  }
  0x91   :  { %2584 = vmatprep.subr.bf16.mxu0 %v3651_v45  ;;  %v3751_v45 = vld [vmem:[%s5060_s1 + $0x714] ss:$8 sps:$4 sm:$0xff]  }
  0x92   :  { %2274 = vmatmul.mubr.bf16.gmra.mrb[8].mxu1 %v3710_v48  ;;  %v3746_v48 = vld [vmem:[%s5060_s1 + $0x310] ss:$8 sps:$4 sm:$0xff]  }
  0x93   :  { %2558 = vmatmul.mubr.bf16.gmra.mrb[8].mxu0 %v3711_v49  ;;  %2301 = vmatpush1.bf16.msra.mxu1 %v3646_v46  ;;  %v3800_v46 = vld [vmem:[%s5061_s0 + $0xa4] ss:$72 sps:$4 sm:$0xff]   ;;  %v3749_v49 = vld [vmem:[%s5060_s1 + $0x710] ss:$8 sps:$4 sm:$0xff]  }
  0x94   :  { %2585 = vmatpush1.bf16.msra.mxu0 %v3649_v47  ;;  %2302 = vmatprep.subr.bf16.mxu1 %v3654_v52  ;;  %v3802_v47 = vld [vmem:[%s5061_s0 + $0xc4] ss:$72 sps:$4 sm:$0xff]   ;;  %v3752_v52 = vld [vmem:[%s5060_s1 + $0x320] ss:$8 sps:$4 sm:$0xff]  }
  0x95   :  { %2586 = vmatprep.subr.bf16.mxu0 %v3657_v53  ;;  %2283 = vmatprep.mubr.bf16.mxu1 %v2915_v54  ;;  %v3804_v53 = vld [vmem:[%s5061_s0 + $0xa0] ss:$72 sps:$4 sm:$0xff]  }
  0x96   :  { %2567 = vmatprep.mubr.bf16.mxu0 %v2923_v55  ;;  %v3808_v54 = vld [vmem:[%s5061_s0 + $0xc0] ss:$72 sps:$4 sm:$0xff]  }
  0x97   :  { %2303 = vmatpush1.bf16.msra.mxu1 %v3652_v56  ;;  %v3755_v55 = vld [vmem:[%s5060_s1 + $0x720] ss:$8 sps:$4 sm:$0xff]   ;;  %v3760_v56 = vld [vmem:[%s5060_s1 + $0x334] ss:$8 sps:$4 sm:$0xff]  }
  0x98   :  { %2587 = vmatpush1.bf16.msra.mxu0 %v3655_v57  ;;  %2304 = vmatprep.subr.bf16.mxu1 %v3660_v58  ;;  %v3763_v57 = vld [vmem:[%s5060_s1 + $0x734] ss:$8 sps:$4 sm:$0xff]  }
  0x99   :  { %2588 = vmatprep.subr.bf16.mxu0 %v3663_v59  ;;  %v3818_v58 = vld [vmem:[%s5061_s0 + $0x134] ss:$72 sps:$4 sm:$0xff]   ;;  %v3758_v59 = vld [vmem:[%s5060_s1 + $0x330] ss:$8 sps:$4 sm:$0xff]  }
  0x9a   :  { %2284 = vmatmul.mubr.bf16.gmra.mrb[12].mxu1 %v2914_v62  ;;  %v3766_v62 = vld [vmem:[%s5060_s1 + $0x344] ss:$8 sps:$4 sm:$0xff]  }
  0x9b   :  { %2568 = vmatmul.mubr.bf16.gmra.mrb[12].mxu0 %v2922_v63  ;;  %2305 = vmatpush1.bf16.msra.mxu1 %v3658_v60  ;;  %v3820_v60 = vld [vmem:[%s5061_s0 + $0x154] ss:$72 sps:$4 sm:$0xff]   ;;  %v3769_v63 = vld [vmem:[%s5060_s1 + $0x744] ss:$8 sps:$4 sm:$0xff]  }
  0x9c   :  { %2589 = vmatpush1.bf16.msra.mxu0 %v3661_v61  ;;  %2306 = vmatprep.subr.bf16.mxu1 %v3666_v0  ;;  %v3761_v61 = vld [vmem:[%s5060_s1 + $0x730] ss:$8 sps:$4 sm:$0xff]  }
  0x9d   :  { %2590 = vmatprep.subr.bf16.mxu0 %v3669_v1  ;;  %2324 = vmatprep.mubr.bf16.mxu1 %v3736_v2  ;;  %v3822_v0 = vld [vmem:[%s5061_s0 + $0x130] ss:$72 sps:$4 sm:$0xff]   ;;  %v3764_v2 = vld [vmem:[%s5060_s1 + $0x340] ss:$8 sps:$4 sm:$0xff]  }
  0x9e   :  { %2608 = vmatprep.mubr.bf16.mxu0 %v3742_v3  ;;  %v3826_v1 = vld [vmem:[%s5061_s0 + $0x150] ss:$72 sps:$4 sm:$0xff]   ;;  %v70_v3 = vld [vmem:[%s5061_s0 + $0x1c0] sm:$0x11] }
  0x9f   :  { %2307 = vmatpush1.bf16.msra.mxu1 %v3664_v4  ;;  %v74_v4 = vld [vmem:[%s5061_s0 + $0x1e0] sm:$0x11] }
  0xa0   :  { %2591 = vmatpush1.bf16.msra.mxu0 %v3667_v5  ;;  %2308 = vmatprep.subr.bf16.mxu1 %v3672_v6  ;;  %v3767_v5 = vld [vmem:[%s5060_s1 + $0x740] ss:$8 sps:$4 sm:$0xff]   ;;  %v3772_v6 = vld [vmem:[%s5060_s1 + $0x354] ss:$8 sps:$4 sm:$0xff]  }
  0xa1   :  { %2592 = vmatprep.subr.bf16.mxu0 %v3675_v7  ;;  %v3775_v7 = vld [vmem:[%s5060_s1 + $0x754] ss:$8 sps:$4 sm:$0xff]  }
  0xa3   :  { %2309 = vmatpush1.bf16.msra.mxu1 %v3670_v8  ;;  %v2917_v8 = vcombine.high %v70_v3, %v70_v3 }
  0xa4   :  { %2593 = vmatpush1.bf16.msra.mxu0 %v3673_v9  ;;  %2310 = vmatprep.subr.bf16.mxu1 %v3678_v10  ;;  %v2925_v9 = vcombine.high %v74_v4, %v74_v4  ;;  %v3770_v10 = vld [vmem:[%s5060_s1 + $0x350] ss:$8 sps:$4 sm:$0xff]  }
  0xa5   :  { %2594 = vmatprep.subr.bf16.mxu0 %v3681_v11  ;;  %v3773_v11 = vld [vmem:[%s5060_s1 + $0x750] ss:$8 sps:$4 sm:$0xff]  }
  0xa7   :  { %2311 = vmatpush1.bf16.msra.mxu1 %v3676_v12  ;;  %v3778_v12 = vld [vmem:[%s5060_s1 + $0x364] ss:$8 sps:$4 sm:$0xff]  }
  0xa8   :  { %2595 = vmatpush1.bf16.msra.mxu0 %v3679_v13  ;;  %2312 = vmatprep.subr.bf16.mxu1 %v3686_v14  ;;  %v3781_v13 = vld [vmem:[%s5060_s1 + $0x764] ss:$8 sps:$4 sm:$0xff]   ;;  %v3776_v14 = vld [vmem:[%s5060_s1 + $0x360] ss:$8 sps:$4 sm:$0xff]  }
  0xa9   :  { %2596 = vmatprep.subr.bf16.mxu0 %v3691_v15  ;;  %v3779_v15 = vld [vmem:[%s5060_s1 + $0x760] ss:$8 sps:$4 sm:$0xff]  }
  0xab   :  { %2313 = vmatpush1.bf16.msra.mxu1 %v3684_v16  ;;  %v2916_v16 = vcombine.low %v70_v3, %v70_v3  ;;  %v3870_v3 = vld [vmem:[%s5060_s1 + $0x820] ss:$8 sps:$4 sm:$0xff]  }
  0xac   :  { %2597 = vmatpush1.bf16.msra.mxu0 %v3689_v17  ;;  %2314 = vmatprep.subr.bf16.mxu1 %v3696_v18  ;;  %v2924_v17 = vcombine.low %v74_v4, %v74_v4  ;;  %v3784_v18 = vld [vmem:[%s5060_s1 + $0x374] ss:$8 sps:$4 sm:$0xff]  }
  0xad   :  { %2598 = vmatprep.subr.bf16.mxu0 %v3699_v19  ;;  %v3787_v19 = vld [vmem:[%s5060_s1 + $0x774] ss:$8 sps:$4 sm:$0xff]  }
  0xae   :  { %v3875_v4 = vld [vmem:[%s5060_s1 + $0x834] ss:$8 sps:$4 sm:$0xff]  }
  0xaf   :  { %2315 = vmatpush1.bf16.msra.mxu1 %v3694_v20  ;;  %v3854_v20 = vld [vmem:[%s5061_s0 + $0x1c] ss:$72 sps:$4 sm:$0xff]  }
  0xb0   :  { %2599 = vmatpush1.bf16.msra.mxu0 %v3697_v21  ;;  %2316 = vmatprep.subr.bf16.mxu1 %v3704_v22  ;;  %v3857_v21 = vld [vmem:[%s5061_s0 + $0x3c] ss:$72 sps:$4 sm:$0xff]   ;;  %v3782_v22 = vld [vmem:[%s5060_s1 + $0x370] ss:$8 sps:$4 sm:$0xff]  }
  0xb1   :  { %2600 = vmatprep.subr.bf16.mxu0 %v3709_v23  ;;  %v3785_v23 = vld [vmem:[%s5060_s1 + $0x770] ss:$8 sps:$4 sm:$0xff]  }
  0xb3   :  { %2317 = vmatpush1.bf16.msra.mxu1 %v3702_v24  ;;  %v3790_v24 = vld [vmem:[%s5060_s1 + $0x384] ss:$8 sps:$4 sm:$0xff]  }
  0xb4   :  { %2601 = vmatpush1.bf16.msra.mxu0 %v3707_v25  ;;  %2318 = vmatprep.subr.bf16.mxu1 %v3714_v26  ;;  %v3793_v25 = vld [vmem:[%s5060_s1 + $0x784] ss:$8 sps:$4 sm:$0xff]   ;;  %v3788_v26 = vld [vmem:[%s5060_s1 + $0x380] ss:$8 sps:$4 sm:$0xff]  }
  0xb5   :  { %2602 = vmatprep.subr.bf16.mxu0 %v3717_v27  ;;  %v3791_v27 = vld [vmem:[%s5060_s1 + $0x780] ss:$8 sps:$4 sm:$0xff]  }
  0xb7   :  { %2319 = vmatpush1.bf16.msra.mxu1 %v3712_v28  ;;  %v3796_v28 = vld [vmem:[%s5060_s1 + $0x394] ss:$8 sps:$4 sm:$0xff]  }
  0xb8   :  { %2603 = vmatpush1.bf16.msra.mxu0 %v3715_v29  ;;  %2320 = vmatprep.subr.bf16.mxu1 %v3721_v30  ;;  %v3799_v29 = vld [vmem:[%s5060_s1 + $0x794] ss:$8 sps:$4 sm:$0xff]   ;;  %v3794_v30 = vld [vmem:[%s5060_s1 + $0x390] ss:$8 sps:$4 sm:$0xff]  }
  0xb9   :  { %2604 = vmatprep.subr.bf16.mxu0 %v3725_v31  ;;  %v3797_v31 = vld [vmem:[%s5060_s1 + $0x790] ss:$8 sps:$4 sm:$0xff]  }
  0xbb   :  { %2321 = vmatpush1.bf16.msra.mxu1 %v3719_v32  ;;  %v3807_v32 = vld [vmem:[%s5060_s1 + $0x3a4] ss:$8 sps:$4 sm:$0xff]  }
  0xbc   :  { %2605 = vmatpush1.bf16.msra.mxu0 %v3723_v33  ;;  %2322 = vmatprep.subr.bf16.mxu1 %v3730_v34  ;;  %v3811_v33 = vld [vmem:[%s5060_s1 + $0x7a4] ss:$8 sps:$4 sm:$0xff]   ;;  %v3805_v34 = vld [vmem:[%s5060_s1 + $0x3a0] ss:$8 sps:$4 sm:$0xff]  }
  0xbd   :  { %2606 = vmatprep.subr.bf16.mxu0 %v3733_v35  ;;  %v3809_v35 = vld [vmem:[%s5060_s1 + $0x7a0] ss:$8 sps:$4 sm:$0xff]  }
  0xbf   :  { %2323 = vmatpush1.bf16.msra.mxu1 %v3728_v36  ;;  %v3814_v36 = vld [vmem:[%s5060_s1 + $0x3b4] ss:$8 sps:$4 sm:$0xff]  }
  0xc0   :  { %2607 = vmatpush1.bf16.msra.mxu0 %v3731_v37  ;;  %2363 = vmatprep.subr.bf16.mxu1 %v3739_v38  ;;  %v3817_v37 = vld [vmem:[%s5060_s1 + $0x7b4] ss:$8 sps:$4 sm:$0xff]   ;;  %v3812_v38 = vld [vmem:[%s5060_s1 + $0x3b0] ss:$8 sps:$4 sm:$0xff]  }
  0xc1   :  { %2647 = vmatprep.subr.bf16.mxu0 %v3745_v39  ;;  %v3815_v39 = vld [vmem:[%s5060_s1 + $0x7b0] ss:$8 sps:$4 sm:$0xff]  }
  0xc2   :  { %2325 = vmatmul.mubr.bf16.vlgmr.msra.gmra.mrb[0].mxu1 %v3734_v40  ;;  %v3825_v40 = vld [vmem:[%s5060_s1 + $0x3c4] ss:$8 sps:$4 sm:$0xff]  }
  0xc3   :  { %2609 = vmatmul.mubr.bf16.vlgmr.msra.gmra.mrb[0].mxu0 %v3740_v42  ;;  %2364 = vmatpush1.bf16.msra.mxu1 %v3737_v41  ;;  %v3829_v41 = vld [vmem:[%s5060_s1 + $0x7c4] ss:$8 sps:$4 sm:$0xff]   ;;  %v3823_v42 = vld [vmem:[%s5060_s1 + $0x3c0] ss:$8 sps:$4 sm:$0xff]  }
  0xc4   :  { %2648 = vmatpush1.bf16.msra.mxu0 %v3743_v43  ;;  %2365 = vmatprep.subr.bf16.mxu1 %v3748_v44  ;;  %v3827_v43 = vld [vmem:[%s5060_s1 + $0x7c0] ss:$8 sps:$4 sm:$0xff]   ;;  %v3832_v44 = vld [vmem:[%s5060_s1 + $0x3d4] ss:$8 sps:$4 sm:$0xff]  }
  0xc5   :  { %2649 = vmatprep.subr.bf16.mxu0 %v3751_v45  ;;  %2334 = vmatprep.mubr.bf16.mxu1 %v3800_v46  ;;  %v3835_v45 = vld [vmem:[%s5060_s1 + $0x7d4] ss:$8 sps:$4 sm:$0xff]   ;;  %v3830_v46 = vld [vmem:[%s5060_s1 + $0x3d0] ss:$8 sps:$4 sm:$0xff]  }
  0xc6   :  { %2618 = vmatprep.mubr.bf16.mxu0 %v3802_v47  ;;  %v3833_v47 = vld [vmem:[%s5060_s1 + $0x7d0] ss:$8 sps:$4 sm:$0xff]  }
  0xc7   :  { %2366 = vmatpush1.bf16.msra.mxu1 %v3746_v48  ;;  %v3841_v48 = vld [vmem:[%s5060_s1 + $0x3e4] ss:$8 sps:$4 sm:$0xff]  }
  0xc8   :  { %2650 = vmatpush1.bf16.msra.mxu0 %v3749_v49  ;;  %2367 = vmatprep.subr.bf16.mxu1 %v3754_v50  ;;  %v3845_v49 = vld [vmem:[%s5060_s1 + $0x7e4] ss:$8 sps:$4 sm:$0xff]   ;;  %v3839_v50 = vld [vmem:[%s5060_s1 + $0x3e0] ss:$8 sps:$4 sm:$0xff]  }
  0xc9   :  { %2651 = vmatprep.subr.bf16.mxu0 %v3757_v51  ;;  %v3843_v51 = vld [vmem:[%s5060_s1 + $0x7e0] ss:$8 sps:$4 sm:$0xff]  }
  0xca   :  { %2335 = vmatmul.mubr.bf16.gmra.mrb[4].mxu1 %v3804_v53  ;;  %v3851_v53 = vld [vmem:[%s5060_s1 + $0x7f4] ss:$8 sps:$4 sm:$0xff]  }
  0xcb   :  { %2619 = vmatmul.mubr.bf16.gmra.mrb[4].mxu0 %v3808_v54  ;;  %2368 = vmatpush1.bf16.msra.mxu1 %v3752_v52  ;;  %v3848_v52 = vld [vmem:[%s5060_s1 + $0x3f4] ss:$8 sps:$4 sm:$0xff]   ;;  %v3846_v54 = vld [vmem:[%s5060_s1 + $0x3f0] ss:$8 sps:$4 sm:$0xff]  }
  0xcc   :  { %2652 = vmatpush1.bf16.msra.mxu0 %v3755_v55  ;;  %2369 = vmatprep.subr.bf16.mxu1 %v3760_v56  ;;  %v3849_v55 = vld [vmem:[%s5060_s1 + $0x7f0] ss:$8 sps:$4 sm:$0xff]   ;;  %v3860_v56 = vld [vmem:[%s5060_s1 + $0x804] ss:$8 sps:$4 sm:$0xff]  }
  0xcd   :  { %2653 = vmatprep.subr.bf16.mxu0 %v3763_v57  ;;  %2344 = vmatprep.mubr.bf16.mxu1 %v3818_v58  ;;  %v3852_v57 = vld [vmem:[%s5061_s0 + $0x18] ss:$72 sps:$4 sm:$0xff]  }
  0xce   :  { %2628 = vmatprep.mubr.bf16.mxu0 %v3820_v60  ;;  %v3855_v58 = vld [vmem:[%s5061_s0 + $0x38] ss:$72 sps:$4 sm:$0xff]   ;;  %v3863_v60 = vld [vmem:[%s5060_s1 + $0x814] ss:$8 sps:$4 sm:$0xff]  }
  0xcf   :  { %2370 = vmatpush1.bf16.msra.mxu1 %v3758_v59  ;;  %v3858_v59 = vld [vmem:[%s5060_s1 + $0x800] ss:$8 sps:$4 sm:$0xff]  }
  0xd0   :  { %2654 = vmatpush1.bf16.msra.mxu0 %v3761_v61  ;;  %2371 = vmatprep.subr.bf16.mxu1 %v3766_v62  ;;  %v3864_v61 = vld [vmem:[%s5061_s0 + $0xac] ss:$72 sps:$4 sm:$0xff]  }
  0xd1   :  { %2655 = vmatprep.subr.bf16.mxu0 %v3769_v63  ;;  %v3866_v62 = vld [vmem:[%s5061_s0 + $0xcc] ss:$72 sps:$4 sm:$0xff]   ;;  %v3861_v63 = vld [vmem:[%s5060_s1 + $0x810] ss:$8 sps:$4 sm:$0xff]  }
  0xd2   :  { %2345 = vmatmul.mubr.bf16.gmra.mrb[8].mxu1 %v3822_v0  ;;  %v3872_v0 = vld [vmem:[%s5060_s1 + $0x824] ss:$8 sps:$4 sm:$0xff]  }
  0xd3   :  { %2629 = vmatmul.mubr.bf16.gmra.mrb[8].mxu0 %v3826_v1  ;;  %2372 = vmatpush1.bf16.msra.mxu1 %v3764_v2  ;;  %v3868_v1 = vld [vmem:[%s5061_s0 + $0xa8] ss:$72 sps:$4 sm:$0xff]  }
  0xd4   :  { %2656 = vmatpush1.bf16.msra.mxu0 %v3767_v5  ;;  %2373 = vmatprep.subr.bf16.mxu1 %v3772_v6  ;;  %v3869_v2 = vld [vmem:[%s5061_s0 + $0xc8] ss:$72 sps:$4 sm:$0xff]   ;;  %v3876_v5 = vld [vmem:[%s5061_s0 + $0x13c] ss:$72 sps:$4 sm:$0xff]  }
  0xd5   :  { %2657 = vmatprep.subr.bf16.mxu0 %v3775_v7  ;;  %2354 = vmatprep.mubr.bf16.mxu1 %v2917_v8  ;;  %v3878_v6 = vld [vmem:[%s5061_s0 + $0x15c] ss:$72 sps:$4 sm:$0xff]   ;;  %v3873_v7 = vld [vmem:[%s5060_s1 + $0x830] ss:$8 sps:$4 sm:$0xff]  }
  0xd6   :  { %2638 = vmatprep.mubr.bf16.mxu0 %v2925_v9  ;;  %v3884_v8 = vld [vmem:[%s5060_s1 + $0x844] ss:$8 sps:$4 sm:$0xff]   ;;  %v3880_v9 = vld [vmem:[%s5061_s0 + $0x138] ss:$72 sps:$4 sm:$0xff]  }
  0xd7   :  { %2374 = vmatpush1.bf16.msra.mxu1 %v3770_v10  ;;  %v3881_v10 = vld [vmem:[%s5061_s0 + $0x158] ss:$72 sps:$4 sm:$0xff]  }
  0xd8   :  { %2658 = vmatpush1.bf16.msra.mxu0 %v3773_v11  ;;  %2375 = vmatprep.subr.bf16.mxu1 %v3778_v12  ;;  %v71_v11 = vld [vmem:[%s5061_s0 + $0x1c8] sm:$0x11] }
  0xd9   :  { %2659 = vmatprep.subr.bf16.mxu0 %v3781_v13  ;;  %v75_v12 = vld [vmem:[%s5061_s0 + $0x1e8] sm:$0x11] }
  0xda   :  { %2355 = vmatmul.mubr.bf16.gmra.mrb[12].mxu1 %v2916_v16  ;;  %v3882_v13 = vld [vmem:[%s5060_s1 + $0x840] ss:$8 sps:$4 sm:$0xff]   ;;  %v2927_v16 = vcombine.high %v75_v12, %v75_v12 }
  0xdb   :  { %2639 = vmatmul.mubr.bf16.gmra.mrb[12].mxu0 %v2924_v17  ;;  %2376 = vmatpush1.bf16.msra.mxu1 %v3776_v14  ;;  %v3887_v14 = vld [vmem:[%s5060_s1 + $0x854] ss:$8 sps:$4 sm:$0xff]   ;;  %v3885_v17 = vld [vmem:[%s5060_s1 + $0x850] ss:$8 sps:$4 sm:$0xff]  }
  0xdc   :  { %2660 = vmatpush1.bf16.msra.mxu0 %v3779_v15  ;;  %2377 = vmatprep.subr.bf16.mxu1 %v3784_v18  ;;  %v2919_v15 = vcombine.high %v71_v11, %v71_v11  ;;  %v3894_v18 = vld [vmem:[%s5060_s1 + $0x864] ss:$8 sps:$4 sm:$0xff]  }
  0xdd   :  { %2661 = vmatprep.subr.bf16.mxu0 %v3787_v19  ;;  %2395 = vmatprep.mubr.bf16.mxu1 %v3854_v20  ;;  %v2918_v19 = vcombine.low %v71_v11, %v71_v11  ;;  %v2926_v20 = vcombine.low %v75_v12, %v75_v12 }
  0xde   :  { %2679 = vmatprep.mubr.bf16.mxu0 %v3857_v21  ;;  %v3892_v21 = vld [vmem:[%s5060_s1 + $0x860] ss:$8 sps:$4 sm:$0xff]  }
  0xdf   :  { %2378 = vmatpush1.bf16.msra.mxu1 %v3782_v22  ;;  %v3897_v22 = vld [vmem:[%s5060_s1 + $0x874] ss:$8 sps:$4 sm:$0xff]  }
  0xe0   :  { %2662 = vmatpush1.bf16.msra.mxu0 %v3785_v23  ;;  %2379 = vmatprep.subr.bf16.mxu1 %v3790_v24  ;;  %v3924_v23 = vld [vmem:[%s5061_s0 + $0x44] ss:$72 sps:$4 sm:$0xff]  }
  0xe1   :  { %2663 = vmatprep.subr.bf16.mxu0 %v3793_v25  ;;  %v3927_v24 = vld [vmem:[%s5061_s0 + $0x164] ss:$72 sps:$4 sm:$0xff]   ;;  %v3895_v25 = vld [vmem:[%s5060_s1 + $0x870] ss:$8 sps:$4 sm:$0xff]  }
  0xe3   :  { %2380 = vmatpush1.bf16.msra.mxu1 %v3788_v26  ;;  %v3900_v26 = vld [vmem:[%s5060_s1 + $0x884] ss:$8 sps:$4 sm:$0xff]  }
  0xe4   :  { %2664 = vmatpush1.bf16.msra.mxu0 %v3791_v27  ;;  %2381 = vmatprep.subr.bf16.mxu1 %v3796_v28  ;;  %v3898_v27 = vld [vmem:[%s5060_s1 + $0x880] ss:$8 sps:$4 sm:$0xff]   ;;  %v3903_v28 = vld [vmem:[%s5060_s1 + $0x894] ss:$8 sps:$4 sm:$0xff]  }
  0xe5   :  { %2665 = vmatprep.subr.bf16.mxu0 %v3799_v29  ;;  %v3901_v29 = vld [vmem:[%s5060_s1 + $0x890] ss:$8 sps:$4 sm:$0xff]  }
  0xe7   :  { %2382 = vmatpush1.bf16.msra.mxu1 %v3794_v30  ;;  %v3906_v30 = vld [vmem:[%s5060_s1 + $0x8a4] ss:$8 sps:$4 sm:$0xff]  }
  0xe8   :  { %2666 = vmatpush1.bf16.msra.mxu0 %v3797_v31  ;;  %2383 = vmatprep.subr.bf16.mxu1 %v3807_v32  ;;  %v3904_v31 = vld [vmem:[%s5060_s1 + $0x8a0] ss:$8 sps:$4 sm:$0xff]   ;;  %v3909_v32 = vld [vmem:[%s5060_s1 + $0x8b4] ss:$8 sps:$4 sm:$0xff]  }
  0xe9   :  { %2667 = vmatprep.subr.bf16.mxu0 %v3811_v33  ;;  %v3907_v33 = vld [vmem:[%s5060_s1 + $0x8b0] ss:$8 sps:$4 sm:$0xff]  }
  0xeb   :  { %2384 = vmatpush1.bf16.msra.mxu1 %v3805_v34  ;;  %v3912_v34 = vld [vmem:[%s5060_s1 + $0x8c4] ss:$8 sps:$4 sm:$0xff]  }
  0xec   :  { %2668 = vmatpush1.bf16.msra.mxu0 %v3809_v35  ;;  %2385 = vmatprep.subr.bf16.mxu1 %v3814_v36  ;;  %v3910_v35 = vld [vmem:[%s5060_s1 + $0x8c0] ss:$8 sps:$4 sm:$0xff]   ;;  %v3915_v36 = vld [vmem:[%s5060_s1 + $0x8d4] ss:$8 sps:$4 sm:$0xff]  }
  0xed   :  { %2669 = vmatprep.subr.bf16.mxu0 %v3817_v37  ;;  %v3913_v37 = vld [vmem:[%s5060_s1 + $0x8d0] ss:$8 sps:$4 sm:$0xff]  }
  0xef   :  { %2386 = vmatpush1.bf16.msra.mxu1 %v3812_v38  ;;  %v3918_v38 = vld [vmem:[%s5060_s1 + $0x8e4] ss:$8 sps:$4 sm:$0xff]  }
  0xf0   :  { %2670 = vmatpush1.bf16.msra.mxu0 %v3815_v39  ;;  %2387 = vmatprep.subr.bf16.mxu1 %v3825_v40  ;;  %v3916_v39 = vld [vmem:[%s5060_s1 + $0x8e0] ss:$8 sps:$4 sm:$0xff]   ;;  %v3921_v40 = vld [vmem:[%s5060_s1 + $0x8f4] ss:$8 sps:$4 sm:$0xff]  }
  0xf1   :  { %2671 = vmatprep.subr.bf16.mxu0 %v3829_v41  ;;  %v3919_v41 = vld [vmem:[%s5060_s1 + $0x8f0] ss:$8 sps:$4 sm:$0xff]  }
  0xf3   :  { %2388 = vmatpush1.bf16.msra.mxu1 %v3823_v42  ;;  %v76_v42 = vld [vmem:[%s5061_s0 + $0x1f0] sm:$0x11] }
  0xf4   :  { %2672 = vmatpush1.bf16.msra.mxu0 %v3827_v43  ;;  %2389 = vmatprep.subr.bf16.mxu1 %v3832_v44  ;;  %v3922_v43 = vld [vmem:[%s5061_s0 + $0x40] ss:$72 sps:$4 sm:$0xff]  }
  0xf5   :  { %2673 = vmatprep.subr.bf16.mxu0 %v3835_v45  ;;  %v3925_v44 = vld [vmem:[%s5061_s0 + $0x160] ss:$72 sps:$4 sm:$0xff]   ;;  %v3928_v45 = vld [vmem:[%s5061_s0 + $0xd4] ss:$72 sps:$4 sm:$0xff]  }
  0xf7   :  { %2390 = vmatpush1.bf16.msra.mxu1 %v3830_v46  ;;  %v2929_v46 = vcombine.high %v76_v42, %v76_v42 }
  0xf8   :  { %2674 = vmatpush1.bf16.msra.mxu0 %v3833_v47  ;;  %2391 = vmatprep.subr.bf16.mxu1 %v3841_v48  ;;  %v3931_v47 = vld [vmem:[%s5061_s0 + $0xd0] ss:$72 sps:$4 sm:$0xff]   ;;  %v2928_v48 = vcombine.low %v76_v42, %v76_v42 }
  0xf9   :  { %2675 = vmatprep.subr.bf16.mxu0 %v3845_v49 }
  0xfb   :  { %2392 = vmatpush1.bf16.msra.mxu1 %v3839_v50 }
  0xfc   :  { %2676 = vmatpush1.bf16.msra.mxu0 %v3843_v51  ;;  %2393 = vmatprep.subr.bf16.mxu1 %v3848_v52  ;;  %v367_v52 = vlaneseq }
  0xfd   :  { %2677 = vmatprep.subr.bf16.mxu0 %v3851_v53 }
  0xff   :  { %2394 = vmatpush1.bf16.msra.mxu1 %v3846_v54  ;;  %v368_v54 = vshrl.u32 %v367_v52, 7 }
 0x100   :  { %2678 = vmatpush1.bf16.msra.mxu0 %v3849_v55  ;;  %3232 = vmatprep.subr.bf16.mxu1 %v3860_v56 }
 0x101   :  { %2718 = vmatprep.subr.bf16.mxu0 %v3860_v56 }
 0x102   :  { %2396 = vmatmul.mubr.bf16.vlgmr.msra.gmra.mrb[0].mxu1 %v3852_v57 }
 0x103   :  { %2680 = vmatmul.mubr.bf16.vlgmr.msra.gmra.mrb[0].mxu0 %v3855_v58  ;;  %3248 = vmatpush1.bf16.msra.mxu1 %v3858_v59  ;;  %v369_v58 = vsub.s32 0, %v368_v54 }
 0x104   :  { %2719 = vmatpush1.bf16.msra.mxu0 %v3858_v59  ;;  %3233 = vmatprep.subr.bf16.mxu1 %v3863_v60 }
 0x105   :  { %2720 = vmatprep.subr.bf16.mxu0 %v3863_v60  ;;  %2405 = vmatprep.mubr.bf16.mxu1 %v3864_v61  ;;  %v365_v60 = vld [vmem:[%s5062_s2] sm:$0x3]  ;;  %v373_v61 = vsub.s32 1, %v368_v54 }
 0x106   :  { %2689 = vmatprep.mubr.bf16.mxu0 %v3866_v62  ;;  %v5017_v62 = vrot.slane %v365_v60, %v369_v58 }
 0x107   :  { %3249 = vmatpush1.bf16.msra.mxu1 %v3861_v63 }
 0x108   :  { %2721 = vmatpush1.bf16.msra.mxu0 %v3861_v63  ;;  %3234 = vmatprep.subr.bf16.mxu1 %v3872_v0  ;;  %v5019_v63 = vrot.slane %v365_v60, %v373_v61 }
 0x109   :  { %2722 = vmatprep.subr.bf16.mxu0 %v3872_v0 }
 0x10a   :  { %2406 = vmatmul.mubr.bf16.gmra.mrb[4].mxu1 %v3868_v1 }
 0x10b   :  { %2690 = vmatmul.mubr.bf16.gmra.mrb[4].mxu0 %v3869_v2  ;;  %3250 = vmatpush1.bf16.msra.mxu1 %v3870_v3 }
 0x10c   :  { %2723 = vmatpush1.bf16.msra.mxu0 %v3870_v3  ;;  %3235 = vmatprep.subr.bf16.mxu1 %v3875_v4 }
 0x10d   :  { %2724 = vmatprep.subr.bf16.mxu0 %v3875_v4  ;;  %2415 = vmatprep.mubr.bf16.mxu1 %v3876_v5 }
 0x10e   :  { %2699 = vmatprep.mubr.bf16.mxu0 %v3878_v6 }
 0x10f   :  { %3251 = vmatpush1.bf16.msra.mxu1 %v3873_v7 }
 0x110   :  { %2725 = vmatpush1.bf16.msra.mxu0 %v3873_v7  ;;  %3236 = vmatprep.subr.bf16.mxu1 %v3884_v8 }
 0x111   :  { %2726 = vmatprep.subr.bf16.mxu0 %v3884_v8 }
 0x112   :  { %2416 = vmatmul.mubr.bf16.gmra.mrb[8].mxu1 %v3880_v9 }
 0x113   :  { %2700 = vmatmul.mubr.bf16.gmra.mrb[8].mxu0 %v3881_v10  ;;  %3252 = vmatpush1.bf16.msra.mxu1 %v3882_v13 }
 0x114   :  { %2727 = vmatpush1.bf16.msra.mxu0 %v3882_v13  ;;  %3237 = vmatprep.subr.bf16.mxu1 %v3887_v14 }
 0x115   :  { %2728 = vmatprep.subr.bf16.mxu0 %v3887_v14  ;;  %2425 = vmatprep.mubr.bf16.mxu1 %v2919_v15 }
 0x116   :  { %2709 = vmatprep.mubr.bf16.mxu0 %v2927_v16 }
 0x117   :  { %3253 = vmatpush1.bf16.msra.mxu1 %v3885_v17 }
 0x118   :  { %2729 = vmatpush1.bf16.msra.mxu0 %v3885_v17  ;;  %3238 = vmatprep.subr.bf16.mxu1 %v3894_v18 }
 0x119   :  { %2730 = vmatprep.subr.bf16.mxu0 %v3894_v18 }
 0x11a   :  { %2426 = vmatmul.mubr.bf16.gmra.mrb[12].mxu1 %v2918_v19 }
 0x11b   :  { %2710 = vmatmul.mubr.bf16.gmra.mrb[12].mxu0 %v2926_v20  ;;  %3254 = vmatpush1.bf16.msra.mxu1 %v3892_v21 }
 0x11c   :  { %2731 = vmatpush1.bf16.msra.mxu0 %v3892_v21  ;;  %3239 = vmatprep.subr.bf16.mxu1 %v3897_v22 }
 0x11d   :  { %2732 = vmatprep.subr.bf16.mxu0 %v3897_v22  ;;  %2750 = vmatprep.mubr.bf16.mxu0 %v3924_v23 }
 0x11e   :  { %2770 = vmatprep.mubr.bf16.mxu1 %v3927_v24 }
 0x11f   :  { %3255 = vmatpush1.bf16.msra.mxu1 %v3895_v25 }
 0x120   :  { %2733 = vmatpush1.bf16.msra.mxu0 %v3895_v25  ;;  %3240 = vmatprep.subr.bf16.mxu1 %v3900_v26 }
 0x121   :  { %2734 = vmatprep.subr.bf16.mxu0 %v3900_v26 }
 0x123   :  { %3256 = vmatpush1.bf16.msra.mxu1 %v3898_v27 }
 0x124   :  { %2735 = vmatpush1.bf16.msra.mxu0 %v3898_v27  ;;  %3241 = vmatprep.subr.bf16.mxu1 %v3903_v28 }
 0x125   :  { %2736 = vmatprep.subr.bf16.mxu0 %v3903_v28 }
 0x127   :  { %3257 = vmatpush1.bf16.msra.mxu1 %v3901_v29 }
 0x128   :  { %2737 = vmatpush1.bf16.msra.mxu0 %v3901_v29  ;;  %3242 = vmatprep.subr.bf16.mxu1 %v3906_v30 }
 0x129   :  { %2738 = vmatprep.subr.bf16.mxu0 %v3906_v30 }
 0x12b   :  { %3258 = vmatpush1.bf16.msra.mxu1 %v3904_v31 }
 0x12c   :  { %2739 = vmatpush1.bf16.msra.mxu0 %v3904_v31  ;;  %3243 = vmatprep.subr.bf16.mxu1 %v3909_v32 }
 0x12d   :  { %2740 = vmatprep.subr.bf16.mxu0 %v3909_v32 }
 0x12f   :  { %3259 = vmatpush1.bf16.msra.mxu1 %v3907_v33 }
 0x130   :  { %2741 = vmatpush1.bf16.msra.mxu0 %v3907_v33  ;;  %3244 = vmatprep.subr.bf16.mxu1 %v3912_v34 }
 0x131   :  { %2742 = vmatprep.subr.bf16.mxu0 %v3912_v34 }
 0x133   :  { %3260 = vmatpush1.bf16.msra.mxu1 %v3910_v35 }
 0x134   :  { %2743 = vmatpush1.bf16.msra.mxu0 %v3910_v35  ;;  %3245 = vmatprep.subr.bf16.mxu1 %v3915_v36 }
 0x135   :  { %2744 = vmatprep.subr.bf16.mxu0 %v3915_v36 }
 0x137   :  { %3261 = vmatpush1.bf16.msra.mxu1 %v3913_v37 }
 0x138   :  { %2745 = vmatpush1.bf16.msra.mxu0 %v3913_v37  ;;  %3246 = vmatprep.subr.bf16.mxu1 %v3918_v38 }
 0x139   :  { %2746 = vmatprep.subr.bf16.mxu0 %v3918_v38 }
 0x13b   :  { %3262 = vmatpush1.bf16.msra.mxu1 %v3916_v39 }
 0x13c   :  { %2747 = vmatpush1.bf16.msra.mxu0 %v3916_v39  ;;  %3247 = vmatprep.subr.bf16.mxu1 %v3921_v40 }
 0x13d   :  { %2748 = vmatprep.subr.bf16.mxu0 %v3921_v40 }
 0x13f   :  { %3263 = vmatpush1.bf16.msra.mxu1 %v3919_v41 }
 0x140   :  { %2749 = vmatpush1.bf16.msra.mxu0 %v3919_v41 }
 0x142   :  { %2771 = vmatmul.mubr.bf16.vlgmr.msra.gmra.mrb[16].mxu1 %v3925_v44 }
 0x143   :  { %2751 = vmatmul.mubr.bf16.vlgmr.msra.gmra.mrb[0].mxu0 %v3922_v43  ;;  %2780 = vmatprep.mubr.bf16.mxu1 %v2929_v46 }
 0x144   :  { %2760 = vmatprep.mubr.bf16.mxu0 %v3928_v45 }
 0x14a   :  { %2781 = vmatmul.mubr.bf16.gmra.mrb[20].mxu1 %v2928_v48 }
 0x14b   :  { %2761 = vmatmul.mubr.bf16.gmra.mrb[4].mxu0 %v3931_v47 }
 0x1d5   :  { %v2397_v49 = vpop.f32.mrb[0].mxu1 }
 0x1d6   :  { %v2399_v50 = vpop.f32.mrb[1].mxu1  ;;  %v3264_v28 = vadd.f32 %v2397_v49, %v5017_v62 }
 0x1d7   :  { %v2401_v51 = vpop.f32.mrb[2].mxu1  ;;  %v3266_v29 = vadd.f32 %v2399_v50, %v5019_v63 }
 0x1d8   :  { %v2403_v53 = vpop.f32.mrb[3].mxu1  ;;  %v3268_v32 = vadd.f32 %v2401_v51, %v5017_v62 }
 0x1d9   :  { %v3270_v37 = vadd.f32 %v2403_v53, %v5019_v63 }
 0x1dd   :  { %v5006_v55 = vpop.f32.mrb[4].mxu1 }
 0x1de   :  { %v5008_v56 = vpop.f32.mrb[5].mxu1 }
 0x1df   :  { %v5010_v57 = vpop.f32.mrb[6].mxu1 }
 0x1e0   :  { %v5012_v59 = vpop.f32.mrb[7].mxu1 }
 0x1e5   :  { %v2417_v0 = vpop.f32.mrb[8].mxu1 }
 0x1e6   :  { %v2701_v1 = vpop.f32.mrb[8].mxu0  ;;  %v3280_v2 = vadd.f32 %v2417_v0, %v5017_v62  ;;  %v2419_v3 = vpop.f32.mrb[9].mxu1  ;;  %v3272_v0 = vadd.f32 %v5006_v55, %v5017_v62 }
 0x1e7   :  { %v2703_v4 = vpop.f32.mrb[9].mxu0  ;;  %v3283_v5 = vadd.f32 %v2419_v3, %v5019_v63  ;;  %v2421_v6 = vpop.f32.mrb[10].mxu1 }
 0x1e8   :  { %v2705_v7 = vpop.f32.mrb[10].mxu0  ;;  %v3281_v8 = vadd.f32 %v3280_v2, %v2701_v1  ;;  %v3286_v9 = vadd.f32 %v2421_v6, %v5017_v62  ;;  %v2423_v10 = vpop.f32.mrb[11].mxu1  ;;  %v3274_v1 = vadd.f32 %v5008_v56, %v5019_v63  ;;  %v3276_v6 = vadd.f32 %v5010_v57, %v5017_v62 }
 0x1e9   :  { %v2707_v11 = vpop.f32.mrb[11].mxu0  ;;  %v3284_v12 = vadd.f32 %v3283_v5, %v2703_v4  ;;  %v3289_v13 = vadd.f32 %v2423_v10, %v5019_v63  ;;  %v3278_v56 = vadd.f32 %v5012_v59, %v5019_v63 }
 0x1ea   :  { %v3287_v14 = vadd.f32 %v3286_v9, %v2705_v7 }
 0x1eb   :  { %v3290_v15 = vadd.f32 %v3289_v13, %v2707_v11 }
 0x1ed   :  { %v2427_v16 = vpop.f32.mrb[12].mxu1 }
 0x1ee   :  { %v2711_v17 = vpop.f32.mrb[12].mxu0  ;;  %v3292_v18 = vadd.f32 %v2427_v16, %v5017_v62  ;;  %v2429_v19 = vpop.f32.mrb[13].mxu1 }
 0x1ef   :  { %v2713_v20 = vpop.f32.mrb[13].mxu0  ;;  %v3295_v21 = vadd.f32 %v2429_v19, %v5019_v63  ;;  %v2431_v22 = vpop.f32.mrb[14].mxu1 }
 0x1f0   :  { %v2715_v23 = vpop.f32.mrb[14].mxu0  ;;  %v3293_v24 = vadd.f32 %v3292_v18, %v2711_v17  ;;  %v2432_v25 = vpop.f32.mrb[15].mxu1 }
 0x1f1   :  { %v2716_v26 = vpop.f32.mrb[15].mxu0  ;;  %v3296_v27 = vadd.f32 %v3295_v21, %v2713_v20 }
 0x215   :  { %v2772_v31 = vpop.f32.mrb[16].mxu1 }
 0x216   :  { %v2752_v30 = vpop.f32.mrb[0].mxu0  ;;  %v3282_v34 = vadd.f32 %v3281_v8, %v2772_v31  ;;  %v2774_v36 = vpop.f32.mrb[17].mxu1 }
 0x217   :  { %v3265_v33 = vadd.f32 %v3264_v28, %v2752_v30  ;;  %v2754_v35 = vpop.f32.mrb[1].mxu0  ;;  %v3285_v39 = vadd.f32 %v3284_v12, %v2774_v36  ;;  %v2776_v41 = vpop.f32.mrb[18].mxu1 }
 0x218   :  { %v3267_v38 = vadd.f32 %v3266_v29, %v2754_v35  ;;  %v2756_v40 = vpop.f32.mrb[2].mxu0  ;;  %v2797_v43 = vmax.f32 %v3282_v34, 0.0  ;;  %v3288_v45 = vadd.f32 %v3287_v14, %v2776_v41  ;;  %v2778_v47 = vpop.f32.mrb[19].mxu1 }
 0x219   :  { %v2789_v42 = vmax.f32 %v3265_v33, 0.0  ;;  %v3269_v44 = vadd.f32 %v3268_v32, %v2756_v40  ;;  %v2758_v46 = vpop.f32.mrb[3].mxu0  ;;  %v2798_v49 = vmax.f32 %v3285_v39, 0.0  ;;  %v3291_v51 = vadd.f32 %v3290_v15, %v2778_v47 }
 0x21a   :  { %v2790_v48 = vmax.f32 %v3267_v38, 0.0  ;;  %v3271_v50 = vadd.f32 %v3270_v37, %v2758_v46  ;;  %v2799_v54 = vmax.f32 %v3288_v45, 0.0 }
 0x21b   :  { %v2791_v52 = vmax.f32 %v3269_v44, 0.0  ;;  %v3229_v60 = vpack.c.bf16 %v2798_v49, %v2797_v43  ;;  %v2800_v53 = vmax.f32 %v3291_v51, 0.0 }
 0x21c   :  { %v3225_v58 = vpack.c.bf16 %v2790_v48, %v2789_v42  ;;  %v2792_v61 = vmax.f32 %v3271_v50, 0.0 }
 0x21d   :  { %2851 = vst [vmem:[%s5063_s3 + $0x20] sm:$0xff] %v3229_v60  ;;  %v3230_v3 = vpack.c.bf16 %v2800_v53, %v2799_v54  ;;  %v2782_v5 = vpop.f32.mrb[20].mxu1 }
 0x21e   :  { %2847 = vst [vmem:[%s5063_s3] sm:$0xff] %v3225_v58  ;;  %v3226_v2 = vpack.c.bf16 %v2792_v61, %v2791_v52  ;;  %v2762_v4 = vpop.f32.mrb[4].mxu0  ;;  %v3294_v55 = vadd.f32 %v3293_v24, %v2782_v5  ;;  %v2784_v9 = vpop.f32.mrb[21].mxu1 }
 0x21f   :  { %v3273_v7 = vadd.f32 %v3272_v0, %v2762_v4  ;;  %v2764_v8 = vpop.f32.mrb[5].mxu0  ;;  %2852 = vst [vmem:[%s5063_s3 + $0x28] sm:$0xff] %v3230_v3  ;;  %v3297_v11 = vadd.f32 %v3296_v27, %v2784_v9  ;;  %v2786_v13 = vpop.f32.mrb[22].mxu1 }
 0x220   :  { %2848 = vst [vmem:[%s5063_s3 + $0x8] sm:$0xff] %v3226_v2  ;;  %v3275_v10 = vadd.f32 %v3274_v1, %v2764_v8  ;;  %v2766_v12 = vpop.f32.mrb[6].mxu0  ;;  %v2801_v62 = vmax.f32 %v3294_v55, 0.0  ;;  %v2787_v16 = vpop.f32.mrb[23].mxu1 }
 0x221   :  { %v2793_v57 = vmax.f32 %v3273_v7, 0.0  ;;  %v3277_v14 = vadd.f32 %v3276_v6, %v2766_v12  ;;  %v2768_v15 = vpop.f32.mrb[7].mxu0  ;;  %v2802_v18 = vmax.f32 %v3297_v11, 0.0 }
 0x222   :  { %v2794_v17 = vmax.f32 %v3275_v10, 0.0  ;;  %v3279_v59 = vadd.f32 %v3278_v56, %v2768_v15 }
 0x223   :  { %v2795_v63 = vmax.f32 %v3277_v14, 0.0  ;;  %v3231_v20 = vpack.c.bf16 %v2802_v18, %v2801_v62 }
 0x224   :  { %v3227_v19 = vpack.c.bf16 %v2794_v17, %v2793_v57  ;;  %v2796_v21 = vmax.f32 %v3279_v59, 0.0 }
 0x225   :  { %2853 = vst [vmem:[%s5063_s3 + $0x30] sm:$0x11] %v3231_v20 }
 0x226   :  { %2849 = vst [vmem:[%s5063_s3 + $0x10] sm:$0xff] %v3227_v19  ;;  %v3228_v22 = vpack.c.bf16 %v2796_v21, %v2795_v63 }
 0x228   :  { %2850 = vst [vmem:[%s5063_s3 + $0x18] sm:$0xff] %v3228_v22 }

</bundles_post_ra>
